<compile_context>
chip_gen: v5e
topology: v5e:2x2
jax: 0.10.0
libtpu: 0.0.40
codegen_flags: <defaults>
</compile_context>

<pallas_src>
import math

import jax
import jax.numpy as jnp
from jax.experimental import pallas as pl
from jax.experimental.pallas import tpu as pltpu

CIN, COUT = 1, 5
KH = KW = 3
STRIDE = 3
EPS = 1e-5                     # torch BatchNorm2d default
LG = 128                       # register-block lane width (one vreg of lanes)


def _make_conv_stats_kernel(k_taps, hw_chunks, n_lg, cout):
    """conv0 as register-blocked VPU taps; emits bias-free per-sample sums.

    p_ref : (K, HW, B)   VMEM  im2col patches, batch on lanes
    w_ref : (COUT, K)    SMEM  conv weights (scalar reads, hoisted)
    s_ref : (COUT, B)    VMEM  out: S0[c,n] = sum_hw(conv(x)[n,c])    (no bias)
    q_ref : (COUT, B)    VMEM  out: Q0[c,n] = sum_hw(conv(x)[n,c]^2)  (no bias)
    """

    def kernel(p_ref, w_ref, s_ref, q_ref):
        # Hoist the 5x9 scalar weights out of all loops (SMEM scalar reads).
        w = [[w_ref[c, k] for k in range(k_taps)] for c in range(cout)]
        for j in range(n_lg):                        # lane groups within the tile
            j0 = j * LG
            s_acc = [None] * cout
            q_acc = [None] * cout
            for (r0, rc) in hw_chunks:               # <=8-row chunks of the HW axis
                # Load each tap chunk ONCE; reuse it for all 5 channels.
                taps = [p_ref[k, r0:r0 + rc, j0:j0 + LG] for k in range(k_taps)]
                for c in range(cout):
                    y = w[c][0] * taps[0]
                    for k in range(1, k_taps):
                        y = y + w[c][k] * taps[k]    # (rc, LG), stays in vregs
                    sy = jnp.sum(y, axis=0, keepdims=True)         # (1, LG)
                    qy = jnp.sum(y * y, axis=0, keepdims=True)     # (1, LG)
                    s_acc[c] = sy if s_acc[c] is None else s_acc[c] + sy
                    q_acc[c] = qy if q_acc[c] is None else q_acc[c] + qy
            for c in range(cout):                    # tiny (1, LG) row stores
                s_ref[c:c + 1, j0:j0 + LG] = s_acc[c]
                q_ref[c:c + 1, j0:j0 + LG] = q_acc[c]

    return kernel


def _make_bn_head_kernel(cout, hw, n_valid):
    """Batch statistics + exact BN/sum head from the sufficient statistics.

      sum_hw(BN(+y)[n,c]) = +gamma_c*inv_c*(S0[n,c] - HW*mu0_c) + HW*beta_c
      sum_hw(BN(-y)[n,c]) = -gamma_c*inv_c*(S0[n,c] - HW*mu0_c) + HW*beta_c

    Padded lanes of S0/Q0 are exact zeros, so plain lane sums divided by the
    static true count give the batch statistics with no mask; the conv bias
    cancels analytically everywhere.
    """
    hw_f = float(hw)
    inv_cnt = 1.0 / float(n_valid * hw)

    def kernel(s_ref, q_ref, g1_ref, b1_ref, g2_ref, b2_ref, o_ref):
        out1 = None
        out2 = None
        bsum1 = 0.0
        bsum2 = 0.0
        for c in range(cout):
            s0 = s_ref[c:c + 1, :]                                # (1, Np)
            q0 = q_ref[c:c + 1, :]
            mu0 = jnp.sum(s0, axis=1, keepdims=True) * inv_cnt    # (1, 1)
            ey2 = jnp.sum(q0, axis=1, keepdims=True) * inv_cnt    # (1, 1)
            inv = jax.lax.rsqrt(ey2 - mu0 * mu0 + EPS)            # 1/std, biased var
            cen = s0 - hw_f * mu0                                 # (1, Np)
            t1 = (g1_ref[c] * inv) * cen
            t2 = (g2_ref[c] * inv) * (-cen)
            out1 = t1 if out1 is None else out1 + t1
            out2 = t2 if out2 is None else out2 + t2
            bsum1 = bsum1 + b1_ref[c]
            bsum2 = bsum2 + b2_ref[c]
        o_ref[0:1, :] = out1 + hw_f * bsum1                       # lane-dense rows
        o_ref[1:2, :] = out2 + hw_f * bsum2

    return kernel


def batch_norm_conv_net(x, conv_w, conv_b, bn1_w, bn1_b, bn2_w, bn2_b):
    """x: (N, 1, H, W) f32 NCHW.  Returns (N, 2) f32."""
    del conv_b  # cancels exactly in train-mode BatchNorm (see module docstring)
    n, cin, h_in, w_in = x.shape
    assert cin == CIN
    oh = (h_in - KH) // STRIDE + 1
    ow = (w_in - KW) // STRIDE + 1
    hw = oh * ow
    k_taps = KH * KW * cin

    # Batch tiling: lane-pad to 128; pick b_tile so the grid has >= 4 steps
    # whenever N allows (pipelining + both v7x cores), capped at 512 lanes.
    n_pad = ((n + 127) // 128) * 128
    b_tile = math.gcd(n_pad, 512)
    while b_tile > LG and n_pad // b_tile < 4:
        b_tile //= 2
    n_lg = b_tile // LG

    # <=8-row sublane chunks of the HW axis for the register-blocked kernel.
    hw_chunks = []
    r = 0
    while r < hw:
        rc = min(8, hw - r)
        hw_chunks.append((r, rc))
        r += rc

    # Layout glue: one fused crop/cast/reshape/transpose -> (K, HW, N) im2col
    # patches with batch on lanes (stride == kernel, so no data duplication).
    xc = x[:, 0, :oh * STRIDE, :ow * STRIDE].astype(jnp.float32)     # (N, 3*oh, 3*ow)
    xr = xc.reshape(n, oh, KH, ow, KW)
    patches = jnp.transpose(xr, (2, 4, 1, 3, 0)).reshape(k_taps, hw, n)
    if n_pad != n:
        patches = jnp.pad(patches, ((0, 0), (0, 0), (0, n_pad - n)))

    w_mat = conv_w.reshape(COUT, k_taps).astype(jnp.float32)         # (5, 9) SMEM

    # --- kernel 1: register-blocked conv taps + per-sample channel sums ---
    conv_kernel = _make_conv_stats_kernel(k_taps, hw_chunks, n_lg, COUT)
    s0, q0 = pl.pallas_call(
        conv_kernel,
        out_shape=(jax.ShapeDtypeStruct((COUT, n_pad), jnp.float32),
                   jax.ShapeDtypeStruct((COUT, n_pad), jnp.float32)),
        grid_spec=pltpu.PrefetchScalarGridSpec(
            num_scalar_prefetch=0,
            grid=(n_pad // b_tile,),
            in_specs=[
                pl.BlockSpec((k_taps, hw, b_tile), lambda t: (0, 0, t)),
                pl.BlockSpec(memory_space=pltpu.MemorySpace.SMEM),
            ],
            out_specs=[
                pl.BlockSpec((COUT, b_tile), lambda t: (0, t)),
                pl.BlockSpec((COUT, b_tile), lambda t: (0, t)),
            ],
        ),
        compiler_params=pltpu.CompilerParams(
            dimension_semantics=("parallel",)),
    )(patches, w_mat)

    # --- kernel 2: batch stats + BN/sum head, lane-dense (2, Np) output ---
    # TODO(synk): for N >~ 500K, tile this reduction over batch blocks instead
    # of one full-width block to stay under the scoped-VMEM limit.
    head_kernel = _make_bn_head_kernel(COUT, hw, n)
    out = pl.pallas_call(
        head_kernel,
        out_shape=jax.ShapeDtypeStruct((2, n_pad), jnp.float32),
        grid_spec=pltpu.PrefetchScalarGridSpec(
            num_scalar_prefetch=0,
            grid=(1,),
            in_specs=[
                pl.BlockSpec((COUT, n_pad), lambda i: (0, 0)),
                pl.BlockSpec((COUT, n_pad), lambda i: (0, 0)),
                pl.BlockSpec(memory_space=pltpu.MemorySpace.SMEM),
                pl.BlockSpec(memory_space=pltpu.MemorySpace.SMEM),
                pl.BlockSpec(memory_space=pltpu.MemorySpace.SMEM),
                pl.BlockSpec(memory_space=pltpu.MemorySpace.SMEM),
            ],
            out_specs=pl.BlockSpec((2, n_pad), lambda i: (0, 0)),
        ),
        compiler_params=pltpu.CompilerParams(
            dimension_semantics=("arbitrary",)),
    )(s0, q0,
      bn1_w.astype(jnp.float32), bn1_b.astype(jnp.float32),
      bn2_w.astype(jnp.float32), bn2_b.astype(jnp.float32))

    return out[:, :n].T                                              # (N, 2)


def _reference(x, conv_w, conv_b, bn1_w, bn1_b, bn2_w, bn2_b):
    """Pure-JAX reference mirroring the torch module in training mode."""
    y = jax.lax.conv_general_dilated(
        x, conv_w, window_strides=(STRIDE, STRIDE), padding="VALID",
        dimension_numbers=("NCHW", "OIHW", "NCHW"),
        precision=jax.lax.Precision.HIGHEST)
    y = y + conv_b.reshape(1, COUT, 1, 1)

    def bn_train(z, g, b):
        mu = jnp.mean(z, axis=(0, 2, 3), keepdims=True)
        var = jnp.mean((z - mu) ** 2, axis=(0, 2, 3), keepdims=True)
        return (z - mu) * jax.lax.rsqrt(var + EPS) * g.reshape(1, COUT, 1, 1) \
            + b.reshape(1, COUT, 1, 1)

    o1 = bn_train(y, bn1_w, bn1_b).sum(axis=(1, 2, 3))
    o2 = bn_train(-y, bn2_w, bn2_b).sum(axis=(1, 2, 3))
    return jnp.stack([o1, o2], axis=1)


if __name__ == "__main__":
    key = jax.random.PRNGKey(0)
    ks = jax.random.split(key, 7)

    N, H, W = 4, 28, 28
    x = jax.random.normal(ks[0], (N, CIN, H, W), jnp.float32)
    conv_w = 0.4 * jax.random.normal(ks[1], (COUT, CIN, KH, KW), jnp.float32)
    conv_b = 0.1 * jax.random.normal(ks[2], (COUT,), jnp.float32)
    bn1_w = 1.0 + 0.1 * jax.random.normal(ks[3], (COUT,), jnp.float32)
    bn1_b = 0.1 * jax.random.normal(ks[4], (COUT,), jnp.float32)
    bn2_w = 1.0 + 0.1 * jax.random.normal(ks[5], (COUT,), jnp.float32)
    bn2_b = 0.1 * jax.random.normal(ks[6], (COUT,), jnp.float32)

    run = jax.jit(batch_norm_conv_net)
    out = run(x, conv_w, conv_b, bn1_w, bn1_b, bn2_w, bn2_b)
    jax.block_until_ready(out)

    ref = _reference(x, conv_w, conv_b, bn1_w, bn1_b, bn2_w, bn2_b)
    assert out.shape == (N, 2), out.shape
    assert jnp.allclose(out, ref, atol=2e-3, rtol=2e-3), (out, ref)

    print("KERNEL_OK")
</pallas_src>

<mosaic_0001>
module attributes {stable_mosaic.version = 11 : i64} {
  func.func @kernel(%arg0: i32, %arg1: memref<5x128xf32, #tpu.memory_space<vmem>>, %arg2: memref<5x128xf32, #tpu.memory_space<vmem>>, %arg3: memref<5xf32, #tpu.memory_space<smem>>, %arg4: memref<5xf32, #tpu.memory_space<smem>>, %arg5: memref<5xf32, #tpu.memory_space<smem>>, %arg6: memref<5xf32, #tpu.memory_space<smem>>, %arg7: memref<2x128xf32, #tpu.memory_space<vmem>>) attributes {dimension_semantics = [#tpu.dimension_semantics<arbitrary>], iteration_bounds = array<i64: 1>, scalar_prefetch = 0 : i64, scratch_operands = 0 : i64, tpu.core_type = #tpu.core_type<tc>, window_params = [{pipeline_mode = #tpu.pipeline_mode<synchronous>, transform_indices = @transform_0, window_bounds = array<i64: 5, 128>}, {pipeline_mode = #tpu.pipeline_mode<synchronous>, transform_indices = @transform_1, window_bounds = array<i64: 5, 128>}, {transform_indices = @transform_2, window_bounds = array<i64: 5>}, {transform_indices = @transform_3, window_bounds = array<i64: 5>}, {transform_indices = @transform_4, window_bounds = array<i64: 5>}, {transform_indices = @transform_5, window_bounds = array<i64: 5>}, {pipeline_mode = #tpu.pipeline_mode<synchronous>, transform_indices = @transform_6, window_bounds = array<i64: 2, 128>}]} {
    %c0 = arith.constant 0 : index
    %c0_0 = arith.constant 0 : index
    %0 = vector.load %arg1[%c0, %c0_0] : memref<5x128xf32, #tpu.memory_space<vmem>>, vector<1x128xf32>
    %c0_1 = arith.constant 0 : index
    %c0_2 = arith.constant 0 : index
    %1 = vector.load %arg2[%c0_1, %c0_2] : memref<5x128xf32, #tpu.memory_space<vmem>>, vector<1x128xf32>
    %cst = arith.constant dense<0.000000e+00> : vector<1xf32>
    %2 = vector.multi_reduction <add>, %0, %cst [1] : vector<1x128xf32> to vector<1xf32>
    %3 = vector.shape_cast %2 : vector<1xf32> to vector<1x1xf32>
    %cst_3 = arith.constant 0.00308641978 : f32
    %4 = vector.broadcast %cst_3 : f32 to vector<1x1xf32>
    %5 = arith.mulf %3, %4 : vector<1x1xf32>
    %cst_4 = arith.constant dense<0.000000e+00> : vector<1xf32>
    %6 = vector.multi_reduction <add>, %1, %cst_4 [1] : vector<1x128xf32> to vector<1xf32>
    %7 = vector.shape_cast %6 : vector<1xf32> to vector<1x1xf32>
    %cst_5 = arith.constant 0.00308641978 : f32
    %8 = vector.broadcast %cst_5 : f32 to vector<1x1xf32>
    %9 = arith.mulf %7, %8 : vector<1x1xf32>
    %10 = arith.mulf %5, %5 : vector<1x1xf32>
    %11 = arith.subf %9, %10 : vector<1x1xf32>
    %cst_6 = arith.constant 9.99999974E-6 : f32
    %12 = vector.broadcast %cst_6 : f32 to vector<1x1xf32>
    %13 = arith.addf %11, %12 : vector<1x1xf32>
    %14 = math.rsqrt %13 : vector<1x1xf32>
    %cst_7 = arith.constant 8.100000e+01 : f32
    %15 = vector.broadcast %cst_7 : f32 to vector<1x1xf32>
    %16 = arith.mulf %15, %5 : vector<1x1xf32>
    %17 = vector.broadcast %16 : vector<1x1xf32> to vector<1x128xf32>
    %18 = arith.subf %0, %17 : vector<1x128xf32>
    %c0_8 = arith.constant 0 : index
    %19 = memref.load %arg3[%c0_8] : memref<5xf32, #tpu.memory_space<smem>>
    %20 = vector.broadcast %19 : f32 to vector<1x1xf32>
    %21 = arith.mulf %20, %14 : vector<1x1xf32>
    %22 = vector.broadcast %21 : vector<1x1xf32> to vector<1x128xf32>
    %23 = arith.mulf %22, %18 : vector<1x128xf32>
    %c0_9 = arith.constant 0 : index
    %24 = memref.load %arg5[%c0_9] : memref<5xf32, #tpu.memory_space<smem>>
    %25 = vector.broadcast %24 : f32 to vector<1x1xf32>
    %26 = arith.mulf %25, %14 : vector<1x1xf32>
    %cst_10 = arith.constant 0.000000e+00 : f32
    %27 = vector.broadcast %cst_10 : f32 to vector<1x128xf32>
    %28 = arith.subf %27, %18 : vector<1x128xf32>
    %29 = vector.broadcast %26 : vector<1x1xf32> to vector<1x128xf32>
    %30 = arith.mulf %29, %28 : vector<1x128xf32>
    %c0_11 = arith.constant 0 : index
    %31 = memref.load %arg4[%c0_11] : memref<5xf32, #tpu.memory_space<smem>>
    %cst_12 = arith.constant 0.000000e+00 : f32
    %32 = arith.addf %cst_12, %31 : f32
    %c0_13 = arith.constant 0 : index
    %33 = memref.load %arg6[%c0_13] : memref<5xf32, #tpu.memory_space<smem>>
    %cst_14 = arith.constant 0.000000e+00 : f32
    %34 = arith.addf %cst_14, %33 : f32
    %c1 = arith.constant 1 : index
    %c0_15 = arith.constant 0 : index
    %35 = vector.load %arg1[%c1, %c0_15] : memref<5x128xf32, #tpu.memory_space<vmem>>, vector<1x128xf32>
    %c1_16 = arith.constant 1 : index
    %c0_17 = arith.constant 0 : index
    %36 = vector.load %arg2[%c1_16, %c0_17] : memref<5x128xf32, #tpu.memory_space<vmem>>, vector<1x128xf32>
    %cst_18 = arith.constant dense<0.000000e+00> : vector<1xf32>
    %37 = vector.multi_reduction <add>, %35, %cst_18 [1] : vector<1x128xf32> to vector<1xf32>
    %38 = vector.shape_cast %37 : vector<1xf32> to vector<1x1xf32>
    %cst_19 = arith.constant 0.00308641978 : f32
    %39 = vector.broadcast %cst_19 : f32 to vector<1x1xf32>
    %40 = arith.mulf %38, %39 : vector<1x1xf32>
    %cst_20 = arith.constant dense<0.000000e+00> : vector<1xf32>
    %41 = vector.multi_reduction <add>, %36, %cst_20 [1] : vector<1x128xf32> to vector<1xf32>
    %42 = vector.shape_cast %41 : vector<1xf32> to vector<1x1xf32>
    %cst_21 = arith.constant 0.00308641978 : f32
    %43 = vector.broadcast %cst_21 : f32 to vector<1x1xf32>
    %44 = arith.mulf %42, %43 : vector<1x1xf32>
    %45 = arith.mulf %40, %40 : vector<1x1xf32>
    %46 = arith.subf %44, %45 : vector<1x1xf32>
    %cst_22 = arith.constant 9.99999974E-6 : f32
    %47 = vector.broadcast %cst_22 : f32 to vector<1x1xf32>
    %48 = arith.addf %46, %47 : vector<1x1xf32>
    %49 = math.rsqrt %48 : vector<1x1xf32>
    %cst_23 = arith.constant 8.100000e+01 : f32
    %50 = vector.broadcast %cst_23 : f32 to vector<1x1xf32>
    %51 = arith.mulf %50, %40 : vector<1x1xf32>
    %52 = vector.broadcast %51 : vector<1x1xf32> to vector<1x128xf32>
    %53 = arith.subf %35, %52 : vector<1x128xf32>
    %c1_24 = arith.constant 1 : index
    %54 = memref.load %arg3[%c1_24] : memref<5xf32, #tpu.memory_space<smem>>
    %55 = vector.broadcast %54 : f32 to vector<1x1xf32>
    %56 = arith.mulf %55, %49 : vector<1x1xf32>
    %57 = vector.broadcast %56 : vector<1x1xf32> to vector<1x128xf32>
    %58 = arith.mulf %57, %53 : vector<1x128xf32>
    %c1_25 = arith.constant 1 : index
    %59 = memref.load %arg5[%c1_25] : memref<5xf32, #tpu.memory_space<smem>>
    %60 = vector.broadcast %59 : f32 to vector<1x1xf32>
    %61 = arith.mulf %60, %49 : vector<1x1xf32>
    %cst_26 = arith.constant 0.000000e+00 : f32
    %62 = vector.broadcast %cst_26 : f32 to vector<1x128xf32>
    %63 = arith.subf %62, %53 : vector<1x128xf32>
    %64 = vector.broadcast %61 : vector<1x1xf32> to vector<1x128xf32>
    %65 = arith.mulf %64, %63 : vector<1x128xf32>
    %66 = arith.addf %23, %58 : vector<1x128xf32>
    %67 = arith.addf %30, %65 : vector<1x128xf32>
    %c1_27 = arith.constant 1 : index
    %68 = memref.load %arg4[%c1_27] : memref<5xf32, #tpu.memory_space<smem>>
    %69 = arith.addf %32, %68 : f32
    %c1_28 = arith.constant 1 : index
    %70 = memref.load %arg6[%c1_28] : memref<5xf32, #tpu.memory_space<smem>>
    %71 = arith.addf %34, %70 : f32
    %c2 = arith.constant 2 : index
    %c0_29 = arith.constant 0 : index
    %72 = vector.load %arg1[%c2, %c0_29] : memref<5x128xf32, #tpu.memory_space<vmem>>, vector<1x128xf32>
    %c2_30 = arith.constant 2 : index
    %c0_31 = arith.constant 0 : index
    %73 = vector.load %arg2[%c2_30, %c0_31] : memref<5x128xf32, #tpu.memory_space<vmem>>, vector<1x128xf32>
    %cst_32 = arith.constant dense<0.000000e+00> : vector<1xf32>
    %74 = vector.multi_reduction <add>, %72, %cst_32 [1] : vector<1x128xf32> to vector<1xf32>
    %75 = vector.shape_cast %74 : vector<1xf32> to vector<1x1xf32>
    %cst_33 = arith.constant 0.00308641978 : f32
    %76 = vector.broadcast %cst_33 : f32 to vector<1x1xf32>
    %77 = arith.mulf %75, %76 : vector<1x1xf32>
    %cst_34 = arith.constant dense<0.000000e+00> : vector<1xf32>
    %78 = vector.multi_reduction <add>, %73, %cst_34 [1] : vector<1x128xf32> to vector<1xf32>
    %79 = vector.shape_cast %78 : vector<1xf32> to vector<1x1xf32>
    %cst_35 = arith.constant 0.00308641978 : f32
    %80 = vector.broadcast %cst_35 : f32 to vector<1x1xf32>
    %81 = arith.mulf %79, %80 : vector<1x1xf32>
    %82 = arith.mulf %77, %77 : vector<1x1xf32>
    %83 = arith.subf %81, %82 : vector<1x1xf32>
    %cst_36 = arith.constant 9.99999974E-6 : f32
    %84 = vector.broadcast %cst_36 : f32 to vector<1x1xf32>
    %85 = arith.addf %83, %84 : vector<1x1xf32>
    %86 = math.rsqrt %85 : vector<1x1xf32>
    %cst_37 = arith.constant 8.100000e+01 : f32
    %87 = vector.broadcast %cst_37 : f32 to vector<1x1xf32>
    %88 = arith.mulf %87, %77 : vector<1x1xf32>
    %89 = vector.broadcast %88 : vector<1x1xf32> to vector<1x128xf32>
    %90 = arith.subf %72, %89 : vector<1x128xf32>
    %c2_38 = arith.constant 2 : index
    %91 = memref.load %arg3[%c2_38] : memref<5xf32, #tpu.memory_space<smem>>
    %92 = vector.broadcast %91 : f32 to vector<1x1xf32>
    %93 = arith.mulf %92, %86 : vector<1x1xf32>
    %94 = vector.broadcast %93 : vector<1x1xf32> to vector<1x128xf32>
    %95 = arith.mulf %94, %90 : vector<1x128xf32>
    %c2_39 = arith.constant 2 : index
    %96 = memref.load %arg5[%c2_39] : memref<5xf32, #tpu.memory_space<smem>>
    %97 = vector.broadcast %96 : f32 to vector<1x1xf32>
    %98 = arith.mulf %97, %86 : vector<1x1xf32>
    %cst_40 = arith.constant 0.000000e+00 : f32
    %99 = vector.broadcast %cst_40 : f32 to vector<1x128xf32>
    %100 = arith.subf %99, %90 : vector<1x128xf32>
    %101 = vector.broadcast %98 : vector<1x1xf32> to vector<1x128xf32>
    %102 = arith.mulf %101, %100 : vector<1x128xf32>
    %103 = arith.addf %66, %95 : vector<1x128xf32>
    %104 = arith.addf %67, %102 : vector<1x128xf32>
    %c2_41 = arith.constant 2 : index
    %105 = memref.load %arg4[%c2_41] : memref<5xf32, #tpu.memory_space<smem>>
    %106 = arith.addf %69, %105 : f32
    %c2_42 = arith.constant 2 : index
    %107 = memref.load %arg6[%c2_42] : memref<5xf32, #tpu.memory_space<smem>>
    %108 = arith.addf %71, %107 : f32
    %c3 = arith.constant 3 : index
    %c0_43 = arith.constant 0 : index
    %109 = vector.load %arg1[%c3, %c0_43] : memref<5x128xf32, #tpu.memory_space<vmem>>, vector<1x128xf32>
    %c3_44 = arith.constant 3 : index
    %c0_45 = arith.constant 0 : index
    %110 = vector.load %arg2[%c3_44, %c0_45] : memref<5x128xf32, #tpu.memory_space<vmem>>, vector<1x128xf32>
    %cst_46 = arith.constant dense<0.000000e+00> : vector<1xf32>
    %111 = vector.multi_reduction <add>, %109, %cst_46 [1] : vector<1x128xf32> to vector<1xf32>
    %112 = vector.shape_cast %111 : vector<1xf32> to vector<1x1xf32>
    %cst_47 = arith.constant 0.00308641978 : f32
    %113 = vector.broadcast %cst_47 : f32 to vector<1x1xf32>
    %114 = arith.mulf %112, %113 : vector<1x1xf32>
    %cst_48 = arith.constant dense<0.000000e+00> : vector<1xf32>
    %115 = vector.multi_reduction <add>, %110, %cst_48 [1] : vector<1x128xf32> to vector<1xf32>
    %116 = vector.shape_cast %115 : vector<1xf32> to vector<1x1xf32>
    %cst_49 = arith.constant 0.00308641978 : f32
    %117 = vector.broadcast %cst_49 : f32 to vector<1x1xf32>
    %118 = arith.mulf %116, %117 : vector<1x1xf32>
    %119 = arith.mulf %114, %114 : vector<1x1xf32>
    %120 = arith.subf %118, %119 : vector<1x1xf32>
    %cst_50 = arith.constant 9.99999974E-6 : f32
    %121 = vector.broadcast %cst_50 : f32 to vector<1x1xf32>
    %122 = arith.addf %120, %121 : vector<1x1xf32>
    %123 = math.rsqrt %122 : vector<1x1xf32>
    %cst_51 = arith.constant 8.100000e+01 : f32
    %124 = vector.broadcast %cst_51 : f32 to vector<1x1xf32>
    %125 = arith.mulf %124, %114 : vector<1x1xf32>
    %126 = vector.broadcast %125 : vector<1x1xf32> to vector<1x128xf32>
    %127 = arith.subf %109, %126 : vector<1x128xf32>
    %c3_52 = arith.constant 3 : index
    %128 = memref.load %arg3[%c3_52] : memref<5xf32, #tpu.memory_space<smem>>
    %129 = vector.broadcast %128 : f32 to vector<1x1xf32>
    %130 = arith.mulf %129, %123 : vector<1x1xf32>
    %131 = vector.broadcast %130 : vector<1x1xf32> to vector<1x128xf32>
    %132 = arith.mulf %131, %127 : vector<1x128xf32>
    %c3_53 = arith.constant 3 : index
    %133 = memref.load %arg5[%c3_53] : memref<5xf32, #tpu.memory_space<smem>>
    %134 = vector.broadcast %133 : f32 to vector<1x1xf32>
    %135 = arith.mulf %134, %123 : vector<1x1xf32>
    %cst_54 = arith.constant 0.000000e+00 : f32
    %136 = vector.broadcast %cst_54 : f32 to vector<1x128xf32>
    %137 = arith.subf %136, %127 : vector<1x128xf32>
    %138 = vector.broadcast %135 : vector<1x1xf32> to vector<1x128xf32>
    %139 = arith.mulf %138, %137 : vector<1x128xf32>
    %140 = arith.addf %103, %132 : vector<1x128xf32>
    %141 = arith.addf %104, %139 : vector<1x128xf32>
    %c3_55 = arith.constant 3 : index
    %142 = memref.load %arg4[%c3_55] : memref<5xf32, #tpu.memory_space<smem>>
    %143 = arith.addf %106, %142 : f32
    %c3_56 = arith.constant 3 : index
    %144 = memref.load %arg6[%c3_56] : memref<5xf32, #tpu.memory_space<smem>>
    %145 = arith.addf %108, %144 : f32
    %c4 = arith.constant 4 : index
    %c0_57 = arith.constant 0 : index
    %146 = vector.load %arg1[%c4, %c0_57] : memref<5x128xf32, #tpu.memory_space<vmem>>, vector<1x128xf32>
    %c4_58 = arith.constant 4 : index
    %c0_59 = arith.constant 0 : index
    %147 = vector.load %arg2[%c4_58, %c0_59] : memref<5x128xf32, #tpu.memory_space<vmem>>, vector<1x128xf32>
    %cst_60 = arith.constant dense<0.000000e+00> : vector<1xf32>
    %148 = vector.multi_reduction <add>, %146, %cst_60 [1] : vector<1x128xf32> to vector<1xf32>
    %149 = vector.shape_cast %148 : vector<1xf32> to vector<1x1xf32>
    %cst_61 = arith.constant 0.00308641978 : f32
    %150 = vector.broadcast %cst_61 : f32 to vector<1x1xf32>
    %151 = arith.mulf %149, %150 : vector<1x1xf32>
    %cst_62 = arith.constant dense<0.000000e+00> : vector<1xf32>
    %152 = vector.multi_reduction <add>, %147, %cst_62 [1] : vector<1x128xf32> to vector<1xf32>
    %153 = vector.shape_cast %152 : vector<1xf32> to vector<1x1xf32>
    %cst_63 = arith.constant 0.00308641978 : f32
    %154 = vector.broadcast %cst_63 : f32 to vector<1x1xf32>
    %155 = arith.mulf %153, %154 : vector<1x1xf32>
    %156 = arith.mulf %151, %151 : vector<1x1xf32>
    %157 = arith.subf %155, %156 : vector<1x1xf32>
    %cst_64 = arith.constant 9.99999974E-6 : f32
    %158 = vector.broadcast %cst_64 : f32 to vector<1x1xf32>
    %159 = arith.addf %157, %158 : vector<1x1xf32>
    %160 = math.rsqrt %159 : vector<1x1xf32>
    %cst_65 = arith.constant 8.100000e+01 : f32
    %161 = vector.broadcast %cst_65 : f32 to vector<1x1xf32>
    %162 = arith.mulf %161, %151 : vector<1x1xf32>
    %163 = vector.broadcast %162 : vector<1x1xf32> to vector<1x128xf32>
    %164 = arith.subf %146, %163 : vector<1x128xf32>
    %c4_66 = arith.constant 4 : index
    %165 = memref.load %arg3[%c4_66] : memref<5xf32, #tpu.memory_space<smem>>
    %166 = vector.broadcast %165 : f32 to vector<1x1xf32>
    %167 = arith.mulf %166, %160 : vector<1x1xf32>
    %168 = vector.broadcast %167 : vector<1x1xf32> to vector<1x128xf32>
    %169 = arith.mulf %168, %164 : vector<1x128xf32>
    %c4_67 = arith.constant 4 : index
    %170 = memref.load %arg5[%c4_67] : memref<5xf32, #tpu.memory_space<smem>>
    %171 = vector.broadcast %170 : f32 to vector<1x1xf32>
    %172 = arith.mulf %171, %160 : vector<1x1xf32>
    %cst_68 = arith.constant 0.000000e+00 : f32
    %173 = vector.broadcast %cst_68 : f32 to vector<1x128xf32>
    %174 = arith.subf %173, %164 : vector<1x128xf32>
    %175 = vector.broadcast %172 : vector<1x1xf32> to vector<1x128xf32>
    %176 = arith.mulf %175, %174 : vector<1x128xf32>
    %177 = arith.addf %140, %169 : vector<1x128xf32>
    %178 = arith.addf %141, %176 : vector<1x128xf32>
    %c4_69 = arith.constant 4 : index
    %179 = memref.load %arg4[%c4_69] : memref<5xf32, #tpu.memory_space<smem>>
    %180 = arith.addf %143, %179 : f32
    %c4_70 = arith.constant 4 : index
    %181 = memref.load %arg6[%c4_70] : memref<5xf32, #tpu.memory_space<smem>>
    %182 = arith.addf %145, %181 : f32
    %cst_71 = arith.constant 8.100000e+01 : f32
    %183 = arith.mulf %cst_71, %180 : f32
    %184 = vector.broadcast %183 : f32 to vector<1x128xf32>
    %185 = arith.addf %177, %184 : vector<1x128xf32>
    %c0_72 = arith.constant 0 : index
    %c0_73 = arith.constant 0 : index
    %186 = vector.load %arg7[%c0_72, %c0_73] : memref<2x128xf32, #tpu.memory_space<vmem>>, vector<1x128xf32>
    tpu.vector_store %arg7[%c0_72, %c0_73], %185 {strides = array<i32>} : memref<2x128xf32, #tpu.memory_space<vmem>>, vector<1x128xf32>,
    %cst_74 = arith.constant 8.100000e+01 : f32
    %187 = arith.mulf %cst_74, %182 : f32
    %188 = vector.broadcast %187 : f32 to vector<1x128xf32>
    %189 = arith.addf %178, %188 : vector<1x128xf32>
    %c1_75 = arith.constant 1 : index
    %c0_76 = arith.constant 0 : index
    %190 = vector.load %arg7[%c1_75, %c0_76] : memref<2x128xf32, #tpu.memory_space<vmem>>, vector<1x128xf32>
    tpu.vector_store %arg7[%c1_75, %c0_76], %189 {strides = array<i32>} : memref<2x128xf32, #tpu.memory_space<vmem>>, vector<1x128xf32>,
    return
  }
  func.func @transform_0(%arg0: i32) -> (i32, i32) {
    %c0_i32 = arith.constant 0 : i32
    %c0_i32_0 = arith.constant 0 : i32
    %c0_i32_1 = arith.constant 0 : i32
    return %c0_i32, %c0_i32_0 : i32, i32
  }
  func.func @transform_1(%arg0: i32) -> (i32, i32) {
    %c0_i32 = arith.constant 0 : i32
    %c0_i32_0 = arith.constant 0 : i32
    %c0_i32_1 = arith.constant 0 : i32
    return %c0_i32, %c0_i32_0 : i32, i32
  }
  func.func @transform_2(%arg0: i32) -> i32 {
    %c0_i32 = arith.constant 0 : i32
    %c0_i32_0 = arith.constant 0 : i32
    return %c0_i32 : i32
  }
  func.func @transform_3(%arg0: i32) -> i32 {
    %c0_i32 = arith.constant 0 : i32
    %c0_i32_0 = arith.constant 0 : i32
    return %c0_i32 : i32
  }
  func.func @transform_4(%arg0: i32) -> i32 {
    %c0_i32 = arith.constant 0 : i32
    %c0_i32_0 = arith.constant 0 : i32
    return %c0_i32 : i32
  }
  func.func @transform_5(%arg0: i32) -> i32 {
    %c0_i32 = arith.constant 0 : i32
    %c0_i32_0 = arith.constant 0 : i32
    return %c0_i32 : i32
  }
  func.func @transform_6(%arg0: i32) -> (i32, i32) {
    %c0_i32 = arith.constant 0 : i32
    %c0_i32_0 = arith.constant 0 : i32
    %c0_i32_1 = arith.constant 0 : i32
    return %c0_i32, %c0_i32_0 : i32, i32
  }
}

module attributes {stable_mosaic.version = 11 : i64} {
  func.func @kernel(%arg0: i32, %arg1: memref<9x81x128xf32, #tpu.memory_space<vmem>>, %arg2: memref<5x9xf32, #tpu.memory_space<smem>>, %arg3: memref<5x128xf32, #tpu.memory_space<vmem>>, %arg4: memref<5x128xf32, #tpu.memory_space<vmem>>) attributes {dimension_semantics = [#tpu.dimension_semantics<parallel>], iteration_bounds = array<i64: 1>, scalar_prefetch = 0 : i64, scratch_operands = 0 : i64, tpu.core_type = #tpu.core_type<tc>, window_params = [{transform_indices = @transform_0, window_bounds = array<i64: 9, 81, 128>}, {transform_indices = @transform_1, window_bounds = array<i64: 5, 9>}, {transform_indices = @transform_2, window_bounds = array<i64: 5, 128>}, {transform_indices = @transform_3, window_bounds = array<i64: 5, 128>}]} {
    %c0 = arith.constant 0 : index
    %c0_0 = arith.constant 0 : index
    %0 = memref.load %arg2[%c0, %c0_0] : memref<5x9xf32, #tpu.memory_space<smem>>
    %c0_1 = arith.constant 0 : index
    %c1 = arith.constant 1 : index
    %1 = memref.load %arg2[%c0_1, %c1] : memref<5x9xf32, #tpu.memory_space<smem>>
    %c0_2 = arith.constant 0 : index
    %c2 = arith.constant 2 : index
    %2 = memref.load %arg2[%c0_2, %c2] : memref<5x9xf32, #tpu.memory_space<smem>>
    %c0_3 = arith.constant 0 : index
    %c3 = arith.constant 3 : index
    %3 = memref.load %arg2[%c0_3, %c3] : memref<5x9xf32, #tpu.memory_space<smem>>
    %c0_4 = arith.constant 0 : index
    %c4 = arith.constant 4 : index
    %4 = memref.load %arg2[%c0_4, %c4] : memref<5x9xf32, #tpu.memory_space<smem>>
    %c0_5 = arith.constant 0 : index
    %c5 = arith.constant 5 : index
    %5 = memref.load %arg2[%c0_5, %c5] : memref<5x9xf32, #tpu.memory_space<smem>>
    %c0_6 = arith.constant 0 : index
    %c6 = arith.constant 6 : index
    %6 = memref.load %arg2[%c0_6, %c6] : memref<5x9xf32, #tpu.memory_space<smem>>
    %c0_7 = arith.constant 0 : index
    %c7 = arith.constant 7 : index
    %7 = memref.load %arg2[%c0_7, %c7] : memref<5x9xf32, #tpu.memory_space<smem>>
    %c0_8 = arith.constant 0 : index
    %c8 = arith.constant 8 : index
    %8 = memref.load %arg2[%c0_8, %c8] : memref<5x9xf32, #tpu.memory_space<smem>>
    %c1_9 = arith.constant 1 : index
    %c0_10 = arith.constant 0 : index
    %9 = memref.load %arg2[%c1_9, %c0_10] : memref<5x9xf32, #tpu.memory_space<smem>>
    %c1_11 = arith.constant 1 : index
    %c1_12 = arith.constant 1 : index
    %10 = memref.load %arg2[%c1_11, %c1_12] : memref<5x9xf32, #tpu.memory_space<smem>>
    %c1_13 = arith.constant 1 : index
    %c2_14 = arith.constant 2 : index
    %11 = memref.load %arg2[%c1_13, %c2_14] : memref<5x9xf32, #tpu.memory_space<smem>>
    %c1_15 = arith.constant 1 : index
    %c3_16 = arith.constant 3 : index
    %12 = memref.load %arg2[%c1_15, %c3_16] : memref<5x9xf32, #tpu.memory_space<smem>>
    %c1_17 = arith.constant 1 : index
    %c4_18 = arith.constant 4 : index
    %13 = memref.load %arg2[%c1_17, %c4_18] : memref<5x9xf32, #tpu.memory_space<smem>>
    %c1_19 = arith.constant 1 : index
    %c5_20 = arith.constant 5 : index
    %14 = memref.load %arg2[%c1_19, %c5_20] : memref<5x9xf32, #tpu.memory_space<smem>>
    %c1_21 = arith.constant 1 : index
    %c6_22 = arith.constant 6 : index
    %15 = memref.load %arg2[%c1_21, %c6_22] : memref<5x9xf32, #tpu.memory_space<smem>>
    %c1_23 = arith.constant 1 : index
    %c7_24 = arith.constant 7 : index
    %16 = memref.load %arg2[%c1_23, %c7_24] : memref<5x9xf32, #tpu.memory_space<smem>>
    %c1_25 = arith.constant 1 : index
    %c8_26 = arith.constant 8 : index
    %17 = memref.load %arg2[%c1_25, %c8_26] : memref<5x9xf32, #tpu.memory_space<smem>>
    %c2_27 = arith.constant 2 : index
    %c0_28 = arith.constant 0 : index
    %18 = memref.load %arg2[%c2_27, %c0_28] : memref<5x9xf32, #tpu.memory_space<smem>>
    %c2_29 = arith.constant 2 : index
    %c1_30 = arith.constant 1 : index
    %19 = memref.load %arg2[%c2_29, %c1_30] : memref<5x9xf32, #tpu.memory_space<smem>>
    %c2_31 = arith.constant 2 : index
    %c2_32 = arith.constant 2 : index
    %20 = memref.load %arg2[%c2_31, %c2_32] : memref<5x9xf32, #tpu.memory_space<smem>>
    %c2_33 = arith.constant 2 : index
    %c3_34 = arith.constant 3 : index
    %21 = memref.load %arg2[%c2_33, %c3_34] : memref<5x9xf32, #tpu.memory_space<smem>>
    %c2_35 = arith.constant 2 : index
    %c4_36 = arith.constant 4 : index
    %22 = memref.load %arg2[%c2_35, %c4_36] : memref<5x9xf32, #tpu.memory_space<smem>>
    %c2_37 = arith.constant 2 : index
    %c5_38 = arith.constant 5 : index
    %23 = memref.load %arg2[%c2_37, %c5_38] : memref<5x9xf32, #tpu.memory_space<smem>>
    %c2_39 = arith.constant 2 : index
    %c6_40 = arith.constant 6 : index
    %24 = memref.load %arg2[%c2_39, %c6_40] : memref<5x9xf32, #tpu.memory_space<smem>>
    %c2_41 = arith.constant 2 : index
    %c7_42 = arith.constant 7 : index
    %25 = memref.load %arg2[%c2_41, %c7_42] : memref<5x9xf32, #tpu.memory_space<smem>>
    %c2_43 = arith.constant 2 : index
    %c8_44 = arith.constant 8 : index
    %26 = memref.load %arg2[%c2_43, %c8_44] : memref<5x9xf32, #tpu.memory_space<smem>>
    %c3_45 = arith.constant 3 : index
    %c0_46 = arith.constant 0 : index
    %27 = memref.load %arg2[%c3_45, %c0_46] : memref<5x9xf32, #tpu.memory_space<smem>>
    %c3_47 = arith.constant 3 : index
    %c1_48 = arith.constant 1 : index
    %28 = memref.load %arg2[%c3_47, %c1_48] : memref<5x9xf32, #tpu.memory_space<smem>>
    %c3_49 = arith.constant 3 : index
    %c2_50 = arith.constant 2 : index
    %29 = memref.load %arg2[%c3_49, %c2_50] : memref<5x9xf32, #tpu.memory_space<smem>>
    %c3_51 = arith.constant 3 : index
    %c3_52 = arith.constant 3 : index
    %30 = memref.load %arg2[%c3_51, %c3_52] : memref<5x9xf32, #tpu.memory_space<smem>>
    %c3_53 = arith.constant 3 : index
    %c4_54 = arith.constant 4 : index
    %31 = memref.load %arg2[%c3_53, %c4_54] : memref<5x9xf32, #tpu.memory_space<smem>>
    %c3_55 = arith.constant 3 : index
    %c5_56 = arith.constant 5 : index
    %32 = memref.load %arg2[%c3_55, %c5_56] : memref<5x9xf32, #tpu.memory_space<smem>>
    %c3_57 = arith.constant 3 : index
    %c6_58 = arith.constant 6 : index
    %33 = memref.load %arg2[%c3_57, %c6_58] : memref<5x9xf32, #tpu.memory_space<smem>>
    %c3_59 = arith.constant 3 : index
    %c7_60 = arith.constant 7 : index
    %34 = memref.load %arg2[%c3_59, %c7_60] : memref<5x9xf32, #tpu.memory_space<smem>>
    %c3_61 = arith.constant 3 : index
    %c8_62 = arith.constant 8 : index
    %35 = memref.load %arg2[%c3_61, %c8_62] : memref<5x9xf32, #tpu.memory_space<smem>>
    %c4_63 = arith.constant 4 : index
    %c0_64 = arith.constant 0 : index
    %36 = memref.load %arg2[%c4_63, %c0_64] : memref<5x9xf32, #tpu.memory_space<smem>>
    %c4_65 = arith.constant 4 : index
    %c1_66 = arith.constant 1 : index
    %37 = memref.load %arg2[%c4_65, %c1_66] : memref<5x9xf32, #tpu.memory_space<smem>>
    %c4_67 = arith.constant 4 : index
    %c2_68 = arith.constant 2 : index
    %38 = memref.load %arg2[%c4_67, %c2_68] : memref<5x9xf32, #tpu.memory_space<smem>>
    %c4_69 = arith.constant 4 : index
    %c3_70 = arith.constant 3 : index
    %39 = memref.load %arg2[%c4_69, %c3_70] : memref<5x9xf32, #tpu.memory_space<smem>>
    %c4_71 = arith.constant 4 : index
    %c4_72 = arith.constant 4 : index
    %40 = memref.load %arg2[%c4_71, %c4_72] : memref<5x9xf32, #tpu.memory_space<smem>>
    %c4_73 = arith.constant 4 : index
    %c5_74 = arith.constant 5 : index
    %41 = memref.load %arg2[%c4_73, %c5_74] : memref<5x9xf32, #tpu.memory_space<smem>>
    %c4_75 = arith.constant 4 : index
    %c6_76 = arith.constant 6 : index
    %42 = memref.load %arg2[%c4_75, %c6_76] : memref<5x9xf32, #tpu.memory_space<smem>>
    %c4_77 = arith.constant 4 : index
    %c7_78 = arith.constant 7 : index
    %43 = memref.load %arg2[%c4_77, %c7_78] : memref<5x9xf32, #tpu.memory_space<smem>>
    %c4_79 = arith.constant 4 : index
    %c8_80 = arith.constant 8 : index
    %44 = memref.load %arg2[%c4_79, %c8_80] : memref<5x9xf32, #tpu.memory_space<smem>>
    %c0_81 = arith.constant 0 : index
    %c0_82 = arith.constant 0 : index
    %c0_83 = arith.constant 0 : index
    %45 = vector.load %arg1[%c0_81, %c0_82, %c0_83] : memref<9x81x128xf32, #tpu.memory_space<vmem>>, vector<1x8x128xf32>
    %46 = vector.shape_cast %45 : vector<1x8x128xf32> to vector<8x128xf32>
    %c1_84 = arith.constant 1 : index
    %c0_85 = arith.constant 0 : index
    %c0_86 = arith.constant 0 : index
    %47 = vector.load %arg1[%c1_84, %c0_85, %c0_86] : memref<9x81x128xf32, #tpu.memory_space<vmem>>, vector<1x8x128xf32>
    %48 = vector.shape_cast %47 : vector<1x8x128xf32> to vector<8x128xf32>
    %c2_87 = arith.constant 2 : index
    %c0_88 = arith.constant 0 : index
    %c0_89 = arith.constant 0 : index
    %49 = vector.load %arg1[%c2_87, %c0_88, %c0_89] : memref<9x81x128xf32, #tpu.memory_space<vmem>>, vector<1x8x128xf32>
    %50 = vector.shape_cast %49 : vector<1x8x128xf32> to vector<8x128xf32>
    %c3_90 = arith.constant 3 : index
    %c0_91 = arith.constant 0 : index
    %c0_92 = arith.constant 0 : index
    %51 = vector.load %arg1[%c3_90, %c0_91, %c0_92] : memref<9x81x128xf32, #tpu.memory_space<vmem>>, vector<1x8x128xf32>
    %52 = vector.shape_cast %51 : vector<1x8x128xf32> to vector<8x128xf32>
    %c4_93 = arith.constant 4 : index
    %c0_94 = arith.constant 0 : index
    %c0_95 = arith.constant 0 : index
    %53 = vector.load %arg1[%c4_93, %c0_94, %c0_95] : memref<9x81x128xf32, #tpu.memory_space<vmem>>, vector<1x8x128xf32>
    %54 = vector.shape_cast %53 : vector<1x8x128xf32> to vector<8x128xf32>
    %c5_96 = arith.constant 5 : index
    %c0_97 = arith.constant 0 : index
    %c0_98 = arith.constant 0 : index
    %55 = vector.load %arg1[%c5_96, %c0_97, %c0_98] : memref<9x81x128xf32, #tpu.memory_space<vmem>>, vector<1x8x128xf32>
    %56 = vector.shape_cast %55 : vector<1x8x128xf32> to vector<8x128xf32>
    %c6_99 = arith.constant 6 : index
    %c0_100 = arith.constant 0 : index
    %c0_101 = arith.constant 0 : index
    %57 = vector.load %arg1[%c6_99, %c0_100, %c0_101] : memref<9x81x128xf32, #tpu.memory_space<vmem>>, vector<1x8x128xf32>
    %58 = vector.shape_cast %57 : vector<1x8x128xf32> to vector<8x128xf32>
    %c7_102 = arith.constant 7 : index
    %c0_103 = arith.constant 0 : index
    %c0_104 = arith.constant 0 : index
    %59 = vector.load %arg1[%c7_102, %c0_103, %c0_104] : memref<9x81x128xf32, #tpu.memory_space<vmem>>, vector<1x8x128xf32>
    %60 = vector.shape_cast %59 : vector<1x8x128xf32> to vector<8x128xf32>
    %c8_105 = arith.constant 8 : index
    %c0_106 = arith.constant 0 : index
    %c0_107 = arith.constant 0 : index
    %61 = vector.load %arg1[%c8_105, %c0_106, %c0_107] : memref<9x81x128xf32, #tpu.memory_space<vmem>>, vector<1x8x128xf32>
    %62 = vector.shape_cast %61 : vector<1x8x128xf32> to vector<8x128xf32>
    %63 = vector.broadcast %0 : f32 to vector<8x128xf32>
    %64 = arith.mulf %63, %46 : vector<8x128xf32>
    %65 = vector.broadcast %1 : f32 to vector<8x128xf32>
    %66 = arith.mulf %65, %48 : vector<8x128xf32>
    %67 = arith.addf %64, %66 : vector<8x128xf32>
    %68 = vector.broadcast %2 : f32 to vector<8x128xf32>
    %69 = arith.mulf %68, %50 : vector<8x128xf32>
    %70 = arith.addf %67, %69 : vector<8x128xf32>
    %71 = vector.broadcast %3 : f32 to vector<8x128xf32>
    %72 = arith.mulf %71, %52 : vector<8x128xf32>
    %73 = arith.addf %70, %72 : vector<8x128xf32>
    %74 = vector.broadcast %4 : f32 to vector<8x128xf32>
    %75 = arith.mulf %74, %54 : vector<8x128xf32>
    %76 = arith.addf %73, %75 : vector<8x128xf32>
    %77 = vector.broadcast %5 : f32 to vector<8x128xf32>
    %78 = arith.mulf %77, %56 : vector<8x128xf32>
    %79 = arith.addf %76, %78 : vector<8x128xf32>
    %80 = vector.broadcast %6 : f32 to vector<8x128xf32>
    %81 = arith.mulf %80, %58 : vector<8x128xf32>
    %82 = arith.addf %79, %81 : vector<8x128xf32>
    %83 = vector.broadcast %7 : f32 to vector<8x128xf32>
    %84 = arith.mulf %83, %60 : vector<8x128xf32>
    %85 = arith.addf %82, %84 : vector<8x128xf32>
    %86 = vector.broadcast %8 : f32 to vector<8x128xf32>
    %87 = arith.mulf %86, %62 : vector<8x128xf32>
    %88 = arith.addf %85, %87 : vector<8x128xf32>
    %cst = arith.constant dense<0.000000e+00> : vector<128xf32>
    %89 = vector.multi_reduction <add>, %88, %cst [0] : vector<8x128xf32> to vector<128xf32>
    %90 = vector.shape_cast %89 : vector<128xf32> to vector<1x128xf32>
    %91 = arith.mulf %88, %88 : vector<8x128xf32>
    %cst_108 = arith.constant dense<0.000000e+00> : vector<128xf32>
    %92 = vector.multi_reduction <add>, %91, %cst_108 [0] : vector<8x128xf32> to vector<128xf32>
    %93 = vector.shape_cast %92 : vector<128xf32> to vector<1x128xf32>
    %94 = vector.broadcast %9 : f32 to vector<8x128xf32>
    %95 = arith.mulf %94, %46 : vector<8x128xf32>
    %96 = vector.broadcast %10 : f32 to vector<8x128xf32>
    %97 = arith.mulf %96, %48 : vector<8x128xf32>
    %98 = arith.addf %95, %97 : vector<8x128xf32>
    %99 = vector.broadcast %11 : f32 to vector<8x128xf32>
    %100 = arith.mulf %99, %50 : vector<8x128xf32>
    %101 = arith.addf %98, %100 : vector<8x128xf32>
    %102 = vector.broadcast %12 : f32 to vector<8x128xf32>
    %103 = arith.mulf %102, %52 : vector<8x128xf32>
    %104 = arith.addf %101, %103 : vector<8x128xf32>
    %105 = vector.broadcast %13 : f32 to vector<8x128xf32>
    %106 = arith.mulf %105, %54 : vector<8x128xf32>
    %107 = arith.addf %104, %106 : vector<8x128xf32>
    %108 = vector.broadcast %14 : f32 to vector<8x128xf32>
    %109 = arith.mulf %108, %56 : vector<8x128xf32>
    %110 = arith.addf %107, %109 : vector<8x128xf32>
    %111 = vector.broadcast %15 : f32 to vector<8x128xf32>
    %112 = arith.mulf %111, %58 : vector<8x128xf32>
    %113 = arith.addf %110, %112 : vector<8x128xf32>
    %114 = vector.broadcast %16 : f32 to vector<8x128xf32>
    %115 = arith.mulf %114, %60 : vector<8x128xf32>
    %116 = arith.addf %113, %115 : vector<8x128xf32>
    %117 = vector.broadcast %17 : f32 to vector<8x128xf32>
    %118 = arith.mulf %117, %62 : vector<8x128xf32>
    %119 = arith.addf %116, %118 : vector<8x128xf32>
    %cst_109 = arith.constant dense<0.000000e+00> : vector<128xf32>
    %120 = vector.multi_reduction <add>, %119, %cst_109 [0] : vector<8x128xf32> to vector<128xf32>
    %121 = vector.shape_cast %120 : vector<128xf32> to vector<1x128xf32>
    %122 = arith.mulf %119, %119 : vector<8x128xf32>
    %cst_110 = arith.constant dense<0.000000e+00> : vector<128xf32>
    %123 = vector.multi_reduction <add>, %122, %cst_110 [0] : vector<8x128xf32> to vector<128xf32>
    %124 = vector.shape_cast %123 : vector<128xf32> to vector<1x128xf32>
    %125 = vector.broadcast %18 : f32 to vector<8x128xf32>
    %126 = arith.mulf %125, %46 : vector<8x128xf32>
    %127 = vector.broadcast %19 : f32 to vector<8x128xf32>
    %128 = arith.mulf %127, %48 : vector<8x128xf32>
    %129 = arith.addf %126, %128 : vector<8x128xf32>
    %130 = vector.broadcast %20 : f32 to vector<8x128xf32>
    %131 = arith.mulf %130, %50 : vector<8x128xf32>
    %132 = arith.addf %129, %131 : vector<8x128xf32>
    %133 = vector.broadcast %21 : f32 to vector<8x128xf32>
    %134 = arith.mulf %133, %52 : vector<8x128xf32>
    %135 = arith.addf %132, %134 : vector<8x128xf32>
    %136 = vector.broadcast %22 : f32 to vector<8x128xf32>
    %137 = arith.mulf %136, %54 : vector<8x128xf32>
    %138 = arith.addf %135, %137 : vector<8x128xf32>
    %139 = vector.broadcast %23 : f32 to vector<8x128xf32>
    %140 = arith.mulf %139, %56 : vector<8x128xf32>
    %141 = arith.addf %138, %140 : vector<8x128xf32>
    %142 = vector.broadcast %24 : f32 to vector<8x128xf32>
    %143 = arith.mulf %142, %58 : vector<8x128xf32>
    %144 = arith.addf %141, %143 : vector<8x128xf32>
    %145 = vector.broadcast %25 : f32 to vector<8x128xf32>
    %146 = arith.mulf %145, %60 : vector<8x128xf32>
    %147 = arith.addf %144, %146 : vector<8x128xf32>
    %148 = vector.broadcast %26 : f32 to vector<8x128xf32>
    %149 = arith.mulf %148, %62 : vector<8x128xf32>
    %150 = arith.addf %147, %149 : vector<8x128xf32>
    %cst_111 = arith.constant dense<0.000000e+00> : vector<128xf32>
    %151 = vector.multi_reduction <add>, %150, %cst_111 [0] : vector<8x128xf32> to vector<128xf32>
    %152 = vector.shape_cast %151 : vector<128xf32> to vector<1x128xf32>
    %153 = arith.mulf %150, %150 : vector<8x128xf32>
    %cst_112 = arith.constant dense<0.000000e+00> : vector<128xf32>
    %154 = vector.multi_reduction <add>, %153, %cst_112 [0] : vector<8x128xf32> to vector<128xf32>
    %155 = vector.shape_cast %154 : vector<128xf32> to vector<1x128xf32>
    %156 = vector.broadcast %27 : f32 to vector<8x128xf32>
    %157 = arith.mulf %156, %46 : vector<8x128xf32>
    %158 = vector.broadcast %28 : f32 to vector<8x128xf32>
    %159 = arith.mulf %158, %48 : vector<8x128xf32>
    %160 = arith.addf %157, %159 : vector<8x128xf32>
    %161 = vector.broadcast %29 : f32 to vector<8x128xf32>
    %162 = arith.mulf %161, %50 : vector<8x128xf32>
    %163 = arith.addf %160, %162 : vector<8x128xf32>
    %164 = vector.broadcast %30 : f32 to vector<8x128xf32>
    %165 = arith.mulf %164, %52 : vector<8x128xf32>
    %166 = arith.addf %163, %165 : vector<8x128xf32>
    %167 = vector.broadcast %31 : f32 to vector<8x128xf32>
    %168 = arith.mulf %167, %54 : vector<8x128xf32>
    %169 = arith.addf %166, %168 : vector<8x128xf32>
    %170 = vector.broadcast %32 : f32 to vector<8x128xf32>
    %171 = arith.mulf %170, %56 : vector<8x128xf32>
    %172 = arith.addf %169, %171 : vector<8x128xf32>
    %173 = vector.broadcast %33 : f32 to vector<8x128xf32>
    %174 = arith.mulf %173, %58 : vector<8x128xf32>
    %175 = arith.addf %172, %174 : vector<8x128xf32>
    %176 = vector.broadcast %34 : f32 to vector<8x128xf32>
    %177 = arith.mulf %176, %60 : vector<8x128xf32>
    %178 = arith.addf %175, %177 : vector<8x128xf32>
    %179 = vector.broadcast %35 : f32 to vector<8x128xf32>
    %180 = arith.mulf %179, %62 : vector<8x128xf32>
    %181 = arith.addf %178, %180 : vector<8x128xf32>
    %cst_113 = arith.constant dense<0.000000e+00> : vector<128xf32>
    %182 = vector.multi_reduction <add>, %181, %cst_113 [0] : vector<8x128xf32> to vector<128xf32>
    %183 = vector.shape_cast %182 : vector<128xf32> to vector<1x128xf32>
    %184 = arith.mulf %181, %181 : vector<8x128xf32>
    %cst_114 = arith.constant dense<0.000000e+00> : vector<128xf32>
    %185 = vector.multi_reduction <add>, %184, %cst_114 [0] : vector<8x128xf32> to vector<128xf32>
    %186 = vector.shape_cast %185 : vector<128xf32> to vector<1x128xf32>
    %187 = vector.broadcast %36 : f32 to vector<8x128xf32>
    %188 = arith.mulf %187, %46 : vector<8x128xf32>
    %189 = vector.broadcast %37 : f32 to vector<8x128xf32>
    %190 = arith.mulf %189, %48 : vector<8x128xf32>
    %191 = arith.addf %188, %190 : vector<8x128xf32>
    %192 = vector.broadcast %38 : f32 to vector<8x128xf32>
    %193 = arith.mulf %192, %50 : vector<8x128xf32>
    %194 = arith.addf %191, %193 : vector<8x128xf32>
    %195 = vector.broadcast %39 : f32 to vector<8x128xf32>
    %196 = arith.mulf %195, %52 : vector<8x128xf32>
    %197 = arith.addf %194, %196 : vector<8x128xf32>
    %198 = vector.broadcast %40 : f32 to vector<8x128xf32>
    %199 = arith.mulf %198, %54 : vector<8x128xf32>
    %200 = arith.addf %197, %199 : vector<8x128xf32>
    %201 = vector.broadcast %41 : f32 to vector<8x128xf32>
    %202 = arith.mulf %201, %56 : vector<8x128xf32>
    %203 = arith.addf %200, %202 : vector<8x128xf32>
    %204 = vector.broadcast %42 : f32 to vector<8x128xf32>
    %205 = arith.mulf %204, %58 : vector<8x128xf32>
    %206 = arith.addf %203, %205 : vector<8x128xf32>
    %207 = vector.broadcast %43 : f32 to vector<8x128xf32>
    %208 = arith.mulf %207, %60 : vector<8x128xf32>
    %209 = arith.addf %206, %208 : vector<8x128xf32>
    %210 = vector.broadcast %44 : f32 to vector<8x128xf32>
    %211 = arith.mulf %210, %62 : vector<8x128xf32>
    %212 = arith.addf %209, %211 : vector<8x128xf32>
    %cst_115 = arith.constant dense<0.000000e+00> : vector<128xf32>
    %213 = vector.multi_reduction <add>, %212, %cst_115 [0] : vector<8x128xf32> to vector<128xf32>
    %214 = vector.shape_cast %213 : vector<128xf32> to vector<1x128xf32>
    %215 = arith.mulf %212, %212 : vector<8x128xf32>
    %cst_116 = arith.constant dense<0.000000e+00> : vector<128xf32>
    %216 = vector.multi_reduction <add>, %215, %cst_116 [0] : vector<8x128xf32> to vector<128xf32>
    %217 = vector.shape_cast %216 : vector<128xf32> to vector<1x128xf32>
    %c0_117 = arith.constant 0 : index
    %c8_118 = arith.constant 8 : index
    %c0_119 = arith.constant 0 : index
    %218 = vector.load %arg1[%c0_117, %c8_118, %c0_119] : memref<9x81x128xf32, #tpu.memory_space<vmem>>, vector<1x8x128xf32>
    %219 = vector.shape_cast %218 : vector<1x8x128xf32> to vector<8x128xf32>
    %c1_120 = arith.constant 1 : index
    %c8_121 = arith.constant 8 : index
    %c0_122 = arith.constant 0 : index
    %220 = vector.load %arg1[%c1_120, %c8_121, %c0_122] : memref<9x81x128xf32, #tpu.memory_space<vmem>>, vector<1x8x128xf32>
    %221 = vector.shape_cast %220 : vector<1x8x128xf32> to vector<8x128xf32>
    %c2_123 = arith.constant 2 : index
    %c8_124 = arith.constant 8 : index
    %c0_125 = arith.constant 0 : index
    %222 = vector.load %arg1[%c2_123, %c8_124, %c0_125] : memref<9x81x128xf32, #tpu.memory_space<vmem>>, vector<1x8x128xf32>
    %223 = vector.shape_cast %222 : vector<1x8x128xf32> to vector<8x128xf32>
    %c3_126 = arith.constant 3 : index
    %c8_127 = arith.constant 8 : index
    %c0_128 = arith.constant 0 : index
    %224 = vector.load %arg1[%c3_126, %c8_127, %c0_128] : memref<9x81x128xf32, #tpu.memory_space<vmem>>, vector<1x8x128xf32>
    %225 = vector.shape_cast %224 : vector<1x8x128xf32> to vector<8x128xf32>
    %c4_129 = arith.constant 4 : index
    %c8_130 = arith.constant 8 : index
    %c0_131 = arith.constant 0 : index
    %226 = vector.load %arg1[%c4_129, %c8_130, %c0_131] : memref<9x81x128xf32, #tpu.memory_space<vmem>>, vector<1x8x128xf32>
    %227 = vector.shape_cast %226 : vector<1x8x128xf32> to vector<8x128xf32>
    %c5_132 = arith.constant 5 : index
    %c8_133 = arith.constant 8 : index
    %c0_134 = arith.constant 0 : index
    %228 = vector.load %arg1[%c5_132, %c8_133, %c0_134] : memref<9x81x128xf32, #tpu.memory_space<vmem>>, vector<1x8x128xf32>
    %229 = vector.shape_cast %228 : vector<1x8x128xf32> to vector<8x128xf32>
    %c6_135 = arith.constant 6 : index
    %c8_136 = arith.constant 8 : index
    %c0_137 = arith.constant 0 : index
    %230 = vector.load %arg1[%c6_135, %c8_136, %c0_137] : memref<9x81x128xf32, #tpu.memory_space<vmem>>, vector<1x8x128xf32>
    %231 = vector.shape_cast %230 : vector<1x8x128xf32> to vector<8x128xf32>
    %c7_138 = arith.constant 7 : index
    %c8_139 = arith.constant 8 : index
    %c0_140 = arith.constant 0 : index
    %232 = vector.load %arg1[%c7_138, %c8_139, %c0_140] : memref<9x81x128xf32, #tpu.memory_space<vmem>>, vector<1x8x128xf32>
    %233 = vector.shape_cast %232 : vector<1x8x128xf32> to vector<8x128xf32>
    %c8_141 = arith.constant 8 : index
    %c8_142 = arith.constant 8 : index
    %c0_143 = arith.constant 0 : index
    %234 = vector.load %arg1[%c8_141, %c8_142, %c0_143] : memref<9x81x128xf32, #tpu.memory_space<vmem>>, vector<1x8x128xf32>
    %235 = vector.shape_cast %234 : vector<1x8x128xf32> to vector<8x128xf32>
    %236 = vector.broadcast %0 : f32 to vector<8x128xf32>
    %237 = arith.mulf %236, %219 : vector<8x128xf32>
    %238 = vector.broadcast %1 : f32 to vector<8x128xf32>
    %239 = arith.mulf %238, %221 : vector<8x128xf32>
    %240 = arith.addf %237, %239 : vector<8x128xf32>
    %241 = vector.broadcast %2 : f32 to vector<8x128xf32>
    %242 = arith.mulf %241, %223 : vector<8x128xf32>
    %243 = arith.addf %240, %242 : vector<8x128xf32>
    %244 = vector.broadcast %3 : f32 to vector<8x128xf32>
    %245 = arith.mulf %244, %225 : vector<8x128xf32>
    %246 = arith.addf %243, %245 : vector<8x128xf32>
    %247 = vector.broadcast %4 : f32 to vector<8x128xf32>
    %248 = arith.mulf %247, %227 : vector<8x128xf32>
    %249 = arith.addf %246, %248 : vector<8x128xf32>
    %250 = vector.broadcast %5 : f32 to vector<8x128xf32>
    %251 = arith.mulf %250, %229 : vector<8x128xf32>
    %252 = arith.addf %249, %251 : vector<8x128xf32>
    %253 = vector.broadcast %6 : f32 to vector<8x128xf32>
    %254 = arith.mulf %253, %231 : vector<8x128xf32>
    %255 = arith.addf %252, %254 : vector<8x128xf32>
    %256 = vector.broadcast %7 : f32 to vector<8x128xf32>
    %257 = arith.mulf %256, %233 : vector<8x128xf32>
    %258 = arith.addf %255, %257 : vector<8x128xf32>
    %259 = vector.broadcast %8 : f32 to vector<8x128xf32>
    %260 = arith.mulf %259, %235 : vector<8x128xf32>
    %261 = arith.addf %258, %260 : vector<8x128xf32>
    %cst_144 = arith.constant dense<0.000000e+00> : vector<128xf32>
    %262 = vector.multi_reduction <add>, %261, %cst_144 [0] : vector<8x128xf32> to vector<128xf32>
    %263 = vector.shape_cast %262 : vector<128xf32> to vector<1x128xf32>
    %264 = arith.mulf %261, %261 : vector<8x128xf32>
    %cst_145 = arith.constant dense<0.000000e+00> : vector<128xf32>
    %265 = vector.multi_reduction <add>, %264, %cst_145 [0] : vector<8x128xf32> to vector<128xf32>
    %266 = vector.shape_cast %265 : vector<128xf32> to vector<1x128xf32>
    %267 = arith.addf %90, %263 : vector<1x128xf32>
    %268 = arith.addf %93, %266 : vector<1x128xf32>
    %269 = vector.broadcast %9 : f32 to vector<8x128xf32>
    %270 = arith.mulf %269, %219 : vector<8x128xf32>
    %271 = vector.broadcast %10 : f32 to vector<8x128xf32>
    %272 = arith.mulf %271, %221 : vector<8x128xf32>
    %273 = arith.addf %270, %272 : vector<8x128xf32>
    %274 = vector.broadcast %11 : f32 to vector<8x128xf32>
    %275 = arith.mulf %274, %223 : vector<8x128xf32>
    %276 = arith.addf %273, %275 : vector<8x128xf32>
    %277 = vector.broadcast %12 : f32 to vector<8x128xf32>
    %278 = arith.mulf %277, %225 : vector<8x128xf32>
    %279 = arith.addf %276, %278 : vector<8x128xf32>
    %280 = vector.broadcast %13 : f32 to vector<8x128xf32>
    %281 = arith.mulf %280, %227 : vector<8x128xf32>
    %282 = arith.addf %279, %281 : vector<8x128xf32>
    %283 = vector.broadcast %14 : f32 to vector<8x128xf32>
    %284 = arith.mulf %283, %229 : vector<8x128xf32>
    %285 = arith.addf %282, %284 : vector<8x128xf32>
    %286 = vector.broadcast %15 : f32 to vector<8x128xf32>
    %287 = arith.mulf %286, %231 : vector<8x128xf32>
    %288 = arith.addf %285, %287 : vector<8x128xf32>
    %289 = vector.broadcast %16 : f32 to vector<8x128xf32>
    %290 = arith.mulf %289, %233 : vector<8x128xf32>
    %291 = arith.addf %288, %290 : vector<8x128xf32>
    %292 = vector.broadcast %17 : f32 to vector<8x128xf32>
    %293 = arith.mulf %292, %235 : vector<8x128xf32>
    %294 = arith.addf %291, %293 : vector<8x128xf32>
    %cst_146 = arith.constant dense<0.000000e+00> : vector<128xf32>
    %295 = vector.multi_reduction <add>, %294, %cst_146 [0] : vector<8x128xf32> to vector<128xf32>
    %296 = vector.shape_cast %295 : vector<128xf32> to vector<1x128xf32>
    %297 = arith.mulf %294, %294 : vector<8x128xf32>
    %cst_147 = arith.constant dense<0.000000e+00> : vector<128xf32>
    %298 = vector.multi_reduction <add>, %297, %cst_147 [0] : vector<8x128xf32> to vector<128xf32>
    %299 = vector.shape_cast %298 : vector<128xf32> to vector<1x128xf32>
    %300 = arith.addf %121, %296 : vector<1x128xf32>
    %301 = arith.addf %124, %299 : vector<1x128xf32>
    %302 = vector.broadcast %18 : f32 to vector<8x128xf32>
    %303 = arith.mulf %302, %219 : vector<8x128xf32>
    %304 = vector.broadcast %19 : f32 to vector<8x128xf32>
    %305 = arith.mulf %304, %221 : vector<8x128xf32>
    %306 = arith.addf %303, %305 : vector<8x128xf32>
    %307 = vector.broadcast %20 : f32 to vector<8x128xf32>
    %308 = arith.mulf %307, %223 : vector<8x128xf32>
    %309 = arith.addf %306, %308 : vector<8x128xf32>
    %310 = vector.broadcast %21 : f32 to vector<8x128xf32>
    %311 = arith.mulf %310, %225 : vector<8x128xf32>
    %312 = arith.addf %309, %311 : vector<8x128xf32>
    %313 = vector.broadcast %22 : f32 to vector<8x128xf32>
    %314 = arith.mulf %313, %227 : vector<8x128xf32>
    %315 = arith.addf %312, %314 : vector<8x128xf32>
    %316 = vector.broadcast %23 : f32 to vector<8x128xf32>
    %317 = arith.mulf %316, %229 : vector<8x128xf32>
    %318 = arith.addf %315, %317 : vector<8x128xf32>
    %319 = vector.broadcast %24 : f32 to vector<8x128xf32>
    %320 = arith.mulf %319, %231 : vector<8x128xf32>
    %321 = arith.addf %318, %320 : vector<8x128xf32>
    %322 = vector.broadcast %25 : f32 to vector<8x128xf32>
    %323 = arith.mulf %322, %233 : vector<8x128xf32>
    %324 = arith.addf %321, %323 : vector<8x128xf32>
    %325 = vector.broadcast %26 : f32 to vector<8x128xf32>
    %326 = arith.mulf %325, %235 : vector<8x128xf32>
    %327 = arith.addf %324, %326 : vector<8x128xf32>
    %cst_148 = arith.constant dense<0.000000e+00> : vector<128xf32>
    %328 = vector.multi_reduction <add>, %327, %cst_148 [0] : vector<8x128xf32> to vector<128xf32>
    %329 = vector.shape_cast %328 : vector<128xf32> to vector<1x128xf32>
    %330 = arith.mulf %327, %327 : vector<8x128xf32>
    %cst_149 = arith.constant dense<0.000000e+00> : vector<128xf32>
    %331 = vector.multi_reduction <add>, %330, %cst_149 [0] : vector<8x128xf32> to vector<128xf32>
    %332 = vector.shape_cast %331 : vector<128xf32> to vector<1x128xf32>
    %333 = arith.addf %152, %329 : vector<1x128xf32>
    %334 = arith.addf %155, %332 : vector<1x128xf32>
    %335 = vector.broadcast %27 : f32 to vector<8x128xf32>
    %336 = arith.mulf %335, %219 : vector<8x128xf32>
    %337 = vector.broadcast %28 : f32 to vector<8x128xf32>
    %338 = arith.mulf %337, %221 : vector<8x128xf32>
    %339 = arith.addf %336, %338 : vector<8x128xf32>
    %340 = vector.broadcast %29 : f32 to vector<8x128xf32>
    %341 = arith.mulf %340, %223 : vector<8x128xf32>
    %342 = arith.addf %339, %341 : vector<8x128xf32>
    %343 = vector.broadcast %30 : f32 to vector<8x128xf32>
    %344 = arith.mulf %343, %225 : vector<8x128xf32>
    %345 = arith.addf %342, %344 : vector<8x128xf32>
    %346 = vector.broadcast %31 : f32 to vector<8x128xf32>
    %347 = arith.mulf %346, %227 : vector<8x128xf32>
    %348 = arith.addf %345, %347 : vector<8x128xf32>
    %349 = vector.broadcast %32 : f32 to vector<8x128xf32>
    %350 = arith.mulf %349, %229 : vector<8x128xf32>
    %351 = arith.addf %348, %350 : vector<8x128xf32>
    %352 = vector.broadcast %33 : f32 to vector<8x128xf32>
    %353 = arith.mulf %352, %231 : vector<8x128xf32>
    %354 = arith.addf %351, %353 : vector<8x128xf32>
    %355 = vector.broadcast %34 : f32 to vector<8x128xf32>
    %356 = arith.mulf %355, %233 : vector<8x128xf32>
    %357 = arith.addf %354, %356 : vector<8x128xf32>
    %358 = vector.broadcast %35 : f32 to vector<8x128xf32>
    %359 = arith.mulf %358, %235 : vector<8x128xf32>
    %360 = arith.addf %357, %359 : vector<8x128xf32>
    %cst_150 = arith.constant dense<0.000000e+00> : vector<128xf32>
    %361 = vector.multi_reduction <add>, %360, %cst_150 [0] : vector<8x128xf32> to vector<128xf32>
    %362 = vector.shape_cast %361 : vector<128xf32> to vector<1x128xf32>
    %363 = arith.mulf %360, %360 : vector<8x128xf32>
    %cst_151 = arith.constant dense<0.000000e+00> : vector<128xf32>
    %364 = vector.multi_reduction <add>, %363, %cst_151 [0] : vector<8x128xf32> to vector<128xf32>
    %365 = vector.shape_cast %364 : vector<128xf32> to vector<1x128xf32>
    %366 = arith.addf %183, %362 : vector<1x128xf32>
    %367 = arith.addf %186, %365 : vector<1x128xf32>
    %368 = vector.broadcast %36 : f32 to vector<8x128xf32>
    %369 = arith.mulf %368, %219 : vector<8x128xf32>
    %370 = vector.broadcast %37 : f32 to vector<8x128xf32>
    %371 = arith.mulf %370, %221 : vector<8x128xf32>
    %372 = arith.addf %369, %371 : vector<8x128xf32>
    %373 = vector.broadcast %38 : f32 to vector<8x128xf32>
    %374 = arith.mulf %373, %223 : vector<8x128xf32>
    %375 = arith.addf %372, %374 : vector<8x128xf32>
    %376 = vector.broadcast %39 : f32 to vector<8x128xf32>
    %377 = arith.mulf %376, %225 : vector<8x128xf32>
    %378 = arith.addf %375, %377 : vector<8x128xf32>
    %379 = vector.broadcast %40 : f32 to vector<8x128xf32>
    %380 = arith.mulf %379, %227 : vector<8x128xf32>
    %381 = arith.addf %378, %380 : vector<8x128xf32>
    %382 = vector.broadcast %41 : f32 to vector<8x128xf32>
    %383 = arith.mulf %382, %229 : vector<8x128xf32>
    %384 = arith.addf %381, %383 : vector<8x128xf32>
    %385 = vector.broadcast %42 : f32 to vector<8x128xf32>
    %386 = arith.mulf %385, %231 : vector<8x128xf32>
    %387 = arith.addf %384, %386 : vector<8x128xf32>
    %388 = vector.broadcast %43 : f32 to vector<8x128xf32>
    %389 = arith.mulf %388, %233 : vector<8x128xf32>
    %390 = arith.addf %387, %389 : vector<8x128xf32>
    %391 = vector.broadcast %44 : f32 to vector<8x128xf32>
    %392 = arith.mulf %391, %235 : vector<8x128xf32>
    %393 = arith.addf %390, %392 : vector<8x128xf32>
    %cst_152 = arith.constant dense<0.000000e+00> : vector<128xf32>
    %394 = vector.multi_reduction <add>, %393, %cst_152 [0] : vector<8x128xf32> to vector<128xf32>
    %395 = vector.shape_cast %394 : vector<128xf32> to vector<1x128xf32>
    %396 = arith.mulf %393, %393 : vector<8x128xf32>
    %cst_153 = arith.constant dense<0.000000e+00> : vector<128xf32>
    %397 = vector.multi_reduction <add>, %396, %cst_153 [0] : vector<8x128xf32> to vector<128xf32>
    %398 = vector.shape_cast %397 : vector<128xf32> to vector<1x128xf32>
    %399 = arith.addf %214, %395 : vector<1x128xf32>
    %400 = arith.addf %217, %398 : vector<1x128xf32>
    %c0_154 = arith.constant 0 : index
    %c16 = arith.constant 16 : index
    %c0_155 = arith.constant 0 : index
    %401 = vector.load %arg1[%c0_154, %c16, %c0_155] : memref<9x81x128xf32, #tpu.memory_space<vmem>>, vector<1x8x128xf32>
    %402 = vector.shape_cast %401 : vector<1x8x128xf32> to vector<8x128xf32>
    %c1_156 = arith.constant 1 : index
    %c16_157 = arith.constant 16 : index
    %c0_158 = arith.constant 0 : index
    %403 = vector.load %arg1[%c1_156, %c16_157, %c0_158] : memref<9x81x128xf32, #tpu.memory_space<vmem>>, vector<1x8x128xf32>
    %404 = vector.shape_cast %403 : vector<1x8x128xf32> to vector<8x128xf32>
    %c2_159 = arith.constant 2 : index
    %c16_160 = arith.constant 16 : index
    %c0_161 = arith.constant 0 : index
    %405 = vector.load %arg1[%c2_159, %c16_160, %c0_161] : memref<9x81x128xf32, #tpu.memory_space<vmem>>, vector<1x8x128xf32>
    %406 = vector.shape_cast %405 : vector<1x8x128xf32> to vector<8x128xf32>
    %c3_162 = arith.constant 3 : index
    %c16_163 = arith.constant 16 : index
    %c0_164 = arith.constant 0 : index
    %407 = vector.load %arg1[%c3_162, %c16_163, %c0_164] : memref<9x81x128xf32, #tpu.memory_space<vmem>>, vector<1x8x128xf32>
    %408 = vector.shape_cast %407 : vector<1x8x128xf32> to vector<8x128xf32>
    %c4_165 = arith.constant 4 : index
    %c16_166 = arith.constant 16 : index
    %c0_167 = arith.constant 0 : index
    %409 = vector.load %arg1[%c4_165, %c16_166, %c0_167] : memref<9x81x128xf32, #tpu.memory_space<vmem>>, vector<1x8x128xf32>
    %410 = vector.shape_cast %409 : vector<1x8x128xf32> to vector<8x128xf32>
    %c5_168 = arith.constant 5 : index
    %c16_169 = arith.constant 16 : index
    %c0_170 = arith.constant 0 : index
    %411 = vector.load %arg1[%c5_168, %c16_169, %c0_170] : memref<9x81x128xf32, #tpu.memory_space<vmem>>, vector<1x8x128xf32>
    %412 = vector.shape_cast %411 : vector<1x8x128xf32> to vector<8x128xf32>
    %c6_171 = arith.constant 6 : index
    %c16_172 = arith.constant 16 : index
    %c0_173 = arith.constant 0 : index
    %413 = vector.load %arg1[%c6_171, %c16_172, %c0_173] : memref<9x81x128xf32, #tpu.memory_space<vmem>>, vector<1x8x128xf32>
    %414 = vector.shape_cast %413 : vector<1x8x128xf32> to vector<8x128xf32>
    %c7_174 = arith.constant 7 : index
    %c16_175 = arith.constant 16 : index
    %c0_176 = arith.constant 0 : index
    %415 = vector.load %arg1[%c7_174, %c16_175, %c0_176] : memref<9x81x128xf32, #tpu.memory_space<vmem>>, vector<1x8x128xf32>
    %416 = vector.shape_cast %415 : vector<1x8x128xf32> to vector<8x128xf32>
    %c8_177 = arith.constant 8 : index
    %c16_178 = arith.constant 16 : index
    %c0_179 = arith.constant 0 : index
    %417 = vector.load %arg1[%c8_177, %c16_178, %c0_179] : memref<9x81x128xf32, #tpu.memory_space<vmem>>, vector<1x8x128xf32>
    %418 = vector.shape_cast %417 : vector<1x8x128xf32> to vector<8x128xf32>
    %419 = vector.broadcast %0 : f32 to vector<8x128xf32>
    %420 = arith.mulf %419, %402 : vector<8x128xf32>
    %421 = vector.broadcast %1 : f32 to vector<8x128xf32>
    %422 = arith.mulf %421, %404 : vector<8x128xf32>
    %423 = arith.addf %420, %422 : vector<8x128xf32>
    %424 = vector.broadcast %2 : f32 to vector<8x128xf32>
    %425 = arith.mulf %424, %406 : vector<8x128xf32>
    %426 = arith.addf %423, %425 : vector<8x128xf32>
    %427 = vector.broadcast %3 : f32 to vector<8x128xf32>
    %428 = arith.mulf %427, %408 : vector<8x128xf32>
    %429 = arith.addf %426, %428 : vector<8x128xf32>
    %430 = vector.broadcast %4 : f32 to vector<8x128xf32>
    %431 = arith.mulf %430, %410 : vector<8x128xf32>
    %432 = arith.addf %429, %431 : vector<8x128xf32>
    %433 = vector.broadcast %5 : f32 to vector<8x128xf32>
    %434 = arith.mulf %433, %412 : vector<8x128xf32>
    %435 = arith.addf %432, %434 : vector<8x128xf32>
    %436 = vector.broadcast %6 : f32 to vector<8x128xf32>
    %437 = arith.mulf %436, %414 : vector<8x128xf32>
    %438 = arith.addf %435, %437 : vector<8x128xf32>
    %439 = vector.broadcast %7 : f32 to vector<8x128xf32>
    %440 = arith.mulf %439, %416 : vector<8x128xf32>
    %441 = arith.addf %438, %440 : vector<8x128xf32>
    %442 = vector.broadcast %8 : f32 to vector<8x128xf32>
    %443 = arith.mulf %442, %418 : vector<8x128xf32>
    %444 = arith.addf %441, %443 : vector<8x128xf32>
    %cst_180 = arith.constant dense<0.000000e+00> : vector<128xf32>
    %445 = vector.multi_reduction <add>, %444, %cst_180 [0] : vector<8x128xf32> to vector<128xf32>
    %446 = vector.shape_cast %445 : vector<128xf32> to vector<1x128xf32>
    %447 = arith.mulf %444, %444 : vector<8x128xf32>
    %cst_181 = arith.constant dense<0.000000e+00> : vector<128xf32>
    %448 = vector.multi_reduction <add>, %447, %cst_181 [0] : vector<8x128xf32> to vector<128xf32>
    %449 = vector.shape_cast %448 : vector<128xf32> to vector<1x128xf32>
    %450 = arith.addf %267, %446 : vector<1x128xf32>
    %451 = arith.addf %268, %449 : vector<1x128xf32>
    %452 = vector.broadcast %9 : f32 to vector<8x128xf32>
    %453 = arith.mulf %452, %402 : vector<8x128xf32>
    %454 = vector.broadcast %10 : f32 to vector<8x128xf32>
    %455 = arith.mulf %454, %404 : vector<8x128xf32>
    %456 = arith.addf %453, %455 : vector<8x128xf32>
    %457 = vector.broadcast %11 : f32 to vector<8x128xf32>
    %458 = arith.mulf %457, %406 : vector<8x128xf32>
    %459 = arith.addf %456, %458 : vector<8x128xf32>
    %460 = vector.broadcast %12 : f32 to vector<8x128xf32>
    %461 = arith.mulf %460, %408 : vector<8x128xf32>
    %462 = arith.addf %459, %461 : vector<8x128xf32>
    %463 = vector.broadcast %13 : f32 to vector<8x128xf32>
    %464 = arith.mulf %463, %410 : vector<8x128xf32>
    %465 = arith.addf %462, %464 : vector<8x128xf32>
    %466 = vector.broadcast %14 : f32 to vector<8x128xf32>
    %467 = arith.mulf %466, %412 : vector<8x128xf32>
    %468 = arith.addf %465, %467 : vector<8x128xf32>
    %469 = vector.broadcast %15 : f32 to vector<8x128xf32>
    %470 = arith.mulf %469, %414 : vector<8x128xf32>
    %471 = arith.addf %468, %470 : vector<8x128xf32>
    %472 = vector.broadcast %16 : f32 to vector<8x128xf32>
    %473 = arith.mulf %472, %416 : vector<8x128xf32>
    %474 = arith.addf %471, %473 : vector<8x128xf32>
    %475 = vector.broadcast %17 : f32 to vector<8x128xf32>
    %476 = arith.mulf %475, %418 : vector<8x128xf32>
    %477 = arith.addf %474, %476 : vector<8x128xf32>
    %cst_182 = arith.constant dense<0.000000e+00> : vector<128xf32>
    %478 = vector.multi_reduction <add>, %477, %cst_182 [0] : vector<8x128xf32> to vector<128xf32>
    %479 = vector.shape_cast %478 : vector<128xf32> to vector<1x128xf32>
    %480 = arith.mulf %477, %477 : vector<8x128xf32>
    %cst_183 = arith.constant dense<0.000000e+00> : vector<128xf32>
    %481 = vector.multi_reduction <add>, %480, %cst_183 [0] : vector<8x128xf32> to vector<128xf32>
    %482 = vector.shape_cast %481 : vector<128xf32> to vector<1x128xf32>
    %483 = arith.addf %300, %479 : vector<1x128xf32>
    %484 = arith.addf %301, %482 : vector<1x128xf32>
    %485 = vector.broadcast %18 : f32 to vector<8x128xf32>
    %486 = arith.mulf %485, %402 : vector<8x128xf32>
    %487 = vector.broadcast %19 : f32 to vector<8x128xf32>
    %488 = arith.mulf %487, %404 : vector<8x128xf32>
    %489 = arith.addf %486, %488 : vector<8x128xf32>
    %490 = vector.broadcast %20 : f32 to vector<8x128xf32>
    %491 = arith.mulf %490, %406 : vector<8x128xf32>
    %492 = arith.addf %489, %491 : vector<8x128xf32>
    %493 = vector.broadcast %21 : f32 to vector<8x128xf32>
    %494 = arith.mulf %493, %408 : vector<8x128xf32>
    %495 = arith.addf %492, %494 : vector<8x128xf32>
    %496 = vector.broadcast %22 : f32 to vector<8x128xf32>
    %497 = arith.mulf %496, %410 : vector<8x128xf32>
    %498 = arith.addf %495, %497 : vector<8x128xf32>
    %499 = vector.broadcast %23 : f32 to vector<8x128xf32>
    %500 = arith.mulf %499, %412 : vector<8x128xf32>
    %501 = arith.addf %498, %500 : vector<8x128xf32>
    %502 = vector.broadcast %24 : f32 to vector<8x128xf32>
    %503 = arith.mulf %502, %414 : vector<8x128xf32>
    %504 = arith.addf %501, %503 : vector<8x128xf32>
    %505 = vector.broadcast %25 : f32 to vector<8x128xf32>
    %506 = arith.mulf %505, %416 : vector<8x128xf32>
    %507 = arith.addf %504, %506 : vector<8x128xf32>
    %508 = vector.broadcast %26 : f32 to vector<8x128xf32>
    %509 = arith.mulf %508, %418 : vector<8x128xf32>
    %510 = arith.addf %507, %509 : vector<8x128xf32>
    %cst_184 = arith.constant dense<0.000000e+00> : vector<128xf32>
    %511 = vector.multi_reduction <add>, %510, %cst_184 [0] : vector<8x128xf32> to vector<128xf32>
    %512 = vector.shape_cast %511 : vector<128xf32> to vector<1x128xf32>
    %513 = arith.mulf %510, %510 : vector<8x128xf32>
    %cst_185 = arith.constant dense<0.000000e+00> : vector<128xf32>
    %514 = vector.multi_reduction <add>, %513, %cst_185 [0] : vector<8x128xf32> to vector<128xf32>
    %515 = vector.shape_cast %514 : vector<128xf32> to vector<1x128xf32>
    %516 = arith.addf %333, %512 : vector<1x128xf32>
    %517 = arith.addf %334, %515 : vector<1x128xf32>
    %518 = vector.broadcast %27 : f32 to vector<8x128xf32>
    %519 = arith.mulf %518, %402 : vector<8x128xf32>
    %520 = vector.broadcast %28 : f32 to vector<8x128xf32>
    %521 = arith.mulf %520, %404 : vector<8x128xf32>
    %522 = arith.addf %519, %521 : vector<8x128xf32>
    %523 = vector.broadcast %29 : f32 to vector<8x128xf32>
    %524 = arith.mulf %523, %406 : vector<8x128xf32>
    %525 = arith.addf %522, %524 : vector<8x128xf32>
    %526 = vector.broadcast %30 : f32 to vector<8x128xf32>
    %527 = arith.mulf %526, %408 : vector<8x128xf32>
    %528 = arith.addf %525, %527 : vector<8x128xf32>
    %529 = vector.broadcast %31 : f32 to vector<8x128xf32>
    %530 = arith.mulf %529, %410 : vector<8x128xf32>
    %531 = arith.addf %528, %530 : vector<8x128xf32>
    %532 = vector.broadcast %32 : f32 to vector<8x128xf32>
    %533 = arith.mulf %532, %412 : vector<8x128xf32>
    %534 = arith.addf %531, %533 : vector<8x128xf32>
    %535 = vector.broadcast %33 : f32 to vector<8x128xf32>
    %536 = arith.mulf %535, %414 : vector<8x128xf32>
    %537 = arith.addf %534, %536 : vector<8x128xf32>
    %538 = vector.broadcast %34 : f32 to vector<8x128xf32>
    %539 = arith.mulf %538, %416 : vector<8x128xf32>
    %540 = arith.addf %537, %539 : vector<8x128xf32>
    %541 = vector.broadcast %35 : f32 to vector<8x128xf32>
    %542 = arith.mulf %541, %418 : vector<8x128xf32>
    %543 = arith.addf %540, %542 : vector<8x128xf32>
    %cst_186 = arith.constant dense<0.000000e+00> : vector<128xf32>
    %544 = vector.multi_reduction <add>, %543, %cst_186 [0] : vector<8x128xf32> to vector<128xf32>
    %545 = vector.shape_cast %544 : vector<128xf32> to vector<1x128xf32>
    %546 = arith.mulf %543, %543 : vector<8x128xf32>
    %cst_187 = arith.constant dense<0.000000e+00> : vector<128xf32>
    %547 = vector.multi_reduction <add>, %546, %cst_187 [0] : vector<8x128xf32> to vector<128xf32>
    %548 = vector.shape_cast %547 : vector<128xf32> to vector<1x128xf32>
    %549 = arith.addf %366, %545 : vector<1x128xf32>
    %550 = arith.addf %367, %548 : vector<1x128xf32>
    %551 = vector.broadcast %36 : f32 to vector<8x128xf32>
    %552 = arith.mulf %551, %402 : vector<8x128xf32>
    %553 = vector.broadcast %37 : f32 to vector<8x128xf32>
    %554 = arith.mulf %553, %404 : vector<8x128xf32>
    %555 = arith.addf %552, %554 : vector<8x128xf32>
    %556 = vector.broadcast %38 : f32 to vector<8x128xf32>
    %557 = arith.mulf %556, %406 : vector<8x128xf32>
    %558 = arith.addf %555, %557 : vector<8x128xf32>
    %559 = vector.broadcast %39 : f32 to vector<8x128xf32>
    %560 = arith.mulf %559, %408 : vector<8x128xf32>
    %561 = arith.addf %558, %560 : vector<8x128xf32>
    %562 = vector.broadcast %40 : f32 to vector<8x128xf32>
    %563 = arith.mulf %562, %410 : vector<8x128xf32>
    %564 = arith.addf %561, %563 : vector<8x128xf32>
    %565 = vector.broadcast %41 : f32 to vector<8x128xf32>
    %566 = arith.mulf %565, %412 : vector<8x128xf32>
    %567 = arith.addf %564, %566 : vector<8x128xf32>
    %568 = vector.broadcast %42 : f32 to vector<8x128xf32>
    %569 = arith.mulf %568, %414 : vector<8x128xf32>
    %570 = arith.addf %567, %569 : vector<8x128xf32>
    %571 = vector.broadcast %43 : f32 to vector<8x128xf32>
    %572 = arith.mulf %571, %416 : vector<8x128xf32>
    %573 = arith.addf %570, %572 : vector<8x128xf32>
    %574 = vector.broadcast %44 : f32 to vector<8x128xf32>
    %575 = arith.mulf %574, %418 : vector<8x128xf32>
    %576 = arith.addf %573, %575 : vector<8x128xf32>
    %cst_188 = arith.constant dense<0.000000e+00> : vector<128xf32>
    %577 = vector.multi_reduction <add>, %576, %cst_188 [0] : vector<8x128xf32> to vector<128xf32>
    %578 = vector.shape_cast %577 : vector<128xf32> to vector<1x128xf32>
    %579 = arith.mulf %576, %576 : vector<8x128xf32>
    %cst_189 = arith.constant dense<0.000000e+00> : vector<128xf32>
    %580 = vector.multi_reduction <add>, %579, %cst_189 [0] : vector<8x128xf32> to vector<128xf32>
    %581 = vector.shape_cast %580 : vector<128xf32> to vector<1x128xf32>
    %582 = arith.addf %399, %578 : vector<1x128xf32>
    %583 = arith.addf %400, %581 : vector<1x128xf32>
    %c0_190 = arith.constant 0 : index
    %c24 = arith.constant 24 : index
    %c0_191 = arith.constant 0 : index
    %584 = vector.load %arg1[%c0_190, %c24, %c0_191] : memref<9x81x128xf32, #tpu.memory_space<vmem>>, vector<1x8x128xf32>
    %585 = vector.shape_cast %584 : vector<1x8x128xf32> to vector<8x128xf32>
    %c1_192 = arith.constant 1 : index
    %c24_193 = arith.constant 24 : index
    %c0_194 = arith.constant 0 : index
    %586 = vector.load %arg1[%c1_192, %c24_193, %c0_194] : memref<9x81x128xf32, #tpu.memory_space<vmem>>, vector<1x8x128xf32>
    %587 = vector.shape_cast %586 : vector<1x8x128xf32> to vector<8x128xf32>
    %c2_195 = arith.constant 2 : index
    %c24_196 = arith.constant 24 : index
    %c0_197 = arith.constant 0 : index
    %588 = vector.load %arg1[%c2_195, %c24_196, %c0_197] : memref<9x81x128xf32, #tpu.memory_space<vmem>>, vector<1x8x128xf32>
    %589 = vector.shape_cast %588 : vector<1x8x128xf32> to vector<8x128xf32>
    %c3_198 = arith.constant 3 : index
    %c24_199 = arith.constant 24 : index
    %c0_200 = arith.constant 0 : index
    %590 = vector.load %arg1[%c3_198, %c24_199, %c0_200] : memref<9x81x128xf32, #tpu.memory_space<vmem>>, vector<1x8x128xf32>
    %591 = vector.shape_cast %590 : vector<1x8x128xf32> to vector<8x128xf32>
    %c4_201 = arith.constant 4 : index
    %c24_202 = arith.constant 24 : index
    %c0_203 = arith.constant 0 : index
    %592 = vector.load %arg1[%c4_201, %c24_202, %c0_203] : memref<9x81x128xf32, #tpu.memory_space<vmem>>, vector<1x8x128xf32>
    %593 = vector.shape_cast %592 : vector<1x8x128xf32> to vector<8x128xf32>
    %c5_204 = arith.constant 5 : index
    %c24_205 = arith.constant 24 : index
    %c0_206 = arith.constant 0 : index
    %594 = vector.load %arg1[%c5_204, %c24_205, %c0_206] : memref<9x81x128xf32, #tpu.memory_space<vmem>>, vector<1x8x128xf32>
    %595 = vector.shape_cast %594 : vector<1x8x128xf32> to vector<8x128xf32>
    %c6_207 = arith.constant 6 : index
    %c24_208 = arith.constant 24 : index
    %c0_209 = arith.constant 0 : index
    %596 = vector.load %arg1[%c6_207, %c24_208, %c0_209] : memref<9x81x128xf32, #tpu.memory_space<vmem>>, vector<1x8x128xf32>
    %597 = vector.shape_cast %596 : vector<1x8x128xf32> to vector<8x128xf32>
    %c7_210 = arith.constant 7 : index
    %c24_211 = arith.constant 24 : index
    %c0_212 = arith.constant 0 : index
    %598 = vector.load %arg1[%c7_210, %c24_211, %c0_212] : memref<9x81x128xf32, #tpu.memory_space<vmem>>, vector<1x8x128xf32>
    %599 = vector.shape_cast %598 : vector<1x8x128xf32> to vector<8x128xf32>
    %c8_213 = arith.constant 8 : index
    %c24_214 = arith.constant 24 : index
    %c0_215 = arith.constant 0 : index
    %600 = vector.load %arg1[%c8_213, %c24_214, %c0_215] : memref<9x81x128xf32, #tpu.memory_space<vmem>>, vector<1x8x128xf32>
    %601 = vector.shape_cast %600 : vector<1x8x128xf32> to vector<8x128xf32>
    %602 = vector.broadcast %0 : f32 to vector<8x128xf32>
    %603 = arith.mulf %602, %585 : vector<8x128xf32>
    %604 = vector.broadcast %1 : f32 to vector<8x128xf32>
    %605 = arith.mulf %604, %587 : vector<8x128xf32>
    %606 = arith.addf %603, %605 : vector<8x128xf32>
    %607 = vector.broadcast %2 : f32 to vector<8x128xf32>
    %608 = arith.mulf %607, %589 : vector<8x128xf32>
    %609 = arith.addf %606, %608 : vector<8x128xf32>
    %610 = vector.broadcast %3 : f32 to vector<8x128xf32>
    %611 = arith.mulf %610, %591 : vector<8x128xf32>
    %612 = arith.addf %609, %611 : vector<8x128xf32>
    %613 = vector.broadcast %4 : f32 to vector<8x128xf32>
    %614 = arith.mulf %613, %593 : vector<8x128xf32>
    %615 = arith.addf %612, %614 : vector<8x128xf32>
    %616 = vector.broadcast %5 : f32 to vector<8x128xf32>
    %617 = arith.mulf %616, %595 : vector<8x128xf32>
    %618 = arith.addf %615, %617 : vector<8x128xf32>
    %619 = vector.broadcast %6 : f32 to vector<8x128xf32>
    %620 = arith.mulf %619, %597 : vector<8x128xf32>
    %621 = arith.addf %618, %620 : vector<8x128xf32>
    %622 = vector.broadcast %7 : f32 to vector<8x128xf32>
    %623 = arith.mulf %622, %599 : vector<8x128xf32>
    %624 = arith.addf %621, %623 : vector<8x128xf32>
    %625 = vector.broadcast %8 : f32 to vector<8x128xf32>
    %626 = arith.mulf %625, %601 : vector<8x128xf32>
    %627 = arith.addf %624, %626 : vector<8x128xf32>
    %cst_216 = arith.constant dense<0.000000e+00> : vector<128xf32>
    %628 = vector.multi_reduction <add>, %627, %cst_216 [0] : vector<8x128xf32> to vector<128xf32>
    %629 = vector.shape_cast %628 : vector<128xf32> to vector<1x128xf32>
    %630 = arith.mulf %627, %627 : vector<8x128xf32>
    %cst_217 = arith.constant dense<0.000000e+00> : vector<128xf32>
    %631 = vector.multi_reduction <add>, %630, %cst_217 [0] : vector<8x128xf32> to vector<128xf32>
    %632 = vector.shape_cast %631 : vector<128xf32> to vector<1x128xf32>
    %633 = arith.addf %450, %629 : vector<1x128xf32>
    %634 = arith.addf %451, %632 : vector<1x128xf32>
    %635 = vector.broadcast %9 : f32 to vector<8x128xf32>
    %636 = arith.mulf %635, %585 : vector<8x128xf32>
    %637 = vector.broadcast %10 : f32 to vector<8x128xf32>
    %638 = arith.mulf %637, %587 : vector<8x128xf32>
    %639 = arith.addf %636, %638 : vector<8x128xf32>
    %640 = vector.broadcast %11 : f32 to vector<8x128xf32>
    %641 = arith.mulf %640, %589 : vector<8x128xf32>
    %642 = arith.addf %639, %641 : vector<8x128xf32>
    %643 = vector.broadcast %12 : f32 to vector<8x128xf32>
    %644 = arith.mulf %643, %591 : vector<8x128xf32>
    %645 = arith.addf %642, %644 : vector<8x128xf32>
    %646 = vector.broadcast %13 : f32 to vector<8x128xf32>
    %647 = arith.mulf %646, %593 : vector<8x128xf32>
    %648 = arith.addf %645, %647 : vector<8x128xf32>
    %649 = vector.broadcast %14 : f32 to vector<8x128xf32>
    %650 = arith.mulf %649, %595 : vector<8x128xf32>
    %651 = arith.addf %648, %650 : vector<8x128xf32>
    %652 = vector.broadcast %15 : f32 to vector<8x128xf32>
    %653 = arith.mulf %652, %597 : vector<8x128xf32>
    %654 = arith.addf %651, %653 : vector<8x128xf32>
    %655 = vector.broadcast %16 : f32 to vector<8x128xf32>
    %656 = arith.mulf %655, %599 : vector<8x128xf32>
    %657 = arith.addf %654, %656 : vector<8x128xf32>
    %658 = vector.broadcast %17 : f32 to vector<8x128xf32>
    %659 = arith.mulf %658, %601 : vector<8x128xf32>
    %660 = arith.addf %657, %659 : vector<8x128xf32>
    %cst_218 = arith.constant dense<0.000000e+00> : vector<128xf32>
    %661 = vector.multi_reduction <add>, %660, %cst_218 [0] : vector<8x128xf32> to vector<128xf32>
    %662 = vector.shape_cast %661 : vector<128xf32> to vector<1x128xf32>
    %663 = arith.mulf %660, %660 : vector<8x128xf32>
    %cst_219 = arith.constant dense<0.000000e+00> : vector<128xf32>
    %664 = vector.multi_reduction <add>, %663, %cst_219 [0] : vector<8x128xf32> to vector<128xf32>
    %665 = vector.shape_cast %664 : vector<128xf32> to vector<1x128xf32>
    %666 = arith.addf %483, %662 : vector<1x128xf32>
    %667 = arith.addf %484, %665 : vector<1x128xf32>
    %668 = vector.broadcast %18 : f32 to vector<8x128xf32>
    %669 = arith.mulf %668, %585 : vector<8x128xf32>
    %670 = vector.broadcast %19 : f32 to vector<8x128xf32>
    %671 = arith.mulf %670, %587 : vector<8x128xf32>
    %672 = arith.addf %669, %671 : vector<8x128xf32>
    %673 = vector.broadcast %20 : f32 to vector<8x128xf32>
    %674 = arith.mulf %673, %589 : vector<8x128xf32>
    %675 = arith.addf %672, %674 : vector<8x128xf32>
    %676 = vector.broadcast %21 : f32 to vector<8x128xf32>
    %677 = arith.mulf %676, %591 : vector<8x128xf32>
    %678 = arith.addf %675, %677 : vector<8x128xf32>
    %679 = vector.broadcast %22 : f32 to vector<8x128xf32>
    %680 = arith.mulf %679, %593 : vector<8x128xf32>
    %681 = arith.addf %678, %680 : vector<8x128xf32>
    %682 = vector.broadcast %23 : f32 to vector<8x128xf32>
    %683 = arith.mulf %682, %595 : vector<8x128xf32>
    %684 = arith.addf %681, %683 : vector<8x128xf32>
    %685 = vector.broadcast %24 : f32 to vector<8x128xf32>
    %686 = arith.mulf %685, %597 : vector<8x128xf32>
    %687 = arith.addf %684, %686 : vector<8x128xf32>
    %688 = vector.broadcast %25 : f32 to vector<8x128xf32>
    %689 = arith.mulf %688, %599 : vector<8x128xf32>
    %690 = arith.addf %687, %689 : vector<8x128xf32>
    %691 = vector.broadcast %26 : f32 to vector<8x128xf32>
    %692 = arith.mulf %691, %601 : vector<8x128xf32>
    %693 = arith.addf %690, %692 : vector<8x128xf32>
    %cst_220 = arith.constant dense<0.000000e+00> : vector<128xf32>
    %694 = vector.multi_reduction <add>, %693, %cst_220 [0] : vector<8x128xf32> to vector<128xf32>
    %695 = vector.shape_cast %694 : vector<128xf32> to vector<1x128xf32>
    %696 = arith.mulf %693, %693 : vector<8x128xf32>
    %cst_221 = arith.constant dense<0.000000e+00> : vector<128xf32>
    %697 = vector.multi_reduction <add>, %696, %cst_221 [0] : vector<8x128xf32> to vector<128xf32>
    %698 = vector.shape_cast %697 : vector<128xf32> to vector<1x128xf32>
    %699 = arith.addf %516, %695 : vector<1x128xf32>
    %700 = arith.addf %517, %698 : vector<1x128xf32>
    %701 = vector.broadcast %27 : f32 to vector<8x128xf32>
    %702 = arith.mulf %701, %585 : vector<8x128xf32>
    %703 = vector.broadcast %28 : f32 to vector<8x128xf32>
    %704 = arith.mulf %703, %587 : vector<8x128xf32>
    %705 = arith.addf %702, %704 : vector<8x128xf32>
    %706 = vector.broadcast %29 : f32 to vector<8x128xf32>
    %707 = arith.mulf %706, %589 : vector<8x128xf32>
    %708 = arith.addf %705, %707 : vector<8x128xf32>
    %709 = vector.broadcast %30 : f32 to vector<8x128xf32>
    %710 = arith.mulf %709, %591 : vector<8x128xf32>
    %711 = arith.addf %708, %710 : vector<8x128xf32>
    %712 = vector.broadcast %31 : f32 to vector<8x128xf32>
    %713 = arith.mulf %712, %593 : vector<8x128xf32>
    %714 = arith.addf %711, %713 : vector<8x128xf32>
    %715 = vector.broadcast %32 : f32 to vector<8x128xf32>
    %716 = arith.mulf %715, %595 : vector<8x128xf32>
    %717 = arith.addf %714, %716 : vector<8x128xf32>
    %718 = vector.broadcast %33 : f32 to vector<8x128xf32>
    %719 = arith.mulf %718, %597 : vector<8x128xf32>
    %720 = arith.addf %717, %719 : vector<8x128xf32>
    %721 = vector.broadcast %34 : f32 to vector<8x128xf32>
    %722 = arith.mulf %721, %599 : vector<8x128xf32>
    %723 = arith.addf %720, %722 : vector<8x128xf32>
    %724 = vector.broadcast %35 : f32 to vector<8x128xf32>
    %725 = arith.mulf %724, %601 : vector<8x128xf32>
    %726 = arith.addf %723, %725 : vector<8x128xf32>
    %cst_222 = arith.constant dense<0.000000e+00> : vector<128xf32>
    %727 = vector.multi_reduction <add>, %726, %cst_222 [0] : vector<8x128xf32> to vector<128xf32>
    %728 = vector.shape_cast %727 : vector<128xf32> to vector<1x128xf32>
    %729 = arith.mulf %726, %726 : vector<8x128xf32>
    %cst_223 = arith.constant dense<0.000000e+00> : vector<128xf32>
    %730 = vector.multi_reduction <add>, %729, %cst_223 [0] : vector<8x128xf32> to vector<128xf32>
    %731 = vector.shape_cast %730 : vector<128xf32> to vector<1x128xf32>
    %732 = arith.addf %549, %728 : vector<1x128xf32>
    %733 = arith.addf %550, %731 : vector<1x128xf32>
    %734 = vector.broadcast %36 : f32 to vector<8x128xf32>
    %735 = arith.mulf %734, %585 : vector<8x128xf32>
    %736 = vector.broadcast %37 : f32 to vector<8x128xf32>
    %737 = arith.mulf %736, %587 : vector<8x128xf32>
    %738 = arith.addf %735, %737 : vector<8x128xf32>
    %739 = vector.broadcast %38 : f32 to vector<8x128xf32>
    %740 = arith.mulf %739, %589 : vector<8x128xf32>
    %741 = arith.addf %738, %740 : vector<8x128xf32>
    %742 = vector.broadcast %39 : f32 to vector<8x128xf32>
    %743 = arith.mulf %742, %591 : vector<8x128xf32>
    %744 = arith.addf %741, %743 : vector<8x128xf32>
    %745 = vector.broadcast %40 : f32 to vector<8x128xf32>
    %746 = arith.mulf %745, %593 : vector<8x128xf32>
    %747 = arith.addf %744, %746 : vector<8x128xf32>
    %748 = vector.broadcast %41 : f32 to vector<8x128xf32>
    %749 = arith.mulf %748, %595 : vector<8x128xf32>
    %750 = arith.addf %747, %749 : vector<8x128xf32>
    %751 = vector.broadcast %42 : f32 to vector<8x128xf32>
    %752 = arith.mulf %751, %597 : vector<8x128xf32>
    %753 = arith.addf %750, %752 : vector<8x128xf32>
    %754 = vector.broadcast %43 : f32 to vector<8x128xf32>
    %755 = arith.mulf %754, %599 : vector<8x128xf32>
    %756 = arith.addf %753, %755 : vector<8x128xf32>
    %757 = vector.broadcast %44 : f32 to vector<8x128xf32>
    %758 = arith.mulf %757, %601 : vector<8x128xf32>
    %759 = arith.addf %756, %758 : vector<8x128xf32>
    %cst_224 = arith.constant dense<0.000000e+00> : vector<128xf32>
    %760 = vector.multi_reduction <add>, %759, %cst_224 [0] : vector<8x128xf32> to vector<128xf32>
    %761 = vector.shape_cast %760 : vector<128xf32> to vector<1x128xf32>
    %762 = arith.mulf %759, %759 : vector<8x128xf32>
    %cst_225 = arith.constant dense<0.000000e+00> : vector<128xf32>
    %763 = vector.multi_reduction <add>, %762, %cst_225 [0] : vector<8x128xf32> to vector<128xf32>
    %764 = vector.shape_cast %763 : vector<128xf32> to vector<1x128xf32>
    %765 = arith.addf %582, %761 : vector<1x128xf32>
    %766 = arith.addf %583, %764 : vector<1x128xf32>
    %c0_226 = arith.constant 0 : index
    %c32 = arith.constant 32 : index
    %c0_227 = arith.constant 0 : index
    %767 = vector.load %arg1[%c0_226, %c32, %c0_227] : memref<9x81x128xf32, #tpu.memory_space<vmem>>, vector<1x8x128xf32>
    %768 = vector.shape_cast %767 : vector<1x8x128xf32> to vector<8x128xf32>
    %c1_228 = arith.constant 1 : index
    %c32_229 = arith.constant 32 : index
    %c0_230 = arith.constant 0 : index
    %769 = vector.load %arg1[%c1_228, %c32_229, %c0_230] : memref<9x81x128xf32, #tpu.memory_space<vmem>>, vector<1x8x128xf32>
    %770 = vector.shape_cast %769 : vector<1x8x128xf32> to vector<8x128xf32>
    %c2_231 = arith.constant 2 : index
    %c32_232 = arith.constant 32 : index
    %c0_233 = arith.constant 0 : index
    %771 = vector.load %arg1[%c2_231, %c32_232, %c0_233] : memref<9x81x128xf32, #tpu.memory_space<vmem>>, vector<1x8x128xf32>
    %772 = vector.shape_cast %771 : vector<1x8x128xf32> to vector<8x128xf32>
    %c3_234 = arith.constant 3 : index
    %c32_235 = arith.constant 32 : index
    %c0_236 = arith.constant 0 : index
    %773 = vector.load %arg1[%c3_234, %c32_235, %c0_236] : memref<9x81x128xf32, #tpu.memory_space<vmem>>, vector<1x8x128xf32>
    %774 = vector.shape_cast %773 : vector<1x8x128xf32> to vector<8x128xf32>
    %c4_237 = arith.constant 4 : index
    %c32_238 = arith.constant 32 : index
    %c0_239 = arith.constant 0 : index
    %775 = vector.load %arg1[%c4_237, %c32_238, %c0_239] : memref<9x81x128xf32, #tpu.memory_space<vmem>>, vector<1x8x128xf32>
    %776 = vector.shape_cast %775 : vector<1x8x128xf32> to vector<8x128xf32>
    %c5_240 = arith.constant 5 : index
    %c32_241 = arith.constant 32 : index
    %c0_242 = arith.constant 0 : index
    %777 = vector.load %arg1[%c5_240, %c32_241, %c0_242] : memref<9x81x128xf32, #tpu.memory_space<vmem>>, vector<1x8x128xf32>
    %778 = vector.shape_cast %777 : vector<1x8x128xf32> to vector<8x128xf32>
    %c6_243 = arith.constant 6 : index
    %c32_244 = arith.constant 32 : index
    %c0_245 = arith.constant 0 : index
    %779 = vector.load %arg1[%c6_243, %c32_244, %c0_245] : memref<9x81x128xf32, #tpu.memory_space<vmem>>, vector<1x8x128xf32>
    %780 = vector.shape_cast %779 : vector<1x8x128xf32> to vector<8x128xf32>
    %c7_246 = arith.constant 7 : index
    %c32_247 = arith.constant 32 : index
    %c0_248 = arith.constant 0 : index
    %781 = vector.load %arg1[%c7_246, %c32_247, %c0_248] : memref<9x81x128xf32, #tpu.memory_space<vmem>>, vector<1x8x128xf32>
    %782 = vector.shape_cast %781 : vector<1x8x128xf32> to vector<8x128xf32>
    %c8_249 = arith.constant 8 : index
    %c32_250 = arith.constant 32 : index
    %c0_251 = arith.constant 0 : index
    %783 = vector.load %arg1[%c8_249, %c32_250, %c0_251] : memref<9x81x128xf32, #tpu.memory_space<vmem>>, vector<1x8x128xf32>
    %784 = vector.shape_cast %783 : vector<1x8x128xf32> to vector<8x128xf32>
    %785 = vector.broadcast %0 : f32 to vector<8x128xf32>
    %786 = arith.mulf %785, %768 : vector<8x128xf32>
    %787 = vector.broadcast %1 : f32 to vector<8x128xf32>
    %788 = arith.mulf %787, %770 : vector<8x128xf32>
    %789 = arith.addf %786, %788 : vector<8x128xf32>
    %790 = vector.broadcast %2 : f32 to vector<8x128xf32>
    %791 = arith.mulf %790, %772 : vector<8x128xf32>
    %792 = arith.addf %789, %791 : vector<8x128xf32>
    %793 = vector.broadcast %3 : f32 to vector<8x128xf32>
    %794 = arith.mulf %793, %774 : vector<8x128xf32>
    %795 = arith.addf %792, %794 : vector<8x128xf32>
    %796 = vector.broadcast %4 : f32 to vector<8x128xf32>
    %797 = arith.mulf %796, %776 : vector<8x128xf32>
    %798 = arith.addf %795, %797 : vector<8x128xf32>
    %799 = vector.broadcast %5 : f32 to vector<8x128xf32>
    %800 = arith.mulf %799, %778 : vector<8x128xf32>
    %801 = arith.addf %798, %800 : vector<8x128xf32>
    %802 = vector.broadcast %6 : f32 to vector<8x128xf32>
    %803 = arith.mulf %802, %780 : vector<8x128xf32>
    %804 = arith.addf %801, %803 : vector<8x128xf32>
    %805 = vector.broadcast %7 : f32 to vector<8x128xf32>
    %806 = arith.mulf %805, %782 : vector<8x128xf32>
    %807 = arith.addf %804, %806 : vector<8x128xf32>
    %808 = vector.broadcast %8 : f32 to vector<8x128xf32>
    %809 = arith.mulf %808, %784 : vector<8x128xf32>
    %810 = arith.addf %807, %809 : vector<8x128xf32>
    %cst_252 = arith.constant dense<0.000000e+00> : vector<128xf32>
    %811 = vector.multi_reduction <add>, %810, %cst_252 [0] : vector<8x128xf32> to vector<128xf32>
    %812 = vector.shape_cast %811 : vector<128xf32> to vector<1x128xf32>
    %813 = arith.mulf %810, %810 : vector<8x128xf32>
    %cst_253 = arith.constant dense<0.000000e+00> : vector<128xf32>
    %814 = vector.multi_reduction <add>, %813, %cst_253 [0] : vector<8x128xf32> to vector<128xf32>
    %815 = vector.shape_cast %814 : vector<128xf32> to vector<1x128xf32>
    %816 = arith.addf %633, %812 : vector<1x128xf32>
    %817 = arith.addf %634, %815 : vector<1x128xf32>
    %818 = vector.broadcast %9 : f32 to vector<8x128xf32>
    %819 = arith.mulf %818, %768 : vector<8x128xf32>
    %820 = vector.broadcast %10 : f32 to vector<8x128xf32>
    %821 = arith.mulf %820, %770 : vector<8x128xf32>
    %822 = arith.addf %819, %821 : vector<8x128xf32>
    %823 = vector.broadcast %11 : f32 to vector<8x128xf32>
    %824 = arith.mulf %823, %772 : vector<8x128xf32>
    %825 = arith.addf %822, %824 : vector<8x128xf32>
    %826 = vector.broadcast %12 : f32 to vector<8x128xf32>
    %827 = arith.mulf %826, %774 : vector<8x128xf32>
    %828 = arith.addf %825, %827 : vector<8x128xf32>
    %829 = vector.broadcast %13 : f32 to vector<8x128xf32>
    %830 = arith.mulf %829, %776 : vector<8x128xf32>
    %831 = arith.addf %828, %830 : vector<8x128xf32>
    %832 = vector.broadcast %14 : f32 to vector<8x128xf32>
    %833 = arith.mulf %832, %778 : vector<8x128xf32>
    %834 = arith.addf %831, %833 : vector<8x128xf32>
    %835 = vector.broadcast %15 : f32 to vector<8x128xf32>
    %836 = arith.mulf %835, %780 : vector<8x128xf32>
    %837 = arith.addf %834, %836 : vector<8x128xf32>
    %838 = vector.broadcast %16 : f32 to vector<8x128xf32>
    %839 = arith.mulf %838, %782 : vector<8x128xf32>
    %840 = arith.addf %837, %839 : vector<8x128xf32>
    %841 = vector.broadcast %17 : f32 to vector<8x128xf32>
    %842 = arith.mulf %841, %784 : vector<8x128xf32>
    %843 = arith.addf %840, %842 : vector<8x128xf32>
    %cst_254 = arith.constant dense<0.000000e+00> : vector<128xf32>
    %844 = vector.multi_reduction <add>, %843, %cst_254 [0] : vector<8x128xf32> to vector<128xf32>
    %845 = vector.shape_cast %844 : vector<128xf32> to vector<1x128xf32>
    %846 = arith.mulf %843, %843 : vector<8x128xf32>
    %cst_255 = arith.constant dense<0.000000e+00> : vector<128xf32>
    %847 = vector.multi_reduction <add>, %846, %cst_255 [0] : vector<8x128xf32> to vector<128xf32>
    %848 = vector.shape_cast %847 : vector<128xf32> to vector<1x128xf32>
    %849 = arith.addf %666, %845 : vector<1x128xf32>
    %850 = arith.addf %667, %848 : vector<1x128xf32>
    %851 = vector.broadcast %18 : f32 to vector<8x128xf32>
    %852 = arith.mulf %851, %768 : vector<8x128xf32>
    %853 = vector.broadcast %19 : f32 to vector<8x128xf32>
    %854 = arith.mulf %853, %770 : vector<8x128xf32>
    %855 = arith.addf %852, %854 : vector<8x128xf32>
    %856 = vector.broadcast %20 : f32 to vector<8x128xf32>
    %857 = arith.mulf %856, %772 : vector<8x128xf32>
    %858 = arith.addf %855, %857 : vector<8x128xf32>
    %859 = vector.broadcast %21 : f32 to vector<8x128xf32>
    %860 = arith.mulf %859, %774 : vector<8x128xf32>
    %861 = arith.addf %858, %860 : vector<8x128xf32>
    %862 = vector.broadcast %22 : f32 to vector<8x128xf32>
    %863 = arith.mulf %862, %776 : vector<8x128xf32>
    %864 = arith.addf %861, %863 : vector<8x128xf32>
    %865 = vector.broadcast %23 : f32 to vector<8x128xf32>
    %866 = arith.mulf %865, %778 : vector<8x128xf32>
    %867 = arith.addf %864, %866 : vector<8x128xf32>
    %868 = vector.broadcast %24 : f32 to vector<8x128xf32>
    %869 = arith.mulf %868, %780 : vector<8x128xf32>
    %870 = arith.addf %867, %869 : vector<8x128xf32>
    %871 = vector.broadcast %25 : f32 to vector<8x128xf32>
    %872 = arith.mulf %871, %782 : vector<8x128xf32>
    %873 = arith.addf %870, %872 : vector<8x128xf32>
    %874 = vector.broadcast %26 : f32 to vector<8x128xf32>
    %875 = arith.mulf %874, %784 : vector<8x128xf32>
    %876 = arith.addf %873, %875 : vector<8x128xf32>
    %cst_256 = arith.constant dense<0.000000e+00> : vector<128xf32>
    %877 = vector.multi_reduction <add>, %876, %cst_256 [0] : vector<8x128xf32> to vector<128xf32>
    %878 = vector.shape_cast %877 : vector<128xf32> to vector<1x128xf32>
    %879 = arith.mulf %876, %876 : vector<8x128xf32>
    %cst_257 = arith.constant dense<0.000000e+00> : vector<128xf32>
    %880 = vector.multi_reduction <add>, %879, %cst_257 [0] : vector<8x128xf32> to vector<128xf32>
    %881 = vector.shape_cast %880 : vector<128xf32> to vector<1x128xf32>
    %882 = arith.addf %699, %878 : vector<1x128xf32>
    %883 = arith.addf %700, %881 : vector<1x128xf32>
    %884 = vector.broadcast %27 : f32 to vector<8x128xf32>
    %885 = arith.mulf %884, %768 : vector<8x128xf32>
    %886 = vector.broadcast %28 : f32 to vector<8x128xf32>
    %887 = arith.mulf %886, %770 : vector<8x128xf32>
    %888 = arith.addf %885, %887 : vector<8x128xf32>
    %889 = vector.broadcast %29 : f32 to vector<8x128xf32>
    %890 = arith.mulf %889, %772 : vector<8x128xf32>
    %891 = arith.addf %888, %890 : vector<8x128xf32>
    %892 = vector.broadcast %30 : f32 to vector<8x128xf32>
    %893 = arith.mulf %892, %774 : vector<8x128xf32>
    %894 = arith.addf %891, %893 : vector<8x128xf32>
    %895 = vector.broadcast %31 : f32 to vector<8x128xf32>
    %896 = arith.mulf %895, %776 : vector<8x128xf32>
    %897 = arith.addf %894, %896 : vector<8x128xf32>
    %898 = vector.broadcast %32 : f32 to vector<8x128xf32>
    %899 = arith.mulf %898, %778 : vector<8x128xf32>
    %900 = arith.addf %897, %899 : vector<8x128xf32>
    %901 = vector.broadcast %33 : f32 to vector<8x128xf32>
    %902 = arith.mulf %901, %780 : vector<8x128xf32>
    %903 = arith.addf %900, %902 : vector<8x128xf32>
    %904 = vector.broadcast %34 : f32 to vector<8x128xf32>
    %905 = arith.mulf %904, %782 : vector<8x128xf32>
    %906 = arith.addf %903, %905 : vector<8x128xf32>
    %907 = vector.broadcast %35 : f32 to vector<8x128xf32>
    %908 = arith.mulf %907, %784 : vector<8x128xf32>
    %909 = arith.addf %906, %908 : vector<8x128xf32>
    %cst_258 = arith.constant dense<0.000000e+00> : vector<128xf32>
    %910 = vector.multi_reduction <add>, %909, %cst_258 [0] : vector<8x128xf32> to vector<128xf32>
    %911 = vector.shape_cast %910 : vector<128xf32> to vector<1x128xf32>
    %912 = arith.mulf %909, %909 : vector<8x128xf32>
    %cst_259 = arith.constant dense<0.000000e+00> : vector<128xf32>
    %913 = vector.multi_reduction <add>, %912, %cst_259 [0] : vector<8x128xf32> to vector<128xf32>
    %914 = vector.shape_cast %913 : vector<128xf32> to vector<1x128xf32>
    %915 = arith.addf %732, %911 : vector<1x128xf32>
    %916 = arith.addf %733, %914 : vector<1x128xf32>
    %917 = vector.broadcast %36 : f32 to vector<8x128xf32>
    %918 = arith.mulf %917, %768 : vector<8x128xf32>
    %919 = vector.broadcast %37 : f32 to vector<8x128xf32>
    %920 = arith.mulf %919, %770 : vector<8x128xf32>
    %921 = arith.addf %918, %920 : vector<8x128xf32>
    %922 = vector.broadcast %38 : f32 to vector<8x128xf32>
    %923 = arith.mulf %922, %772 : vector<8x128xf32>
    %924 = arith.addf %921, %923 : vector<8x128xf32>
    %925 = vector.broadcast %39 : f32 to vector<8x128xf32>
    %926 = arith.mulf %925, %774 : vector<8x128xf32>
    %927 = arith.addf %924, %926 : vector<8x128xf32>
    %928 = vector.broadcast %40 : f32 to vector<8x128xf32>
    %929 = arith.mulf %928, %776 : vector<8x128xf32>
    %930 = arith.addf %927, %929 : vector<8x128xf32>
    %931 = vector.broadcast %41 : f32 to vector<8x128xf32>
    %932 = arith.mulf %931, %778 : vector<8x128xf32>
    %933 = arith.addf %930, %932 : vector<8x128xf32>
    %934 = vector.broadcast %42 : f32 to vector<8x128xf32>
    %935 = arith.mulf %934, %780 : vector<8x128xf32>
    %936 = arith.addf %933, %935 : vector<8x128xf32>
    %937 = vector.broadcast %43 : f32 to vector<8x128xf32>
    %938 = arith.mulf %937, %782 : vector<8x128xf32>
    %939 = arith.addf %936, %938 : vector<8x128xf32>
    %940 = vector.broadcast %44 : f32 to vector<8x128xf32>
    %941 = arith.mulf %940, %784 : vector<8x128xf32>
    %942 = arith.addf %939, %941 : vector<8x128xf32>
    %cst_260 = arith.constant dense<0.000000e+00> : vector<128xf32>
    %943 = vector.multi_reduction <add>, %942, %cst_260 [0] : vector<8x128xf32> to vector<128xf32>
    %944 = vector.shape_cast %943 : vector<128xf32> to vector<1x128xf32>
    %945 = arith.mulf %942, %942 : vector<8x128xf32>
    %cst_261 = arith.constant dense<0.000000e+00> : vector<128xf32>
    %946 = vector.multi_reduction <add>, %945, %cst_261 [0] : vector<8x128xf32> to vector<128xf32>
    %947 = vector.shape_cast %946 : vector<128xf32> to vector<1x128xf32>
    %948 = arith.addf %765, %944 : vector<1x128xf32>
    %949 = arith.addf %766, %947 : vector<1x128xf32>
    %c0_262 = arith.constant 0 : index
    %c40 = arith.constant 40 : index
    %c0_263 = arith.constant 0 : index
    %950 = vector.load %arg1[%c0_262, %c40, %c0_263] : memref<9x81x128xf32, #tpu.memory_space<vmem>>, vector<1x8x128xf32>
    %951 = vector.shape_cast %950 : vector<1x8x128xf32> to vector<8x128xf32>
    %c1_264 = arith.constant 1 : index
    %c40_265 = arith.constant 40 : index
    %c0_266 = arith.constant 0 : index
    %952 = vector.load %arg1[%c1_264, %c40_265, %c0_266] : memref<9x81x128xf32, #tpu.memory_space<vmem>>, vector<1x8x128xf32>
    %953 = vector.shape_cast %952 : vector<1x8x128xf32> to vector<8x128xf32>
    %c2_267 = arith.constant 2 : index
    %c40_268 = arith.constant 40 : index
    %c0_269 = arith.constant 0 : index
    %954 = vector.load %arg1[%c2_267, %c40_268, %c0_269] : memref<9x81x128xf32, #tpu.memory_space<vmem>>, vector<1x8x128xf32>
    %955 = vector.shape_cast %954 : vector<1x8x128xf32> to vector<8x128xf32>
    %c3_270 = arith.constant 3 : index
    %c40_271 = arith.constant 40 : index
    %c0_272 = arith.constant 0 : index
    %956 = vector.load %arg1[%c3_270, %c40_271, %c0_272] : memref<9x81x128xf32, #tpu.memory_space<vmem>>, vector<1x8x128xf32>
    %957 = vector.shape_cast %956 : vector<1x8x128xf32> to vector<8x128xf32>
    %c4_273 = arith.constant 4 : index
    %c40_274 = arith.constant 40 : index
    %c0_275 = arith.constant 0 : index
    %958 = vector.load %arg1[%c4_273, %c40_274, %c0_275] : memref<9x81x128xf32, #tpu.memory_space<vmem>>, vector<1x8x128xf32>
    %959 = vector.shape_cast %958 : vector<1x8x128xf32> to vector<8x128xf32>
    %c5_276 = arith.constant 5 : index
    %c40_277 = arith.constant 40 : index
    %c0_278 = arith.constant 0 : index
    %960 = vector.load %arg1[%c5_276, %c40_277, %c0_278] : memref<9x81x128xf32, #tpu.memory_space<vmem>>, vector<1x8x128xf32>
    %961 = vector.shape_cast %960 : vector<1x8x128xf32> to vector<8x128xf32>
    %c6_279 = arith.constant 6 : index
    %c40_280 = arith.constant 40 : index
    %c0_281 = arith.constant 0 : index
    %962 = vector.load %arg1[%c6_279, %c40_280, %c0_281] : memref<9x81x128xf32, #tpu.memory_space<vmem>>, vector<1x8x128xf32>
    %963 = vector.shape_cast %962 : vector<1x8x128xf32> to vector<8x128xf32>
    %c7_282 = arith.constant 7 : index
    %c40_283 = arith.constant 40 : index
    %c0_284 = arith.constant 0 : index
    %964 = vector.load %arg1[%c7_282, %c40_283, %c0_284] : memref<9x81x128xf32, #tpu.memory_space<vmem>>, vector<1x8x128xf32>
    %965 = vector.shape_cast %964 : vector<1x8x128xf32> to vector<8x128xf32>
    %c8_285 = arith.constant 8 : index
    %c40_286 = arith.constant 40 : index
    %c0_287 = arith.constant 0 : index
    %966 = vector.load %arg1[%c8_285, %c40_286, %c0_287] : memref<9x81x128xf32, #tpu.memory_space<vmem>>, vector<1x8x128xf32>
    %967 = vector.shape_cast %966 : vector<1x8x128xf32> to vector<8x128xf32>
    %968 = vector.broadcast %0 : f32 to vector<8x128xf32>
    %969 = arith.mulf %968, %951 : vector<8x128xf32>
    %970 = vector.broadcast %1 : f32 to vector<8x128xf32>
    %971 = arith.mulf %970, %953 : vector<8x128xf32>
    %972 = arith.addf %969, %971 : vector<8x128xf32>
    %973 = vector.broadcast %2 : f32 to vector<8x128xf32>
    %974 = arith.mulf %973, %955 : vector<8x128xf32>
    %975 = arith.addf %972, %974 : vector<8x128xf32>
    %976 = vector.broadcast %3 : f32 to vector<8x128xf32>
    %977 = arith.mulf %976, %957 : vector<8x128xf32>
    %978 = arith.addf %975, %977 : vector<8x128xf32>
    %979 = vector.broadcast %4 : f32 to vector<8x128xf32>
    %980 = arith.mulf %979, %959 : vector<8x128xf32>
    %981 = arith.addf %978, %980 : vector<8x128xf32>
    %982 = vector.broadcast %5 : f32 to vector<8x128xf32>
    %983 = arith.mulf %982, %961 : vector<8x128xf32>
    %984 = arith.addf %981, %983 : vector<8x128xf32>
    %985 = vector.broadcast %6 : f32 to vector<8x128xf32>
    %986 = arith.mulf %985, %963 : vector<8x128xf32>
    %987 = arith.addf %984, %986 : vector<8x128xf32>
    %988 = vector.broadcast %7 : f32 to vector<8x128xf32>
    %989 = arith.mulf %988, %965 : vector<8x128xf32>
    %990 = arith.addf %987, %989 : vector<8x128xf32>
    %991 = vector.broadcast %8 : f32 to vector<8x128xf32>
    %992 = arith.mulf %991, %967 : vector<8x128xf32>
    %993 = arith.addf %990, %992 : vector<8x128xf32>
    %cst_288 = arith.constant dense<0.000000e+00> : vector<128xf32>
    %994 = vector.multi_reduction <add>, %993, %cst_288 [0] : vector<8x128xf32> to vector<128xf32>
    %995 = vector.shape_cast %994 : vector<128xf32> to vector<1x128xf32>
    %996 = arith.mulf %993, %993 : vector<8x128xf32>
    %cst_289 = arith.constant dense<0.000000e+00> : vector<128xf32>
    %997 = vector.multi_reduction <add>, %996, %cst_289 [0] : vector<8x128xf32> to vector<128xf32>
    %998 = vector.shape_cast %997 : vector<128xf32> to vector<1x128xf32>
    %999 = arith.addf %816, %995 : vector<1x128xf32>
    %1000 = arith.addf %817, %998 : vector<1x128xf32>
    %1001 = vector.broadcast %9 : f32 to vector<8x128xf32>
    %1002 = arith.mulf %1001, %951 : vector<8x128xf32>
    %1003 = vector.broadcast %10 : f32 to vector<8x128xf32>
    %1004 = arith.mulf %1003, %953 : vector<8x128xf32>
    %1005 = arith.addf %1002, %1004 : vector<8x128xf32>
    %1006 = vector.broadcast %11 : f32 to vector<8x128xf32>
    %1007 = arith.mulf %1006, %955 : vector<8x128xf32>
    %1008 = arith.addf %1005, %1007 : vector<8x128xf32>
    %1009 = vector.broadcast %12 : f32 to vector<8x128xf32>
    %1010 = arith.mulf %1009, %957 : vector<8x128xf32>
    %1011 = arith.addf %1008, %1010 : vector<8x128xf32>
    %1012 = vector.broadcast %13 : f32 to vector<8x128xf32>
    %1013 = arith.mulf %1012, %959 : vector<8x128xf32>
    %1014 = arith.addf %1011, %1013 : vector<8x128xf32>
    %1015 = vector.broadcast %14 : f32 to vector<8x128xf32>
    %1016 = arith.mulf %1015, %961 : vector<8x128xf32>
    %1017 = arith.addf %1014, %1016 : vector<8x128xf32>
    %1018 = vector.broadcast %15 : f32 to vector<8x128xf32>
    %1019 = arith.mulf %1018, %963 : vector<8x128xf32>
    %1020 = arith.addf %1017, %1019 : vector<8x128xf32>
    %1021 = vector.broadcast %16 : f32 to vector<8x128xf32>
    %1022 = arith.mulf %1021, %965 : vector<8x128xf32>
    %1023 = arith.addf %1020, %1022 : vector<8x128xf32>
    %1024 = vector.broadcast %17 : f32 to vector<8x128xf32>
    %1025 = arith.mulf %1024, %967 : vector<8x128xf32>
    %1026 = arith.addf %1023, %1025 : vector<8x128xf32>
    %cst_290 = arith.constant dense<0.000000e+00> : vector<128xf32>
    %1027 = vector.multi_reduction <add>, %1026, %cst_290 [0] : vector<8x128xf32> to vector<128xf32>
    %1028 = vector.shape_cast %1027 : vector<128xf32> to vector<1x128xf32>
    %1029 = arith.mulf %1026, %1026 : vector<8x128xf32>
    %cst_291 = arith.constant dense<0.000000e+00> : vector<128xf32>
    %1030 = vector.multi_reduction <add>, %1029, %cst_291 [0] : vector<8x128xf32> to vector<128xf32>
    %1031 = vector.shape_cast %1030 : vector<128xf32> to vector<1x128xf32>
    %1032 = arith.addf %849, %1028 : vector<1x128xf32>
    %1033 = arith.addf %850, %1031 : vector<1x128xf32>
    %1034 = vector.broadcast %18 : f32 to vector<8x128xf32>
    %1035 = arith.mulf %1034, %951 : vector<8x128xf32>
    %1036 = vector.broadcast %19 : f32 to vector<8x128xf32>
    %1037 = arith.mulf %1036, %953 : vector<8x128xf32>
    %1038 = arith.addf %1035, %1037 : vector<8x128xf32>
    %1039 = vector.broadcast %20 : f32 to vector<8x128xf32>
    %1040 = arith.mulf %1039, %955 : vector<8x128xf32>
    %1041 = arith.addf %1038, %1040 : vector<8x128xf32>
    %1042 = vector.broadcast %21 : f32 to vector<8x128xf32>
    %1043 = arith.mulf %1042, %957 : vector<8x128xf32>
    %1044 = arith.addf %1041, %1043 : vector<8x128xf32>
    %1045 = vector.broadcast %22 : f32 to vector<8x128xf32>
    %1046 = arith.mulf %1045, %959 : vector<8x128xf32>
    %1047 = arith.addf %1044, %1046 : vector<8x128xf32>
    %1048 = vector.broadcast %23 : f32 to vector<8x128xf32>
    %1049 = arith.mulf %1048, %961 : vector<8x128xf32>
    %1050 = arith.addf %1047, %1049 : vector<8x128xf32>
    %1051 = vector.broadcast %24 : f32 to vector<8x128xf32>
    %1052 = arith.mulf %1051, %963 : vector<8x128xf32>
    %1053 = arith.addf %1050, %1052 : vector<8x128xf32>
    %1054 = vector.broadcast %25 : f32 to vector<8x128xf32>
    %1055 = arith.mulf %1054, %965 : vector<8x128xf32>
    %1056 = arith.addf %1053, %1055 : vector<8x128xf32>
    %1057 = vector.broadcast %26 : f32 to vector<8x128xf32>
    %1058 = arith.mulf %1057, %967 : vector<8x128xf32>
    %1059 = arith.addf %1056, %1058 : vector<8x128xf32>
    %cst_292 = arith.constant dense<0.000000e+00> : vector<128xf32>
    %1060 = vector.multi_reduction <add>, %1059, %cst_292 [0] : vector<8x128xf32> to vector<128xf32>
    %1061 = vector.shape_cast %1060 : vector<128xf32> to vector<1x128xf32>
    %1062 = arith.mulf %1059, %1059 : vector<8x128xf32>
    %cst_293 = arith.constant dense<0.000000e+00> : vector<128xf32>
    %1063 = vector.multi_reduction <add>, %1062, %cst_293 [0] : vector<8x128xf32> to vector<128xf32>
    %1064 = vector.shape_cast %1063 : vector<128xf32> to vector<1x128xf32>
    %1065 = arith.addf %882, %1061 : vector<1x128xf32>
    %1066 = arith.addf %883, %1064 : vector<1x128xf32>
    %1067 = vector.broadcast %27 : f32 to vector<8x128xf32>
    %1068 = arith.mulf %1067, %951 : vector<8x128xf32>
    %1069 = vector.broadcast %28 : f32 to vector<8x128xf32>
    %1070 = arith.mulf %1069, %953 : vector<8x128xf32>
    %1071 = arith.addf %1068, %1070 : vector<8x128xf32>
    %1072 = vector.broadcast %29 : f32 to vector<8x128xf32>
    %1073 = arith.mulf %1072, %955 : vector<8x128xf32>
    %1074 = arith.addf %1071, %1073 : vector<8x128xf32>
    %1075 = vector.broadcast %30 : f32 to vector<8x128xf32>
    %1076 = arith.mulf %1075, %957 : vector<8x128xf32>
    %1077 = arith.addf %1074, %1076 : vector<8x128xf32>
    %1078 = vector.broadcast %31 : f32 to vector<8x128xf32>
    %1079 = arith.mulf %1078, %959 : vector<8x128xf32>
    %1080 = arith.addf %1077, %1079 : vector<8x128xf32>
    %1081 = vector.broadcast %32 : f32 to vector<8x128xf32>
    %1082 = arith.mulf %1081, %961 : vector<8x128xf32>
    %1083 = arith.addf %1080, %1082 : vector<8x128xf32>
    %1084 = vector.broadcast %33 : f32 to vector<8x128xf32>
    %1085 = arith.mulf %1084, %963 : vector<8x128xf32>
    %1086 = arith.addf %1083, %1085 : vector<8x128xf32>
    %1087 = vector.broadcast %34 : f32 to vector<8x128xf32>
    %1088 = arith.mulf %1087, %965 : vector<8x128xf32>
    %1089 = arith.addf %1086, %1088 : vector<8x128xf32>
    %1090 = vector.broadcast %35 : f32 to vector<8x128xf32>
    %1091 = arith.mulf %1090, %967 : vector<8x128xf32>
    %1092 = arith.addf %1089, %1091 : vector<8x128xf32>
    %cst_294 = arith.constant dense<0.000000e+00> : vector<128xf32>
    %1093 = vector.multi_reduction <add>, %1092, %cst_294 [0] : vector<8x128xf32> to vector<128xf32>
    %1094 = vector.shape_cast %1093 : vector<128xf32> to vector<1x128xf32>
    %1095 = arith.mulf %1092, %1092 : vector<8x128xf32>
    %cst_295 = arith.constant dense<0.000000e+00> : vector<128xf32>
    %1096 = vector.multi_reduction <add>, %1095, %cst_295 [0] : vector<8x128xf32> to vector<128xf32>
    %1097 = vector.shape_cast %1096 : vector<128xf32> to vector<1x128xf32>
    %1098 = arith.addf %915, %1094 : vector<1x128xf32>
    %1099 = arith.addf %916, %1097 : vector<1x128xf32>
    %1100 = vector.broadcast %36 : f32 to vector<8x128xf32>
    %1101 = arith.mulf %1100, %951 : vector<8x128xf32>
    %1102 = vector.broadcast %37 : f32 to vector<8x128xf32>
    %1103 = arith.mulf %1102, %953 : vector<8x128xf32>
    %1104 = arith.addf %1101, %1103 : vector<8x128xf32>
    %1105 = vector.broadcast %38 : f32 to vector<8x128xf32>
    %1106 = arith.mulf %1105, %955 : vector<8x128xf32>
    %1107 = arith.addf %1104, %1106 : vector<8x128xf32>
    %1108 = vector.broadcast %39 : f32 to vector<8x128xf32>
    %1109 = arith.mulf %1108, %957 : vector<8x128xf32>
    %1110 = arith.addf %1107, %1109 : vector<8x128xf32>
    %1111 = vector.broadcast %40 : f32 to vector<8x128xf32>
    %1112 = arith.mulf %1111, %959 : vector<8x128xf32>
    %1113 = arith.addf %1110, %1112 : vector<8x128xf32>
    %1114 = vector.broadcast %41 : f32 to vector<8x128xf32>
    %1115 = arith.mulf %1114, %961 : vector<8x128xf32>
    %1116 = arith.addf %1113, %1115 : vector<8x128xf32>
    %1117 = vector.broadcast %42 : f32 to vector<8x128xf32>
    %1118 = arith.mulf %1117, %963 : vector<8x128xf32>
    %1119 = arith.addf %1116, %1118 : vector<8x128xf32>
    %1120 = vector.broadcast %43 : f32 to vector<8x128xf32>
    %1121 = arith.mulf %1120, %965 : vector<8x128xf32>
    %1122 = arith.addf %1119, %1121 : vector<8x128xf32>
    %1123 = vector.broadcast %44 : f32 to vector<8x128xf32>
    %1124 = arith.mulf %1123, %967 : vector<8x128xf32>
    %1125 = arith.addf %1122, %1124 : vector<8x128xf32>
    %cst_296 = arith.constant dense<0.000000e+00> : vector<128xf32>
    %1126 = vector.multi_reduction <add>, %1125, %cst_296 [0] : vector<8x128xf32> to vector<128xf32>
    %1127 = vector.shape_cast %1126 : vector<128xf32> to vector<1x128xf32>
    %1128 = arith.mulf %1125, %1125 : vector<8x128xf32>
    %cst_297 = arith.constant dense<0.000000e+00> : vector<128xf32>
    %1129 = vector.multi_reduction <add>, %1128, %cst_297 [0] : vector<8x128xf32> to vector<128xf32>
    %1130 = vector.shape_cast %1129 : vector<128xf32> to vector<1x128xf32>
    %1131 = arith.addf %948, %1127 : vector<1x128xf32>
    %1132 = arith.addf %949, %1130 : vector<1x128xf32>
    %c0_298 = arith.constant 0 : index
    %c48 = arith.constant 48 : index
    %c0_299 = arith.constant 0 : index
    %1133 = vector.load %arg1[%c0_298, %c48, %c0_299] : memref<9x81x128xf32, #tpu.memory_space<vmem>>, vector<1x8x128xf32>
    %1134 = vector.shape_cast %1133 : vector<1x8x128xf32> to vector<8x128xf32>
    %c1_300 = arith.constant 1 : index
    %c48_301 = arith.constant 48 : index
    %c0_302 = arith.constant 0 : index
    %1135 = vector.load %arg1[%c1_300, %c48_301, %c0_302] : memref<9x81x128xf32, #tpu.memory_space<vmem>>, vector<1x8x128xf32>
    %1136 = vector.shape_cast %1135 : vector<1x8x128xf32> to vector<8x128xf32>
    %c2_303 = arith.constant 2 : index
    %c48_304 = arith.constant 48 : index
    %c0_305 = arith.constant 0 : index
    %1137 = vector.load %arg1[%c2_303, %c48_304, %c0_305] : memref<9x81x128xf32, #tpu.memory_space<vmem>>, vector<1x8x128xf32>
    %1138 = vector.shape_cast %1137 : vector<1x8x128xf32> to vector<8x128xf32>
    %c3_306 = arith.constant 3 : index
    %c48_307 = arith.constant 48 : index
    %c0_308 = arith.constant 0 : index
    %1139 = vector.load %arg1[%c3_306, %c48_307, %c0_308] : memref<9x81x128xf32, #tpu.memory_space<vmem>>, vector<1x8x128xf32>
    %1140 = vector.shape_cast %1139 : vector<1x8x128xf32> to vector<8x128xf32>
    %c4_309 = arith.constant 4 : index
    %c48_310 = arith.constant 48 : index
    %c0_311 = arith.constant 0 : index
    %1141 = vector.load %arg1[%c4_309, %c48_310, %c0_311] : memref<9x81x128xf32, #tpu.memory_space<vmem>>, vector<1x8x128xf32>
    %1142 = vector.shape_cast %1141 : vector<1x8x128xf32> to vector<8x128xf32>
    %c5_312 = arith.constant 5 : index
    %c48_313 = arith.constant 48 : index
    %c0_314 = arith.constant 0 : index
    %1143 = vector.load %arg1[%c5_312, %c48_313, %c0_314] : memref<9x81x128xf32, #tpu.memory_space<vmem>>, vector<1x8x128xf32>
    %1144 = vector.shape_cast %1143 : vector<1x8x128xf32> to vector<8x128xf32>
    %c6_315 = arith.constant 6 : index
    %c48_316 = arith.constant 48 : index
    %c0_317 = arith.constant 0 : index
    %1145 = vector.load %arg1[%c6_315, %c48_316, %c0_317] : memref<9x81x128xf32, #tpu.memory_space<vmem>>, vector<1x8x128xf32>
    %1146 = vector.shape_cast %1145 : vector<1x8x128xf32> to vector<8x128xf32>
    %c7_318 = arith.constant 7 : index
    %c48_319 = arith.constant 48 : index
    %c0_320 = arith.constant 0 : index
    %1147 = vector.load %arg1[%c7_318, %c48_319, %c0_320] : memref<9x81x128xf32, #tpu.memory_space<vmem>>, vector<1x8x128xf32>
    %1148 = vector.shape_cast %1147 : vector<1x8x128xf32> to vector<8x128xf32>
    %c8_321 = arith.constant 8 : index
    %c48_322 = arith.constant 48 : index
    %c0_323 = arith.constant 0 : index
    %1149 = vector.load %arg1[%c8_321, %c48_322, %c0_323] : memref<9x81x128xf32, #tpu.memory_space<vmem>>, vector<1x8x128xf32>
    %1150 = vector.shape_cast %1149 : vector<1x8x128xf32> to vector<8x128xf32>
    %1151 = vector.broadcast %0 : f32 to vector<8x128xf32>
    %1152 = arith.mulf %1151, %1134 : vector<8x128xf32>
    %1153 = vector.broadcast %1 : f32 to vector<8x128xf32>
    %1154 = arith.mulf %1153, %1136 : vector<8x128xf32>
    %1155 = arith.addf %1152, %1154 : vector<8x128xf32>
    %1156 = vector.broadcast %2 : f32 to vector<8x128xf32>
    %1157 = arith.mulf %1156, %1138 : vector<8x128xf32>
    %1158 = arith.addf %1155, %1157 : vector<8x128xf32>
    %1159 = vector.broadcast %3 : f32 to vector<8x128xf32>
    %1160 = arith.mulf %1159, %1140 : vector<8x128xf32>
    %1161 = arith.addf %1158, %1160 : vector<8x128xf32>
    %1162 = vector.broadcast %4 : f32 to vector<8x128xf32>
    %1163 = arith.mulf %1162, %1142 : vector<8x128xf32>
    %1164 = arith.addf %1161, %1163 : vector<8x128xf32>
    %1165 = vector.broadcast %5 : f32 to vector<8x128xf32>
    %1166 = arith.mulf %1165, %1144 : vector<8x128xf32>
    %1167 = arith.addf %1164, %1166 : vector<8x128xf32>
    %1168 = vector.broadcast %6 : f32 to vector<8x128xf32>
    %1169 = arith.mulf %1168, %1146 : vector<8x128xf32>
    %1170 = arith.addf %1167, %1169 : vector<8x128xf32>
    %1171 = vector.broadcast %7 : f32 to vector<8x128xf32>
    %1172 = arith.mulf %1171, %1148 : vector<8x128xf32>
    %1173 = arith.addf %1170, %1172 : vector<8x128xf32>
    %1174 = vector.broadcast %8 : f32 to vector<8x128xf32>
    %1175 = arith.mulf %1174, %1150 : vector<8x128xf32>
    %1176 = arith.addf %1173, %1175 : vector<8x128xf32>
    %cst_324 = arith.constant dense<0.000000e+00> : vector<128xf32>
    %1177 = vector.multi_reduction <add>, %1176, %cst_324 [0] : vector<8x128xf32> to vector<128xf32>
    %1178 = vector.shape_cast %1177 : vector<128xf32> to vector<1x128xf32>
    %1179 = arith.mulf %1176, %1176 : vector<8x128xf32>
    %cst_325 = arith.constant dense<0.000000e+00> : vector<128xf32>
    %1180 = vector.multi_reduction <add>, %1179, %cst_325 [0] : vector<8x128xf32> to vector<128xf32>
    %1181 = vector.shape_cast %1180 : vector<128xf32> to vector<1x128xf32>
    %1182 = arith.addf %999, %1178 : vector<1x128xf32>
    %1183 = arith.addf %1000, %1181 : vector<1x128xf32>
    %1184 = vector.broadcast %9 : f32 to vector<8x128xf32>
    %1185 = arith.mulf %1184, %1134 : vector<8x128xf32>
    %1186 = vector.broadcast %10 : f32 to vector<8x128xf32>
    %1187 = arith.mulf %1186, %1136 : vector<8x128xf32>
    %1188 = arith.addf %1185, %1187 : vector<8x128xf32>
    %1189 = vector.broadcast %11 : f32 to vector<8x128xf32>
    %1190 = arith.mulf %1189, %1138 : vector<8x128xf32>
    %1191 = arith.addf %1188, %1190 : vector<8x128xf32>
    %1192 = vector.broadcast %12 : f32 to vector<8x128xf32>
    %1193 = arith.mulf %1192, %1140 : vector<8x128xf32>
    %1194 = arith.addf %1191, %1193 : vector<8x128xf32>
    %1195 = vector.broadcast %13 : f32 to vector<8x128xf32>
    %1196 = arith.mulf %1195, %1142 : vector<8x128xf32>
    %1197 = arith.addf %1194, %1196 : vector<8x128xf32>
    %1198 = vector.broadcast %14 : f32 to vector<8x128xf32>
    %1199 = arith.mulf %1198, %1144 : vector<8x128xf32>
    %1200 = arith.addf %1197, %1199 : vector<8x128xf32>
    %1201 = vector.broadcast %15 : f32 to vector<8x128xf32>
    %1202 = arith.mulf %1201, %1146 : vector<8x128xf32>
    %1203 = arith.addf %1200, %1202 : vector<8x128xf32>
    %1204 = vector.broadcast %16 : f32 to vector<8x128xf32>
    %1205 = arith.mulf %1204, %1148 : vector<8x128xf32>
    %1206 = arith.addf %1203, %1205 : vector<8x128xf32>
    %1207 = vector.broadcast %17 : f32 to vector<8x128xf32>
    %1208 = arith.mulf %1207, %1150 : vector<8x128xf32>
    %1209 = arith.addf %1206, %1208 : vector<8x128xf32>
    %cst_326 = arith.constant dense<0.000000e+00> : vector<128xf32>
    %1210 = vector.multi_reduction <add>, %1209, %cst_326 [0] : vector<8x128xf32> to vector<128xf32>
    %1211 = vector.shape_cast %1210 : vector<128xf32> to vector<1x128xf32>
    %1212 = arith.mulf %1209, %1209 : vector<8x128xf32>
    %cst_327 = arith.constant dense<0.000000e+00> : vector<128xf32>
    %1213 = vector.multi_reduction <add>, %1212, %cst_327 [0] : vector<8x128xf32> to vector<128xf32>
    %1214 = vector.shape_cast %1213 : vector<128xf32> to vector<1x128xf32>
    %1215 = arith.addf %1032, %1211 : vector<1x128xf32>
    %1216 = arith.addf %1033, %1214 : vector<1x128xf32>
    %1217 = vector.broadcast %18 : f32 to vector<8x128xf32>
    %1218 = arith.mulf %1217, %1134 : vector<8x128xf32>
    %1219 = vector.broadcast %19 : f32 to vector<8x128xf32>
    %1220 = arith.mulf %1219, %1136 : vector<8x128xf32>
    %1221 = arith.addf %1218, %1220 : vector<8x128xf32>
    %1222 = vector.broadcast %20 : f32 to vector<8x128xf32>
    %1223 = arith.mulf %1222, %1138 : vector<8x128xf32>
    %1224 = arith.addf %1221, %1223 : vector<8x128xf32>
    %1225 = vector.broadcast %21 : f32 to vector<8x128xf32>
    %1226 = arith.mulf %1225, %1140 : vector<8x128xf32>
    %1227 = arith.addf %1224, %1226 : vector<8x128xf32>
    %1228 = vector.broadcast %22 : f32 to vector<8x128xf32>
    %1229 = arith.mulf %1228, %1142 : vector<8x128xf32>
    %1230 = arith.addf %1227, %1229 : vector<8x128xf32>
    %1231 = vector.broadcast %23 : f32 to vector<8x128xf32>
    %1232 = arith.mulf %1231, %1144 : vector<8x128xf32>
    %1233 = arith.addf %1230, %1232 : vector<8x128xf32>
    %1234 = vector.broadcast %24 : f32 to vector<8x128xf32>
    %1235 = arith.mulf %1234, %1146 : vector<8x128xf32>
    %1236 = arith.addf %1233, %1235 : vector<8x128xf32>
    %1237 = vector.broadcast %25 : f32 to vector<8x128xf32>
    %1238 = arith.mulf %1237, %1148 : vector<8x128xf32>
    %1239 = arith.addf %1236, %1238 : vector<8x128xf32>
    %1240 = vector.broadcast %26 : f32 to vector<8x128xf32>
    %1241 = arith.mulf %1240, %1150 : vector<8x128xf32>
    %1242 = arith.addf %1239, %1241 : vector<8x128xf32>
    %cst_328 = arith.constant dense<0.000000e+00> : vector<128xf32>
    %1243 = vector.multi_reduction <add>, %1242, %cst_328 [0] : vector<8x128xf32> to vector<128xf32>
    %1244 = vector.shape_cast %1243 : vector<128xf32> to vector<1x128xf32>
    %1245 = arith.mulf %1242, %1242 : vector<8x128xf32>
    %cst_329 = arith.constant dense<0.000000e+00> : vector<128xf32>
    %1246 = vector.multi_reduction <add>, %1245, %cst_329 [0] : vector<8x128xf32> to vector<128xf32>
    %1247 = vector.shape_cast %1246 : vector<128xf32> to vector<1x128xf32>
    %1248 = arith.addf %1065, %1244 : vector<1x128xf32>
    %1249 = arith.addf %1066, %1247 : vector<1x128xf32>
    %1250 = vector.broadcast %27 : f32 to vector<8x128xf32>
    %1251 = arith.mulf %1250, %1134 : vector<8x128xf32>
    %1252 = vector.broadcast %28 : f32 to vector<8x128xf32>
    %1253 = arith.mulf %1252, %1136 : vector<8x128xf32>
    %1254 = arith.addf %1251, %1253 : vector<8x128xf32>
    %1255 = vector.broadcast %29 : f32 to vector<8x128xf32>
    %1256 = arith.mulf %1255, %1138 : vector<8x128xf32>
    %1257 = arith.addf %1254, %1256 : vector<8x128xf32>
    %1258 = vector.broadcast %30 : f32 to vector<8x128xf32>
    %1259 = arith.mulf %1258, %1140 : vector<8x128xf32>
    %1260 = arith.addf %1257, %1259 : vector<8x128xf32>
    %1261 = vector.broadcast %31 : f32 to vector<8x128xf32>
    %1262 = arith.mulf %1261, %1142 : vector<8x128xf32>
    %1263 = arith.addf %1260, %1262 : vector<8x128xf32>
    %1264 = vector.broadcast %32 : f32 to vector<8x128xf32>
    %1265 = arith.mulf %1264, %1144 : vector<8x128xf32>
    %1266 = arith.addf %1263, %1265 : vector<8x128xf32>
    %1267 = vector.broadcast %33 : f32 to vector<8x128xf32>
    %1268 = arith.mulf %1267, %1146 : vector<8x128xf32>
    %1269 = arith.addf %1266, %1268 : vector<8x128xf32>
    %1270 = vector.broadcast %34 : f32 to vector<8x128xf32>
    %1271 = arith.mulf %1270, %1148 : vector<8x128xf32>
    %1272 = arith.addf %1269, %1271 : vector<8x128xf32>
    %1273 = vector.broadcast %35 : f32 to vector<8x128xf32>
    %1274 = arith.mulf %1273, %1150 : vector<8x128xf32>
    %1275 = arith.addf %1272, %1274 : vector<8x128xf32>
    %cst_330 = arith.constant dense<0.000000e+00> : vector<128xf32>
    %1276 = vector.multi_reduction <add>, %1275, %cst_330 [0] : vector<8x128xf32> to vector<128xf32>
    %1277 = vector.shape_cast %1276 : vector<128xf32> to vector<1x128xf32>
    %1278 = arith.mulf %1275, %1275 : vector<8x128xf32>
    %cst_331 = arith.constant dense<0.000000e+00> : vector<128xf32>
    %1279 = vector.multi_reduction <add>, %1278, %cst_331 [0] : vector<8x128xf32> to vector<128xf32>
    %1280 = vector.shape_cast %1279 : vector<128xf32> to vector<1x128xf32>
    %1281 = arith.addf %1098, %1277 : vector<1x128xf32>
    %1282 = arith.addf %1099, %1280 : vector<1x128xf32>
    %1283 = vector.broadcast %36 : f32 to vector<8x128xf32>
    %1284 = arith.mulf %1283, %1134 : vector<8x128xf32>
    %1285 = vector.broadcast %37 : f32 to vector<8x128xf32>
    %1286 = arith.mulf %1285, %1136 : vector<8x128xf32>
    %1287 = arith.addf %1284, %1286 : vector<8x128xf32>
    %1288 = vector.broadcast %38 : f32 to vector<8x128xf32>
    %1289 = arith.mulf %1288, %1138 : vector<8x128xf32>
    %1290 = arith.addf %1287, %1289 : vector<8x128xf32>
    %1291 = vector.broadcast %39 : f32 to vector<8x128xf32>
    %1292 = arith.mulf %1291, %1140 : vector<8x128xf32>
    %1293 = arith.addf %1290, %1292 : vector<8x128xf32>
    %1294 = vector.broadcast %40 : f32 to vector<8x128xf32>
    %1295 = arith.mulf %1294, %1142 : vector<8x128xf32>
    %1296 = arith.addf %1293, %1295 : vector<8x128xf32>
    %1297 = vector.broadcast %41 : f32 to vector<8x128xf32>
    %1298 = arith.mulf %1297, %1144 : vector<8x128xf32>
    %1299 = arith.addf %1296, %1298 : vector<8x128xf32>
    %1300 = vector.broadcast %42 : f32 to vector<8x128xf32>
    %1301 = arith.mulf %1300, %1146 : vector<8x128xf32>
    %1302 = arith.addf %1299, %1301 : vector<8x128xf32>
    %1303 = vector.broadcast %43 : f32 to vector<8x128xf32>
    %1304 = arith.mulf %1303, %1148 : vector<8x128xf32>
    %1305 = arith.addf %1302, %1304 : vector<8x128xf32>
    %1306 = vector.broadcast %44 : f32 to vector<8x128xf32>
    %1307 = arith.mulf %1306, %1150 : vector<8x128xf32>
    %1308 = arith.addf %1305, %1307 : vector<8x128xf32>
    %cst_332 = arith.constant dense<0.000000e+00> : vector<128xf32>
    %1309 = vector.multi_reduction <add>, %1308, %cst_332 [0] : vector<8x128xf32> to vector<128xf32>
    %1310 = vector.shape_cast %1309 : vector<128xf32> to vector<1x128xf32>
    %1311 = arith.mulf %1308, %1308 : vector<8x128xf32>
    %cst_333 = arith.constant dense<0.000000e+00> : vector<128xf32>
    %1312 = vector.multi_reduction <add>, %1311, %cst_333 [0] : vector<8x128xf32> to vector<128xf32>
    %1313 = vector.shape_cast %1312 : vector<128xf32> to vector<1x128xf32>
    %1314 = arith.addf %1131, %1310 : vector<1x128xf32>
    %1315 = arith.addf %1132, %1313 : vector<1x128xf32>
    %c0_334 = arith.constant 0 : index
    %c56 = arith.constant 56 : index
    %c0_335 = arith.constant 0 : index
    %1316 = vector.load %arg1[%c0_334, %c56, %c0_335] : memref<9x81x128xf32, #tpu.memory_space<vmem>>, vector<1x8x128xf32>
    %1317 = vector.shape_cast %1316 : vector<1x8x128xf32> to vector<8x128xf32>
    %c1_336 = arith.constant 1 : index
    %c56_337 = arith.constant 56 : index
    %c0_338 = arith.constant 0 : index
    %1318 = vector.load %arg1[%c1_336, %c56_337, %c0_338] : memref<9x81x128xf32, #tpu.memory_space<vmem>>, vector<1x8x128xf32>
    %1319 = vector.shape_cast %1318 : vector<1x8x128xf32> to vector<8x128xf32>
    %c2_339 = arith.constant 2 : index
    %c56_340 = arith.constant 56 : index
    %c0_341 = arith.constant 0 : index
    %1320 = vector.load %arg1[%c2_339, %c56_340, %c0_341] : memref<9x81x128xf32, #tpu.memory_space<vmem>>, vector<1x8x128xf32>
    %1321 = vector.shape_cast %1320 : vector<1x8x128xf32> to vector<8x128xf32>
    %c3_342 = arith.constant 3 : index
    %c56_343 = arith.constant 56 : index
    %c0_344 = arith.constant 0 : index
    %1322 = vector.load %arg1[%c3_342, %c56_343, %c0_344] : memref<9x81x128xf32, #tpu.memory_space<vmem>>, vector<1x8x128xf32>
    %1323 = vector.shape_cast %1322 : vector<1x8x128xf32> to vector<8x128xf32>
    %c4_345 = arith.constant 4 : index
    %c56_346 = arith.constant 56 : index
    %c0_347 = arith.constant 0 : index
    %1324 = vector.load %arg1[%c4_345, %c56_346, %c0_347] : memref<9x81x128xf32, #tpu.memory_space<vmem>>, vector<1x8x128xf32>
    %1325 = vector.shape_cast %1324 : vector<1x8x128xf32> to vector<8x128xf32>
    %c5_348 = arith.constant 5 : index
    %c56_349 = arith.constant 56 : index
    %c0_350 = arith.constant 0 : index
    %1326 = vector.load %arg1[%c5_348, %c56_349, %c0_350] : memref<9x81x128xf32, #tpu.memory_space<vmem>>, vector<1x8x128xf32>
    %1327 = vector.shape_cast %1326 : vector<1x8x128xf32> to vector<8x128xf32>
    %c6_351 = arith.constant 6 : index
    %c56_352 = arith.constant 56 : index
    %c0_353 = arith.constant 0 : index
    %1328 = vector.load %arg1[%c6_351, %c56_352, %c0_353] : memref<9x81x128xf32, #tpu.memory_space<vmem>>, vector<1x8x128xf32>
    %1329 = vector.shape_cast %1328 : vector<1x8x128xf32> to vector<8x128xf32>
    %c7_354 = arith.constant 7 : index
    %c56_355 = arith.constant 56 : index
    %c0_356 = arith.constant 0 : index
    %1330 = vector.load %arg1[%c7_354, %c56_355, %c0_356] : memref<9x81x128xf32, #tpu.memory_space<vmem>>, vector<1x8x128xf32>
    %1331 = vector.shape_cast %1330 : vector<1x8x128xf32> to vector<8x128xf32>
    %c8_357 = arith.constant 8 : index
    %c56_358 = arith.constant 56 : index
    %c0_359 = arith.constant 0 : index
    %1332 = vector.load %arg1[%c8_357, %c56_358, %c0_359] : memref<9x81x128xf32, #tpu.memory_space<vmem>>, vector<1x8x128xf32>
    %1333 = vector.shape_cast %1332 : vector<1x8x128xf32> to vector<8x128xf32>
    %1334 = vector.broadcast %0 : f32 to vector<8x128xf32>
    %1335 = arith.mulf %1334, %1317 : vector<8x128xf32>
    %1336 = vector.broadcast %1 : f32 to vector<8x128xf32>
    %1337 = arith.mulf %1336, %1319 : vector<8x128xf32>
    %1338 = arith.addf %1335, %1337 : vector<8x128xf32>
    %1339 = vector.broadcast %2 : f32 to vector<8x128xf32>
    %1340 = arith.mulf %1339, %1321 : vector<8x128xf32>
    %1341 = arith.addf %1338, %1340 : vector<8x128xf32>
    %1342 = vector.broadcast %3 : f32 to vector<8x128xf32>
    %1343 = arith.mulf %1342, %1323 : vector<8x128xf32>
    %1344 = arith.addf %1341, %1343 : vector<8x128xf32>
    %1345 = vector.broadcast %4 : f32 to vector<8x128xf32>
    %1346 = arith.mulf %1345, %1325 : vector<8x128xf32>
    %1347 = arith.addf %1344, %1346 : vector<8x128xf32>
    %1348 = vector.broadcast %5 : f32 to vector<8x128xf32>
    %1349 = arith.mulf %1348, %1327 : vector<8x128xf32>
    %1350 = arith.addf %1347, %1349 : vector<8x128xf32>
    %1351 = vector.broadcast %6 : f32 to vector<8x128xf32>
    %1352 = arith.mulf %1351, %1329 : vector<8x128xf32>
    %1353 = arith.addf %1350, %1352 : vector<8x128xf32>
    %1354 = vector.broadcast %7 : f32 to vector<8x128xf32>
    %1355 = arith.mulf %1354, %1331 : vector<8x128xf32>
    %1356 = arith.addf %1353, %1355 : vector<8x128xf32>
    %1357 = vector.broadcast %8 : f32 to vector<8x128xf32>
    %1358 = arith.mulf %1357, %1333 : vector<8x128xf32>
    %1359 = arith.addf %1356, %1358 : vector<8x128xf32>
    %cst_360 = arith.constant dense<0.000000e+00> : vector<128xf32>
    %1360 = vector.multi_reduction <add>, %1359, %cst_360 [0] : vector<8x128xf32> to vector<128xf32>
    %1361 = vector.shape_cast %1360 : vector<128xf32> to vector<1x128xf32>
    %1362 = arith.mulf %1359, %1359 : vector<8x128xf32>
    %cst_361 = arith.constant dense<0.000000e+00> : vector<128xf32>
    %1363 = vector.multi_reduction <add>, %1362, %cst_361 [0] : vector<8x128xf32> to vector<128xf32>
    %1364 = vector.shape_cast %1363 : vector<128xf32> to vector<1x128xf32>
    %1365 = arith.addf %1182, %1361 : vector<1x128xf32>
    %1366 = arith.addf %1183, %1364 : vector<1x128xf32>
    %1367 = vector.broadcast %9 : f32 to vector<8x128xf32>
    %1368 = arith.mulf %1367, %1317 : vector<8x128xf32>
    %1369 = vector.broadcast %10 : f32 to vector<8x128xf32>
    %1370 = arith.mulf %1369, %1319 : vector<8x128xf32>
    %1371 = arith.addf %1368, %1370 : vector<8x128xf32>
    %1372 = vector.broadcast %11 : f32 to vector<8x128xf32>
    %1373 = arith.mulf %1372, %1321 : vector<8x128xf32>
    %1374 = arith.addf %1371, %1373 : vector<8x128xf32>
    %1375 = vector.broadcast %12 : f32 to vector<8x128xf32>
    %1376 = arith.mulf %1375, %1323 : vector<8x128xf32>
    %1377 = arith.addf %1374, %1376 : vector<8x128xf32>
    %1378 = vector.broadcast %13 : f32 to vector<8x128xf32>
    %1379 = arith.mulf %1378, %1325 : vector<8x128xf32>
    %1380 = arith.addf %1377, %1379 : vector<8x128xf32>
    %1381 = vector.broadcast %14 : f32 to vector<8x128xf32>
    %1382 = arith.mulf %1381, %1327 : vector<8x128xf32>
    %1383 = arith.addf %1380, %1382 : vector<8x128xf32>
    %1384 = vector.broadcast %15 : f32 to vector<8x128xf32>
    %1385 = arith.mulf %1384, %1329 : vector<8x128xf32>
    %1386 = arith.addf %1383, %1385 : vector<8x128xf32>
    %1387 = vector.broadcast %16 : f32 to vector<8x128xf32>
    %1388 = arith.mulf %1387, %1331 : vector<8x128xf32>
    %1389 = arith.addf %1386, %1388 : vector<8x128xf32>
    %1390 = vector.broadcast %17 : f32 to vector<8x128xf32>
    %1391 = arith.mulf %1390, %1333 : vector<8x128xf32>
    %1392 = arith.addf %1389, %1391 : vector<8x128xf32>
    %cst_362 = arith.constant dense<0.000000e+00> : vector<128xf32>
    %1393 = vector.multi_reduction <add>, %1392, %cst_362 [0] : vector<8x128xf32> to vector<128xf32>
    %1394 = vector.shape_cast %1393 : vector<128xf32> to vector<1x128xf32>
    %1395 = arith.mulf %1392, %1392 : vector<8x128xf32>
    %cst_363 = arith.constant dense<0.000000e+00> : vector<128xf32>
    %1396 = vector.multi_reduction <add>, %1395, %cst_363 [0] : vector<8x128xf32> to vector<128xf32>
    %1397 = vector.shape_cast %1396 : vector<128xf32> to vector<1x128xf32>
    %1398 = arith.addf %1215, %1394 : vector<1x128xf32>
    %1399 = arith.addf %1216, %1397 : vector<1x128xf32>
    %1400 = vector.broadcast %18 : f32 to vector<8x128xf32>
    %1401 = arith.mulf %1400, %1317 : vector<8x128xf32>
    %1402 = vector.broadcast %19 : f32 to vector<8x128xf32>
    %1403 = arith.mulf %1402, %1319 : vector<8x128xf32>
    %1404 = arith.addf %1401, %1403 : vector<8x128xf32>
    %1405 = vector.broadcast %20 : f32 to vector<8x128xf32>
    %1406 = arith.mulf %1405, %1321 : vector<8x128xf32>
    %1407 = arith.addf %1404, %1406 : vector<8x128xf32>
    %1408 = vector.broadcast %21 : f32 to vector<8x128xf32>
    %1409 = arith.mulf %1408, %1323 : vector<8x128xf32>
    %1410 = arith.addf %1407, %1409 : vector<8x128xf32>
    %1411 = vector.broadcast %22 : f32 to vector<8x128xf32>
    %1412 = arith.mulf %1411, %1325 : vector<8x128xf32>
    %1413 = arith.addf %1410, %1412 : vector<8x128xf32>
    %1414 = vector.broadcast %23 : f32 to vector<8x128xf32>
    %1415 = arith.mulf %1414, %1327 : vector<8x128xf32>
    %1416 = arith.addf %1413, %1415 : vector<8x128xf32>
    %1417 = vector.broadcast %24 : f32 to vector<8x128xf32>
    %1418 = arith.mulf %1417, %1329 : vector<8x128xf32>
    %1419 = arith.addf %1416, %1418 : vector<8x128xf32>
    %1420 = vector.broadcast %25 : f32 to vector<8x128xf32>
    %1421 = arith.mulf %1420, %1331 : vector<8x128xf32>
    %1422 = arith.addf %1419, %1421 : vector<8x128xf32>
    %1423 = vector.broadcast %26 : f32 to vector<8x128xf32>
    %1424 = arith.mulf %1423, %1333 : vector<8x128xf32>
    %1425 = arith.addf %1422, %1424 : vector<8x128xf32>
    %cst_364 = arith.constant dense<0.000000e+00> : vector<128xf32>
    %1426 = vector.multi_reduction <add>, %1425, %cst_364 [0] : vector<8x128xf32> to vector<128xf32>
    %1427 = vector.shape_cast %1426 : vector<128xf32> to vector<1x128xf32>
    %1428 = arith.mulf %1425, %1425 : vector<8x128xf32>
    %cst_365 = arith.constant dense<0.000000e+00> : vector<128xf32>
    %1429 = vector.multi_reduction <add>, %1428, %cst_365 [0] : vector<8x128xf32> to vector<128xf32>
    %1430 = vector.shape_cast %1429 : vector<128xf32> to vector<1x128xf32>
    %1431 = arith.addf %1248, %1427 : vector<1x128xf32>
    %1432 = arith.addf %1249, %1430 : vector<1x128xf32>
    %1433 = vector.broadcast %27 : f32 to vector<8x128xf32>
    %1434 = arith.mulf %1433, %1317 : vector<8x128xf32>
    %1435 = vector.broadcast %28 : f32 to vector<8x128xf32>
    %1436 = arith.mulf %1435, %1319 : vector<8x128xf32>
    %1437 = arith.addf %1434, %1436 : vector<8x128xf32>
    %1438 = vector.broadcast %29 : f32 to vector<8x128xf32>
    %1439 = arith.mulf %1438, %1321 : vector<8x128xf32>
    %1440 = arith.addf %1437, %1439 : vector<8x128xf32>
    %1441 = vector.broadcast %30 : f32 to vector<8x128xf32>
    %1442 = arith.mulf %1441, %1323 : vector<8x128xf32>
    %1443 = arith.addf %1440, %1442 : vector<8x128xf32>
    %1444 = vector.broadcast %31 : f32 to vector<8x128xf32>
    %1445 = arith.mulf %1444, %1325 : vector<8x128xf32>
    %1446 = arith.addf %1443, %1445 : vector<8x128xf32>
    %1447 = vector.broadcast %32 : f32 to vector<8x128xf32>
    %1448 = arith.mulf %1447, %1327 : vector<8x128xf32>
    %1449 = arith.addf %1446, %1448 : vector<8x128xf32>
    %1450 = vector.broadcast %33 : f32 to vector<8x128xf32>
    %1451 = arith.mulf %1450, %1329 : vector<8x128xf32>
    %1452 = arith.addf %1449, %1451 : vector<8x128xf32>
    %1453 = vector.broadcast %34 : f32 to vector<8x128xf32>
    %1454 = arith.mulf %1453, %1331 : vector<8x128xf32>
    %1455 = arith.addf %1452, %1454 : vector<8x128xf32>
    %1456 = vector.broadcast %35 : f32 to vector<8x128xf32>
    %1457 = arith.mulf %1456, %1333 : vector<8x128xf32>
    %1458 = arith.addf %1455, %1457 : vector<8x128xf32>
    %cst_366 = arith.constant dense<0.000000e+00> : vector<128xf32>
    %1459 = vector.multi_reduction <add>, %1458, %cst_366 [0] : vector<8x128xf32> to vector<128xf32>
    %1460 = vector.shape_cast %1459 : vector<128xf32> to vector<1x128xf32>
    %1461 = arith.mulf %1458, %1458 : vector<8x128xf32>
    %cst_367 = arith.constant dense<0.000000e+00> : vector<128xf32>
    %1462 = vector.multi_reduction <add>, %1461, %cst_367 [0] : vector<8x128xf32> to vector<128xf32>
    %1463 = vector.shape_cast %1462 : vector<128xf32> to vector<1x128xf32>
    %1464 = arith.addf %1281, %1460 : vector<1x128xf32>
    %1465 = arith.addf %1282, %1463 : vector<1x128xf32>
    %1466 = vector.broadcast %36 : f32 to vector<8x128xf32>
    %1467 = arith.mulf %1466, %1317 : vector<8x128xf32>
    %1468 = vector.broadcast %37 : f32 to vector<8x128xf32>
    %1469 = arith.mulf %1468, %1319 : vector<8x128xf32>
    %1470 = arith.addf %1467, %1469 : vector<8x128xf32>
    %1471 = vector.broadcast %38 : f32 to vector<8x128xf32>
    %1472 = arith.mulf %1471, %1321 : vector<8x128xf32>
    %1473 = arith.addf %1470, %1472 : vector<8x128xf32>
    %1474 = vector.broadcast %39 : f32 to vector<8x128xf32>
    %1475 = arith.mulf %1474, %1323 : vector<8x128xf32>
    %1476 = arith.addf %1473, %1475 : vector<8x128xf32>
    %1477 = vector.broadcast %40 : f32 to vector<8x128xf32>
    %1478 = arith.mulf %1477, %1325 : vector<8x128xf32>
    %1479 = arith.addf %1476, %1478 : vector<8x128xf32>
    %1480 = vector.broadcast %41 : f32 to vector<8x128xf32>
    %1481 = arith.mulf %1480, %1327 : vector<8x128xf32>
    %1482 = arith.addf %1479, %1481 : vector<8x128xf32>
    %1483 = vector.broadcast %42 : f32 to vector<8x128xf32>
    %1484 = arith.mulf %1483, %1329 : vector<8x128xf32>
    %1485 = arith.addf %1482, %1484 : vector<8x128xf32>
    %1486 = vector.broadcast %43 : f32 to vector<8x128xf32>
    %1487 = arith.mulf %1486, %1331 : vector<8x128xf32>
    %1488 = arith.addf %1485, %1487 : vector<8x128xf32>
    %1489 = vector.broadcast %44 : f32 to vector<8x128xf32>
    %1490 = arith.mulf %1489, %1333 : vector<8x128xf32>
    %1491 = arith.addf %1488, %1490 : vector<8x128xf32>
    %cst_368 = arith.constant dense<0.000000e+00> : vector<128xf32>
    %1492 = vector.multi_reduction <add>, %1491, %cst_368 [0] : vector<8x128xf32> to vector<128xf32>
    %1493 = vector.shape_cast %1492 : vector<128xf32> to vector<1x128xf32>
    %1494 = arith.mulf %1491, %1491 : vector<8x128xf32>
    %cst_369 = arith.constant dense<0.000000e+00> : vector<128xf32>
    %1495 = vector.multi_reduction <add>, %1494, %cst_369 [0] : vector<8x128xf32> to vector<128xf32>
    %1496 = vector.shape_cast %1495 : vector<128xf32> to vector<1x128xf32>
    %1497 = arith.addf %1314, %1493 : vector<1x128xf32>
    %1498 = arith.addf %1315, %1496 : vector<1x128xf32>
    %c0_370 = arith.constant 0 : index
    %c64 = arith.constant 64 : index
    %c0_371 = arith.constant 0 : index
    %1499 = vector.load %arg1[%c0_370, %c64, %c0_371] : memref<9x81x128xf32, #tpu.memory_space<vmem>>, vector<1x8x128xf32>
    %1500 = vector.shape_cast %1499 : vector<1x8x128xf32> to vector<8x128xf32>
    %c1_372 = arith.constant 1 : index
    %c64_373 = arith.constant 64 : index
    %c0_374 = arith.constant 0 : index
    %1501 = vector.load %arg1[%c1_372, %c64_373, %c0_374] : memref<9x81x128xf32, #tpu.memory_space<vmem>>, vector<1x8x128xf32>
    %1502 = vector.shape_cast %1501 : vector<1x8x128xf32> to vector<8x128xf32>
    %c2_375 = arith.constant 2 : index
    %c64_376 = arith.constant 64 : index
    %c0_377 = arith.constant 0 : index
    %1503 = vector.load %arg1[%c2_375, %c64_376, %c0_377] : memref<9x81x128xf32, #tpu.memory_space<vmem>>, vector<1x8x128xf32>
    %1504 = vector.shape_cast %1503 : vector<1x8x128xf32> to vector<8x128xf32>
    %c3_378 = arith.constant 3 : index
    %c64_379 = arith.constant 64 : index
    %c0_380 = arith.constant 0 : index
    %1505 = vector.load %arg1[%c3_378, %c64_379, %c0_380] : memref<9x81x128xf32, #tpu.memory_space<vmem>>, vector<1x8x128xf32>
    %1506 = vector.shape_cast %1505 : vector<1x8x128xf32> to vector<8x128xf32>
    %c4_381 = arith.constant 4 : index
    %c64_382 = arith.constant 64 : index
    %c0_383 = arith.constant 0 : index
    %1507 = vector.load %arg1[%c4_381, %c64_382, %c0_383] : memref<9x81x128xf32, #tpu.memory_space<vmem>>, vector<1x8x128xf32>
    %1508 = vector.shape_cast %1507 : vector<1x8x128xf32> to vector<8x128xf32>
    %c5_384 = arith.constant 5 : index
    %c64_385 = arith.constant 64 : index
    %c0_386 = arith.constant 0 : index
    %1509 = vector.load %arg1[%c5_384, %c64_385, %c0_386] : memref<9x81x128xf32, #tpu.memory_space<vmem>>, vector<1x8x128xf32>
    %1510 = vector.shape_cast %1509 : vector<1x8x128xf32> to vector<8x128xf32>
    %c6_387 = arith.constant 6 : index
    %c64_388 = arith.constant 64 : index
    %c0_389 = arith.constant 0 : index
    %1511 = vector.load %arg1[%c6_387, %c64_388, %c0_389] : memref<9x81x128xf32, #tpu.memory_space<vmem>>, vector<1x8x128xf32>
    %1512 = vector.shape_cast %1511 : vector<1x8x128xf32> to vector<8x128xf32>
    %c7_390 = arith.constant 7 : index
    %c64_391 = arith.constant 64 : index
    %c0_392 = arith.constant 0 : index
    %1513 = vector.load %arg1[%c7_390, %c64_391, %c0_392] : memref<9x81x128xf32, #tpu.memory_space<vmem>>, vector<1x8x128xf32>
    %1514 = vector.shape_cast %1513 : vector<1x8x128xf32> to vector<8x128xf32>
    %c8_393 = arith.constant 8 : index
    %c64_394 = arith.constant 64 : index
    %c0_395 = arith.constant 0 : index
    %1515 = vector.load %arg1[%c8_393, %c64_394, %c0_395] : memref<9x81x128xf32, #tpu.memory_space<vmem>>, vector<1x8x128xf32>
    %1516 = vector.shape_cast %1515 : vector<1x8x128xf32> to vector<8x128xf32>
    %1517 = vector.broadcast %0 : f32 to vector<8x128xf32>
    %1518 = arith.mulf %1517, %1500 : vector<8x128xf32>
    %1519 = vector.broadcast %1 : f32 to vector<8x128xf32>
    %1520 = arith.mulf %1519, %1502 : vector<8x128xf32>
    %1521 = arith.addf %1518, %1520 : vector<8x128xf32>
    %1522 = vector.broadcast %2 : f32 to vector<8x128xf32>
    %1523 = arith.mulf %1522, %1504 : vector<8x128xf32>
    %1524 = arith.addf %1521, %1523 : vector<8x128xf32>
    %1525 = vector.broadcast %3 : f32 to vector<8x128xf32>
    %1526 = arith.mulf %1525, %1506 : vector<8x128xf32>
    %1527 = arith.addf %1524, %1526 : vector<8x128xf32>
    %1528 = vector.broadcast %4 : f32 to vector<8x128xf32>
    %1529 = arith.mulf %1528, %1508 : vector<8x128xf32>
    %1530 = arith.addf %1527, %1529 : vector<8x128xf32>
    %1531 = vector.broadcast %5 : f32 to vector<8x128xf32>
    %1532 = arith.mulf %1531, %1510 : vector<8x128xf32>
    %1533 = arith.addf %1530, %1532 : vector<8x128xf32>
    %1534 = vector.broadcast %6 : f32 to vector<8x128xf32>
    %1535 = arith.mulf %1534, %1512 : vector<8x128xf32>
    %1536 = arith.addf %1533, %1535 : vector<8x128xf32>
    %1537 = vector.broadcast %7 : f32 to vector<8x128xf32>
    %1538 = arith.mulf %1537, %1514 : vector<8x128xf32>
    %1539 = arith.addf %1536, %1538 : vector<8x128xf32>
    %1540 = vector.broadcast %8 : f32 to vector<8x128xf32>
    %1541 = arith.mulf %1540, %1516 : vector<8x128xf32>
    %1542 = arith.addf %1539, %1541 : vector<8x128xf32>
    %cst_396 = arith.constant dense<0.000000e+00> : vector<128xf32>
    %1543 = vector.multi_reduction <add>, %1542, %cst_396 [0] : vector<8x128xf32> to vector<128xf32>
    %1544 = vector.shape_cast %1543 : vector<128xf32> to vector<1x128xf32>
    %1545 = arith.mulf %1542, %1542 : vector<8x128xf32>
    %cst_397 = arith.constant dense<0.000000e+00> : vector<128xf32>
    %1546 = vector.multi_reduction <add>, %1545, %cst_397 [0] : vector<8x128xf32> to vector<128xf32>
    %1547 = vector.shape_cast %1546 : vector<128xf32> to vector<1x128xf32>
    %1548 = arith.addf %1365, %1544 : vector<1x128xf32>
    %1549 = arith.addf %1366, %1547 : vector<1x128xf32>
    %1550 = vector.broadcast %9 : f32 to vector<8x128xf32>
    %1551 = arith.mulf %1550, %1500 : vector<8x128xf32>
    %1552 = vector.broadcast %10 : f32 to vector<8x128xf32>
    %1553 = arith.mulf %1552, %1502 : vector<8x128xf32>
    %1554 = arith.addf %1551, %1553 : vector<8x128xf32>
    %1555 = vector.broadcast %11 : f32 to vector<8x128xf32>
    %1556 = arith.mulf %1555, %1504 : vector<8x128xf32>
    %1557 = arith.addf %1554, %1556 : vector<8x128xf32>
    %1558 = vector.broadcast %12 : f32 to vector<8x128xf32>
    %1559 = arith.mulf %1558, %1506 : vector<8x128xf32>
    %1560 = arith.addf %1557, %1559 : vector<8x128xf32>
    %1561 = vector.broadcast %13 : f32 to vector<8x128xf32>
    %1562 = arith.mulf %1561, %1508 : vector<8x128xf32>
    %1563 = arith.addf %1560, %1562 : vector<8x128xf32>
    %1564 = vector.broadcast %14 : f32 to vector<8x128xf32>
    %1565 = arith.mulf %1564, %1510 : vector<8x128xf32>
    %1566 = arith.addf %1563, %1565 : vector<8x128xf32>
    %1567 = vector.broadcast %15 : f32 to vector<8x128xf32>
    %1568 = arith.mulf %1567, %1512 : vector<8x128xf32>
    %1569 = arith.addf %1566, %1568 : vector<8x128xf32>
    %1570 = vector.broadcast %16 : f32 to vector<8x128xf32>
    %1571 = arith.mulf %1570, %1514 : vector<8x128xf32>
    %1572 = arith.addf %1569, %1571 : vector<8x128xf32>
    %1573 = vector.broadcast %17 : f32 to vector<8x128xf32>
    %1574 = arith.mulf %1573, %1516 : vector<8x128xf32>
    %1575 = arith.addf %1572, %1574 : vector<8x128xf32>
    %cst_398 = arith.constant dense<0.000000e+00> : vector<128xf32>
    %1576 = vector.multi_reduction <add>, %1575, %cst_398 [0] : vector<8x128xf32> to vector<128xf32>
    %1577 = vector.shape_cast %1576 : vector<128xf32> to vector<1x128xf32>
    %1578 = arith.mulf %1575, %1575 : vector<8x128xf32>
    %cst_399 = arith.constant dense<0.000000e+00> : vector<128xf32>
    %1579 = vector.multi_reduction <add>, %1578, %cst_399 [0] : vector<8x128xf32> to vector<128xf32>
    %1580 = vector.shape_cast %1579 : vector<128xf32> to vector<1x128xf32>
    %1581 = arith.addf %1398, %1577 : vector<1x128xf32>
    %1582 = arith.addf %1399, %1580 : vector<1x128xf32>
    %1583 = vector.broadcast %18 : f32 to vector<8x128xf32>
    %1584 = arith.mulf %1583, %1500 : vector<8x128xf32>
    %1585 = vector.broadcast %19 : f32 to vector<8x128xf32>
    %1586 = arith.mulf %1585, %1502 : vector<8x128xf32>
    %1587 = arith.addf %1584, %1586 : vector<8x128xf32>
    %1588 = vector.broadcast %20 : f32 to vector<8x128xf32>
    %1589 = arith.mulf %1588, %1504 : vector<8x128xf32>
    %1590 = arith.addf %1587, %1589 : vector<8x128xf32>
    %1591 = vector.broadcast %21 : f32 to vector<8x128xf32>
    %1592 = arith.mulf %1591, %1506 : vector<8x128xf32>
    %1593 = arith.addf %1590, %1592 : vector<8x128xf32>
    %1594 = vector.broadcast %22 : f32 to vector<8x128xf32>
    %1595 = arith.mulf %1594, %1508 : vector<8x128xf32>
    %1596 = arith.addf %1593, %1595 : vector<8x128xf32>
    %1597 = vector.broadcast %23 : f32 to vector<8x128xf32>
    %1598 = arith.mulf %1597, %1510 : vector<8x128xf32>
    %1599 = arith.addf %1596, %1598 : vector<8x128xf32>
    %1600 = vector.broadcast %24 : f32 to vector<8x128xf32>
    %1601 = arith.mulf %1600, %1512 : vector<8x128xf32>
    %1602 = arith.addf %1599, %1601 : vector<8x128xf32>
    %1603 = vector.broadcast %25 : f32 to vector<8x128xf32>
    %1604 = arith.mulf %1603, %1514 : vector<8x128xf32>
    %1605 = arith.addf %1602, %1604 : vector<8x128xf32>
    %1606 = vector.broadcast %26 : f32 to vector<8x128xf32>
    %1607 = arith.mulf %1606, %1516 : vector<8x128xf32>
    %1608 = arith.addf %1605, %1607 : vector<8x128xf32>
    %cst_400 = arith.constant dense<0.000000e+00> : vector<128xf32>
    %1609 = vector.multi_reduction <add>, %1608, %cst_400 [0] : vector<8x128xf32> to vector<128xf32>
    %1610 = vector.shape_cast %1609 : vector<128xf32> to vector<1x128xf32>
    %1611 = arith.mulf %1608, %1608 : vector<8x128xf32>
    %cst_401 = arith.constant dense<0.000000e+00> : vector<128xf32>
    %1612 = vector.multi_reduction <add>, %1611, %cst_401 [0] : vector<8x128xf32> to vector<128xf32>
    %1613 = vector.shape_cast %1612 : vector<128xf32> to vector<1x128xf32>
    %1614 = arith.addf %1431, %1610 : vector<1x128xf32>
    %1615 = arith.addf %1432, %1613 : vector<1x128xf32>
    %1616 = vector.broadcast %27 : f32 to vector<8x128xf32>
    %1617 = arith.mulf %1616, %1500 : vector<8x128xf32>
    %1618 = vector.broadcast %28 : f32 to vector<8x128xf32>
    %1619 = arith.mulf %1618, %1502 : vector<8x128xf32>
    %1620 = arith.addf %1617, %1619 : vector<8x128xf32>
    %1621 = vector.broadcast %29 : f32 to vector<8x128xf32>
    %1622 = arith.mulf %1621, %1504 : vector<8x128xf32>
    %1623 = arith.addf %1620, %1622 : vector<8x128xf32>
    %1624 = vector.broadcast %30 : f32 to vector<8x128xf32>
    %1625 = arith.mulf %1624, %1506 : vector<8x128xf32>
    %1626 = arith.addf %1623, %1625 : vector<8x128xf32>
    %1627 = vector.broadcast %31 : f32 to vector<8x128xf32>
    %1628 = arith.mulf %1627, %1508 : vector<8x128xf32>
    %1629 = arith.addf %1626, %1628 : vector<8x128xf32>
    %1630 = vector.broadcast %32 : f32 to vector<8x128xf32>
    %1631 = arith.mulf %1630, %1510 : vector<8x128xf32>
    %1632 = arith.addf %1629, %1631 : vector<8x128xf32>
    %1633 = vector.broadcast %33 : f32 to vector<8x128xf32>
    %1634 = arith.mulf %1633, %1512 : vector<8x128xf32>
    %1635 = arith.addf %1632, %1634 : vector<8x128xf32>
    %1636 = vector.broadcast %34 : f32 to vector<8x128xf32>
    %1637 = arith.mulf %1636, %1514 : vector<8x128xf32>
    %1638 = arith.addf %1635, %1637 : vector<8x128xf32>
    %1639 = vector.broadcast %35 : f32 to vector<8x128xf32>
    %1640 = arith.mulf %1639, %1516 : vector<8x128xf32>
    %1641 = arith.addf %1638, %1640 : vector<8x128xf32>
    %cst_402 = arith.constant dense<0.000000e+00> : vector<128xf32>
    %1642 = vector.multi_reduction <add>, %1641, %cst_402 [0] : vector<8x128xf32> to vector<128xf32>
    %1643 = vector.shape_cast %1642 : vector<128xf32> to vector<1x128xf32>
    %1644 = arith.mulf %1641, %1641 : vector<8x128xf32>
    %cst_403 = arith.constant dense<0.000000e+00> : vector<128xf32>
    %1645 = vector.multi_reduction <add>, %1644, %cst_403 [0] : vector<8x128xf32> to vector<128xf32>
    %1646 = vector.shape_cast %1645 : vector<128xf32> to vector<1x128xf32>
    %1647 = arith.addf %1464, %1643 : vector<1x128xf32>
    %1648 = arith.addf %1465, %1646 : vector<1x128xf32>
    %1649 = vector.broadcast %36 : f32 to vector<8x128xf32>
    %1650 = arith.mulf %1649, %1500 : vector<8x128xf32>
    %1651 = vector.broadcast %37 : f32 to vector<8x128xf32>
    %1652 = arith.mulf %1651, %1502 : vector<8x128xf32>
    %1653 = arith.addf %1650, %1652 : vector<8x128xf32>
    %1654 = vector.broadcast %38 : f32 to vector<8x128xf32>
    %1655 = arith.mulf %1654, %1504 : vector<8x128xf32>
    %1656 = arith.addf %1653, %1655 : vector<8x128xf32>
    %1657 = vector.broadcast %39 : f32 to vector<8x128xf32>
    %1658 = arith.mulf %1657, %1506 : vector<8x128xf32>
    %1659 = arith.addf %1656, %1658 : vector<8x128xf32>
    %1660 = vector.broadcast %40 : f32 to vector<8x128xf32>
    %1661 = arith.mulf %1660, %1508 : vector<8x128xf32>
    %1662 = arith.addf %1659, %1661 : vector<8x128xf32>
    %1663 = vector.broadcast %41 : f32 to vector<8x128xf32>
    %1664 = arith.mulf %1663, %1510 : vector<8x128xf32>
    %1665 = arith.addf %1662, %1664 : vector<8x128xf32>
    %1666 = vector.broadcast %42 : f32 to vector<8x128xf32>
    %1667 = arith.mulf %1666, %1512 : vector<8x128xf32>
    %1668 = arith.addf %1665, %1667 : vector<8x128xf32>
    %1669 = vector.broadcast %43 : f32 to vector<8x128xf32>
    %1670 = arith.mulf %1669, %1514 : vector<8x128xf32>
    %1671 = arith.addf %1668, %1670 : vector<8x128xf32>
    %1672 = vector.broadcast %44 : f32 to vector<8x128xf32>
    %1673 = arith.mulf %1672, %1516 : vector<8x128xf32>
    %1674 = arith.addf %1671, %1673 : vector<8x128xf32>
    %cst_404 = arith.constant dense<0.000000e+00> : vector<128xf32>
    %1675 = vector.multi_reduction <add>, %1674, %cst_404 [0] : vector<8x128xf32> to vector<128xf32>
    %1676 = vector.shape_cast %1675 : vector<128xf32> to vector<1x128xf32>
    %1677 = arith.mulf %1674, %1674 : vector<8x128xf32>
    %cst_405 = arith.constant dense<0.000000e+00> : vector<128xf32>
    %1678 = vector.multi_reduction <add>, %1677, %cst_405 [0] : vector<8x128xf32> to vector<128xf32>
    %1679 = vector.shape_cast %1678 : vector<128xf32> to vector<1x128xf32>
    %1680 = arith.addf %1497, %1676 : vector<1x128xf32>
    %1681 = arith.addf %1498, %1679 : vector<1x128xf32>
    %c0_406 = arith.constant 0 : index
    %c72 = arith.constant 72 : index
    %c0_407 = arith.constant 0 : index
    %1682 = vector.load %arg1[%c0_406, %c72, %c0_407] : memref<9x81x128xf32, #tpu.memory_space<vmem>>, vector<1x8x128xf32>
    %1683 = vector.shape_cast %1682 : vector<1x8x128xf32> to vector<8x128xf32>
    %c1_408 = arith.constant 1 : index
    %c72_409 = arith.constant 72 : index
    %c0_410 = arith.constant 0 : index
    %1684 = vector.load %arg1[%c1_408, %c72_409, %c0_410] : memref<9x81x128xf32, #tpu.memory_space<vmem>>, vector<1x8x128xf32>
    %1685 = vector.shape_cast %1684 : vector<1x8x128xf32> to vector<8x128xf32>
    %c2_411 = arith.constant 2 : index
    %c72_412 = arith.constant 72 : index
    %c0_413 = arith.constant 0 : index
    %1686 = vector.load %arg1[%c2_411, %c72_412, %c0_413] : memref<9x81x128xf32, #tpu.memory_space<vmem>>, vector<1x8x128xf32>
    %1687 = vector.shape_cast %1686 : vector<1x8x128xf32> to vector<8x128xf32>
    %c3_414 = arith.constant 3 : index
    %c72_415 = arith.constant 72 : index
    %c0_416 = arith.constant 0 : index
    %1688 = vector.load %arg1[%c3_414, %c72_415, %c0_416] : memref<9x81x128xf32, #tpu.memory_space<vmem>>, vector<1x8x128xf32>
    %1689 = vector.shape_cast %1688 : vector<1x8x128xf32> to vector<8x128xf32>
    %c4_417 = arith.constant 4 : index
    %c72_418 = arith.constant 72 : index
    %c0_419 = arith.constant 0 : index
    %1690 = vector.load %arg1[%c4_417, %c72_418, %c0_419] : memref<9x81x128xf32, #tpu.memory_space<vmem>>, vector<1x8x128xf32>
    %1691 = vector.shape_cast %1690 : vector<1x8x128xf32> to vector<8x128xf32>
    %c5_420 = arith.constant 5 : index
    %c72_421 = arith.constant 72 : index
    %c0_422 = arith.constant 0 : index
    %1692 = vector.load %arg1[%c5_420, %c72_421, %c0_422] : memref<9x81x128xf32, #tpu.memory_space<vmem>>, vector<1x8x128xf32>
    %1693 = vector.shape_cast %1692 : vector<1x8x128xf32> to vector<8x128xf32>
    %c6_423 = arith.constant 6 : index
    %c72_424 = arith.constant 72 : index
    %c0_425 = arith.constant 0 : index
    %1694 = vector.load %arg1[%c6_423, %c72_424, %c0_425] : memref<9x81x128xf32, #tpu.memory_space<vmem>>, vector<1x8x128xf32>
    %1695 = vector.shape_cast %1694 : vector<1x8x128xf32> to vector<8x128xf32>
    %c7_426 = arith.constant 7 : index
    %c72_427 = arith.constant 72 : index
    %c0_428 = arith.constant 0 : index
    %1696 = vector.load %arg1[%c7_426, %c72_427, %c0_428] : memref<9x81x128xf32, #tpu.memory_space<vmem>>, vector<1x8x128xf32>
    %1697 = vector.shape_cast %1696 : vector<1x8x128xf32> to vector<8x128xf32>
    %c8_429 = arith.constant 8 : index
    %c72_430 = arith.constant 72 : index
    %c0_431 = arith.constant 0 : index
    %1698 = vector.load %arg1[%c8_429, %c72_430, %c0_431] : memref<9x81x128xf32, #tpu.memory_space<vmem>>, vector<1x8x128xf32>
    %1699 = vector.shape_cast %1698 : vector<1x8x128xf32> to vector<8x128xf32>
    %1700 = vector.broadcast %0 : f32 to vector<8x128xf32>
    %1701 = arith.mulf %1700, %1683 : vector<8x128xf32>
    %1702 = vector.broadcast %1 : f32 to vector<8x128xf32>
    %1703 = arith.mulf %1702, %1685 : vector<8x128xf32>
    %1704 = arith.addf %1701, %1703 : vector<8x128xf32>
    %1705 = vector.broadcast %2 : f32 to vector<8x128xf32>
    %1706 = arith.mulf %1705, %1687 : vector<8x128xf32>
    %1707 = arith.addf %1704, %1706 : vector<8x128xf32>
    %1708 = vector.broadcast %3 : f32 to vector<8x128xf32>
    %1709 = arith.mulf %1708, %1689 : vector<8x128xf32>
    %1710 = arith.addf %1707, %1709 : vector<8x128xf32>
    %1711 = vector.broadcast %4 : f32 to vector<8x128xf32>
    %1712 = arith.mulf %1711, %1691 : vector<8x128xf32>
    %1713 = arith.addf %1710, %1712 : vector<8x128xf32>
    %1714 = vector.broadcast %5 : f32 to vector<8x128xf32>
    %1715 = arith.mulf %1714, %1693 : vector<8x128xf32>
    %1716 = arith.addf %1713, %1715 : vector<8x128xf32>
    %1717 = vector.broadcast %6 : f32 to vector<8x128xf32>
    %1718 = arith.mulf %1717, %1695 : vector<8x128xf32>
    %1719 = arith.addf %1716, %1718 : vector<8x128xf32>
    %1720 = vector.broadcast %7 : f32 to vector<8x128xf32>
    %1721 = arith.mulf %1720, %1697 : vector<8x128xf32>
    %1722 = arith.addf %1719, %1721 : vector<8x128xf32>
    %1723 = vector.broadcast %8 : f32 to vector<8x128xf32>
    %1724 = arith.mulf %1723, %1699 : vector<8x128xf32>
    %1725 = arith.addf %1722, %1724 : vector<8x128xf32>
    %cst_432 = arith.constant dense<0.000000e+00> : vector<128xf32>
    %1726 = vector.multi_reduction <add>, %1725, %cst_432 [0] : vector<8x128xf32> to vector<128xf32>
    %1727 = vector.shape_cast %1726 : vector<128xf32> to vector<1x128xf32>
    %1728 = arith.mulf %1725, %1725 : vector<8x128xf32>
    %cst_433 = arith.constant dense<0.000000e+00> : vector<128xf32>
    %1729 = vector.multi_reduction <add>, %1728, %cst_433 [0] : vector<8x128xf32> to vector<128xf32>
    %1730 = vector.shape_cast %1729 : vector<128xf32> to vector<1x128xf32>
    %1731 = arith.addf %1548, %1727 : vector<1x128xf32>
    %1732 = arith.addf %1549, %1730 : vector<1x128xf32>
    %1733 = vector.broadcast %9 : f32 to vector<8x128xf32>
    %1734 = arith.mulf %1733, %1683 : vector<8x128xf32>
    %1735 = vector.broadcast %10 : f32 to vector<8x128xf32>
    %1736 = arith.mulf %1735, %1685 : vector<8x128xf32>
    %1737 = arith.addf %1734, %1736 : vector<8x128xf32>
    %1738 = vector.broadcast %11 : f32 to vector<8x128xf32>
    %1739 = arith.mulf %1738, %1687 : vector<8x128xf32>
    %1740 = arith.addf %1737, %1739 : vector<8x128xf32>
    %1741 = vector.broadcast %12 : f32 to vector<8x128xf32>
    %1742 = arith.mulf %1741, %1689 : vector<8x128xf32>
    %1743 = arith.addf %1740, %1742 : vector<8x128xf32>
    %1744 = vector.broadcast %13 : f32 to vector<8x128xf32>
    %1745 = arith.mulf %1744, %1691 : vector<8x128xf32>
    %1746 = arith.addf %1743, %1745 : vector<8x128xf32>
    %1747 = vector.broadcast %14 : f32 to vector<8x128xf32>
    %1748 = arith.mulf %1747, %1693 : vector<8x128xf32>
    %1749 = arith.addf %1746, %1748 : vector<8x128xf32>
    %1750 = vector.broadcast %15 : f32 to vector<8x128xf32>
    %1751 = arith.mulf %1750, %1695 : vector<8x128xf32>
    %1752 = arith.addf %1749, %1751 : vector<8x128xf32>
    %1753 = vector.broadcast %16 : f32 to vector<8x128xf32>
    %1754 = arith.mulf %1753, %1697 : vector<8x128xf32>
    %1755 = arith.addf %1752, %1754 : vector<8x128xf32>
    %1756 = vector.broadcast %17 : f32 to vector<8x128xf32>
    %1757 = arith.mulf %1756, %1699 : vector<8x128xf32>
    %1758 = arith.addf %1755, %1757 : vector<8x128xf32>
    %cst_434 = arith.constant dense<0.000000e+00> : vector<128xf32>
    %1759 = vector.multi_reduction <add>, %1758, %cst_434 [0] : vector<8x128xf32> to vector<128xf32>
    %1760 = vector.shape_cast %1759 : vector<128xf32> to vector<1x128xf32>
    %1761 = arith.mulf %1758, %1758 : vector<8x128xf32>
    %cst_435 = arith.constant dense<0.000000e+00> : vector<128xf32>
    %1762 = vector.multi_reduction <add>, %1761, %cst_435 [0] : vector<8x128xf32> to vector<128xf32>
    %1763 = vector.shape_cast %1762 : vector<128xf32> to vector<1x128xf32>
    %1764 = arith.addf %1581, %1760 : vector<1x128xf32>
    %1765 = arith.addf %1582, %1763 : vector<1x128xf32>
    %1766 = vector.broadcast %18 : f32 to vector<8x128xf32>
    %1767 = arith.mulf %1766, %1683 : vector<8x128xf32>
    %1768 = vector.broadcast %19 : f32 to vector<8x128xf32>
    %1769 = arith.mulf %1768, %1685 : vector<8x128xf32>
    %1770 = arith.addf %1767, %1769 : vector<8x128xf32>
    %1771 = vector.broadcast %20 : f32 to vector<8x128xf32>
    %1772 = arith.mulf %1771, %1687 : vector<8x128xf32>
    %1773 = arith.addf %1770, %1772 : vector<8x128xf32>
    %1774 = vector.broadcast %21 : f32 to vector<8x128xf32>
    %1775 = arith.mulf %1774, %1689 : vector<8x128xf32>
    %1776 = arith.addf %1773, %1775 : vector<8x128xf32>
    %1777 = vector.broadcast %22 : f32 to vector<8x128xf32>
    %1778 = arith.mulf %1777, %1691 : vector<8x128xf32>
    %1779 = arith.addf %1776, %1778 : vector<8x128xf32>
    %1780 = vector.broadcast %23 : f32 to vector<8x128xf32>
    %1781 = arith.mulf %1780, %1693 : vector<8x128xf32>
    %1782 = arith.addf %1779, %1781 : vector<8x128xf32>
    %1783 = vector.broadcast %24 : f32 to vector<8x128xf32>
    %1784 = arith.mulf %1783, %1695 : vector<8x128xf32>
    %1785 = arith.addf %1782, %1784 : vector<8x128xf32>
    %1786 = vector.broadcast %25 : f32 to vector<8x128xf32>
    %1787 = arith.mulf %1786, %1697 : vector<8x128xf32>
    %1788 = arith.addf %1785, %1787 : vector<8x128xf32>
    %1789 = vector.broadcast %26 : f32 to vector<8x128xf32>
    %1790 = arith.mulf %1789, %1699 : vector<8x128xf32>
    %1791 = arith.addf %1788, %1790 : vector<8x128xf32>
    %cst_436 = arith.constant dense<0.000000e+00> : vector<128xf32>
    %1792 = vector.multi_reduction <add>, %1791, %cst_436 [0] : vector<8x128xf32> to vector<128xf32>
    %1793 = vector.shape_cast %1792 : vector<128xf32> to vector<1x128xf32>
    %1794 = arith.mulf %1791, %1791 : vector<8x128xf32>
    %cst_437 = arith.constant dense<0.000000e+00> : vector<128xf32>
    %1795 = vector.multi_reduction <add>, %1794, %cst_437 [0] : vector<8x128xf32> to vector<128xf32>
    %1796 = vector.shape_cast %1795 : vector<128xf32> to vector<1x128xf32>
    %1797 = arith.addf %1614, %1793 : vector<1x128xf32>
    %1798 = arith.addf %1615, %1796 : vector<1x128xf32>
    %1799 = vector.broadcast %27 : f32 to vector<8x128xf32>
    %1800 = arith.mulf %1799, %1683 : vector<8x128xf32>
    %1801 = vector.broadcast %28 : f32 to vector<8x128xf32>
    %1802 = arith.mulf %1801, %1685 : vector<8x128xf32>
    %1803 = arith.addf %1800, %1802 : vector<8x128xf32>
    %1804 = vector.broadcast %29 : f32 to vector<8x128xf32>
    %1805 = arith.mulf %1804, %1687 : vector<8x128xf32>
    %1806 = arith.addf %1803, %1805 : vector<8x128xf32>
    %1807 = vector.broadcast %30 : f32 to vector<8x128xf32>
    %1808 = arith.mulf %1807, %1689 : vector<8x128xf32>
    %1809 = arith.addf %1806, %1808 : vector<8x128xf32>
    %1810 = vector.broadcast %31 : f32 to vector<8x128xf32>
    %1811 = arith.mulf %1810, %1691 : vector<8x128xf32>
    %1812 = arith.addf %1809, %1811 : vector<8x128xf32>
    %1813 = vector.broadcast %32 : f32 to vector<8x128xf32>
    %1814 = arith.mulf %1813, %1693 : vector<8x128xf32>
    %1815 = arith.addf %1812, %1814 : vector<8x128xf32>
    %1816 = vector.broadcast %33 : f32 to vector<8x128xf32>
    %1817 = arith.mulf %1816, %1695 : vector<8x128xf32>
    %1818 = arith.addf %1815, %1817 : vector<8x128xf32>
    %1819 = vector.broadcast %34 : f32 to vector<8x128xf32>
    %1820 = arith.mulf %1819, %1697 : vector<8x128xf32>
    %1821 = arith.addf %1818, %1820 : vector<8x128xf32>
    %1822 = vector.broadcast %35 : f32 to vector<8x128xf32>
    %1823 = arith.mulf %1822, %1699 : vector<8x128xf32>
    %1824 = arith.addf %1821, %1823 : vector<8x128xf32>
    %cst_438 = arith.constant dense<0.000000e+00> : vector<128xf32>
    %1825 = vector.multi_reduction <add>, %1824, %cst_438 [0] : vector<8x128xf32> to vector<128xf32>
    %1826 = vector.shape_cast %1825 : vector<128xf32> to vector<1x128xf32>
    %1827 = arith.mulf %1824, %1824 : vector<8x128xf32>
    %cst_439 = arith.constant dense<0.000000e+00> : vector<128xf32>
    %1828 = vector.multi_reduction <add>, %1827, %cst_439 [0] : vector<8x128xf32> to vector<128xf32>
    %1829 = vector.shape_cast %1828 : vector<128xf32> to vector<1x128xf32>
    %1830 = arith.addf %1647, %1826 : vector<1x128xf32>
    %1831 = arith.addf %1648, %1829 : vector<1x128xf32>
    %1832 = vector.broadcast %36 : f32 to vector<8x128xf32>
    %1833 = arith.mulf %1832, %1683 : vector<8x128xf32>
    %1834 = vector.broadcast %37 : f32 to vector<8x128xf32>
    %1835 = arith.mulf %1834, %1685 : vector<8x128xf32>
    %1836 = arith.addf %1833, %1835 : vector<8x128xf32>
    %1837 = vector.broadcast %38 : f32 to vector<8x128xf32>
    %1838 = arith.mulf %1837, %1687 : vector<8x128xf32>
    %1839 = arith.addf %1836, %1838 : vector<8x128xf32>
    %1840 = vector.broadcast %39 : f32 to vector<8x128xf32>
    %1841 = arith.mulf %1840, %1689 : vector<8x128xf32>
    %1842 = arith.addf %1839, %1841 : vector<8x128xf32>
    %1843 = vector.broadcast %40 : f32 to vector<8x128xf32>
    %1844 = arith.mulf %1843, %1691 : vector<8x128xf32>
    %1845 = arith.addf %1842, %1844 : vector<8x128xf32>
    %1846 = vector.broadcast %41 : f32 to vector<8x128xf32>
    %1847 = arith.mulf %1846, %1693 : vector<8x128xf32>
    %1848 = arith.addf %1845, %1847 : vector<8x128xf32>
    %1849 = vector.broadcast %42 : f32 to vector<8x128xf32>
    %1850 = arith.mulf %1849, %1695 : vector<8x128xf32>
    %1851 = arith.addf %1848, %1850 : vector<8x128xf32>
    %1852 = vector.broadcast %43 : f32 to vector<8x128xf32>
    %1853 = arith.mulf %1852, %1697 : vector<8x128xf32>
    %1854 = arith.addf %1851, %1853 : vector<8x128xf32>
    %1855 = vector.broadcast %44 : f32 to vector<8x128xf32>
    %1856 = arith.mulf %1855, %1699 : vector<8x128xf32>
    %1857 = arith.addf %1854, %1856 : vector<8x128xf32>
    %cst_440 = arith.constant dense<0.000000e+00> : vector<128xf32>
    %1858 = vector.multi_reduction <add>, %1857, %cst_440 [0] : vector<8x128xf32> to vector<128xf32>
    %1859 = vector.shape_cast %1858 : vector<128xf32> to vector<1x128xf32>
    %1860 = arith.mulf %1857, %1857 : vector<8x128xf32>
    %cst_441 = arith.constant dense<0.000000e+00> : vector<128xf32>
    %1861 = vector.multi_reduction <add>, %1860, %cst_441 [0] : vector<8x128xf32> to vector<128xf32>
    %1862 = vector.shape_cast %1861 : vector<128xf32> to vector<1x128xf32>
    %1863 = arith.addf %1680, %1859 : vector<1x128xf32>
    %1864 = arith.addf %1681, %1862 : vector<1x128xf32>
    %c0_442 = arith.constant 0 : index
    %c80 = arith.constant 80 : index
    %c0_443 = arith.constant 0 : index
    %1865 = vector.load %arg1[%c0_442, %c80, %c0_443] : memref<9x81x128xf32, #tpu.memory_space<vmem>>, vector<1x1x128xf32>
    %1866 = vector.shape_cast %1865 : vector<1x1x128xf32> to vector<1x128xf32>
    %c1_444 = arith.constant 1 : index
    %c80_445 = arith.constant 80 : index
    %c0_446 = arith.constant 0 : index
    %1867 = vector.load %arg1[%c1_444, %c80_445, %c0_446] : memref<9x81x128xf32, #tpu.memory_space<vmem>>, vector<1x1x128xf32>
    %1868 = vector.shape_cast %1867 : vector<1x1x128xf32> to vector<1x128xf32>
    %c2_447 = arith.constant 2 : index
    %c80_448 = arith.constant 80 : index
    %c0_449 = arith.constant 0 : index
    %1869 = vector.load %arg1[%c2_447, %c80_448, %c0_449] : memref<9x81x128xf32, #tpu.memory_space<vmem>>, vector<1x1x128xf32>
    %1870 = vector.shape_cast %1869 : vector<1x1x128xf32> to vector<1x128xf32>
    %c3_450 = arith.constant 3 : index
    %c80_451 = arith.constant 80 : index
    %c0_452 = arith.constant 0 : index
    %1871 = vector.load %arg1[%c3_450, %c80_451, %c0_452] : memref<9x81x128xf32, #tpu.memory_space<vmem>>, vector<1x1x128xf32>
    %1872 = vector.shape_cast %1871 : vector<1x1x128xf32> to vector<1x128xf32>
    %c4_453 = arith.constant 4 : index
    %c80_454 = arith.constant 80 : index
    %c0_455 = arith.constant 0 : index
    %1873 = vector.load %arg1[%c4_453, %c80_454, %c0_455] : memref<9x81x128xf32, #tpu.memory_space<vmem>>, vector<1x1x128xf32>
    %1874 = vector.shape_cast %1873 : vector<1x1x128xf32> to vector<1x128xf32>
    %c5_456 = arith.constant 5 : index
    %c80_457 = arith.constant 80 : index
    %c0_458 = arith.constant 0 : index
    %1875 = vector.load %arg1[%c5_456, %c80_457, %c0_458] : memref<9x81x128xf32, #tpu.memory_space<vmem>>, vector<1x1x128xf32>
    %1876 = vector.shape_cast %1875 : vector<1x1x128xf32> to vector<1x128xf32>
    %c6_459 = arith.constant 6 : index
    %c80_460 = arith.constant 80 : index
    %c0_461 = arith.constant 0 : index
    %1877 = vector.load %arg1[%c6_459, %c80_460, %c0_461] : memref<9x81x128xf32, #tpu.memory_space<vmem>>, vector<1x1x128xf32>
    %1878 = vector.shape_cast %1877 : vector<1x1x128xf32> to vector<1x128xf32>
    %c7_462 = arith.constant 7 : index
    %c80_463 = arith.constant 80 : index
    %c0_464 = arith.constant 0 : index
    %1879 = vector.load %arg1[%c7_462, %c80_463, %c0_464] : memref<9x81x128xf32, #tpu.memory_space<vmem>>, vector<1x1x128xf32>
    %1880 = vector.shape_cast %1879 : vector<1x1x128xf32> to vector<1x128xf32>
    %c8_465 = arith.constant 8 : index
    %c80_466 = arith.constant 80 : index
    %c0_467 = arith.constant 0 : index
    %1881 = vector.load %arg1[%c8_465, %c80_466, %c0_467] : memref<9x81x128xf32, #tpu.memory_space<vmem>>, vector<1x1x128xf32>
    %1882 = vector.shape_cast %1881 : vector<1x1x128xf32> to vector<1x128xf32>
    %1883 = vector.broadcast %0 : f32 to vector<1x128xf32>
    %1884 = arith.mulf %1883, %1866 : vector<1x128xf32>
    %1885 = vector.broadcast %1 : f32 to vector<1x128xf32>
    %1886 = arith.mulf %1885, %1868 : vector<1x128xf32>
    %1887 = arith.addf %1884, %1886 : vector<1x128xf32>
    %1888 = vector.broadcast %2 : f32 to vector<1x128xf32>
    %1889 = arith.mulf %1888, %1870 : vector<1x128xf32>
    %1890 = arith.addf %1887, %1889 : vector<1x128xf32>
    %1891 = vector.broadcast %3 : f32 to vector<1x128xf32>
    %1892 = arith.mulf %1891, %1872 : vector<1x128xf32>
    %1893 = arith.addf %1890, %1892 : vector<1x128xf32>
    %1894 = vector.broadcast %4 : f32 to vector<1x128xf32>
    %1895 = arith.mulf %1894, %1874 : vector<1x128xf32>
    %1896 = arith.addf %1893, %1895 : vector<1x128xf32>
    %1897 = vector.broadcast %5 : f32 to vector<1x128xf32>
    %1898 = arith.mulf %1897, %1876 : vector<1x128xf32>
    %1899 = arith.addf %1896, %1898 : vector<1x128xf32>
    %1900 = vector.broadcast %6 : f32 to vector<1x128xf32>
    %1901 = arith.mulf %1900, %1878 : vector<1x128xf32>
    %1902 = arith.addf %1899, %1901 : vector<1x128xf32>
    %1903 = vector.broadcast %7 : f32 to vector<1x128xf32>
    %1904 = arith.mulf %1903, %1880 : vector<1x128xf32>
    %1905 = arith.addf %1902, %1904 : vector<1x128xf32>
    %1906 = vector.broadcast %8 : f32 to vector<1x128xf32>
    %1907 = arith.mulf %1906, %1882 : vector<1x128xf32>
    %1908 = arith.addf %1905, %1907 : vector<1x128xf32>
    %cst_468 = arith.constant dense<0.000000e+00> : vector<128xf32>
    %1909 = vector.multi_reduction <add>, %1908, %cst_468 [0] : vector<1x128xf32> to vector<128xf32>
    %1910 = vector.shape_cast %1909 : vector<128xf32> to vector<1x128xf32>
    %1911 = arith.mulf %1908, %1908 : vector<1x128xf32>
    %cst_469 = arith.constant dense<0.000000e+00> : vector<128xf32>
    %1912 = vector.multi_reduction <add>, %1911, %cst_469 [0] : vector<1x128xf32> to vector<128xf32>
    %1913 = vector.shape_cast %1912 : vector<128xf32> to vector<1x128xf32>
    %1914 = arith.addf %1731, %1910 : vector<1x128xf32>
    %1915 = arith.addf %1732, %1913 : vector<1x128xf32>
    %1916 = vector.broadcast %9 : f32 to vector<1x128xf32>
    %1917 = arith.mulf %1916, %1866 : vector<1x128xf32>
    %1918 = vector.broadcast %10 : f32 to vector<1x128xf32>
    %1919 = arith.mulf %1918, %1868 : vector<1x128xf32>
    %1920 = arith.addf %1917, %1919 : vector<1x128xf32>
    %1921 = vector.broadcast %11 : f32 to vector<1x128xf32>
    %1922 = arith.mulf %1921, %1870 : vector<1x128xf32>
    %1923 = arith.addf %1920, %1922 : vector<1x128xf32>
    %1924 = vector.broadcast %12 : f32 to vector<1x128xf32>
    %1925 = arith.mulf %1924, %1872 : vector<1x128xf32>
    %1926 = arith.addf %1923, %1925 : vector<1x128xf32>
    %1927 = vector.broadcast %13 : f32 to vector<1x128xf32>
    %1928 = arith.mulf %1927, %1874 : vector<1x128xf32>
    %1929 = arith.addf %1926, %1928 : vector<1x128xf32>
    %1930 = vector.broadcast %14 : f32 to vector<1x128xf32>
    %1931 = arith.mulf %1930, %1876 : vector<1x128xf32>
    %1932 = arith.addf %1929, %1931 : vector<1x128xf32>
    %1933 = vector.broadcast %15 : f32 to vector<1x128xf32>
    %1934 = arith.mulf %1933, %1878 : vector<1x128xf32>
    %1935 = arith.addf %1932, %1934 : vector<1x128xf32>
    %1936 = vector.broadcast %16 : f32 to vector<1x128xf32>
    %1937 = arith.mulf %1936, %1880 : vector<1x128xf32>
    %1938 = arith.addf %1935, %1937 : vector<1x128xf32>
    %1939 = vector.broadcast %17 : f32 to vector<1x128xf32>
    %1940 = arith.mulf %1939, %1882 : vector<1x128xf32>
    %1941 = arith.addf %1938, %1940 : vector<1x128xf32>
    %cst_470 = arith.constant dense<0.000000e+00> : vector<128xf32>
    %1942 = vector.multi_reduction <add>, %1941, %cst_470 [0] : vector<1x128xf32> to vector<128xf32>
    %1943 = vector.shape_cast %1942 : vector<128xf32> to vector<1x128xf32>
    %1944 = arith.mulf %1941, %1941 : vector<1x128xf32>
    %cst_471 = arith.constant dense<0.000000e+00> : vector<128xf32>
    %1945 = vector.multi_reduction <add>, %1944, %cst_471 [0] : vector<1x128xf32> to vector<128xf32>
    %1946 = vector.shape_cast %1945 : vector<128xf32> to vector<1x128xf32>
    %1947 = arith.addf %1764, %1943 : vector<1x128xf32>
    %1948 = arith.addf %1765, %1946 : vector<1x128xf32>
    %1949 = vector.broadcast %18 : f32 to vector<1x128xf32>
    %1950 = arith.mulf %1949, %1866 : vector<1x128xf32>
    %1951 = vector.broadcast %19 : f32 to vector<1x128xf32>
    %1952 = arith.mulf %1951, %1868 : vector<1x128xf32>
    %1953 = arith.addf %1950, %1952 : vector<1x128xf32>
    %1954 = vector.broadcast %20 : f32 to vector<1x128xf32>
    %1955 = arith.mulf %1954, %1870 : vector<1x128xf32>
    %1956 = arith.addf %1953, %1955 : vector<1x128xf32>
    %1957 = vector.broadcast %21 : f32 to vector<1x128xf32>
    %1958 = arith.mulf %1957, %1872 : vector<1x128xf32>
    %1959 = arith.addf %1956, %1958 : vector<1x128xf32>
    %1960 = vector.broadcast %22 : f32 to vector<1x128xf32>
    %1961 = arith.mulf %1960, %1874 : vector<1x128xf32>
    %1962 = arith.addf %1959, %1961 : vector<1x128xf32>
    %1963 = vector.broadcast %23 : f32 to vector<1x128xf32>
    %1964 = arith.mulf %1963, %1876 : vector<1x128xf32>
    %1965 = arith.addf %1962, %1964 : vector<1x128xf32>
    %1966 = vector.broadcast %24 : f32 to vector<1x128xf32>
    %1967 = arith.mulf %1966, %1878 : vector<1x128xf32>
    %1968 = arith.addf %1965, %1967 : vector<1x128xf32>
    %1969 = vector.broadcast %25 : f32 to vector<1x128xf32>
    %1970 = arith.mulf %1969, %1880 : vector<1x128xf32>
    %1971 = arith.addf %1968, %1970 : vector<1x128xf32>
    %1972 = vector.broadcast %26 : f32 to vector<1x128xf32>
    %1973 = arith.mulf %1972, %1882 : vector<1x128xf32>
    %1974 = arith.addf %1971, %1973 : vector<1x128xf32>
    %cst_472 = arith.constant dense<0.000000e+00> : vector<128xf32>
    %1975 = vector.multi_reduction <add>, %1974, %cst_472 [0] : vector<1x128xf32> to vector<128xf32>
    %1976 = vector.shape_cast %1975 : vector<128xf32> to vector<1x128xf32>
    %1977 = arith.mulf %1974, %1974 : vector<1x128xf32>
    %cst_473 = arith.constant dense<0.000000e+00> : vector<128xf32>
    %1978 = vector.multi_reduction <add>, %1977, %cst_473 [0] : vector<1x128xf32> to vector<128xf32>
    %1979 = vector.shape_cast %1978 : vector<128xf32> to vector<1x128xf32>
    %1980 = arith.addf %1797, %1976 : vector<1x128xf32>
    %1981 = arith.addf %1798, %1979 : vector<1x128xf32>
    %1982 = vector.broadcast %27 : f32 to vector<1x128xf32>
    %1983 = arith.mulf %1982, %1866 : vector<1x128xf32>
    %1984 = vector.broadcast %28 : f32 to vector<1x128xf32>
    %1985 = arith.mulf %1984, %1868 : vector<1x128xf32>
    %1986 = arith.addf %1983, %1985 : vector<1x128xf32>
    %1987 = vector.broadcast %29 : f32 to vector<1x128xf32>
    %1988 = arith.mulf %1987, %1870 : vector<1x128xf32>
    %1989 = arith.addf %1986, %1988 : vector<1x128xf32>
    %1990 = vector.broadcast %30 : f32 to vector<1x128xf32>
    %1991 = arith.mulf %1990, %1872 : vector<1x128xf32>
    %1992 = arith.addf %1989, %1991 : vector<1x128xf32>
    %1993 = vector.broadcast %31 : f32 to vector<1x128xf32>
    %1994 = arith.mulf %1993, %1874 : vector<1x128xf32>
    %1995 = arith.addf %1992, %1994 : vector<1x128xf32>
    %1996 = vector.broadcast %32 : f32 to vector<1x128xf32>
    %1997 = arith.mulf %1996, %1876 : vector<1x128xf32>
    %1998 = arith.addf %1995, %1997 : vector<1x128xf32>
    %1999 = vector.broadcast %33 : f32 to vector<1x128xf32>
    %2000 = arith.mulf %1999, %1878 : vector<1x128xf32>
    %2001 = arith.addf %1998, %2000 : vector<1x128xf32>
    %2002 = vector.broadcast %34 : f32 to vector<1x128xf32>
    %2003 = arith.mulf %2002, %1880 : vector<1x128xf32>
    %2004 = arith.addf %2001, %2003 : vector<1x128xf32>
    %2005 = vector.broadcast %35 : f32 to vector<1x128xf32>
    %2006 = arith.mulf %2005, %1882 : vector<1x128xf32>
    %2007 = arith.addf %2004, %2006 : vector<1x128xf32>
    %cst_474 = arith.constant dense<0.000000e+00> : vector<128xf32>
    %2008 = vector.multi_reduction <add>, %2007, %cst_474 [0] : vector<1x128xf32> to vector<128xf32>
    %2009 = vector.shape_cast %2008 : vector<128xf32> to vector<1x128xf32>
    %2010 = arith.mulf %2007, %2007 : vector<1x128xf32>
    %cst_475 = arith.constant dense<0.000000e+00> : vector<128xf32>
    %2011 = vector.multi_reduction <add>, %2010, %cst_475 [0] : vector<1x128xf32> to vector<128xf32>
    %2012 = vector.shape_cast %2011 : vector<128xf32> to vector<1x128xf32>
    %2013 = arith.addf %1830, %2009 : vector<1x128xf32>
    %2014 = arith.addf %1831, %2012 : vector<1x128xf32>
    %2015 = vector.broadcast %36 : f32 to vector<1x128xf32>
    %2016 = arith.mulf %2015, %1866 : vector<1x128xf32>
    %2017 = vector.broadcast %37 : f32 to vector<1x128xf32>
    %2018 = arith.mulf %2017, %1868 : vector<1x128xf32>
    %2019 = arith.addf %2016, %2018 : vector<1x128xf32>
    %2020 = vector.broadcast %38 : f32 to vector<1x128xf32>
    %2021 = arith.mulf %2020, %1870 : vector<1x128xf32>
    %2022 = arith.addf %2019, %2021 : vector<1x128xf32>
    %2023 = vector.broadcast %39 : f32 to vector<1x128xf32>
    %2024 = arith.mulf %2023, %1872 : vector<1x128xf32>
    %2025 = arith.addf %2022, %2024 : vector<1x128xf32>
    %2026 = vector.broadcast %40 : f32 to vector<1x128xf32>
    %2027 = arith.mulf %2026, %1874 : vector<1x128xf32>
    %2028 = arith.addf %2025, %2027 : vector<1x128xf32>
    %2029 = vector.broadcast %41 : f32 to vector<1x128xf32>
    %2030 = arith.mulf %2029, %1876 : vector<1x128xf32>
    %2031 = arith.addf %2028, %2030 : vector<1x128xf32>
    %2032 = vector.broadcast %42 : f32 to vector<1x128xf32>
    %2033 = arith.mulf %2032, %1878 : vector<1x128xf32>
    %2034 = arith.addf %2031, %2033 : vector<1x128xf32>
    %2035 = vector.broadcast %43 : f32 to vector<1x128xf32>
    %2036 = arith.mulf %2035, %1880 : vector<1x128xf32>
    %2037 = arith.addf %2034, %2036 : vector<1x128xf32>
    %2038 = vector.broadcast %44 : f32 to vector<1x128xf32>
    %2039 = arith.mulf %2038, %1882 : vector<1x128xf32>
    %2040 = arith.addf %2037, %2039 : vector<1x128xf32>
    %cst_476 = arith.constant dense<0.000000e+00> : vector<128xf32>
    %2041 = vector.multi_reduction <add>, %2040, %cst_476 [0] : vector<1x128xf32> to vector<128xf32>
    %2042 = vector.shape_cast %2041 : vector<128xf32> to vector<1x128xf32>
    %2043 = arith.mulf %2040, %2040 : vector<1x128xf32>
    %cst_477 = arith.constant dense<0.000000e+00> : vector<128xf32>
    %2044 = vector.multi_reduction <add>, %2043, %cst_477 [0] : vector<1x128xf32> to vector<128xf32>
    %2045 = vector.shape_cast %2044 : vector<128xf32> to vector<1x128xf32>
    %2046 = arith.addf %1863, %2042 : vector<1x128xf32>
    %2047 = arith.addf %1864, %2045 : vector<1x128xf32>
    %c0_478 = arith.constant 0 : index
    %c0_479 = arith.constant 0 : index
    %2048 = vector.load %arg3[%c0_478, %c0_479] : memref<5x128xf32, #tpu.memory_space<vmem>>, vector<1x128xf32>
    tpu.vector_store %arg3[%c0_478, %c0_479], %1914 {strides = array<i32>} : memref<5x128xf32, #tpu.memory_space<vmem>>, vector<1x128xf32>,
    %c0_480 = arith.constant 0 : index
    %c0_481 = arith.constant 0 : index
    %2049 = vector.load %arg4[%c0_480, %c0_481] : memref<5x128xf32, #tpu.memory_space<vmem>>, vector<1x128xf32>
    tpu.vector_store %arg4[%c0_480, %c0_481], %1915 {strides = array<i32>} : memref<5x128xf32, #tpu.memory_space<vmem>>, vector<1x128xf32>,
    %c1_482 = arith.constant 1 : index
    %c0_483 = arith.constant 0 : index
    %2050 = vector.load %arg3[%c1_482, %c0_483] : memref<5x128xf32, #tpu.memory_space<vmem>>, vector<1x128xf32>
    tpu.vector_store %arg3[%c1_482, %c0_483], %1947 {strides = array<i32>} : memref<5x128xf32, #tpu.memory_space<vmem>>, vector<1x128xf32>,
    %c1_484 = arith.constant 1 : index
    %c0_485 = arith.constant 0 : index
    %2051 = vector.load %arg4[%c1_484, %c0_485] : memref<5x128xf32, #tpu.memory_space<vmem>>, vector<1x128xf32>
    tpu.vector_store %arg4[%c1_484, %c0_485], %1948 {strides = array<i32>} : memref<5x128xf32, #tpu.memory_space<vmem>>, vector<1x128xf32>,
    %c2_486 = arith.constant 2 : index
    %c0_487 = arith.constant 0 : index
    %2052 = vector.load %arg3[%c2_486, %c0_487] : memref<5x128xf32, #tpu.memory_space<vmem>>, vector<1x128xf32>
    tpu.vector_store %arg3[%c2_486, %c0_487], %1980 {strides = array<i32>} : memref<5x128xf32, #tpu.memory_space<vmem>>, vector<1x128xf32>,
    %c2_488 = arith.constant 2 : index
    %c0_489 = arith.constant 0 : index
    %2053 = vector.load %arg4[%c2_488, %c0_489] : memref<5x128xf32, #tpu.memory_space<vmem>>, vector<1x128xf32>
    tpu.vector_store %arg4[%c2_488, %c0_489], %1981 {strides = array<i32>} : memref<5x128xf32, #tpu.memory_space<vmem>>, vector<1x128xf32>,
    %c3_490 = arith.constant 3 : index
    %c0_491 = arith.constant 0 : index
    %2054 = vector.load %arg3[%c3_490, %c0_491] : memref<5x128xf32, #tpu.memory_space<vmem>>, vector<1x128xf32>
    tpu.vector_store %arg3[%c3_490, %c0_491], %2013 {strides = array<i32>} : memref<5x128xf32, #tpu.memory_space<vmem>>, vector<1x128xf32>,
    %c3_492 = arith.constant 3 : index
    %c0_493 = arith.constant 0 : index
    %2055 = vector.load %arg4[%c3_492, %c0_493] : memref<5x128xf32, #tpu.memory_space<vmem>>, vector<1x128xf32>
    tpu.vector_store %arg4[%c3_492, %c0_493], %2014 {strides = array<i32>} : memref<5x128xf32, #tpu.memory_space<vmem>>, vector<1x128xf32>,
    %c4_494 = arith.constant 4 : index
    %c0_495 = arith.constant 0 : index
    %2056 = vector.load %arg3[%c4_494, %c0_495] : memref<5x128xf32, #tpu.memory_space<vmem>>, vector<1x128xf32>
    tpu.vector_store %arg3[%c4_494, %c0_495], %2046 {strides = array<i32>} : memref<5x128xf32, #tpu.memory_space<vmem>>, vector<1x128xf32>,
    %c4_496 = arith.constant 4 : index
    %c0_497 = arith.constant 0 : index
    %2057 = vector.load %arg4[%c4_496, %c0_497] : memref<5x128xf32, #tpu.memory_space<vmem>>, vector<1x128xf32>
    tpu.vector_store %arg4[%c4_496, %c0_497], %2047 {strides = array<i32>} : memref<5x128xf32, #tpu.memory_space<vmem>>, vector<1x128xf32>,
    return
  }
  func.func @transform_0(%arg0: i32) -> (i32, i32, i32) {
    %c0_i32 = arith.constant 0 : i32
    %c0_i32_0 = arith.constant 0 : i32
    %c0_i32_1 = arith.constant 0 : i32
    return %c0_i32, %c0_i32_0, %arg0 : i32, i32, i32
  }
  func.func @transform_1(%arg0: i32) -> (i32, i32) {
    %c0_i32 = arith.constant 0 : i32
    %c0_i32_0 = arith.constant 0 : i32
    %c0_i32_1 = arith.constant 0 : i32
    return %c0_i32, %c0_i32_0 : i32, i32
  }
  func.func @transform_2(%arg0: i32) -> (i32, i32) {
    %c0_i32 = arith.constant 0 : i32
    %c0_i32_0 = arith.constant 0 : i32
    return %c0_i32, %arg0 : i32, i32
  }
  func.func @transform_3(%arg0: i32) -> (i32, i32) {
    %c0_i32 = arith.constant 0 : i32
    %c0_i32_0 = arith.constant 0 : i32
    return %c0_i32, %arg0 : i32, i32
  }
}

</mosaic_0001>

<bundles_post_ra>
// kernel: squeeze.1
= control target key start
LH: loop header
LB: loop body
LE: loop exit
PB: predicated region body
PF: predicated region fallthrough
CT: control target
= control target key end

     0   :  { %s2230_s30 = smov 125   ;;  %vm111_vm0 = vcmask 23552   ;;  %s2233_s12 = smov 116   ;;  %s4492_s0 = inlined_call_operand.vmem [shape: f32[4,1,27,27], index: 0, kind: input, shape index: {}]   ;;  %s4493_s1 = inlined_call_operand.vmem [shape: f32[4,9,3,9,3], index: 1, kind: output, shape index: {}]  }
   0x1   :  { %v1737_v0 = vld [vmem:[%s4492_s0 + $0x4] sm:$0xf]  ;;  %v108_v1 = vld [vmem:[%s4492_s0] sm:$0xf]  ;;  %v1735_v2 = vld [vmem:[%s4492_s0 + $0xc] sm:$0xf] }
   0x2   :  { %107 = vst [vmem:[#allocation0 + $0x8] sm:$0xf] %v1737_v0  ;;  %v1736_v3 = vld [vmem:[%s4492_s0 + $0x8] sm:$0xf]  ;;  %v1733_v4 = vld [vmem:[%s4492_s0 + $0x14] sm:$0xf] }
   0x3   :  { %109 = vst [vmem:[#allocation0] sm:$0xf] %v108_v1  ;;  %v1734_v5 = vld [vmem:[%s4492_s0 + $0x10] sm:$0xf]  ;;  %v1731_v6 = vld [vmem:[%s4492_s0 + $0x1c] sm:$0xf] }
   0x4   :  { %99 = vst [vmem:[#allocation0 + $0x18] sm:$0xf] %v1735_v2  ;;  %v1732_v7 = vld [vmem:[%s4492_s0 + $0x18] sm:$0xf]  ;;  %v1725_v8 = vld [vmem:[%s4492_s0 + $0x34] sm:$0xf] }
   0x5   :  { %103 = vst [vmem:[#allocation0 + $0x10] sm:$0xf] %v1736_v3  ;;  %v1726_v9 = vld [vmem:[%s4492_s0 + $0x30] sm:$0xf]  ;;  %v1723_v10 = vld [vmem:[%s4492_s0 + $0x3c] sm:$0xf] }
   0x6   :  { %91 = vst [vmem:[#allocation0 + $0x28] sm:$0xf] %v1733_v4  ;;  %v1724_v11 = vld [vmem:[%s4492_s0 + $0x38] sm:$0xf]  ;;  %v1719_v13 = vld [vmem:[%s4492_s0 + $0x4c] sm:$0xf] }
   0x7   :  { %95 = vst [vmem:[#allocation0 + $0x20] sm:$0xf] %v1734_v5  ;;  %v1720_v14 = vld [vmem:[%s4492_s0 + $0x48] sm:$0xf]  ;;  %v1729_v15 = vld [vmem:[%s4492_s0 + $0x24] sm:$0xf] }
   0x8   :  { %83 = vst [vmem:[#allocation0 + $0x38] sm:$0xf] %v1731_v6  ;;  %v1730_v16 = vld [vmem:[%s4492_s0 + $0x20] sm:$0xf]  ;;  %v1717_v18 = vld [vmem:[%s4492_s0 + $0x54] sm:$0xf] }
   0x9   :  { %87 = vst [vmem:[#allocation0 + $0x30] sm:$0xf] %v1732_v7  ;;  %v1718_v19 = vld [vmem:[%s4492_s0 + $0x50] sm:$0xf]  ;;  %v1713_v21 = vld [vmem:[%s4492_s0 + $0x64] sm:$0xf] }
   0xa   :  { %v2284_v12 = vld.sshfl [vmem:[#allocation0] sm:$0xff pattern:$0xba983210]   ;;  %59 = vst [vmem:[#allocation0 + $0x68] sm:$0xf] %v1725_v8  ;;  %s2234_s4 = smov 113  }
   0xb   :  { %297 = vrot.lane.b32.xlu0 %v2284_v12, %s2230_s30  ;;  %63 = vst [vmem:[#allocation0 + $0x60] sm:$0xf] %v1726_v9  ;;  %v1714_v22 = vld [vmem:[%s4492_s0 + $0x60] sm:$0xf]  ;;  %v1727_v23 = vld [vmem:[%s4492_s0 + $0x2c] sm:$0xf] }
   0xc   :  { %51 = vst [vmem:[#allocation0 + $0x78] sm:$0xf] %v1723_v10  ;;  %v2310_v20 = vld.sshfl [vmem:[#allocation0 + $0x10] sm:$0xff pattern:$0xba983210]   ;;  %s2235_s20 = smov 110  }
   0xd   :  { %55 = vst [vmem:[#allocation0 + $0x70] sm:$0xf] %v1724_v11  ;;  %v1728_v24 = vld [vmem:[%s4492_s0 + $0x28] sm:$0xf]  ;;  %v1721_v28 = vld [vmem:[%s4492_s0 + $0x44] sm:$0xf] }
   0xe   :  { %v2300_v17 = vld.sshfl [vmem:[#allocation0 + $0x20] sm:$0xff pattern:$0xba983210]   ;;  %35 = vst [vmem:[#allocation0 + $0x98] sm:$0xf] %v1719_v13  ;;  %s2237_s2 = smov 104  }
   0xf   :  { %323 = vrot.lane.b32.xlu1 %v2300_v17, %s2230_s30  ;;  %39 = vst [vmem:[#allocation0 + $0x90] sm:$0xf] %v1720_v14  ;;  %v1712_v26 = vld [vmem:[%s4492_s0 + $0x68] sm:$0xf]  ;;  %v1722_v29 = vld [vmem:[%s4492_s0 + $0x40] sm:$0xf] }
  0x10   :  { %75 = vst [vmem:[#allocation0 + $0x48] sm:$0xf] %v1729_v15  ;;  %v2326_v25 = vld.sshfl [vmem:[#allocation0 + $0x30] sm:$0xff pattern:$0xba983210]  }
  0x11   :  { %79 = vst [vmem:[#allocation0 + $0x40] sm:$0xf] %v1730_v16  ;;  %v1715_v31 = vld [vmem:[%s4492_s0 + $0x5c] sm:$0xf]  ;;  %v1716_v32 = vld [vmem:[%s4492_s0 + $0x58] sm:$0xf] }
  0x12   :  { %27 = vst [vmem:[#allocation0 + $0xa8] sm:$0xf] %v1717_v18  ;;  %v2331_v27 = vld.sshfl [vmem:[#allocation0 + $0x60] sm:$0xff pattern:$0xba983210]   ;;  %s2231_s0 = smov 122  }
  0x13   :  { %310 = vrot.lane.b32.xlu0 %v2310_v20, %s2230_s30  ;;  %31 = vst [vmem:[#allocation0 + $0xa0] sm:$0xf] %v1718_v19 }
  0x14   :  { %11 = vst [vmem:[#allocation0 + $0xc8] sm:$0xf] %v1713_v21  ;;  %v2353_v33 = vld.sshfl [vmem:[#allocation0 + $0x70] sm:$0xff pattern:$0xba983210]  }
  0x15   :  { %15 = vst [vmem:[#allocation0 + $0xc0] sm:$0xf] %v1714_v22 }
  0x16   :  { %67 = vst [vmem:[#allocation0 + $0x58] sm:$0xf] %v1727_v23  ;;  %v2359_v35 = vld.sshfl [vmem:[#allocation0 + $0x90] sm:$0xff pattern:$0xba983210]  }
  0x17   :  { %336 = vrot.lane.b32.xlu1 %v2326_v25, %s2230_s30  ;;  %71 = vst [vmem:[#allocation0 + $0x50] sm:$0xf] %v1728_v24 }
  0x18   :  { %v2341_v30 = vld.sshfl [vmem:[#allocation0 + $0x40] sm:$0xff pattern:$0xba983210]   ;;  %7 = vst [vmem:[#allocation0 + $0xd0] sm:$0xf] %v1712_v26 }
  0x19   :  { %349 = vrot.lane.b32.xlu2 %v2341_v30, %s2230_s30  ;;  %43 = vst [vmem:[#allocation0 + $0x88] sm:$0xf] %v1721_v28 }
  0x1a   :  { %47 = vst [vmem:[#allocation0 + $0x80] sm:$0xf] %v1722_v29  ;;  %v2365_v36 = vld.sshfl [vmem:[#allocation0 + $0xa0] sm:$0xff pattern:$0xba983210]  }
  0x1b   :  { %375 = vrot.lane.b32.xlu0 %v2331_v27, %s2230_s30  ;;  %19 = vst [vmem:[#allocation0 + $0xb8] sm:$0xf] %v1715_v31 }
  0x1c   :  { %23 = vst [vmem:[#allocation0 + $0xb0] sm:$0xf] %v1716_v32  ;;  %v2371_v38 = vld.sshfl [vmem:[#allocation0 + $0xc0] sm:$0xff pattern:$0xba983210]  }
  0x1e   :  { %v2355_v34 = vld.sshfl [vmem:[#allocation0 + $0x50] sm:$0xff pattern:$0xba983210]  }
  0x1f   :  { %388 = vrot.lane.b32.xlu1 %v2353_v33, %s2230_s30  ;;  %v465_v39 = vld [vmem:[#allocation0 + $0xd0] sm:$0xf]  }
  0x20   :  { %v642_v41 = vld [vmem:[#allocation0 + $0xd0] sm:$0xf]  }
  0x21   :  { %362 = vrot.lane.b32.xlu2 %v2355_v34, %s2230_s30  ;;  %v2367_v37 = vld.sshfl [vmem:[#allocation0 + $0x80] sm:$0xff pattern:$0xba983210]   ;;  %v819_v45 = vld [vmem:[#allocation0 + $0xd0] sm:$0xf]  }
  0x22   :  { %v996_v57 = vld [vmem:[#allocation0 + $0xd0] sm:$0xf]  }
  0x23   :  { %414 = vrot.lane.b32.xlu0 %v2359_v35, %s2230_s30  ;;  %v2377_v40 = vld.sshfl [vmem:[#allocation0 + $0xb0] sm:$0xff pattern:$0xba983210]  }
  0x24   :  { %v1173_v6 = vld [vmem:[#allocation0 + $0xd0] sm:$0xf]  }
  0x27   :  { %427 = vrot.lane.b32.xlu1 %v2365_v36, %s2230_s30 }
  0x29   :  { %401 = vrot.lane.b32.xlu2 %v2367_v37, %s2230_s30 }
  0x2b   :  { %453 = vrot.lane.b32.xlu0 %v2371_v38, %s2230_s30 }
  0x2f   :  { %466 = vrot.lane.b32.xlu1 %v465_v39, %s2230_s30  ;;  %v1527_v39 = vld [vmem:[#allocation0 + $0xd0] sm:$0xf]  }
  0x31   :  { %440 = vrot.lane.b32.xlu2 %v2377_v40, %s2230_s30  ;;  %s2232_s30 = smov 119  }
  0x33   :  { %487 = vrot.lane.b32.xlu0 %v2310_v20, %s2231_s0 }
  0x37   :  { %500 = vrot.lane.b32.xlu1 %v2300_v17, %s2231_s0 }
  0x39   :  { %474 = vrot.lane.b32.xlu2 %v2284_v12, %s2231_s0 }
  0x3b   :  { %526 = vrot.lane.b32.xlu0 %v2341_v30, %s2231_s0 }
  0x3f   :  { %539 = vrot.lane.b32.xlu1 %v2355_v34, %s2231_s0 }
  0x41   :  { %513 = vrot.lane.b32.xlu2 %v2326_v25, %s2231_s0 }
  0x43   :  { %565 = vrot.lane.b32.xlu0 %v2353_v33, %s2231_s0 }
  0x47   :  { %578 = vrot.lane.b32.xlu1 %v2367_v37, %s2231_s0 }
  0x49   :  { %552 = vrot.lane.b32.xlu2 %v2331_v27, %s2231_s0 }
  0x4b   :  { %604 = vrot.lane.b32.xlu0 %v2365_v36, %s2231_s0 }
  0x4f   :  { %617 = vrot.lane.b32.xlu1 %v2377_v40, %s2231_s0 }
  0x51   :  { %591 = vrot.lane.b32.xlu2 %v2359_v35, %s2231_s0 }
  0x53   :  { %643 = vrot.lane.b32.xlu0 %v642_v41, %s2231_s0 }
  0x57   :  { %651 = vrot.lane.b32.xlu1 %v2284_v12, %s2232_s30 }
  0x59   :  { %630 = vrot.lane.b32.xlu2 %v2371_v38, %s2231_s0 }
  0x5b   :  { %677 = vrot.lane.b32.xlu0 %v2300_v17, %s2232_s30 }
  0x5f   :  { %690 = vrot.lane.b32.xlu1 %v2326_v25, %s2232_s30 }
  0x61   :  { %664 = vrot.lane.b32.xlu2 %v2310_v20, %s2232_s30 }
  0x63   :  { %716 = vrot.lane.b32.xlu0 %v2355_v34, %s2232_s30 }
  0x67   :  { %729 = vrot.lane.b32.xlu1 %v2331_v27, %s2232_s30 }
  0x69   :  { %703 = vrot.lane.b32.xlu2 %v2341_v30, %s2232_s30 }
  0x6b   :  { %755 = vrot.lane.b32.xlu0 %v2367_v37, %s2232_s30 }
  0x6f   :  { %768 = vrot.lane.b32.xlu1 %v2359_v35, %s2232_s30 }
  0x71   :  { %742 = vrot.lane.b32.xlu2 %v2353_v33, %s2232_s30 }
  0x73   :  { %794 = vrot.lane.b32.xlu0 %v2377_v40, %s2232_s30  ;;  %v350_v42 = vpop.permute.xlu2 %349  }
  0x74   :  { %1806 = vst.msk [vmem:[%s4493_s1 + $0x201] ss:$16 sm:$0x3] %vm111_vm0, %v350_v42  }
  0x75   :  { %1807 = vst.msk [vmem:[%s4493_s1 + $0x201] ss:$16 sm:$0xc] %vm111_vm0, %v350_v42  }
  0x76   :  { %1808 = vst.msk [vmem:[%s4493_s1 + $0x201] ss:$16 sm:$0x30] %vm111_vm0, %v350_v42  }
  0x77   :  { %807 = vrot.lane.b32.xlu1 %v2371_v38, %s2232_s30  ;;  %1809 = vst.msk [vmem:[%s4493_s1 + $0x201] ss:$16 sm:$0xc0] %vm111_vm0, %v350_v42  }
  0x79   :  { %781 = vrot.lane.b32.xlu2 %v2365_v36, %s2232_s30 }
  0x7b   :  { %828 = vrot.lane.b32.xlu0 %v2284_v12, %s2233_s12  ;;  %v363_v43 = vpop.permute.xlu2 %362  }
  0x7c   :  { %1810 = vst.msk [vmem:[%s4493_s1 + $0x281] ss:$16 sm:$0x3] %vm111_vm0, %v363_v43  }
  0x7d   :  { %v298_v44 = vpop.permute.xlu0 %297   ;;  %1811 = vst.msk [vmem:[%s4493_s1 + $0x281] ss:$16 sm:$0xc] %vm111_vm0, %v363_v43  }
  0x7e   :  { %1790 = vst.msk [vmem:[%s4493_s1 + $0x1] ss:$16 sm:$0x3] %vm111_vm0, %v298_v44  }
  0x7f   :  { %1791 = vst.msk [vmem:[%s4493_s1 + $0x1] ss:$16 sm:$0xc] %vm111_vm0, %v298_v44   ;;  %841 = vrot.lane.b32.xlu1 %v2310_v20, %s2233_s12 }
  0x80   :  { %1792 = vst.msk [vmem:[%s4493_s1 + $0x1] ss:$16 sm:$0x30] %vm111_vm0, %v298_v44  }
  0x81   :  { %1793 = vst.msk [vmem:[%s4493_s1 + $0x1] ss:$16 sm:$0xc0] %vm111_vm0, %v298_v44   ;;  %v324_v46 = vpop.permute.xlu1 %323   ;;  %820 = vrot.lane.b32.xlu2 %v819_v45, %s2232_s30  ;;  %s2236_s30 = smov 107  }
  0x82   :  { %1798 = vst.msk [vmem:[%s4493_s1 + $0x101] ss:$16 sm:$0x3] %vm111_vm0, %v324_v46  }
  0x83   :  { %867 = vrot.lane.b32.xlu0 %v2326_v25, %s2233_s12  ;;  %1799 = vst.msk [vmem:[%s4493_s1 + $0x101] ss:$16 sm:$0xc] %vm111_vm0, %v324_v46   ;;  %v402_v47 = vpop.permute.xlu2 %401  }
  0x84   :  { %1800 = vst.msk [vmem:[%s4493_s1 + $0x101] ss:$16 sm:$0x30] %vm111_vm0, %v324_v46  }
  0x85   :  { %v311_v48 = vpop.permute.xlu0 %310   ;;  %1801 = vst.msk [vmem:[%s4493_s1 + $0x101] ss:$16 sm:$0xc0] %vm111_vm0, %v324_v46  }
  0x86   :  { %1794 = vst.msk [vmem:[%s4493_s1 + $0x81] ss:$16 sm:$0x3] %vm111_vm0, %v311_v48  }
  0x87   :  { %1795 = vst.msk [vmem:[%s4493_s1 + $0x81] ss:$16 sm:$0xc] %vm111_vm0, %v311_v48   ;;  %880 = vrot.lane.b32.xlu1 %v2341_v30, %s2233_s12 }
  0x88   :  { %1796 = vst.msk [vmem:[%s4493_s1 + $0x81] ss:$16 sm:$0x30] %vm111_vm0, %v311_v48  }
  0x89   :  { %1797 = vst.msk [vmem:[%s4493_s1 + $0x81] ss:$16 sm:$0xc0] %vm111_vm0, %v311_v48   ;;  %v337_v49 = vpop.permute.xlu1 %336   ;;  %854 = vrot.lane.b32.xlu2 %v2300_v17, %s2233_s12 }
  0x8a   :  { %1802 = vst.msk [vmem:[%s4493_s1 + $0x181] ss:$16 sm:$0x3] %vm111_vm0, %v337_v49  }
  0x8b   :  { %906 = vrot.lane.b32.xlu0 %v2331_v27, %s2233_s12  ;;  %1803 = vst.msk [vmem:[%s4493_s1 + $0x181] ss:$16 sm:$0xc] %vm111_vm0, %v337_v49   ;;  %v441_v50 = vpop.permute.xlu2 %440  }
  0x8c   :  { %1804 = vst.msk [vmem:[%s4493_s1 + $0x181] ss:$16 sm:$0x30] %vm111_vm0, %v337_v49  }
  0x8d   :  { %1805 = vst.msk [vmem:[%s4493_s1 + $0x181] ss:$16 sm:$0xc0] %vm111_vm0, %v337_v49   ;;  %v376_v51 = vpop.permute.xlu0 %375   ;;  %v1535_v49 = vld.sshfl [vmem:[#allocation0] sm:$0xff pattern:$0xba983210]  }
  0x8e   :  { %1812 = vst.msk [vmem:[%s4493_s1 + $0x281] ss:$16 sm:$0x30] %vm111_vm0, %v363_v43  }
  0x8f   :  { %1813 = vst.msk [vmem:[%s4493_s1 + $0x281] ss:$16 sm:$0xc0] %vm111_vm0, %v363_v43   ;;  %919 = vrot.lane.b32.xlu1 %v2353_v33, %s2233_s12 }
  0x90   :  { %1814 = vst.msk [vmem:[%s4493_s1 + $0x301] ss:$16 sm:$0x3] %vm111_vm0, %v376_v51  }
  0x91   :  { %1815 = vst.msk [vmem:[%s4493_s1 + $0x301] ss:$16 sm:$0xc] %vm111_vm0, %v376_v51   ;;  %v389_v52 = vpop.permute.xlu1 %388   ;;  %893 = vrot.lane.b32.xlu2 %v2355_v34, %s2233_s12 }
  0x92   :  { %1816 = vst.msk [vmem:[%s4493_s1 + $0x301] ss:$16 sm:$0x30] %vm111_vm0, %v376_v51  }
  0x93   :  { %1817 = vst.msk [vmem:[%s4493_s1 + $0x301] ss:$16 sm:$0xc0] %vm111_vm0, %v376_v51   ;;  %945 = vrot.lane.b32.xlu0 %v2359_v35, %s2233_s12  ;;  %v475_v53 = vpop.permute.xlu2 %474   ;;  %v1665_v51 = vld.sshfl [vmem:[#allocation0 + $0xa0] sm:$0xff pattern:$0xba983210]  }
  0x94   :  { %1818 = vst.msk [vmem:[%s4493_s1 + $0x381] ss:$16 sm:$0x3] %vm111_vm0, %v389_v52  }
  0x95   :  { %1819 = vst.msk [vmem:[%s4493_s1 + $0x381] ss:$16 sm:$0xc] %vm111_vm0, %v389_v52   ;;  %v415_v54 = vpop.permute.xlu0 %414  }
  0x96   :  { %1820 = vst.msk [vmem:[%s4493_s1 + $0x381] ss:$16 sm:$0x30] %vm111_vm0, %v389_v52  }
  0x97   :  { %1821 = vst.msk [vmem:[%s4493_s1 + $0x381] ss:$16 sm:$0xc0] %vm111_vm0, %v389_v52   ;;  %958 = vrot.lane.b32.xlu1 %v2365_v36, %s2233_s12 }
  0x98   :  { %1822 = vst.msk [vmem:[%s4493_s1 + $0x401] ss:$16 sm:$0x3] %vm111_vm0, %v402_v47  }
  0x99   :  { %1823 = vst.msk [vmem:[%s4493_s1 + $0x401] ss:$16 sm:$0xc] %vm111_vm0, %v402_v47   ;;  %v428_v55 = vpop.permute.xlu1 %427   ;;  %932 = vrot.lane.b32.xlu2 %v2367_v37, %s2233_s12 }
  0x9a   :  { %1824 = vst.msk [vmem:[%s4493_s1 + $0x401] ss:$16 sm:$0x30] %vm111_vm0, %v402_v47  }
  0x9b   :  { %1825 = vst.msk [vmem:[%s4493_s1 + $0x401] ss:$16 sm:$0xc0] %vm111_vm0, %v402_v47   ;;  %984 = vrot.lane.b32.xlu0 %v2371_v38, %s2233_s12  ;;  %v514_v56 = vpop.permute.xlu2 %513  }
  0x9c   :  { %1826 = vst.msk [vmem:[%s4493_s1 + $0x481] ss:$16 sm:$0x3] %vm111_vm0, %v415_v54  }
  0x9d   :  { %1827 = vst.msk [vmem:[%s4493_s1 + $0x481] ss:$16 sm:$0xc] %vm111_vm0, %v415_v54   ;;  %v454_v58 = vpop.permute.xlu0 %453  }
  0x9e   :  { %1828 = vst.msk [vmem:[%s4493_s1 + $0x481] ss:$16 sm:$0x30] %vm111_vm0, %v415_v54  }
  0x9f   :  { %1829 = vst.msk [vmem:[%s4493_s1 + $0x481] ss:$16 sm:$0xc0] %vm111_vm0, %v415_v54   ;;  %997 = vrot.lane.b32.xlu1 %v996_v57, %s2233_s12  ;;  %v1574_v54 = vld.sshfl [vmem:[#allocation0 + $0x30] sm:$0xff pattern:$0xba983210]  }
  0xa0   :  { %1830 = vst.msk [vmem:[%s4493_s1 + $0x501] ss:$16 sm:$0x3] %vm111_vm0, %v428_v55   ;;  %v1678_v57 = vld.sshfl [vmem:[#allocation0 + $0xb0] sm:$0xff pattern:$0xba983210]  }
  0xa1   :  { %1831 = vst.msk [vmem:[%s4493_s1 + $0x501] ss:$16 sm:$0xc] %vm111_vm0, %v428_v55   ;;  %v467_v59 = vpop.permute.xlu1 %466   ;;  %971 = vrot.lane.b32.xlu2 %v2377_v40, %s2233_s12 }
  0xa2   :  { %1832 = vst.msk [vmem:[%s4493_s1 + $0x501] ss:$16 sm:$0x30] %vm111_vm0, %v428_v55  }
  0xa3   :  { %1833 = vst.msk [vmem:[%s4493_s1 + $0x501] ss:$16 sm:$0xc0] %vm111_vm0, %v428_v55   ;;  %1018 = vrot.lane.b32.xlu0 %v2310_v20, %s2234_s4  ;;  %v553_v60 = vpop.permute.xlu2 %552  }
  0xa4   :  { %1834 = vst.msk [vmem:[%s4493_s1 + $0x581] ss:$16 sm:$0x3] %vm111_vm0, %v441_v50  }
  0xa5   :  { %1835 = vst.msk [vmem:[%s4493_s1 + $0x581] ss:$16 sm:$0xc] %vm111_vm0, %v441_v50   ;;  %v488_v61 = vpop.permute.xlu0 %487  }
  0xa6   :  { %1836 = vst.msk [vmem:[%s4493_s1 + $0x581] ss:$16 sm:$0x30] %vm111_vm0, %v441_v50  }
  0xa7   :  { %1837 = vst.msk [vmem:[%s4493_s1 + $0x581] ss:$16 sm:$0xc0] %vm111_vm0, %v441_v50   ;;  %1031 = vrot.lane.b32.xlu1 %v2300_v17, %s2234_s4 }
  0xa8   :  { %1838 = vst.msk [vmem:[%s4493_s1 + $0x601] ss:$16 sm:$0x3] %vm111_vm0, %v454_v58  }
  0xa9   :  { %1839 = vst.msk [vmem:[%s4493_s1 + $0x601] ss:$16 sm:$0xc] %vm111_vm0, %v454_v58   ;;  %v501_v62 = vpop.permute.xlu1 %500   ;;  %1005 = vrot.lane.b32.xlu2 %v2284_v12, %s2234_s4 }
  0xaa   :  { %1840 = vst.msk [vmem:[%s4493_s1 + $0x601] ss:$16 sm:$0x30] %vm111_vm0, %v454_v58  }
  0xab   :  { %1841 = vst.msk [vmem:[%s4493_s1 + $0x601] ss:$16 sm:$0xc0] %vm111_vm0, %v454_v58   ;;  %1057 = vrot.lane.b32.xlu0 %v2341_v30, %s2234_s4  ;;  %v592_v0 = vpop.permute.xlu2 %591  }
  0xac   :  { %1844 = vst.msk [vmem:[%s4493_s1 + $0x2] ss:$16 sm:$0x3] %vm111_vm0, %v475_v53  }
  0xad   :  { %1845 = vst.msk [vmem:[%s4493_s1 + $0x2] ss:$16 sm:$0xc] %vm111_vm0, %v475_v53   ;;  %v527_v63 = vpop.permute.xlu0 %526  }
  0xae   :  { %1846 = vst.msk [vmem:[%s4493_s1 + $0x2] ss:$16 sm:$0x30] %vm111_vm0, %v475_v53  }
  0xaf   :  { %1847 = vst.msk [vmem:[%s4493_s1 + $0x2] ss:$16 sm:$0xc0] %vm111_vm0, %v475_v53   ;;  %1070 = vrot.lane.b32.xlu1 %v2355_v34, %s2234_s4 }
  0xb0   :  { %1848 = vst.msk [vmem:[%s4493_s1 + $0x82] ss:$16 sm:$0x3] %vm111_vm0, %v488_v61  }
  0xb1   :  { %1849 = vst.msk [vmem:[%s4493_s1 + $0x82] ss:$16 sm:$0xc] %vm111_vm0, %v488_v61   ;;  %v540_v1 = vpop.permute.xlu1 %539   ;;  %1044 = vrot.lane.b32.xlu2 %v2326_v25, %s2234_s4 }
  0xb2   :  { %1850 = vst.msk [vmem:[%s4493_s1 + $0x82] ss:$16 sm:$0x30] %vm111_vm0, %v488_v61  }
  0xb3   :  { %1851 = vst.msk [vmem:[%s4493_s1 + $0x82] ss:$16 sm:$0xc0] %vm111_vm0, %v488_v61   ;;  %1096 = vrot.lane.b32.xlu0 %v2353_v33, %s2234_s4  ;;  %v631_v4 = vpop.permute.xlu2 %630  }
  0xb4   :  { %1842 = vst.msk [vmem:[%s4493_s1 + $0x681] ss:$16 sm:$0x3] %vm111_vm0, %v467_v59  }
  0xb5   :  { %1843 = vst.msk [vmem:[%s4493_s1 + $0x681] ss:$16 sm:$0xc] %vm111_vm0, %v467_v59   ;;  %v566_v2 = vpop.permute.xlu0 %565  }
  0xb6   :  { %1856 = vst.msk [vmem:[%s4493_s1 + $0x182] ss:$16 sm:$0x3] %vm111_vm0, %v514_v56  }
  0xb7   :  { %1857 = vst.msk [vmem:[%s4493_s1 + $0x182] ss:$16 sm:$0xc] %vm111_vm0, %v514_v56   ;;  %1109 = vrot.lane.b32.xlu1 %v2367_v37, %s2234_s4 }
  0xb8   :  { %1858 = vst.msk [vmem:[%s4493_s1 + $0x182] ss:$16 sm:$0x30] %vm111_vm0, %v514_v56  }
  0xb9   :  { %1859 = vst.msk [vmem:[%s4493_s1 + $0x182] ss:$16 sm:$0xc0] %vm111_vm0, %v514_v56   ;;  %v579_v3 = vpop.permute.xlu1 %578   ;;  %1083 = vrot.lane.b32.xlu2 %v2331_v27, %s2234_s4  ;;  %v1704_v56 = vld [vmem:[#allocation0 + $0xd0] sm:$0xf]  }
  0xba   :  { %1860 = vst.msk [vmem:[%s4493_s1 + $0x202] ss:$16 sm:$0x3] %vm111_vm0, %v527_v63  }
  0xbb   :  { %1861 = vst.msk [vmem:[%s4493_s1 + $0x202] ss:$16 sm:$0xc] %vm111_vm0, %v527_v63   ;;  %1135 = vrot.lane.b32.xlu0 %v2365_v36, %s2234_s4  ;;  %v665_v8 = vpop.permute.xlu2 %664  }
  0xbc   :  { %1862 = vst.msk [vmem:[%s4493_s1 + $0x202] ss:$16 sm:$0x30] %vm111_vm0, %v527_v63  }
  0xbd   :  { %1863 = vst.msk [vmem:[%s4493_s1 + $0x202] ss:$16 sm:$0xc0] %vm111_vm0, %v527_v63   ;;  %v605_v5 = vpop.permute.xlu0 %604  }
  0xbe   :  { %1852 = vst.msk [vmem:[%s4493_s1 + $0x102] ss:$16 sm:$0x3] %vm111_vm0, %v501_v62  }
  0xbf   :  { %1853 = vst.msk [vmem:[%s4493_s1 + $0x102] ss:$16 sm:$0xc] %vm111_vm0, %v501_v62   ;;  %1148 = vrot.lane.b32.xlu1 %v2377_v40, %s2234_s4 }
  0xc0   :  { %1854 = vst.msk [vmem:[%s4493_s1 + $0x102] ss:$16 sm:$0x30] %vm111_vm0, %v501_v62  }
  0xc1   :  { %1855 = vst.msk [vmem:[%s4493_s1 + $0x102] ss:$16 sm:$0xc0] %vm111_vm0, %v501_v62   ;;  %v618_v7 = vpop.permute.xlu1 %617   ;;  %1122 = vrot.lane.b32.xlu2 %v2359_v35, %s2234_s4 }
  0xc2   :  { %1868 = vst.msk [vmem:[%s4493_s1 + $0x302] ss:$16 sm:$0x3] %vm111_vm0, %v553_v60  }
  0xc3   :  { %1869 = vst.msk [vmem:[%s4493_s1 + $0x302] ss:$16 sm:$0xc] %vm111_vm0, %v553_v60   ;;  %1174 = vrot.lane.b32.xlu0 %v1173_v6, %s2234_s4  ;;  %v704_v13 = vpop.permute.xlu2 %703  }
  0xc4   :  { %1870 = vst.msk [vmem:[%s4493_s1 + $0x302] ss:$16 sm:$0x30] %vm111_vm0, %v553_v60  }
  0xc5   :  { %1871 = vst.msk [vmem:[%s4493_s1 + $0x302] ss:$16 sm:$0xc0] %vm111_vm0, %v553_v60   ;;  %v644_v9 = vpop.permute.xlu0 %643   ;;  %v1613_v60 = vld.sshfl [vmem:[#allocation0 + $0x60] sm:$0xff pattern:$0xba983210]  }
  0xc6   :  { %1872 = vst.msk [vmem:[%s4493_s1 + $0x382] ss:$16 sm:$0x3] %vm111_vm0, %v566_v2  }
  0xc7   :  { %1873 = vst.msk [vmem:[%s4493_s1 + $0x382] ss:$16 sm:$0xc] %vm111_vm0, %v566_v2   ;;  %1182 = vrot.lane.b32.xlu1 %v2284_v12, %s2235_s20 }
  0xc8   :  { %1874 = vst.msk [vmem:[%s4493_s1 + $0x382] ss:$16 sm:$0x30] %vm111_vm0, %v566_v2  }
  0xc9   :  { %1875 = vst.msk [vmem:[%s4493_s1 + $0x382] ss:$16 sm:$0xc0] %vm111_vm0, %v566_v2   ;;  %1161 = vrot.lane.b32.xlu2 %v2371_v38, %s2234_s4  ;;  %v652_v10 = vpop.permute.xlu1 %651  }
  0xca   :  { %1864 = vst.msk [vmem:[%s4493_s1 + $0x282] ss:$16 sm:$0x3] %vm111_vm0, %v540_v1  }
  0xcb   :  { %1865 = vst.msk [vmem:[%s4493_s1 + $0x282] ss:$16 sm:$0xc] %vm111_vm0, %v540_v1   ;;  %1208 = vrot.lane.b32.xlu0 %v2300_v17, %s2235_s20  ;;  %v743_v16 = vpop.permute.xlu2 %742  }
  0xcc   :  { %1866 = vst.msk [vmem:[%s4493_s1 + $0x282] ss:$16 sm:$0x30] %vm111_vm0, %v540_v1  }
  0xcd   :  { %1867 = vst.msk [vmem:[%s4493_s1 + $0x282] ss:$16 sm:$0xc0] %vm111_vm0, %v540_v1   ;;  %v678_v11 = vpop.permute.xlu0 %677  }
  0xce   :  { %1880 = vst.msk [vmem:[%s4493_s1 + $0x482] ss:$16 sm:$0x3] %vm111_vm0, %v592_v0  }
  0xcf   :  { %1881 = vst.msk [vmem:[%s4493_s1 + $0x482] ss:$16 sm:$0xc] %vm111_vm0, %v592_v0   ;;  %1221 = vrot.lane.b32.xlu1 %v2326_v25, %s2235_s20 }
  0xd0   :  { %1882 = vst.msk [vmem:[%s4493_s1 + $0x482] ss:$16 sm:$0x30] %vm111_vm0, %v592_v0  }
  0xd1   :  { %1883 = vst.msk [vmem:[%s4493_s1 + $0x482] ss:$16 sm:$0xc0] %vm111_vm0, %v592_v0   ;;  %1195 = vrot.lane.b32.xlu2 %v2310_v20, %s2235_s20  ;;  %v691_v15 = vpop.permute.xlu1 %690   ;;  %v1652_v0 = vld.sshfl [vmem:[#allocation0 + $0x90] sm:$0xff pattern:$0xba983210]  }
  0xd2   :  { %1884 = vst.msk [vmem:[%s4493_s1 + $0x502] ss:$16 sm:$0x3] %vm111_vm0, %v605_v5  }
  0xd3   :  { %1885 = vst.msk [vmem:[%s4493_s1 + $0x502] ss:$16 sm:$0xc] %vm111_vm0, %v605_v5   ;;  %1247 = vrot.lane.b32.xlu0 %v2355_v34, %s2235_s20  ;;  %v782_v21 = vpop.permute.xlu2 %781  }
  0xd4   :  { %1886 = vst.msk [vmem:[%s4493_s1 + $0x502] ss:$16 sm:$0x30] %vm111_vm0, %v605_v5  }
  0xd5   :  { %1887 = vst.msk [vmem:[%s4493_s1 + $0x502] ss:$16 sm:$0xc0] %vm111_vm0, %v605_v5   ;;  %v717_v14 = vpop.permute.xlu0 %716  }
  0xd6   :  { %1876 = vst.msk [vmem:[%s4493_s1 + $0x402] ss:$16 sm:$0x3] %vm111_vm0, %v579_v3  }
  0xd7   :  { %1877 = vst.msk [vmem:[%s4493_s1 + $0x402] ss:$16 sm:$0xc] %vm111_vm0, %v579_v3   ;;  %1260 = vrot.lane.b32.xlu1 %v2331_v27, %s2235_s20 }
  0xd8   :  { %1878 = vst.msk [vmem:[%s4493_s1 + $0x402] ss:$16 sm:$0x30] %vm111_vm0, %v579_v3  }
  0xd9   :  { %1879 = vst.msk [vmem:[%s4493_s1 + $0x402] ss:$16 sm:$0xc0] %vm111_vm0, %v579_v3   ;;  %1234 = vrot.lane.b32.xlu2 %v2341_v30, %s2235_s20  ;;  %v730_v19 = vpop.permute.xlu1 %729  }
  0xda   :  { %1892 = vst.msk [vmem:[%s4493_s1 + $0x602] ss:$16 sm:$0x3] %vm111_vm0, %v631_v4  }
  0xdb   :  { %1893 = vst.msk [vmem:[%s4493_s1 + $0x602] ss:$16 sm:$0xc] %vm111_vm0, %v631_v4   ;;  %1286 = vrot.lane.b32.xlu0 %v2367_v37, %s2235_s20  ;;  %v821_v23 = vpop.permute.xlu2 %820  }
  0xdc   :  { %1894 = vst.msk [vmem:[%s4493_s1 + $0x602] ss:$16 sm:$0x30] %vm111_vm0, %v631_v4  }
  0xdd   :  { %1895 = vst.msk [vmem:[%s4493_s1 + $0x602] ss:$16 sm:$0xc0] %vm111_vm0, %v631_v4   ;;  %v756_v18 = vpop.permute.xlu0 %755   ;;  %v1691_v4 = vld.sshfl [vmem:[#allocation0 + $0xc0] sm:$0xff pattern:$0xba983210]  }
  0xde   :  { %1896 = vst.msk [vmem:[%s4493_s1 + $0x682] ss:$16 sm:$0x3] %vm111_vm0, %v644_v9  }
  0xdf   :  { %1897 = vst.msk [vmem:[%s4493_s1 + $0x682] ss:$16 sm:$0xc] %vm111_vm0, %v644_v9   ;;  %1299 = vrot.lane.b32.xlu1 %v2359_v35, %s2235_s20 }
  0xe0   :  { %1888 = vst.msk [vmem:[%s4493_s1 + $0x582] ss:$16 sm:$0x3] %vm111_vm0, %v618_v7  }
  0xe1   :  { %1889 = vst.msk [vmem:[%s4493_s1 + $0x582] ss:$16 sm:$0xc] %vm111_vm0, %v618_v7   ;;  %1273 = vrot.lane.b32.xlu2 %v2353_v33, %s2235_s20 }
  0xe2   :  { %1890 = vst.msk [vmem:[%s4493_s1 + $0x582] ss:$16 sm:$0x30] %vm111_vm0, %v618_v7  }
  0xe3   :  { %1891 = vst.msk [vmem:[%s4493_s1 + $0x582] ss:$16 sm:$0xc0] %vm111_vm0, %v618_v7   ;;  %1325 = vrot.lane.b32.xlu0 %v2377_v40, %s2235_s20  ;;  %v855_v26 = vpop.permute.xlu2 %854  }
  0xe4   :  { %1902 = vst.msk [vmem:[%s4493_s1 + $0x83] ss:$16 sm:$0x3] %vm111_vm0, %v665_v8  }
  0xe5   :  { %1903 = vst.msk [vmem:[%s4493_s1 + $0x83] ss:$16 sm:$0xc] %vm111_vm0, %v665_v8   ;;  %v795_v22 = vpop.permute.xlu0 %794  }
  0xe6   :  { %1904 = vst.msk [vmem:[%s4493_s1 + $0x83] ss:$16 sm:$0x30] %vm111_vm0, %v665_v8  }
  0xe7   :  { %1905 = vst.msk [vmem:[%s4493_s1 + $0x83] ss:$16 sm:$0xc0] %vm111_vm0, %v665_v8   ;;  %1338 = vrot.lane.b32.xlu1 %v2371_v38, %s2235_s20 }
  0xe8   :  { %1906 = vst.msk [vmem:[%s4493_s1 + $0x103] ss:$16 sm:$0x3] %vm111_vm0, %v678_v11  }
  0xe9   :  { %1907 = vst.msk [vmem:[%s4493_s1 + $0x103] ss:$16 sm:$0xc] %vm111_vm0, %v678_v11   ;;  %1312 = vrot.lane.b32.xlu2 %v2365_v36, %s2235_s20 }
  0xea   :  { %1908 = vst.msk [vmem:[%s4493_s1 + $0x103] ss:$16 sm:$0x30] %vm111_vm0, %v678_v11  }
  0xeb   :  { %1909 = vst.msk [vmem:[%s4493_s1 + $0x103] ss:$16 sm:$0xc0] %vm111_vm0, %v678_v11   ;;  %1359 = vrot.lane.b32.xlu0 %v2284_v12, %s2236_s30  ;;  %v769_v12 = vpop.permute.xlu1 %768   ;;  %v894_v29 = vpop.permute.xlu2 %893  }
  0xec   :  { %1898 = vst.msk [vmem:[%s4493_s1 + $0x3] ss:$16 sm:$0x3] %vm111_vm0, %v652_v10  }
  0xed   :  { %1899 = vst.msk [vmem:[%s4493_s1 + $0x3] ss:$16 sm:$0xc] %vm111_vm0, %v652_v10   ;;  %v829_v24 = vpop.permute.xlu0 %828  }
  0xee   :  { %1900 = vst.msk [vmem:[%s4493_s1 + $0x3] ss:$16 sm:$0x30] %vm111_vm0, %v652_v10  }
  0xef   :  { %1901 = vst.msk [vmem:[%s4493_s1 + $0x3] ss:$16 sm:$0xc0] %vm111_vm0, %v652_v10   ;;  %1372 = vrot.lane.b32.xlu1 %v2310_v20, %s2236_s30 }
  0xf0   :  { %1914 = vst.msk [vmem:[%s4493_s1 + $0x203] ss:$16 sm:$0x3] %vm111_vm0, %v704_v13  }
  0xf1   :  { %1915 = vst.msk [vmem:[%s4493_s1 + $0x203] ss:$16 sm:$0xc] %vm111_vm0, %v704_v13  }
  0xf2   :  { %1916 = vst.msk [vmem:[%s4493_s1 + $0x203] ss:$16 sm:$0x30] %vm111_vm0, %v704_v13  }
  0xf3   :  { %1917 = vst.msk [vmem:[%s4493_s1 + $0x203] ss:$16 sm:$0xc0] %vm111_vm0, %v704_v13   ;;  %1398 = vrot.lane.b32.xlu0 %v2326_v25, %s2236_s30  ;;  %v808_v25 = vpop.permute.xlu1 %807  }
  0xf4   :  { %1918 = vst.msk [vmem:[%s4493_s1 + $0x283] ss:$16 sm:$0x3] %vm111_vm0, %v717_v14  }
  0xf5   :  { %1919 = vst.msk [vmem:[%s4493_s1 + $0x283] ss:$16 sm:$0xc] %vm111_vm0, %v717_v14  }
  0xf6   :  { %1920 = vst.msk [vmem:[%s4493_s1 + $0x283] ss:$16 sm:$0x30] %vm111_vm0, %v717_v14  }
  0xf7   :  { %1921 = vst.msk [vmem:[%s4493_s1 + $0x283] ss:$16 sm:$0xc0] %vm111_vm0, %v717_v14   ;;  %1411 = vrot.lane.b32.xlu1 %v2341_v30, %s2236_s30 }
  0xf8   :  { %1910 = vst.msk [vmem:[%s4493_s1 + $0x183] ss:$16 sm:$0x3] %vm111_vm0, %v691_v15  }
  0xf9   :  { %1911 = vst.msk [vmem:[%s4493_s1 + $0x183] ss:$16 sm:$0xc] %vm111_vm0, %v691_v15  }
  0xfa   :  { %1912 = vst.msk [vmem:[%s4493_s1 + $0x183] ss:$16 sm:$0x30] %vm111_vm0, %v691_v15  }
  0xfb   :  { %1913 = vst.msk [vmem:[%s4493_s1 + $0x183] ss:$16 sm:$0xc0] %vm111_vm0, %v691_v15   ;;  %1437 = vrot.lane.b32.xlu0 %v2331_v27, %s2236_s30  ;;  %v868_v27 = vpop.permute.xlu0 %867   ;;  %v842_v28 = vpop.permute.xlu1 %841  }
  0xfc   :  { %1926 = vst.msk [vmem:[%s4493_s1 + $0x383] ss:$16 sm:$0x3] %vm111_vm0, %v743_v16  }
  0xfd   :  { %1927 = vst.msk [vmem:[%s4493_s1 + $0x383] ss:$16 sm:$0xc] %vm111_vm0, %v743_v16  }
  0xfe   :  { %1928 = vst.msk [vmem:[%s4493_s1 + $0x383] ss:$16 sm:$0x30] %vm111_vm0, %v743_v16  }
  0xff   :  { %1929 = vst.msk [vmem:[%s4493_s1 + $0x383] ss:$16 sm:$0xc0] %vm111_vm0, %v743_v16   ;;  %1450 = vrot.lane.b32.xlu1 %v2353_v33, %s2236_s30  ;;  %v933_v33 = vpop.permute.xlu2 %932  }
 0x100   :  { %1930 = vst.msk [vmem:[%s4493_s1 + $0x403] ss:$16 sm:$0x3] %vm111_vm0, %v756_v18  }
 0x101   :  { %1931 = vst.msk [vmem:[%s4493_s1 + $0x403] ss:$16 sm:$0xc] %vm111_vm0, %v756_v18  }
 0x102   :  { %1932 = vst.msk [vmem:[%s4493_s1 + $0x403] ss:$16 sm:$0x30] %vm111_vm0, %v756_v18  }
 0x103   :  { %1933 = vst.msk [vmem:[%s4493_s1 + $0x403] ss:$16 sm:$0xc0] %vm111_vm0, %v756_v18   ;;  %1476 = vrot.lane.b32.xlu0 %v2359_v35, %s2236_s30  ;;  %v907_v31 = vpop.permute.xlu0 %906   ;;  %v881_v32 = vpop.permute.xlu1 %880  }
 0x104   :  { %1922 = vst.msk [vmem:[%s4493_s1 + $0x303] ss:$16 sm:$0x3] %vm111_vm0, %v730_v19  }
 0x105   :  { %1923 = vst.msk [vmem:[%s4493_s1 + $0x303] ss:$16 sm:$0xc] %vm111_vm0, %v730_v19  }
 0x106   :  { %1924 = vst.msk [vmem:[%s4493_s1 + $0x303] ss:$16 sm:$0x30] %vm111_vm0, %v730_v19  }
 0x107   :  { %1925 = vst.msk [vmem:[%s4493_s1 + $0x303] ss:$16 sm:$0xc0] %vm111_vm0, %v730_v19   ;;  %1489 = vrot.lane.b32.xlu1 %v2365_v36, %s2236_s30 }
 0x108   :  { %1938 = vst.msk [vmem:[%s4493_s1 + $0x503] ss:$16 sm:$0x3] %vm111_vm0, %v782_v21  }
 0x109   :  { %1939 = vst.msk [vmem:[%s4493_s1 + $0x503] ss:$16 sm:$0xc] %vm111_vm0, %v782_v21  }
 0x10a   :  { %1940 = vst.msk [vmem:[%s4493_s1 + $0x503] ss:$16 sm:$0x30] %vm111_vm0, %v782_v21  }
 0x10b   :  { %1941 = vst.msk [vmem:[%s4493_s1 + $0x503] ss:$16 sm:$0xc0] %vm111_vm0, %v782_v21   ;;  %1515 = vrot.lane.b32.xlu0 %v2371_v38, %s2236_s30  ;;  %v946_v35 = vpop.permute.xlu0 %945  }
 0x10c   :  { %1942 = vst.msk [vmem:[%s4493_s1 + $0x583] ss:$16 sm:$0x3] %vm111_vm0, %v795_v22  }
 0x10d   :  { %1943 = vst.msk [vmem:[%s4493_s1 + $0x583] ss:$16 sm:$0xc] %vm111_vm0, %v795_v22  }
 0x10e   :  { %1944 = vst.msk [vmem:[%s4493_s1 + $0x583] ss:$16 sm:$0x30] %vm111_vm0, %v795_v22  }
 0x10f   :  { %1945 = vst.msk [vmem:[%s4493_s1 + $0x583] ss:$16 sm:$0xc0] %vm111_vm0, %v795_v22   ;;  %1528 = vrot.lane.b32.xlu1 %v1527_v39, %s2236_s30 }
 0x110   :  { %1934 = vst.msk [vmem:[%s4493_s1 + $0x483] ss:$16 sm:$0x3] %vm111_vm0, %v769_v12  }
 0x111   :  { %1935 = vst.msk [vmem:[%s4493_s1 + $0x483] ss:$16 sm:$0xc] %vm111_vm0, %v769_v12  }
 0x112   :  { %1936 = vst.msk [vmem:[%s4493_s1 + $0x483] ss:$16 sm:$0x30] %vm111_vm0, %v769_v12  }
 0x113   :  { %1937 = vst.msk [vmem:[%s4493_s1 + $0x483] ss:$16 sm:$0xc0] %vm111_vm0, %v769_v12   ;;  %1549 = vrot.lane.b32.xlu0 %v2310_v20, %s2237_s2  ;;  %v1350_v20 = vld [vmem:[#allocation0 + $0xd0] sm:$0xf]   ;;  %v985_v36 = vpop.permute.xlu0 %984  }
 0x114   :  { %1950 = vst.msk [vmem:[%s4493_s1 + $0x683] ss:$16 sm:$0x3] %vm111_vm0, %v821_v23   ;;  %1351 = vrot.lane.b32.xlu2 %v1350_v20, %s2235_s20 }
 0x115   :  { %1951 = vst.msk [vmem:[%s4493_s1 + $0x683] ss:$16 sm:$0xc] %vm111_vm0, %v821_v23  }
 0x116   :  { %1952 = vst.msk [vmem:[%s4493_s1 + $0x4] ss:$16 sm:$0x3] %vm111_vm0, %v829_v24  }
 0x117   :  { %1953 = vst.msk [vmem:[%s4493_s1 + $0x4] ss:$16 sm:$0xc] %vm111_vm0, %v829_v24  }
 0x118   :  { %1954 = vst.msk [vmem:[%s4493_s1 + $0x4] ss:$16 sm:$0x30] %vm111_vm0, %v829_v24  }
 0x119   :  { %1955 = vst.msk [vmem:[%s4493_s1 + $0x4] ss:$16 sm:$0xc0] %vm111_vm0, %v829_v24  }
 0x11a   :  { %1946 = vst.msk [vmem:[%s4493_s1 + $0x603] ss:$16 sm:$0x3] %vm111_vm0, %v808_v25  }
 0x11b   :  { %1947 = vst.msk [vmem:[%s4493_s1 + $0x603] ss:$16 sm:$0xc] %vm111_vm0, %v808_v25   ;;  %1588 = vrot.lane.b32.xlu0 %v2341_v30, %s2237_s2  ;;  %v920_v30 = vpop.permute.xlu1 %919   ;;  %v1019_v42 = vpop.permute.xlu0 %1018  }
 0x11c   :  { %1948 = vst.msk [vmem:[%s4493_s1 + $0x603] ss:$16 sm:$0x30] %vm111_vm0, %v808_v25   ;;  %1385 = vrot.lane.b32.xlu2 %v2300_v17, %s2236_s30  ;;  %v972_v17 = vpop.permute.xlu2 %971  }
 0x11d   :  { %1949 = vst.msk [vmem:[%s4493_s1 + $0x603] ss:$16 sm:$0xc0] %vm111_vm0, %v808_v25  }
 0x11e   :  { %1960 = vst.msk [vmem:[%s4493_s1 + $0x104] ss:$16 sm:$0x3] %vm111_vm0, %v855_v26  }
 0x11f   :  { %1961 = vst.msk [vmem:[%s4493_s1 + $0x104] ss:$16 sm:$0xc] %vm111_vm0, %v855_v26  }
 0x120   :  { %1962 = vst.msk [vmem:[%s4493_s1 + $0x104] ss:$16 sm:$0x30] %vm111_vm0, %v855_v26  }
 0x121   :  { %1963 = vst.msk [vmem:[%s4493_s1 + $0x104] ss:$16 sm:$0xc0] %vm111_vm0, %v855_v26  }
 0x122   :  { %1964 = vst.msk [vmem:[%s4493_s1 + $0x184] ss:$16 sm:$0x3] %vm111_vm0, %v868_v27  }
 0x123   :  { %1965 = vst.msk [vmem:[%s4493_s1 + $0x184] ss:$16 sm:$0xc] %vm111_vm0, %v868_v27   ;;  %v959_v38 = vpop.permute.xlu1 %958   ;;  %v1058_v45 = vpop.permute.xlu0 %1057  }
 0x124   :  { %1966 = vst.msk [vmem:[%s4493_s1 + $0x184] ss:$16 sm:$0x30] %vm111_vm0, %v868_v27   ;;  %1424 = vrot.lane.b32.xlu2 %v2355_v34, %s2236_s30  ;;  %v1006_v41 = vpop.permute.xlu2 %1005  }
 0x125   :  { %1967 = vst.msk [vmem:[%s4493_s1 + $0x184] ss:$16 sm:$0xc0] %vm111_vm0, %v868_v27  }
 0x126   :  { %1956 = vst.msk [vmem:[%s4493_s1 + $0x84] ss:$16 sm:$0x3] %vm111_vm0, %v842_v28  }
 0x127   :  { %1957 = vst.msk [vmem:[%s4493_s1 + $0x84] ss:$16 sm:$0xc] %vm111_vm0, %v842_v28  }
 0x128   :  { %1958 = vst.msk [vmem:[%s4493_s1 + $0x84] ss:$16 sm:$0x30] %vm111_vm0, %v842_v28  }
 0x129   :  { %1959 = vst.msk [vmem:[%s4493_s1 + $0x84] ss:$16 sm:$0xc0] %vm111_vm0, %v842_v28  }
 0x12a   :  { %1972 = vst.msk [vmem:[%s4493_s1 + $0x284] ss:$16 sm:$0x3] %vm111_vm0, %v894_v29  }
 0x12b   :  { %1973 = vst.msk [vmem:[%s4493_s1 + $0x284] ss:$16 sm:$0xc] %vm111_vm0, %v894_v29   ;;  %v998_v43 = vpop.permute.xlu1 %997   ;;  %v1097_v48 = vpop.permute.xlu0 %1096  }
 0x12c   :  { %1974 = vst.msk [vmem:[%s4493_s1 + $0x284] ss:$16 sm:$0x30] %vm111_vm0, %v894_v29   ;;  %1463 = vrot.lane.b32.xlu2 %v2367_v37, %s2236_s30  ;;  %v1045_v44 = vpop.permute.xlu2 %1044  }
 0x12d   :  { %1975 = vst.msk [vmem:[%s4493_s1 + $0x284] ss:$16 sm:$0xc0] %vm111_vm0, %v894_v29  }
 0x12e   :  { %1976 = vst.msk [vmem:[%s4493_s1 + $0x304] ss:$16 sm:$0x3] %vm111_vm0, %v907_v31  }
 0x12f   :  { %1977 = vst.msk [vmem:[%s4493_s1 + $0x304] ss:$16 sm:$0xc] %vm111_vm0, %v907_v31  }
 0x130   :  { %1978 = vst.msk [vmem:[%s4493_s1 + $0x304] ss:$16 sm:$0x30] %vm111_vm0, %v907_v31  }
 0x131   :  { %1979 = vst.msk [vmem:[%s4493_s1 + $0x304] ss:$16 sm:$0xc0] %vm111_vm0, %v907_v31  }
 0x132   :  { %1968 = vst.msk [vmem:[%s4493_s1 + $0x204] ss:$16 sm:$0x3] %vm111_vm0, %v881_v32  }
 0x133   :  { %1969 = vst.msk [vmem:[%s4493_s1 + $0x204] ss:$16 sm:$0xc] %vm111_vm0, %v881_v32   ;;  %v1032_v46 = vpop.permute.xlu1 %1031   ;;  %v1136_v52 = vpop.permute.xlu0 %1135  }
 0x134   :  { %1970 = vst.msk [vmem:[%s4493_s1 + $0x204] ss:$16 sm:$0x30] %vm111_vm0, %v881_v32   ;;  %1502 = vrot.lane.b32.xlu2 %v2377_v40, %s2236_s30  ;;  %v1561_v40 = vld.sshfl [vmem:[#allocation0 + $0x20] sm:$0xff pattern:$0xba983210]   ;;  %v1084_v47 = vpop.permute.xlu2 %1083  }
 0x135   :  { %1971 = vst.msk [vmem:[%s4493_s1 + $0x204] ss:$16 sm:$0xc0] %vm111_vm0, %v881_v32   ;;  %1562 = vrot.lane.b32.xlu1 %v1561_v40, %s2237_s2  ;;  %v110_v40 = vld [vmem:[#allocation0] sm:$0xf]  }
 0x136   :  { %1984 = vst.msk [vmem:[%s4493_s1 + $0x404] ss:$16 sm:$0x3] %vm111_vm0, %v933_v33  }
 0x137   :  { %1985 = vst.msk [vmem:[%s4493_s1 + $0x404] ss:$16 sm:$0xc] %vm111_vm0, %v933_v33  }
 0x138   :  { %1986 = vst.msk [vmem:[%s4493_s1 + $0x404] ss:$16 sm:$0x30] %vm111_vm0, %v933_v33  }
 0x139   :  { %1987 = vst.msk [vmem:[%s4493_s1 + $0x404] ss:$16 sm:$0xc0] %vm111_vm0, %v933_v33  }
 0x13a   :  { %1988 = vst.msk [vmem:[%s4493_s1 + $0x484] ss:$16 sm:$0x3] %vm111_vm0, %v946_v35  }
 0x13b   :  { %1989 = vst.msk [vmem:[%s4493_s1 + $0x484] ss:$16 sm:$0xc] %vm111_vm0, %v946_v35   ;;  %v1175_v58 = vpop.permute.xlu0 %1174  }
 0x13c   :  { %1990 = vst.msk [vmem:[%s4493_s1 + $0x484] ss:$16 sm:$0x30] %vm111_vm0, %v946_v35   ;;  %v1123_v50 = vpop.permute.xlu2 %1122   ;;  %1536 = vrot.lane.b32.xlu2 %v1535_v49, %s2237_s2  ;;  %v164_v49 = vld [vmem:[#allocation0 + $0x40] sm:$0xf]  }
 0x13d   :  { %1991 = vst.msk [vmem:[%s4493_s1 + $0x484] ss:$16 sm:$0xc0] %vm111_vm0, %v946_v35   ;;  %1601 = vrot.lane.b32.xlu1 %v2355_v34, %s2237_s2  ;;  %v1626_v34 = vld.sshfl [vmem:[#allocation0 + $0x70] sm:$0xff pattern:$0xba983210]  }
 0x13e   :  { %1980 = vst.msk [vmem:[%s4493_s1 + $0x384] ss:$16 sm:$0x3] %vm111_vm0, %v920_v30   ;;  %1627 = vrot.lane.b32.xlu0 %v1626_v34, %s2237_s2  ;;  %v136_v34 = vld [vmem:[#allocation0 + $0x20] sm:$0xf]  }
 0x13f   :  { %1981 = vst.msk [vmem:[%s4493_s1 + $0x384] ss:$16 sm:$0xc] %vm111_vm0, %v920_v30  }
 0x140   :  { %1982 = vst.msk [vmem:[%s4493_s1 + $0x384] ss:$16 sm:$0x30] %vm111_vm0, %v920_v30  }
 0x141   :  { %1983 = vst.msk [vmem:[%s4493_s1 + $0x384] ss:$16 sm:$0xc0] %vm111_vm0, %v920_v30  }
 0x142   :  { %1996 = vst.msk [vmem:[%s4493_s1 + $0x584] ss:$16 sm:$0x3] %vm111_vm0, %v972_v17  }
 0x143   :  { %1997 = vst.msk [vmem:[%s4493_s1 + $0x584] ss:$16 sm:$0xc] %vm111_vm0, %v972_v17   ;;  %v1209_v62 = vpop.permute.xlu0 %1208  }
 0x144   :  { %1998 = vst.msk [vmem:[%s4493_s1 + $0x584] ss:$16 sm:$0x30] %vm111_vm0, %v972_v17   ;;  %v1162_v55 = vpop.permute.xlu2 %1161   ;;  %1575 = vrot.lane.b32.xlu2 %v1574_v54, %s2237_s2  ;;  %v199_v54 = vld [vmem:[#allocation0 + $0x68] sm:$0xf]  }
 0x145   :  { %1999 = vst.msk [vmem:[%s4493_s1 + $0x584] ss:$16 sm:$0xc0] %vm111_vm0, %v972_v17   ;;  %1640 = vrot.lane.b32.xlu1 %v2367_v37, %s2237_s2  ;;  %v1071_v37 = vpop.permute.xlu1 %1070  }
 0x146   :  { %2000 = vst.msk [vmem:[%s4493_s1 + $0x604] ss:$16 sm:$0x3] %vm111_vm0, %v985_v36   ;;  %1666 = vrot.lane.b32.xlu0 %v1665_v51, %s2237_s2  ;;  %v178_v51 = vld [vmem:[#allocation0 + $0x50] sm:$0xf]  }
 0x147   :  { %2001 = vst.msk [vmem:[%s4493_s1 + $0x604] ss:$16 sm:$0xc] %vm111_vm0, %v985_v36  }
 0x148   :  { %2002 = vst.msk [vmem:[%s4493_s1 + $0x604] ss:$16 sm:$0x30] %vm111_vm0, %v985_v36  }
 0x149   :  { %2003 = vst.msk [vmem:[%s4493_s1 + $0x604] ss:$16 sm:$0xc0] %vm111_vm0, %v985_v36  }
 0x14a   :  { %1992 = vst.msk [vmem:[%s4493_s1 + $0x504] ss:$16 sm:$0x3] %vm111_vm0, %v959_v38  }
 0x14b   :  { %1993 = vst.msk [vmem:[%s4493_s1 + $0x504] ss:$16 sm:$0xc] %vm111_vm0, %v959_v38   ;;  %v1248_v2 = vpop.permute.xlu0 %1247  }
 0x14c   :  { %1994 = vst.msk [vmem:[%s4493_s1 + $0x504] ss:$16 sm:$0x30] %vm111_vm0, %v959_v38   ;;  %v1196_v61 = vpop.permute.xlu2 %1195   ;;  %1614 = vrot.lane.b32.xlu2 %v1613_v60, %s2237_s2  ;;  %v241_v60 = vld [vmem:[#allocation0 + $0x98] sm:$0xf]  }
 0x14d   :  { %1995 = vst.msk [vmem:[%s4493_s1 + $0x504] ss:$16 sm:$0xc0] %vm111_vm0, %v959_v38   ;;  %v1110_v53 = vpop.permute.xlu1 %1109   ;;  %1679 = vrot.lane.b32.xlu1 %v1678_v57, %s2237_s2  ;;  %v220_v57 = vld [vmem:[#allocation0 + $0x80] sm:$0xf]  }
 0x14e   :  { %2006 = vst.msk [vmem:[%s4493_s1 + $0x5] ss:$16 sm:$0x3] %vm111_vm0, %v1006_v41   ;;  %1705 = vrot.lane.b32.xlu0 %v1704_v56, %s2237_s2  ;;  %v213_v56 = vld [vmem:[#allocation0 + $0x78] sm:$0xf]  }
 0x14f   :  { %2007 = vst.msk [vmem:[%s4493_s1 + $0x5] ss:$16 sm:$0xc] %vm111_vm0, %v1006_v41  }
 0x150   :  { %2008 = vst.msk [vmem:[%s4493_s1 + $0x5] ss:$16 sm:$0x30] %vm111_vm0, %v1006_v41  }
 0x151   :  { %2009 = vst.msk [vmem:[%s4493_s1 + $0x5] ss:$16 sm:$0xc0] %vm111_vm0, %v1006_v41  }
 0x152   :  { %2010 = vst.msk [vmem:[%s4493_s1 + $0x85] ss:$16 sm:$0x3] %vm111_vm0, %v1019_v42  }
 0x153   :  { %2011 = vst.msk [vmem:[%s4493_s1 + $0x85] ss:$16 sm:$0xc] %vm111_vm0, %v1019_v42   ;;  %v1287_v6 = vpop.permute.xlu0 %1286  }
 0x154   :  { %2012 = vst.msk [vmem:[%s4493_s1 + $0x85] ss:$16 sm:$0x30] %vm111_vm0, %v1019_v42   ;;  %v1235_v1 = vpop.permute.xlu2 %1234   ;;  %1653 = vrot.lane.b32.xlu2 %v1652_v0, %s2237_s2  ;;  %v269_v0 = vld [vmem:[#allocation0 + $0xb8] sm:$0xf]  }
 0x155   :  { %2013 = vst.msk [vmem:[%s4493_s1 + $0x85] ss:$16 sm:$0xc0] %vm111_vm0, %v1019_v42   ;;  %v1149_v59 = vpop.permute.xlu1 %1148  }
 0x156   :  { %2004 = vst.msk [vmem:[%s4493_s1 + $0x684] ss:$16 sm:$0x3] %vm111_vm0, %v998_v43  }
 0x157   :  { %2005 = vst.msk [vmem:[%s4493_s1 + $0x684] ss:$16 sm:$0xc] %vm111_vm0, %v998_v43  }
 0x158   :  { %2018 = vst.msk [vmem:[%s4493_s1 + $0x185] ss:$16 sm:$0x3] %vm111_vm0, %v1045_v44  }
 0x159   :  { %2019 = vst.msk [vmem:[%s4493_s1 + $0x185] ss:$16 sm:$0xc] %vm111_vm0, %v1045_v44  }
 0x15a   :  { %2020 = vst.msk [vmem:[%s4493_s1 + $0x185] ss:$16 sm:$0x30] %vm111_vm0, %v1045_v44  }
 0x15b   :  { %2021 = vst.msk [vmem:[%s4493_s1 + $0x185] ss:$16 sm:$0xc0] %vm111_vm0, %v1045_v44   ;;  %v1326_v9 = vpop.permute.xlu0 %1325   ;;  %v115_v44 = vld [vmem:[#allocation0 + $0x8] sm:$0xf]  }
 0x15c   :  { %2022 = vst.msk [vmem:[%s4493_s1 + $0x205] ss:$16 sm:$0x3] %vm111_vm0, %v1058_v45   ;;  %v1274_v5 = vpop.permute.xlu2 %1273   ;;  %1692 = vrot.lane.b32.xlu2 %v1691_v4, %s2237_s2 }
 0x15d   :  { %2023 = vst.msk [vmem:[%s4493_s1 + $0x205] ss:$16 sm:$0xc] %vm111_vm0, %v1058_v45   ;;  %v1183_v63 = vpop.permute.xlu1 %1182  }
 0x15e   :  { %2024 = vst.msk [vmem:[%s4493_s1 + $0x205] ss:$16 sm:$0x30] %vm111_vm0, %v1058_v45  }
 0x15f   :  { %2025 = vst.msk [vmem:[%s4493_s1 + $0x205] ss:$16 sm:$0xc0] %vm111_vm0, %v1058_v45   ;;  %v122_v45 = vld [vmem:[#allocation0 + $0x10] sm:$0xf]  }
 0x160   :  { %2014 = vst.msk [vmem:[%s4493_s1 + $0x105] ss:$16 sm:$0x3] %vm111_vm0, %v1032_v46  }
 0x161   :  { %2015 = vst.msk [vmem:[%s4493_s1 + $0x105] ss:$16 sm:$0xc] %vm111_vm0, %v1032_v46  }
 0x162   :  { %2016 = vst.msk [vmem:[%s4493_s1 + $0x105] ss:$16 sm:$0x30] %vm111_vm0, %v1032_v46  }
 0x163   :  { %2017 = vst.msk [vmem:[%s4493_s1 + $0x105] ss:$16 sm:$0xc0] %vm111_vm0, %v1032_v46   ;;  %v1360_v13 = vpop.permute.xlu0 %1359   ;;  %v129_v46 = vld [vmem:[#allocation0 + $0x18] sm:$0xf]  }
 0x164   :  { %2030 = vst.msk [vmem:[%s4493_s1 + $0x305] ss:$16 sm:$0x3] %vm111_vm0, %v1084_v47   ;;  %v1313_v8 = vpop.permute.xlu2 %1312  }
 0x165   :  { %2031 = vst.msk [vmem:[%s4493_s1 + $0x305] ss:$16 sm:$0xc] %vm111_vm0, %v1084_v47   ;;  %v1222_v3 = vpop.permute.xlu1 %1221  }
 0x166   :  { %2032 = vst.msk [vmem:[%s4493_s1 + $0x305] ss:$16 sm:$0x30] %vm111_vm0, %v1084_v47  }
 0x167   :  { %2033 = vst.msk [vmem:[%s4493_s1 + $0x305] ss:$16 sm:$0xc0] %vm111_vm0, %v1084_v47   ;;  %v143_v47 = vld [vmem:[#allocation0 + $0x28] sm:$0xf]  }
 0x168   :  { %2034 = vst.msk [vmem:[%s4493_s1 + $0x385] ss:$16 sm:$0x3] %vm111_vm0, %v1097_v48  }
 0x169   :  { %2035 = vst.msk [vmem:[%s4493_s1 + $0x385] ss:$16 sm:$0xc] %vm111_vm0, %v1097_v48  }
 0x16a   :  { %2036 = vst.msk [vmem:[%s4493_s1 + $0x385] ss:$16 sm:$0x30] %vm111_vm0, %v1097_v48  }
 0x16b   :  { %2037 = vst.msk [vmem:[%s4493_s1 + $0x385] ss:$16 sm:$0xc0] %vm111_vm0, %v1097_v48   ;;  %v1399_v16 = vpop.permute.xlu0 %1398   ;;  %v150_v48 = vld [vmem:[#allocation0 + $0x30] sm:$0xf]  }
 0x16c   :  { %2026 = vst.msk [vmem:[%s4493_s1 + $0x285] ss:$16 sm:$0x3] %vm111_vm0, %v1071_v37  }
 0x16d   :  { %2027 = vst.msk [vmem:[%s4493_s1 + $0x285] ss:$16 sm:$0xc] %vm111_vm0, %v1071_v37   ;;  %v1261_v7 = vpop.permute.xlu1 %1260  }
 0x16e   :  { %2028 = vst.msk [vmem:[%s4493_s1 + $0x285] ss:$16 sm:$0x30] %vm111_vm0, %v1071_v37   ;;  %v1352_v11 = vpop.permute.xlu2 %1351  }
 0x16f   :  { %2029 = vst.msk [vmem:[%s4493_s1 + $0x285] ss:$16 sm:$0xc0] %vm111_vm0, %v1071_v37   ;;  %v157_v37 = vld [vmem:[#allocation0 + $0x38] sm:$0xf]  }
 0x170   :  { %2042 = vst.msk [vmem:[%s4493_s1 + $0x485] ss:$16 sm:$0x3] %vm111_vm0, %v1123_v50  }
 0x171   :  { %2043 = vst.msk [vmem:[%s4493_s1 + $0x485] ss:$16 sm:$0xc] %vm111_vm0, %v1123_v50  }
 0x172   :  { %2044 = vst.msk [vmem:[%s4493_s1 + $0x485] ss:$16 sm:$0x30] %vm111_vm0, %v1123_v50  }
 0x173   :  { %2045 = vst.msk [vmem:[%s4493_s1 + $0x485] ss:$16 sm:$0xc0] %vm111_vm0, %v1123_v50   ;;  %v1438_v21 = vpop.permute.xlu0 %1437   ;;  %v171_v50 = vld [vmem:[#allocation0 + $0x48] sm:$0xf]  }
 0x174   :  { %2046 = vst.msk [vmem:[%s4493_s1 + $0x505] ss:$16 sm:$0x3] %vm111_vm0, %v1136_v52  }
 0x175   :  { %2047 = vst.msk [vmem:[%s4493_s1 + $0x505] ss:$16 sm:$0xc] %vm111_vm0, %v1136_v52   ;;  %v1300_v10 = vpop.permute.xlu1 %1299  }
 0x176   :  { %2048 = vst.msk [vmem:[%s4493_s1 + $0x505] ss:$16 sm:$0x30] %vm111_vm0, %v1136_v52   ;;  %v1386_v15 = vpop.permute.xlu2 %1385  }
 0x177   :  { %2049 = vst.msk [vmem:[%s4493_s1 + $0x505] ss:$16 sm:$0xc0] %vm111_vm0, %v1136_v52   ;;  %v185_v52 = vld [vmem:[#allocation0 + $0x58] sm:$0xf]  }
 0x178   :  { %2038 = vst.msk [vmem:[%s4493_s1 + $0x405] ss:$16 sm:$0x3] %vm111_vm0, %v1110_v53  }
 0x179   :  { %2039 = vst.msk [vmem:[%s4493_s1 + $0x405] ss:$16 sm:$0xc] %vm111_vm0, %v1110_v53  }
 0x17a   :  { %2040 = vst.msk [vmem:[%s4493_s1 + $0x405] ss:$16 sm:$0x30] %vm111_vm0, %v1110_v53  }
 0x17b   :  { %2041 = vst.msk [vmem:[%s4493_s1 + $0x405] ss:$16 sm:$0xc0] %vm111_vm0, %v1110_v53   ;;  %v1477_v23 = vpop.permute.xlu0 %1476   ;;  %v192_v53 = vld [vmem:[#allocation0 + $0x60] sm:$0xf]  }
 0x17c   :  { %2054 = vst.msk [vmem:[%s4493_s1 + $0x605] ss:$16 sm:$0x3] %vm111_vm0, %v1162_v55  }
 0x17d   :  { %2055 = vst.msk [vmem:[%s4493_s1 + $0x605] ss:$16 sm:$0xc] %vm111_vm0, %v1162_v55   ;;  %v1339_v14 = vpop.permute.xlu1 %1338  }
 0x17e   :  { %2056 = vst.msk [vmem:[%s4493_s1 + $0x605] ss:$16 sm:$0x30] %vm111_vm0, %v1162_v55   ;;  %v1425_v19 = vpop.permute.xlu2 %1424  }
 0x17f   :  { %2057 = vst.msk [vmem:[%s4493_s1 + $0x605] ss:$16 sm:$0xc0] %vm111_vm0, %v1162_v55   ;;  %v206_v55 = vld [vmem:[#allocation0 + $0x70] sm:$0xf]  }
 0x180   :  { %2058 = vst.msk [vmem:[%s4493_s1 + $0x685] ss:$16 sm:$0x3] %vm111_vm0, %v1175_v58  }
 0x181   :  { %2059 = vst.msk [vmem:[%s4493_s1 + $0x685] ss:$16 sm:$0xc] %vm111_vm0, %v1175_v58   ;;  %v227_v58 = vld [vmem:[#allocation0 + $0x88] sm:$0xf]  }
 0x182   :  { %2050 = vst.msk [vmem:[%s4493_s1 + $0x585] ss:$16 sm:$0x3] %vm111_vm0, %v1149_v59  }
 0x183   :  { %2051 = vst.msk [vmem:[%s4493_s1 + $0x585] ss:$16 sm:$0xc] %vm111_vm0, %v1149_v59   ;;  %v1516_v26 = vpop.permute.xlu0 %1515  }
 0x184   :  { %2052 = vst.msk [vmem:[%s4493_s1 + $0x585] ss:$16 sm:$0x30] %vm111_vm0, %v1149_v59  }
 0x185   :  { %2053 = vst.msk [vmem:[%s4493_s1 + $0x585] ss:$16 sm:$0xc0] %vm111_vm0, %v1149_v59   ;;  %v1373_v18 = vpop.permute.xlu1 %1372   ;;  %v234_v59 = vld [vmem:[#allocation0 + $0x90] sm:$0xf]  }
 0x186   :  { %2064 = vst.msk [vmem:[%s4493_s1 + $0x86] ss:$16 sm:$0x3] %vm111_vm0, %v1196_v61   ;;  %v1464_v12 = vpop.permute.xlu2 %1463  }
 0x187   :  { %2065 = vst.msk [vmem:[%s4493_s1 + $0x86] ss:$16 sm:$0xc] %vm111_vm0, %v1196_v61  }
 0x188   :  { %2066 = vst.msk [vmem:[%s4493_s1 + $0x86] ss:$16 sm:$0x30] %vm111_vm0, %v1196_v61  }
 0x189   :  { %2067 = vst.msk [vmem:[%s4493_s1 + $0x86] ss:$16 sm:$0xc0] %vm111_vm0, %v1196_v61   ;;  %v248_v61 = vld [vmem:[#allocation0 + $0xa0] sm:$0xf]  }
 0x18a   :  { %2068 = vst.msk [vmem:[%s4493_s1 + $0x106] ss:$16 sm:$0x3] %vm111_vm0, %v1209_v62  }
 0x18b   :  { %2069 = vst.msk [vmem:[%s4493_s1 + $0x106] ss:$16 sm:$0xc] %vm111_vm0, %v1209_v62   ;;  %v1550_v29 = vpop.permute.xlu0 %1549  }
 0x18c   :  { %2070 = vst.msk [vmem:[%s4493_s1 + $0x106] ss:$16 sm:$0x30] %vm111_vm0, %v1209_v62  }
 0x18d   :  { %2071 = vst.msk [vmem:[%s4493_s1 + $0x106] ss:$16 sm:$0xc0] %vm111_vm0, %v1209_v62   ;;  %v1412_v22 = vpop.permute.xlu1 %1411   ;;  %v255_v62 = vld [vmem:[#allocation0 + $0xa8] sm:$0xf]  }
 0x18e   :  { %2060 = vst.msk [vmem:[%s4493_s1 + $0x6] ss:$16 sm:$0x3] %vm111_vm0, %v1183_v63   ;;  %v1503_v25 = vpop.permute.xlu2 %1502  }
 0x18f   :  { %2061 = vst.msk [vmem:[%s4493_s1 + $0x6] ss:$16 sm:$0xc] %vm111_vm0, %v1183_v63  }
 0x190   :  { %2062 = vst.msk [vmem:[%s4493_s1 + $0x6] ss:$16 sm:$0x30] %vm111_vm0, %v1183_v63  }
 0x191   :  { %2063 = vst.msk [vmem:[%s4493_s1 + $0x6] ss:$16 sm:$0xc0] %vm111_vm0, %v1183_v63   ;;  %v262_v63 = vld [vmem:[#allocation0 + $0xb0] sm:$0xf]  }
 0x192   :  { %2076 = vst.msk [vmem:[%s4493_s1 + $0x206] ss:$16 sm:$0x3] %vm111_vm0, %v1235_v1  }
 0x193   :  { %2077 = vst.msk [vmem:[%s4493_s1 + $0x206] ss:$16 sm:$0xc] %vm111_vm0, %v1235_v1   ;;  %v1589_v20 = vpop.permute.xlu0 %1588  }
 0x194   :  { %2078 = vst.msk [vmem:[%s4493_s1 + $0x206] ss:$16 sm:$0x30] %vm111_vm0, %v1235_v1  }
 0x195   :  { %2079 = vst.msk [vmem:[%s4493_s1 + $0x206] ss:$16 sm:$0xc0] %vm111_vm0, %v1235_v1   ;;  %v1451_v24 = vpop.permute.xlu1 %1450   ;;  %v276_v1 = vld [vmem:[#allocation0 + $0xc0] sm:$0xf]  }
 0x196   :  { %2080 = vst.msk [vmem:[%s4493_s1 + $0x286] ss:$16 sm:$0x3] %vm111_vm0, %v1248_v2   ;;  %v1537_v28 = vpop.permute.xlu2 %1536  }
 0x197   :  { %2081 = vst.msk [vmem:[%s4493_s1 + $0x286] ss:$16 sm:$0xc] %vm111_vm0, %v1248_v2  }
 0x198   :  { %2082 = vst.msk [vmem:[%s4493_s1 + $0x286] ss:$16 sm:$0x30] %vm111_vm0, %v1248_v2  }
 0x199   :  { %2083 = vst.msk [vmem:[%s4493_s1 + $0x286] ss:$16 sm:$0xc0] %vm111_vm0, %v1248_v2   ;;  %v283_v2 = vld [vmem:[#allocation0 + $0xc8] sm:$0xf]  }
 0x19a   :  { %2072 = vst.msk [vmem:[%s4493_s1 + $0x186] ss:$16 sm:$0x3] %vm111_vm0, %v1222_v3  }
 0x19b   :  { %2073 = vst.msk [vmem:[%s4493_s1 + $0x186] ss:$16 sm:$0xc] %vm111_vm0, %v1222_v3  }
 0x19c   :  { %2074 = vst.msk [vmem:[%s4493_s1 + $0x186] ss:$16 sm:$0x30] %vm111_vm0, %v1222_v3  }
 0x19d   :  { %2075 = vst.msk [vmem:[%s4493_s1 + $0x186] ss:$16 sm:$0xc0] %vm111_vm0, %v1222_v3   ;;  %v1490_v27 = vpop.permute.xlu1 %1489   ;;  %v290_v3 = vld [vmem:[#allocation0 + $0xd0] sm:$0xf]  }
 0x19e   :  { %2088 = vst.msk [vmem:[%s4493_s1 + $0x386] ss:$16 sm:$0x3] %vm111_vm0, %v1274_v5   ;;  %v1576_v32 = vpop.permute.xlu2 %1575  }
 0x19f   :  { %2089 = vst.msk [vmem:[%s4493_s1 + $0x386] ss:$16 sm:$0xc] %vm111_vm0, %v1274_v5  }
 0x1a0   :  { %2090 = vst.msk [vmem:[%s4493_s1 + $0x386] ss:$16 sm:$0x30] %vm111_vm0, %v1274_v5  }
 0x1a1   :  { %2091 = vst.msk [vmem:[%s4493_s1 + $0x386] ss:$16 sm:$0xc0] %vm111_vm0, %v1274_v5  }
 0x1a2   :  { %2092 = vst.msk [vmem:[%s4493_s1 + $0x406] ss:$16 sm:$0x3] %vm111_vm0, %v1287_v6  }
 0x1a3   :  { %2093 = vst.msk [vmem:[%s4493_s1 + $0x406] ss:$16 sm:$0xc] %vm111_vm0, %v1287_v6  }
 0x1a4   :  { %2094 = vst.msk [vmem:[%s4493_s1 + $0x406] ss:$16 sm:$0x30] %vm111_vm0, %v1287_v6  }
 0x1a5   :  { %2095 = vst.msk [vmem:[%s4493_s1 + $0x406] ss:$16 sm:$0xc0] %vm111_vm0, %v1287_v6   ;;  %v1529_v31 = vpop.permute.xlu1 %1528  }
 0x1a6   :  { %2084 = vst.msk [vmem:[%s4493_s1 + $0x306] ss:$16 sm:$0x3] %vm111_vm0, %v1261_v7   ;;  %v1615_v35 = vpop.permute.xlu2 %1614  }
 0x1a7   :  { %2085 = vst.msk [vmem:[%s4493_s1 + $0x306] ss:$16 sm:$0xc] %vm111_vm0, %v1261_v7  }
 0x1a8   :  { %2086 = vst.msk [vmem:[%s4493_s1 + $0x306] ss:$16 sm:$0x30] %vm111_vm0, %v1261_v7  }
 0x1a9   :  { %2087 = vst.msk [vmem:[%s4493_s1 + $0x306] ss:$16 sm:$0xc0] %vm111_vm0, %v1261_v7  }
 0x1aa   :  { %2100 = vst.msk [vmem:[%s4493_s1 + $0x506] ss:$16 sm:$0x3] %vm111_vm0, %v1313_v8  }
 0x1ab   :  { %2101 = vst.msk [vmem:[%s4493_s1 + $0x506] ss:$16 sm:$0xc] %vm111_vm0, %v1313_v8  }
 0x1ac   :  { %2102 = vst.msk [vmem:[%s4493_s1 + $0x506] ss:$16 sm:$0x30] %vm111_vm0, %v1313_v8  }
 0x1ad   :  { %2103 = vst.msk [vmem:[%s4493_s1 + $0x506] ss:$16 sm:$0xc0] %vm111_vm0, %v1313_v8   ;;  %v1563_v33 = vpop.permute.xlu1 %1562  }
 0x1ae   :  { %2104 = vst.msk [vmem:[%s4493_s1 + $0x586] ss:$16 sm:$0x3] %vm111_vm0, %v1326_v9   ;;  %v1654_v36 = vpop.permute.xlu2 %1653  }
 0x1af   :  { %2105 = vst.msk [vmem:[%s4493_s1 + $0x586] ss:$16 sm:$0xc] %vm111_vm0, %v1326_v9  }
 0x1b0   :  { %2106 = vst.msk [vmem:[%s4493_s1 + $0x586] ss:$16 sm:$0x30] %vm111_vm0, %v1326_v9   ;;  %v1628_v30 = vpop.permute.xlu0 %1627  }
 0x1b1   :  { %2107 = vst.msk [vmem:[%s4493_s1 + $0x586] ss:$16 sm:$0xc0] %vm111_vm0, %v1326_v9  }
 0x1b2   :  { %2096 = vst.msk [vmem:[%s4493_s1 + $0x486] ss:$16 sm:$0x3] %vm111_vm0, %v1300_v10  }
 0x1b3   :  { %2097 = vst.msk [vmem:[%s4493_s1 + $0x486] ss:$16 sm:$0xc] %vm111_vm0, %v1300_v10  }
 0x1b4   :  { %2098 = vst.msk [vmem:[%s4493_s1 + $0x486] ss:$16 sm:$0x30] %vm111_vm0, %v1300_v10  }
 0x1b5   :  { %2099 = vst.msk [vmem:[%s4493_s1 + $0x486] ss:$16 sm:$0xc0] %vm111_vm0, %v1300_v10   ;;  %v1602_v17 = vpop.permute.xlu1 %1601  }
 0x1b6   :  { %2112 = vst.msk [vmem:[%s4493_s1 + $0x686] ss:$16 sm:$0x3] %vm111_vm0, %v1352_v11   ;;  %v1693_v41 = vpop.permute.xlu2 %1692  }
 0x1b7   :  { %2113 = vst.msk [vmem:[%s4493_s1 + $0x686] ss:$16 sm:$0xc] %vm111_vm0, %v1352_v11  }
 0x1b8   :  { %2114 = vst.msk [vmem:[%s4493_s1 + $0x7] ss:$16 sm:$0x3] %vm111_vm0, %v1360_v13   ;;  %v1667_v38 = vpop.permute.xlu0 %1666  }
 0x1b9   :  { %2115 = vst.msk [vmem:[%s4493_s1 + $0x7] ss:$16 sm:$0xc] %vm111_vm0, %v1360_v13  }
 0x1ba   :  { %2116 = vst.msk [vmem:[%s4493_s1 + $0x7] ss:$16 sm:$0x30] %vm111_vm0, %v1360_v13  }
 0x1bb   :  { %2117 = vst.msk [vmem:[%s4493_s1 + $0x7] ss:$16 sm:$0xc0] %vm111_vm0, %v1360_v13  }
 0x1bc   :  { %2108 = vst.msk [vmem:[%s4493_s1 + $0x606] ss:$16 sm:$0x3] %vm111_vm0, %v1339_v14  }
 0x1bd   :  { %2109 = vst.msk [vmem:[%s4493_s1 + $0x606] ss:$16 sm:$0xc] %vm111_vm0, %v1339_v14   ;;  %v1641_v39 = vpop.permute.xlu1 %1640  }
 0x1be   :  { %2110 = vst.msk [vmem:[%s4493_s1 + $0x606] ss:$16 sm:$0x30] %vm111_vm0, %v1339_v14  }
 0x1bf   :  { %2111 = vst.msk [vmem:[%s4493_s1 + $0x606] ss:$16 sm:$0xc0] %vm111_vm0, %v1339_v14  }
 0x1c0   :  { %2122 = vst.msk [vmem:[%s4493_s1 + $0x107] ss:$16 sm:$0x3] %vm111_vm0, %v1386_v15   ;;  %v1706_v42 = vpop.permute.xlu0 %1705  }
 0x1c1   :  { %2123 = vst.msk [vmem:[%s4493_s1 + $0x107] ss:$16 sm:$0xc] %vm111_vm0, %v1386_v15  }
 0x1c2   :  { %2124 = vst.msk [vmem:[%s4493_s1 + $0x107] ss:$16 sm:$0x30] %vm111_vm0, %v1386_v15  }
 0x1c3   :  { %2125 = vst.msk [vmem:[%s4493_s1 + $0x107] ss:$16 sm:$0xc0] %vm111_vm0, %v1386_v15  }
 0x1c4   :  { %2126 = vst.msk [vmem:[%s4493_s1 + $0x187] ss:$16 sm:$0x3] %vm111_vm0, %v1399_v16  }
 0x1c5   :  { %2127 = vst.msk [vmem:[%s4493_s1 + $0x187] ss:$16 sm:$0xc] %vm111_vm0, %v1399_v16   ;;  %v1680_v43 = vpop.permute.xlu1 %1679  }
 0x1c6   :  { %2128 = vst.msk [vmem:[%s4493_s1 + $0x187] ss:$16 sm:$0x30] %vm111_vm0, %v1399_v16  }
 0x1c7   :  { %2129 = vst.msk [vmem:[%s4493_s1 + $0x187] ss:$16 sm:$0xc0] %vm111_vm0, %v1399_v16  }
 0x1c8   :  { %2118 = vst.msk [vmem:[%s4493_s1 + $0x87] ss:$16 sm:$0x3] %vm111_vm0, %v1373_v18  }
 0x1c9   :  { %2119 = vst.msk [vmem:[%s4493_s1 + $0x87] ss:$16 sm:$0xc] %vm111_vm0, %v1373_v18  }
 0x1ca   :  { %2120 = vst.msk [vmem:[%s4493_s1 + $0x87] ss:$16 sm:$0x30] %vm111_vm0, %v1373_v18  }
 0x1cb   :  { %2121 = vst.msk [vmem:[%s4493_s1 + $0x87] ss:$16 sm:$0xc0] %vm111_vm0, %v1373_v18  }
 0x1cc   :  { %2134 = vst.msk [vmem:[%s4493_s1 + $0x287] ss:$16 sm:$0x3] %vm111_vm0, %v1425_v19  }
 0x1cd   :  { %2135 = vst.msk [vmem:[%s4493_s1 + $0x287] ss:$16 sm:$0xc] %vm111_vm0, %v1425_v19  }
 0x1ce   :  { %2136 = vst.msk [vmem:[%s4493_s1 + $0x287] ss:$16 sm:$0x30] %vm111_vm0, %v1425_v19  }
 0x1cf   :  { %2137 = vst.msk [vmem:[%s4493_s1 + $0x287] ss:$16 sm:$0xc0] %vm111_vm0, %v1425_v19  }
 0x1d0   :  { %2138 = vst.msk [vmem:[%s4493_s1 + $0x307] ss:$16 sm:$0x3] %vm111_vm0, %v1438_v21  }
 0x1d1   :  { %2139 = vst.msk [vmem:[%s4493_s1 + $0x307] ss:$16 sm:$0xc] %vm111_vm0, %v1438_v21  }
 0x1d2   :  { %2140 = vst.msk [vmem:[%s4493_s1 + $0x307] ss:$16 sm:$0x30] %vm111_vm0, %v1438_v21  }
 0x1d3   :  { %2141 = vst.msk [vmem:[%s4493_s1 + $0x307] ss:$16 sm:$0xc0] %vm111_vm0, %v1438_v21  }
 0x1d4   :  { %2130 = vst.msk [vmem:[%s4493_s1 + $0x207] ss:$16 sm:$0x3] %vm111_vm0, %v1412_v22  }
 0x1d5   :  { %2131 = vst.msk [vmem:[%s4493_s1 + $0x207] ss:$16 sm:$0xc] %vm111_vm0, %v1412_v22  }
 0x1d6   :  { %2132 = vst.msk [vmem:[%s4493_s1 + $0x207] ss:$16 sm:$0x30] %vm111_vm0, %v1412_v22  }
 0x1d7   :  { %2133 = vst.msk [vmem:[%s4493_s1 + $0x207] ss:$16 sm:$0xc0] %vm111_vm0, %v1412_v22  }
 0x1d8   :  { %2146 = vst.msk [vmem:[%s4493_s1 + $0x407] ss:$16 sm:$0x3] %vm111_vm0, %v1464_v12  }
 0x1d9   :  { %2147 = vst.msk [vmem:[%s4493_s1 + $0x407] ss:$16 sm:$0xc] %vm111_vm0, %v1464_v12  }
 0x1da   :  { %2148 = vst.msk [vmem:[%s4493_s1 + $0x407] ss:$16 sm:$0x30] %vm111_vm0, %v1464_v12  }
 0x1db   :  { %2149 = vst.msk [vmem:[%s4493_s1 + $0x407] ss:$16 sm:$0xc0] %vm111_vm0, %v1464_v12  }
 0x1dc   :  { %2150 = vst.msk [vmem:[%s4493_s1 + $0x487] ss:$16 sm:$0x3] %vm111_vm0, %v1477_v23  }
 0x1dd   :  { %2151 = vst.msk [vmem:[%s4493_s1 + $0x487] ss:$16 sm:$0xc] %vm111_vm0, %v1477_v23  }
 0x1de   :  { %2152 = vst.msk [vmem:[%s4493_s1 + $0x487] ss:$16 sm:$0x30] %vm111_vm0, %v1477_v23  }
 0x1df   :  { %2153 = vst.msk [vmem:[%s4493_s1 + $0x487] ss:$16 sm:$0xc0] %vm111_vm0, %v1477_v23  }
 0x1e0   :  { %2142 = vst.msk [vmem:[%s4493_s1 + $0x387] ss:$16 sm:$0x3] %vm111_vm0, %v1451_v24  }
 0x1e1   :  { %2143 = vst.msk [vmem:[%s4493_s1 + $0x387] ss:$16 sm:$0xc] %vm111_vm0, %v1451_v24  }
 0x1e2   :  { %2144 = vst.msk [vmem:[%s4493_s1 + $0x387] ss:$16 sm:$0x30] %vm111_vm0, %v1451_v24  }
 0x1e3   :  { %2145 = vst.msk [vmem:[%s4493_s1 + $0x387] ss:$16 sm:$0xc0] %vm111_vm0, %v1451_v24  }
 0x1e4   :  { %2158 = vst.msk [vmem:[%s4493_s1 + $0x587] ss:$16 sm:$0x3] %vm111_vm0, %v1503_v25  }
 0x1e5   :  { %2159 = vst.msk [vmem:[%s4493_s1 + $0x587] ss:$16 sm:$0xc] %vm111_vm0, %v1503_v25  }
 0x1e6   :  { %2160 = vst.msk [vmem:[%s4493_s1 + $0x587] ss:$16 sm:$0x30] %vm111_vm0, %v1503_v25  }
 0x1e7   :  { %2161 = vst.msk [vmem:[%s4493_s1 + $0x587] ss:$16 sm:$0xc0] %vm111_vm0, %v1503_v25  }
 0x1e8   :  { %2162 = vst.msk [vmem:[%s4493_s1 + $0x607] ss:$16 sm:$0x3] %vm111_vm0, %v1516_v26  }
 0x1e9   :  { %2163 = vst.msk [vmem:[%s4493_s1 + $0x607] ss:$16 sm:$0xc] %vm111_vm0, %v1516_v26  }
 0x1ea   :  { %2164 = vst.msk [vmem:[%s4493_s1 + $0x607] ss:$16 sm:$0x30] %vm111_vm0, %v1516_v26  }
 0x1eb   :  { %2165 = vst.msk [vmem:[%s4493_s1 + $0x607] ss:$16 sm:$0xc0] %vm111_vm0, %v1516_v26  }
 0x1ec   :  { %2154 = vst.msk [vmem:[%s4493_s1 + $0x507] ss:$16 sm:$0x3] %vm111_vm0, %v1490_v27  }
 0x1ed   :  { %2155 = vst.msk [vmem:[%s4493_s1 + $0x507] ss:$16 sm:$0xc] %vm111_vm0, %v1490_v27  }
 0x1ee   :  { %2156 = vst.msk [vmem:[%s4493_s1 + $0x507] ss:$16 sm:$0x30] %vm111_vm0, %v1490_v27  }
 0x1ef   :  { %2157 = vst.msk [vmem:[%s4493_s1 + $0x507] ss:$16 sm:$0xc0] %vm111_vm0, %v1490_v27  }
 0x1f0   :  { %2168 = vst.msk [vmem:[%s4493_s1 + $0x8] ss:$16 sm:$0x3] %vm111_vm0, %v1537_v28  }
 0x1f1   :  { %2169 = vst.msk [vmem:[%s4493_s1 + $0x8] ss:$16 sm:$0xc] %vm111_vm0, %v1537_v28  }
 0x1f2   :  { %2170 = vst.msk [vmem:[%s4493_s1 + $0x8] ss:$16 sm:$0x30] %vm111_vm0, %v1537_v28  }
 0x1f3   :  { %2171 = vst.msk [vmem:[%s4493_s1 + $0x8] ss:$16 sm:$0xc0] %vm111_vm0, %v1537_v28  }
 0x1f4   :  { %2172 = vst.msk [vmem:[%s4493_s1 + $0x88] ss:$16 sm:$0x3] %vm111_vm0, %v1550_v29  }
 0x1f5   :  { %2173 = vst.msk [vmem:[%s4493_s1 + $0x88] ss:$16 sm:$0xc] %vm111_vm0, %v1550_v29  }
 0x1f6   :  { %2174 = vst.msk [vmem:[%s4493_s1 + $0x88] ss:$16 sm:$0x30] %vm111_vm0, %v1550_v29  }
 0x1f7   :  { %2175 = vst.msk [vmem:[%s4493_s1 + $0x88] ss:$16 sm:$0xc0] %vm111_vm0, %v1550_v29  }
 0x1f8   :  { %2166 = vst.msk [vmem:[%s4493_s1 + $0x687] ss:$16 sm:$0x3] %vm111_vm0, %v1529_v31  }
 0x1f9   :  { %2167 = vst.msk [vmem:[%s4493_s1 + $0x687] ss:$16 sm:$0xc] %vm111_vm0, %v1529_v31  }
 0x1fa   :  { %2180 = vst.msk [vmem:[%s4493_s1 + $0x188] ss:$16 sm:$0x3] %vm111_vm0, %v1576_v32  }
 0x1fb   :  { %2181 = vst.msk [vmem:[%s4493_s1 + $0x188] ss:$16 sm:$0xc] %vm111_vm0, %v1576_v32  }
 0x1fc   :  { %2182 = vst.msk [vmem:[%s4493_s1 + $0x188] ss:$16 sm:$0x30] %vm111_vm0, %v1576_v32  }
 0x1fd   :  { %2183 = vst.msk [vmem:[%s4493_s1 + $0x188] ss:$16 sm:$0xc0] %vm111_vm0, %v1576_v32  }
 0x1fe   :  { %2184 = vst.msk [vmem:[%s4493_s1 + $0x208] ss:$16 sm:$0x3] %vm111_vm0, %v1589_v20  }
 0x1ff   :  { %2185 = vst.msk [vmem:[%s4493_s1 + $0x208] ss:$16 sm:$0xc] %vm111_vm0, %v1589_v20  }
 0x200   :  { %2186 = vst.msk [vmem:[%s4493_s1 + $0x208] ss:$16 sm:$0x30] %vm111_vm0, %v1589_v20  }
 0x201   :  { %2187 = vst.msk [vmem:[%s4493_s1 + $0x208] ss:$16 sm:$0xc0] %vm111_vm0, %v1589_v20  }
 0x202   :  { %2176 = vst.msk [vmem:[%s4493_s1 + $0x108] ss:$16 sm:$0x3] %vm111_vm0, %v1563_v33  }
 0x203   :  { %2177 = vst.msk [vmem:[%s4493_s1 + $0x108] ss:$16 sm:$0xc] %vm111_vm0, %v1563_v33  }
 0x204   :  { %2178 = vst.msk [vmem:[%s4493_s1 + $0x108] ss:$16 sm:$0x30] %vm111_vm0, %v1563_v33  }
 0x205   :  { %2179 = vst.msk [vmem:[%s4493_s1 + $0x108] ss:$16 sm:$0xc0] %vm111_vm0, %v1563_v33  }
 0x206   :  { %2192 = vst.msk [vmem:[%s4493_s1 + $0x308] ss:$16 sm:$0x3] %vm111_vm0, %v1615_v35  }
 0x207   :  { %2193 = vst.msk [vmem:[%s4493_s1 + $0x308] ss:$16 sm:$0xc] %vm111_vm0, %v1615_v35  }
 0x208   :  { %2194 = vst.msk [vmem:[%s4493_s1 + $0x308] ss:$16 sm:$0x30] %vm111_vm0, %v1615_v35  }
 0x209   :  { %2195 = vst.msk [vmem:[%s4493_s1 + $0x308] ss:$16 sm:$0xc0] %vm111_vm0, %v1615_v35  }
 0x20a   :  { %2196 = vst.msk [vmem:[%s4493_s1 + $0x388] ss:$16 sm:$0x3] %vm111_vm0, %v1628_v30  }
 0x20b   :  { %2197 = vst.msk [vmem:[%s4493_s1 + $0x388] ss:$16 sm:$0xc] %vm111_vm0, %v1628_v30  }
 0x20c   :  { %2198 = vst.msk [vmem:[%s4493_s1 + $0x388] ss:$16 sm:$0x30] %vm111_vm0, %v1628_v30  }
 0x20d   :  { %2199 = vst.msk [vmem:[%s4493_s1 + $0x388] ss:$16 sm:$0xc0] %vm111_vm0, %v1628_v30  }
 0x20e   :  { %2188 = vst.msk [vmem:[%s4493_s1 + $0x288] ss:$16 sm:$0x3] %vm111_vm0, %v1602_v17  }
 0x20f   :  { %2189 = vst.msk [vmem:[%s4493_s1 + $0x288] ss:$16 sm:$0xc] %vm111_vm0, %v1602_v17  }
 0x210   :  { %2190 = vst.msk [vmem:[%s4493_s1 + $0x288] ss:$16 sm:$0x30] %vm111_vm0, %v1602_v17  }
 0x211   :  { %2191 = vst.msk [vmem:[%s4493_s1 + $0x288] ss:$16 sm:$0xc0] %vm111_vm0, %v1602_v17  }
 0x212   :  { %2204 = vst.msk [vmem:[%s4493_s1 + $0x488] ss:$16 sm:$0x3] %vm111_vm0, %v1654_v36  }
 0x213   :  { %2205 = vst.msk [vmem:[%s4493_s1 + $0x488] ss:$16 sm:$0xc] %vm111_vm0, %v1654_v36  }
 0x214   :  { %2206 = vst.msk [vmem:[%s4493_s1 + $0x488] ss:$16 sm:$0x30] %vm111_vm0, %v1654_v36  }
 0x215   :  { %2207 = vst.msk [vmem:[%s4493_s1 + $0x488] ss:$16 sm:$0xc0] %vm111_vm0, %v1654_v36  }
 0x216   :  { %2208 = vst.msk [vmem:[%s4493_s1 + $0x508] ss:$16 sm:$0x3] %vm111_vm0, %v1667_v38  }
 0x217   :  { %2209 = vst.msk [vmem:[%s4493_s1 + $0x508] ss:$16 sm:$0xc] %vm111_vm0, %v1667_v38  }
 0x218   :  { %2210 = vst.msk [vmem:[%s4493_s1 + $0x508] ss:$16 sm:$0x30] %vm111_vm0, %v1667_v38  }
 0x219   :  { %2211 = vst.msk [vmem:[%s4493_s1 + $0x508] ss:$16 sm:$0xc0] %vm111_vm0, %v1667_v38  }
 0x21a   :  { %2200 = vst.msk [vmem:[%s4493_s1 + $0x408] ss:$16 sm:$0x3] %vm111_vm0, %v1641_v39  }
 0x21b   :  { %2201 = vst.msk [vmem:[%s4493_s1 + $0x408] ss:$16 sm:$0xc] %vm111_vm0, %v1641_v39  }
 0x21c   :  { %2202 = vst.msk [vmem:[%s4493_s1 + $0x408] ss:$16 sm:$0x30] %vm111_vm0, %v1641_v39  }
 0x21d   :  { %2203 = vst.msk [vmem:[%s4493_s1 + $0x408] ss:$16 sm:$0xc0] %vm111_vm0, %v1641_v39  }
 0x21e   :  { %2216 = vst.msk [vmem:[%s4493_s1 + $0x608] ss:$16 sm:$0x3] %vm111_vm0, %v1693_v41  }
 0x21f   :  { %2217 = vst.msk [vmem:[%s4493_s1 + $0x608] ss:$16 sm:$0xc] %vm111_vm0, %v1693_v41  }
 0x220   :  { %2218 = vst.msk [vmem:[%s4493_s1 + $0x608] ss:$16 sm:$0x30] %vm111_vm0, %v1693_v41  }
 0x221   :  { %2219 = vst.msk [vmem:[%s4493_s1 + $0x608] ss:$16 sm:$0xc0] %vm111_vm0, %v1693_v41  }
 0x222   :  { %2220 = vst.msk [vmem:[%s4493_s1 + $0x688] ss:$16 sm:$0x3] %vm111_vm0, %v1706_v42  }
 0x223   :  { %2221 = vst.msk [vmem:[%s4493_s1 + $0x688] ss:$16 sm:$0xc] %vm111_vm0, %v1706_v42  }
 0x224   :  { %2212 = vst.msk [vmem:[%s4493_s1 + $0x588] ss:$16 sm:$0x3] %vm111_vm0, %v1680_v43  }
 0x225   :  { %2213 = vst.msk [vmem:[%s4493_s1 + $0x588] ss:$16 sm:$0xc] %vm111_vm0, %v1680_v43  }
 0x226   :  { %2214 = vst.msk [vmem:[%s4493_s1 + $0x588] ss:$16 sm:$0x30] %vm111_vm0, %v1680_v43  }
 0x227   :  { %2215 = vst.msk [vmem:[%s4493_s1 + $0x588] ss:$16 sm:$0xc0] %vm111_vm0, %v1680_v43  }
 0x228   :  { %112 = vst.msk [vmem:[%s4493_s1] ss:$16 sm:$0x3] %vm111_vm0, %v110_v40  }
 0x229   :  { %113 = vst.msk [vmem:[%s4493_s1] ss:$16 sm:$0xc] %vm111_vm0, %v110_v40  }
 0x22a   :  { %1738 = vst.msk [vmem:[%s4493_s1 + $0x40] ss:$16 sm:$0x3] %vm111_vm0, %v115_v44  }
 0x22b   :  { %1739 = vst.msk [vmem:[%s4493_s1 + $0x40] ss:$16 sm:$0xc] %vm111_vm0, %v115_v44  }
 0x22c   :  { %1740 = vst.msk [vmem:[%s4493_s1 + $0x80] ss:$16 sm:$0x3] %vm111_vm0, %v122_v45  }
 0x22d   :  { %1741 = vst.msk [vmem:[%s4493_s1 + $0x80] ss:$16 sm:$0xc] %vm111_vm0, %v122_v45  }
 0x22e   :  { %1742 = vst.msk [vmem:[%s4493_s1 + $0xc0] ss:$16 sm:$0x3] %vm111_vm0, %v129_v46  }
 0x22f   :  { %1743 = vst.msk [vmem:[%s4493_s1 + $0xc0] ss:$16 sm:$0xc] %vm111_vm0, %v129_v46  }
 0x230   :  { %1744 = vst.msk [vmem:[%s4493_s1 + $0x100] ss:$16 sm:$0x3] %vm111_vm0, %v136_v34  }
 0x231   :  { %1745 = vst.msk [vmem:[%s4493_s1 + $0x100] ss:$16 sm:$0xc] %vm111_vm0, %v136_v34  }
 0x232   :  { %1746 = vst.msk [vmem:[%s4493_s1 + $0x140] ss:$16 sm:$0x3] %vm111_vm0, %v143_v47  }
 0x233   :  { %1747 = vst.msk [vmem:[%s4493_s1 + $0x140] ss:$16 sm:$0xc] %vm111_vm0, %v143_v47  }
 0x234   :  { %1748 = vst.msk [vmem:[%s4493_s1 + $0x180] ss:$16 sm:$0x3] %vm111_vm0, %v150_v48  }
 0x235   :  { %1749 = vst.msk [vmem:[%s4493_s1 + $0x180] ss:$16 sm:$0xc] %vm111_vm0, %v150_v48  }
 0x236   :  { %1750 = vst.msk [vmem:[%s4493_s1 + $0x1c0] ss:$16 sm:$0x3] %vm111_vm0, %v157_v37  }
 0x237   :  { %1751 = vst.msk [vmem:[%s4493_s1 + $0x1c0] ss:$16 sm:$0xc] %vm111_vm0, %v157_v37  }
 0x238   :  { %1752 = vst.msk [vmem:[%s4493_s1 + $0x200] ss:$16 sm:$0x3] %vm111_vm0, %v164_v49  }
 0x239   :  { %1753 = vst.msk [vmem:[%s4493_s1 + $0x200] ss:$16 sm:$0xc] %vm111_vm0, %v164_v49  }
 0x23a   :  { %1754 = vst.msk [vmem:[%s4493_s1 + $0x240] ss:$16 sm:$0x3] %vm111_vm0, %v171_v50  }
 0x23b   :  { %1755 = vst.msk [vmem:[%s4493_s1 + $0x240] ss:$16 sm:$0xc] %vm111_vm0, %v171_v50  }
 0x23c   :  { %1756 = vst.msk [vmem:[%s4493_s1 + $0x280] ss:$16 sm:$0x3] %vm111_vm0, %v178_v51  }
 0x23d   :  { %1757 = vst.msk [vmem:[%s4493_s1 + $0x280] ss:$16 sm:$0xc] %vm111_vm0, %v178_v51  }
 0x23e   :  { %1758 = vst.msk [vmem:[%s4493_s1 + $0x2c0] ss:$16 sm:$0x3] %vm111_vm0, %v185_v52  }
 0x23f   :  { %1759 = vst.msk [vmem:[%s4493_s1 + $0x2c0] ss:$16 sm:$0xc] %vm111_vm0, %v185_v52  }
 0x240   :  { %1760 = vst.msk [vmem:[%s4493_s1 + $0x300] ss:$16 sm:$0x3] %vm111_vm0, %v192_v53  }
 0x241   :  { %1761 = vst.msk [vmem:[%s4493_s1 + $0x300] ss:$16 sm:$0xc] %vm111_vm0, %v192_v53  }
 0x242   :  { %1762 = vst.msk [vmem:[%s4493_s1 + $0x340] ss:$16 sm:$0x3] %vm111_vm0, %v199_v54  }
 0x243   :  { %1763 = vst.msk [vmem:[%s4493_s1 + $0x340] ss:$16 sm:$0xc] %vm111_vm0, %v199_v54  }
 0x244   :  { %1764 = vst.msk [vmem:[%s4493_s1 + $0x380] ss:$16 sm:$0x3] %vm111_vm0, %v206_v55  }
 0x245   :  { %1765 = vst.msk [vmem:[%s4493_s1 + $0x380] ss:$16 sm:$0xc] %vm111_vm0, %v206_v55  }
 0x246   :  { %1766 = vst.msk [vmem:[%s4493_s1 + $0x3c0] ss:$16 sm:$0x3] %vm111_vm0, %v213_v56  }
 0x247   :  { %1767 = vst.msk [vmem:[%s4493_s1 + $0x3c0] ss:$16 sm:$0xc] %vm111_vm0, %v213_v56  }
 0x248   :  { %1768 = vst.msk [vmem:[%s4493_s1 + $0x400] ss:$16 sm:$0x3] %vm111_vm0, %v220_v57  }
 0x249   :  { %1769 = vst.msk [vmem:[%s4493_s1 + $0x400] ss:$16 sm:$0xc] %vm111_vm0, %v220_v57  }
 0x24a   :  { %1770 = vst.msk [vmem:[%s4493_s1 + $0x440] ss:$16 sm:$0x3] %vm111_vm0, %v227_v58  }
 0x24b   :  { %1771 = vst.msk [vmem:[%s4493_s1 + $0x440] ss:$16 sm:$0xc] %vm111_vm0, %v227_v58  }
 0x24c   :  { %1772 = vst.msk [vmem:[%s4493_s1 + $0x480] ss:$16 sm:$0x3] %vm111_vm0, %v234_v59  }
 0x24d   :  { %1773 = vst.msk [vmem:[%s4493_s1 + $0x480] ss:$16 sm:$0xc] %vm111_vm0, %v234_v59  }
 0x24e   :  { %1774 = vst.msk [vmem:[%s4493_s1 + $0x4c0] ss:$16 sm:$0x3] %vm111_vm0, %v241_v60  }
 0x24f   :  { %1775 = vst.msk [vmem:[%s4493_s1 + $0x4c0] ss:$16 sm:$0xc] %vm111_vm0, %v241_v60  }
 0x250   :  { %1776 = vst.msk [vmem:[%s4493_s1 + $0x500] ss:$16 sm:$0x3] %vm111_vm0, %v248_v61  }
 0x251   :  { %1777 = vst.msk [vmem:[%s4493_s1 + $0x500] ss:$16 sm:$0xc] %vm111_vm0, %v248_v61  }
 0x252   :  { %1778 = vst.msk [vmem:[%s4493_s1 + $0x540] ss:$16 sm:$0x3] %vm111_vm0, %v255_v62  }
 0x253   :  { %1779 = vst.msk [vmem:[%s4493_s1 + $0x540] ss:$16 sm:$0xc] %vm111_vm0, %v255_v62  }
 0x254   :  { %1780 = vst.msk [vmem:[%s4493_s1 + $0x580] ss:$16 sm:$0x3] %vm111_vm0, %v262_v63  }
 0x255   :  { %1781 = vst.msk [vmem:[%s4493_s1 + $0x580] ss:$16 sm:$0xc] %vm111_vm0, %v262_v63  }
 0x256   :  { %1782 = vst.msk [vmem:[%s4493_s1 + $0x5c0] ss:$16 sm:$0x3] %vm111_vm0, %v269_v0  }
 0x257   :  { %1783 = vst.msk [vmem:[%s4493_s1 + $0x5c0] ss:$16 sm:$0xc] %vm111_vm0, %v269_v0  }
 0x258   :  { %1784 = vst.msk [vmem:[%s4493_s1 + $0x600] ss:$16 sm:$0x3] %vm111_vm0, %v276_v1  }
 0x259   :  { %1785 = vst.msk [vmem:[%s4493_s1 + $0x600] ss:$16 sm:$0xc] %vm111_vm0, %v276_v1  }
 0x25a   :  { %1786 = vst.msk [vmem:[%s4493_s1 + $0x640] ss:$16 sm:$0x3] %vm111_vm0, %v283_v2  }
 0x25b   :  { %1787 = vst.msk [vmem:[%s4493_s1 + $0x640] ss:$16 sm:$0xc] %vm111_vm0, %v283_v2  }
 0x25c   :  { %1788 = vst.msk [vmem:[%s4493_s1 + $0x680] ss:$16 sm:$0x3] %vm111_vm0, %v290_v3  }
 0x25d   :  { %1789 = vst.msk [vmem:[%s4493_s1 + $0x680] ss:$16 sm:$0xc] %vm111_vm0, %v290_v3  }

// kernel: batch_norm_conv_net.3
= control target key start
LH: loop header
LB: loop body
LE: loop exit
PB: predicated region body
PF: predicated region fallthrough
CT: control target
= control target key end

     0   :  { %11 = vsyncpa [#allocation3], 0  ;;  %s624_s0 = inlined_call_operand.vmem [shape: f32[5,128], index: 0, kind: input, shape index: {}]   ;;  %s625_s1 = inlined_call_operand.vmem [shape: f32[5,128], index: 1, kind: input, shape index: {}]   ;;  %s626_s2 = inlined_call_operand.vmem [shape: f32[5], index: 2, kind: input, shape index: {}]   ;;  %s627_s3 = inlined_call_operand.vmem [shape: f32[5], index: 3, kind: input, shape index: {}]   ;;  %s628_s4 = inlined_call_operand.vmem [shape: f32[5], index: 4, kind: input, shape index: {}]   ;;  %s629_s5 = inlined_call_operand.vmem [shape: f32[5], index: 5, kind: input, shape index: {}]   ;;  %s630_s6 = inlined_call_operand.vmem [shape: f32[2,128], index: 6, kind: output, shape index: {}]  }
   0x1   :  { %12 = vsyncpa [#allocation5], 0  ;;  %s32_s23 = sshll.u32 %s627_s3, 4  ;;  %s33_s23 = int_to_ptr.vmem [resolvable:$true] %s32_s23 }
   0x2   :  { %13 = vsyncpa [#allocation8], 0  ;;  %s23_s26 = sshll.u32 %s626_s2, 4  ;;  %s369_s27 = smov [#allocation4]   ;;  %s24_s26 = int_to_ptr.vmem [resolvable:$true] %s23_s26 }
   0x3   :  { %35 = dma.vmem_to_smem %s33_s23, 16, %s369_s27, [#allocation5]  }
   0x4   :  { %s370_s28 = smov [#allocation2]   ;;  %s41_s7 = sshll.u32 %s628_s4, 4  ;;  %s42_s7 = int_to_ptr.vmem [resolvable:$true] %s41_s7 }
   0x5   :  { %26 = dma.vmem_to_smem %s24_s26, 16, %s370_s28, [#allocation3]  }
   0x6   :  { %s50_s3 = sshll.u32 %s629_s5, 4  ;;  %s371_s10 = smov [#allocation6]   ;;  %s51_s3 = int_to_ptr.vmem [resolvable:$true] %s50_s3 }
   0x7   :  { %44 = dma.vmem_to_smem %s42_s7, 16, %s371_s10, [#allocation5]  }
   0x8   :  { %s372_s11 = smov [#allocation7]  }
   0x9   :  { %53 = dma.vmem_to_smem %s51_s3, 16, %s372_s11, [#allocation8]  }
   0xa   :  { %363 = dma.done.wait [#allocation3], 16  }
   0xb   :  { %364 = vsyncadd [#allocation3], 4294967280 }
   0xc   :  { %365 = dma.done.wait [#allocation5], 32  }
   0xd   :  { %366 = vsyncadd [#allocation5], 4294967264 }
   0xe   :  { %367 = dma.done.wait [#allocation8], 16  }
   0xf   :  { %368 = vsyncadd [#allocation8], 4294967280 }
  0x10   :  { %70 = sfence }
  0x11   :  { %vm73_vm0 = vcmask 1040384   ;;  %v423_v0 = vld [vmem:[%s624_s0 + $0x2] sm:$0x1]  ;;  %v428_v1 = vld [vmem:[%s624_s0] sm:$0x1]  ;;  %s495_s29 = sld [smem:[#allocation2 + $0x2]] }
  0x12   :  { %v152_v2 = vsel %vm73_vm0, %v423_v0, 0.0  ;;  %v74_v3 = vsel %vm73_vm0, %v428_v1, 0.0  ;;  %v72_v4 = vld [vmem:[%s625_s1] sm:$0x1]  ;;  %v151_v6 = vld [vmem:[%s625_s1 + $0x2] sm:$0x1] }
  0x13   :  { %153 = vadd.xlane.f32.xlu2 %v152_v2  ;;  %75 = vadd.xlane.f32.xlu0 %v74_v3  ;;  %v78_v5 = vsel %vm73_vm0, %v72_v4, 0.0  ;;  %v444_v7 = vld [vmem:[%s624_s0 + $0x1] sm:$0x1]  ;;  %v156_v9 = vsel %vm73_vm0, %v151_v6, 0.0  ;;  %v456_v12 = vld [vmem:[%s624_s0 + $0x3] sm:$0x1] }
  0x14   :  { %79 = vadd.xlane.f32.xlu1 %v78_v5  ;;  %v111_v8 = vld [vmem:[%s625_s1 + $0x1] sm:$0x1]  ;;  %v112_v10 = vsel %vm73_vm0, %v444_v7, 0.0  ;;  %v461_v13 = vld [vmem:[%s624_s0 + $0x4] sm:$0x1]  ;;  %v192_v15 = vsel %vm73_vm0, %v456_v12, 0.0 }
  0x15   :  { %v116_v11 = vsel %vm73_vm0, %v111_v8, 0.0  ;;  %v191_v14 = vld [vmem:[%s625_s1 + $0x3] sm:$0x1]  ;;  %v232_v16 = vsel %vm73_vm0, %v461_v13, 0.0  ;;  %v231_v18 = vld [vmem:[%s625_s1 + $0x4] sm:$0x1] }
  0x16   :  { %v196_v17 = vsel %vm73_vm0, %v191_v14, 0.0  ;;  %v236_v19 = vsel %vm73_vm0, %v231_v18, 0.0  ;;  %s486_s0 = sld [smem:[#allocation2]] }
  0x17   :  { %s491_s1 = sld [smem:[#allocation6]] }
  0x18   :  { %s501_s30 = sld [smem:[#allocation6 + $0x2]] }
  0x19   :  { %s507_s7 = sld [smem:[#allocation4]] }
  0x1a   :  { %s509_s8 = sld [smem:[#allocation7]] }
  0x1b   :  { %157 = vadd.xlane.f32.xlu2 %v156_v9  ;;  %113 = vadd.xlane.f32.xlu0 %v112_v10  ;;  %s513_s9 = sld [smem:[#allocation4 + $0x1]] }
  0x1c   :  { %117 = vadd.xlane.f32.xlu1 %v116_v11  ;;  %s517_s3 = sld [smem:[#allocation7 + $0x1]] }
  0x1d   :  { %s519_s10 = sld [smem:[#allocation2 + $0x1]]  ;;  %v102_v18 = vstv %s491_s1 }
  0x1e   :  { %s526_s11 = sld [smem:[#allocation6 + $0x1]] }
  0x1f   :  { %s530_s2 = sld [smem:[#allocation4 + $0x2]] }
  0x20   :  { %s532_s4 = sld [smem:[#allocation7 + $0x2]] }
  0x21   :  { %s534_s12 = sld [smem:[#allocation2 + $0x3]] }
  0x22   :  { %s536_s5 = sld [smem:[#allocation6 + $0x3]] }
  0x23   :  { %193 = vadd.xlane.f32.xlu0 %v192_v15  ;;  %233 = vadd.xlane.f32.xlu2 %v232_v16  ;;  %s147_s13 = sadd.f32 %s513_s9, %s507_s7 }
  0x24   :  { %197 = vadd.xlane.f32.xlu1 %v196_v17  ;;  %s149_s14 = sadd.f32 %s517_s3, %s509_s8 }
  0x25   :  { %s550_s15 = sld [smem:[#allocation4 + $0x3]] }
  0x26   :  { %s556_s16 = sld [smem:[#allocation7 + $0x3]] }
  0x27   :  { %s564_s17 = sadd.f32 %s530_s2, %s147_s13 }
  0x28   :  { %s570_s18 = sadd.f32 %s532_s4, %s149_s14 }
  0x29   :  { %s575_s19 = sld [smem:[#allocation4 + $0x4]] }
  0x2a   :  { %s580_s20 = sld [smem:[#allocation7 + $0x4]] }
  0x2b   :  { %237 = vadd.xlane.f32.xlu0 %v236_v19  ;;  %v176_v19 = vstv %s495_s29  ;;  %s583_s21 = sld [smem:[#allocation2 + $0x4]] }
  0x2c   :  { %s586_s22 = sld [smem:[#allocation6 + $0x4]] }
  0x2d   :  { %s227_s23 = sadd.f32 %s550_s15, %s564_s17 }
  0x2e   :  { %s229_s24 = sadd.f32 %s556_s16, %s570_s18 }
  0x2f   :  { %s607_s25 = sadd.f32 %s575_s19, %s227_s23 }
  0x30   :  { %s611_s26 = sadd.f32 %s580_s20, %s229_s24 }
  0x31   :  { %s270_s27 = smul.f32 81.0, %s607_s25 }
  0x32   :  { %s274_s28 = smul.f32 81.0, %s611_s26 }
  0x86   :  { %v154_v20 = vpop.xlane.xlu2 %153  ;;  %v76_v21 = vpop.xlane.xlu0 %75 }
  0x87   :  { %v77_v22 = vmul.f32 0.0030864198, %v76_v21  ;;  %v80_v23 = vpop.xlane.xlu1 %79  ;;  %v475_v25 = vmul.f32 0.0030864198, %v154_v20  ;;  %v136_v20 = vstv %s519_s10 }
  0x88   :  { %v81_v24 = vmul.f32 0.0030864198, %v80_v23 }
  0x89   :  { %v82_v26 = vmul.f32 %v77_v22, %v77_v22  ;;  %v160_v28 = vmul.f32 %v475_v25, %v475_v25  ;;  %v95_v2 = vmul.f32 81.0, %v77_v22  ;;  %v140_v22 = vstv %s526_s11 }
  0x8b   :  { %v83_v27 = vsub.f32 %v81_v24, %v82_v26  ;;  %v96_v11 = vsub.f32 %v428_v1, %v95_v2  ;;  %v98_v1 = vstv %s486_s0  ;;  %v173_v26 = vmul.f32 81.0, %v475_v25 }
  0x8d   :  { %v479_v29 = vadd.f32 1e-05, %v83_v27  ;;  %v104_v27 = vsub.f32 0.0, %v96_v11 }
  0x8e   :  { %v158_v30 = vpop.xlane.xlu2 %157  ;;  %v114_v31 = vpop.xlane.xlu0 %113 }
  0x8f   :  { %305 = vrsqrt.f32 %v479_v29  ;;  %v159_v32 = vmul.f32 0.0030864198, %v158_v30  ;;  %v115_v33 = vmul.f32 0.0030864198, %v114_v31  ;;  %v118_v34 = vpop.xlane.xlu1 %117  ;;  %vm91_vm3 = vweird.f32 %v479_v29 }
  0x90   :  { %v119_v35 = vmul.f32 0.0030864198, %v118_v34 }
  0x91   :  { %v161_v36 = vsub.f32 %v159_v32, %v160_v28  ;;  %v120_v37 = vmul.f32 %v115_v33, %v115_v33  ;;  %v133_v14 = vmul.f32 81.0, %v115_v33  ;;  %v180_v28 = vstv %s501_s30 }
  0x93   :  { %v482_v38 = vadd.f32 1e-05, %v161_v36  ;;  %v121_v39 = vsub.f32 %v119_v35, %v120_v37 }
  0x95   :  { %v484_v40 = vpop.eup %305  ;;  %307 = vrsqrt.f32 %v482_v38  ;;  %v489_v41 = vadd.f32 1e-05, %v121_v39  ;;  %vm169_vm7 = vweird.f32 %v482_v38 }
  0x96   :  { %v86_v42 = vmul.f32 %v484_v40, %v479_v29  ;;  %v194_v43 = vpop.xlane.xlu0 %193  ;;  %v234_v44 = vpop.xlane.xlu2 %233  ;;  %vm92_vm1 = vweird.f32 %v484_v40  ;;  %v134_v29 = vsub.f32 %v444_v7, %v133_v14 }
  0x97   :  { %309 = vrsqrt.f32 %v489_v41  ;;  %v498_v45 = vmul.f32 0.0030864198, %v194_v43  ;;  %v198_v46 = vpop.xlane.xlu1 %197  ;;  %v505_v50 = vmul.f32 0.0030864198, %v234_v44  ;;  %vm93_vm4 = vmor %vm91_vm3, %vm92_vm1  ;;  %vm129_vm5 = vweird.f32 %v489_v41 }
  0x98   :  { %v87_v47 = vmul.f32 %v484_v40, %v86_v42  ;;  %v199_v48 = vmul.f32 0.0030864198, %v198_v46  ;;  %v142_v39 = vsub.f32 0.0, %v134_v29  ;;  %v174_v46 = vsub.f32 %v423_v0, %v173_v26 }
  0x99   :  { %v200_v49 = vmul.f32 %v498_v45, %v498_v45  ;;  %v240_v57 = vmul.f32 %v505_v50, %v505_v50  ;;  %v213_v7 = vmul.f32 81.0, %v498_v45  ;;  %v253_v42 = vmul.f32 81.0, %v505_v50 }
  0x9a   :  { %v88_v53 = vmul.f32 0.5, %v87_v47 }
  0x9b   :  { %v511_v51 = vpop.eup %307  ;;  %v201_v52 = vsub.f32 %v199_v48, %v200_v49  ;;  %v214_v48 = vsub.f32 %v456_v12, %v213_v7  ;;  %v254_v0 = vsub.f32 %v461_v13, %v253_v42 }
  0x9c   :  { %v164_v54 = vmul.f32 %v511_v51, %v482_v38  ;;  %v89_v62 = vsub.f32 1.5, %v88_v53  ;;  %vm170_vm8 = vweird.f32 %v511_v51 }
  0x9d   :  { %v310_v55 = vpop.eup %309  ;;  %v521_v56 = vadd.f32 1e-05, %v201_v52  ;;  %vm171_vm10 = vmor %vm169_vm7, %vm170_vm8  ;;  %v262_v13 = vsub.f32 0.0, %v254_v0 }
  0x9e   :  { %v165_v58 = vmul.f32 %v511_v51, %v164_v54  ;;  %v124_v59 = vmul.f32 %v310_v55, %v489_v41  ;;  %v238_v60 = vpop.xlane.xlu0 %237  ;;  %v90_v8 = vmul.f32 %v484_v40, %v89_v62  ;;  %vm130_vm2 = vweird.f32 %v310_v55 }
  0x9f   :  { %311 = vrsqrt.f32 %v521_v56  ;;  %v239_v61 = vmul.f32 0.0030864198, %v238_v60  ;;  %vm131_vm6 = vmor %vm129_vm5, %vm130_vm2  ;;  %v220_v41 = vstv %s536_s5  ;;  %vm209_vm11 = vweird.f32 %v521_v56 }
  0xa0   :  { %v125_v63 = vmul.f32 %v310_v55, %v124_v59  ;;  %v166_v4 = vmul.f32 0.5, %v165_v58  ;;  %v94_v21 = vsel %vm93_vm4, %v484_v40, %v90_v8  ;;  %v216_v40 = vstv %s534_s12 }
  0xa1   :  { %v241_v3 = vsub.f32 %v239_v61, %v240_v57  ;;  %v99_v25 = vmul.f32 %v98_v1, %v94_v21  ;;  %v103_v35 = vmul.f32 %v102_v18, %v94_v21  ;;  %v182_v57 = vsub.f32 0.0, %v174_v46 }
  0xa2   :  { %v126_v5 = vmul.f32 0.5, %v125_v63  ;;  %v167_v15 = vsub.f32 1.5, %v166_v4  ;;  %v222_v60 = vsub.f32 0.0, %v214_v48  ;;  %v256_v61 = vstv %s583_s21 }
  0xa3   :  { %v541_v6 = vadd.f32 1e-05, %v241_v3  ;;  %v100_v49 = vmul.f32 %v99_v25, %v96_v11  ;;  %v105_v50 = vmul.f32 %v104_v27, %v103_v35  ;;  %v260_v62 = vstv %s586_s22 }
  0xa4   :  { %v127_v9 = vsub.f32 1.5, %v126_v5  ;;  %v168_v30 = vmul.f32 %v511_v51, %v167_v15  ;;  %v271_v18 = vstv %s270_s27 }
  0xa5   :  { %v546_v10 = vpop.eup %311  ;;  %313 = vrsqrt.f32 %v541_v6  ;;  %vm249_vm14 = vweird.f32 %v541_v6 }
  0xa6   :  { %v128_v16 = vmul.f32 %v310_v55, %v127_v9  ;;  %v204_v17 = vmul.f32 %v546_v10, %v521_v56  ;;  %vm210_vm9 = vweird.f32 %v546_v10  ;;  %v172_v43 = vsel %vm171_vm10, %v511_v51, %v168_v30 }
  0xa7   :  { %vm211_vm12 = vmor %vm209_vm11, %vm210_vm9  ;;  %v177_v53 = vmul.f32 %v176_v19, %v172_v43  ;;  %v181_v54 = vmul.f32 %v180_v28, %v172_v43  ;;  %v275_v19 = vstv %s274_s28 }
  0xa8   :  { %v132_v23 = vsel %vm131_vm6, %v310_v55, %v128_v16  ;;  %v205_v24 = vmul.f32 %v546_v10, %v204_v17 }
  0xa9   :  { %v137_v33 = vmul.f32 %v136_v20, %v132_v23  ;;  %v141_v34 = vmul.f32 %v140_v22, %v132_v23  ;;  %v178_v2 = vmul.f32 %v177_v53, %v174_v46  ;;  %v183_v3 = vmul.f32 %v182_v57, %v181_v54 }
  0xaa   :  { %v206_v31 = vmul.f32 0.5, %v205_v24 }
  0xab   :  { %v314_v32 = vpop.eup %313  ;;  %v138_v38 = vmul.f32 %v137_v33, %v134_v29  ;;  %v143_v47 = vmul.f32 %v142_v39, %v141_v34 }
  0xac   :  { %v207_v36 = vsub.f32 1.5, %v206_v31  ;;  %v244_v37 = vmul.f32 %v314_v32, %v541_v6  ;;  %vm250_vm13 = vweird.f32 %v314_v32 }
  0xad   :  { %v144_v58 = vadd.f32 %v138_v38, %v100_v49  ;;  %v145_v59 = vadd.f32 %v143_v47, %v105_v50  ;;  %vm251_vm15 = vmor %vm249_vm14, %vm250_vm13 }
  0xae   :  { %v208_v44 = vmul.f32 %v546_v10, %v207_v36  ;;  %v245_v45 = vmul.f32 %v314_v32, %v244_v37 }
  0xaf   :  { %v184_v9 = vadd.f32 %v178_v2, %v144_v58 }
  0xb0   :  { %v212_v51 = vsel %vm211_vm12, %v546_v10, %v208_v44  ;;  %v246_v52 = vmul.f32 0.5, %v245_v45  ;;  %v185_v10 = vadd.f32 %v183_v3, %v145_v59 }
  0xb1   :  { %v217_v55 = vmul.f32 %v216_v40, %v212_v51  ;;  %v221_v56 = vmul.f32 %v220_v41, %v212_v51 }
  0xb2   :  { %v247_v12 = vsub.f32 1.5, %v246_v52 }
  0xb3   :  { %v218_v4 = vmul.f32 %v217_v55, %v214_v48  ;;  %v223_v5 = vmul.f32 %v222_v60, %v221_v56 }
  0xb4   :  { %v248_v63 = vmul.f32 %v314_v32, %v247_v12 }
  0xb5   :  { %v224_v15 = vadd.f32 %v218_v4, %v184_v9  ;;  %v225_v16 = vadd.f32 %v223_v5, %v185_v10 }
  0xb6   :  { %v252_v8 = vsel %vm251_vm15, %v314_v32, %v248_v63 }
  0xb7   :  { %v257_v11 = vmul.f32 %v256_v61, %v252_v8  ;;  %v261_v14 = vmul.f32 %v260_v62, %v252_v8 }
  0xb9   :  { %v258_v17 = vmul.f32 %v257_v11, %v254_v0  ;;  %v263_v1 = vmul.f32 %v262_v13, %v261_v14 }
  0xbb   :  { %v264_v6 = vadd.f32 %v258_v17, %v224_v15  ;;  %v265_v20 = vadd.f32 %v263_v1, %v225_v16 }
  0xbd   :  { %v272_v21 = vadd.f32 %v271_v18, %v264_v6  ;;  %v276_v22 = vadd.f32 %v275_v19, %v265_v20 }
  0xbf   :  { %273 = vst [vmem:[%s630_s6] sm:$0x1] %v272_v21 }
  0xc0   :  { %277 = vst [vmem:[%s630_s6 + $0x1] sm:$0x1] %v276_v22 }
  0xc1   :  { %282 = vsyncpa [#allocation3], 1 }
  0xc2   :  { %283 = vsyncpa [#allocation5], 1 }
  0xc3   :  { %284 = vsyncpa [#allocation8], 1 }

// kernel: batch_norm_conv_net.2
= control target key start
LH: loop header
LB: loop body
LE: loop exit
PB: predicated region body
PF: predicated region fallthrough
CT: control target
= control target key end

     0   :  { %9 = vsyncpa [#allocation3], 0  ;;  %s2089_s15 = smov [#allocation2]   ;;  %s4123_s0 = inlined_call_operand.vmem [shape: f32[9,81,128], index: 0, kind: input, shape index: {}]   ;;  %s4124_s1 = inlined_call_operand.vmem [shape: f32[5,9], index: 1, kind: input, shape index: {}]   ;;  %s4125_s2 = inlined_call_operand.vmem [shape: f32[5,128], index: 2, kind: output, shape index: {0}]   ;;  %s4126_s3 = inlined_call_operand.vmem [shape: f32[5,128], index: 3, kind: output, shape index: {1}]  }
   0x1   :  { %s17_s14 = sshll.u32 %s4124_s1, 4  ;;  %s18_s14 = int_to_ptr.vmem [resolvable:$true] %s17_s14 }
   0x2   :  { %20 = dma.vmem_to_smem %s18_s14, 128, %s2089_s15, [#allocation3]  }
   0x3   :  { %2087 = dma.done.wait [#allocation3], 128  }
   0x4   :  { %2088 = vsyncadd [#allocation3], 4294967168 }
   0x5   :  { %25 = sfence }
   0x6   :  { %s26_s16 = sld [smem:[#allocation2]]  ;;  %v2128_v0 = vld [vmem:[%s4123_s0] sm:$0xff]  ;;  %v2133_v1 = vld [vmem:[%s4123_s0 + $0x58] sm:$0xff]  ;;  %v2144_v4 = vld [vmem:[%s4123_s0 + $0xb0] sm:$0xff] }
   0x7   :  { %s1942_s17 = sld [smem:[#allocation2 + $0x1]]  ;;  %v2149_v5 = vld [vmem:[%s4123_s0 + $0x108] sm:$0xff]  ;;  %v2162_v9 = vld [vmem:[%s4123_s0 + $0x160] sm:$0xff]  ;;  %v2167_v10 = vld [vmem:[%s4123_s0 + $0x1b8] sm:$0xff] }
   0x8   :  { %s1943_s18 = sld [smem:[#allocation2 + $0x2]]  ;;  %v2188_v17 = vld [vmem:[%s4123_s0 + $0x210] sm:$0xff]  ;;  %v2216_v26 = vld [vmem:[%s4123_s0 + $0x268] sm:$0xff]  ;;  %v2239_v34 = vld [vmem:[%s4123_s0 + $0x2c0] sm:$0xff] }
   0x9   :  { %s1944_s19 = sld [smem:[#allocation2 + $0x3]]  ;;  %v2249_v39 = vld [vmem:[%s4123_s0 + $0x8] sm:$0xff]  ;;  %v2268_v46 = vld [vmem:[%s4123_s0 + $0x60] sm:$0xff] }
   0xa   :  { %s1945_s20 = sld [smem:[#allocation2 + $0x4]] }
   0xb   :  { %s1946_s21 = sld [smem:[#allocation2 + $0x5]] }
   0xc   :  { %s2113_s22 = sld [smem:[#allocation2 + $0x6]]  ;;  %v2135_v2 = vstv %s26_s16 }
   0xd   :  { %s2115_s23 = sld [smem:[#allocation2 + $0x7]]  ;;  %4259 = vst [vmem:[#allocation5_spill] sm:$0xff] %v2135_v2  ;;  %v2137_v3 = vstv %s1942_s17  ;;  %v89_v6 = vmul.f32 %v2135_v2, %v2128_v0  ;;  %v292_v48 = vmul.f32 %v2249_v39, %v2135_v2 }
   0xe   :  { %s2117_s24 = sld [smem:[#allocation2 + $0x8]]  ;;  %4260 = vst [vmem:[#allocation6_spill] sm:$0xff] %v2137_v3  ;;  %v91_v7 = vmul.f32 %v2133_v1, %v2137_v3  ;;  %v2155_v8 = vstv %s1943_s18  ;;  %v293_v56 = vmul.f32 %v2268_v46, %v2137_v3 }
   0xf   :  { %s2119_s25 = sld [smem:[#allocation2 + $0x80]]  ;;  %4261 = vst [vmem:[#allocation7_spill] sm:$0xff] %v2155_v8  ;;  %v94_v11 = vmul.f32 %v2144_v4, %v2155_v8  ;;  %v2171_v12 = vstv %s1944_s19 }
  0x10   :  { %s2121_s1 = sld [smem:[#allocation2 + $0x81]]  ;;  %4262 = vst [vmem:[#allocation8_spill] sm:$0xff] %v2171_v12  ;;  %v92_v13 = vadd.f32 %v91_v7, %v89_v6  ;;  %v97_v14 = vmul.f32 %v2149_v5, %v2171_v12  ;;  %v2177_v15 = vstv %s1945_s20  ;;  %v2315_v7 = vld [vmem:[%s4123_s0 + $0xb8] sm:$0xff] }
  0x11   :  { %s2123_s26 = sld [smem:[#allocation2 + $0x82]]  ;;  %4263 = vst [vmem:[#allocation9_spill] sm:$0xff] %v2177_v15  ;;  %v2179_v16 = vstv %s1946_s21  ;;  %v100_v19 = vmul.f32 %v2162_v9, %v2177_v15 }
  0x12   :  { %s2139_s4 = sld [smem:[#allocation2 + $0x83]]  ;;  %4264 = vst [vmem:[#allocation10_spill] sm:$0xff] %v2179_v16  ;;  %v95_v18 = vadd.f32 %v94_v11, %v92_v13  ;;  %v103_v20 = vmul.f32 %v2167_v10, %v2179_v16  ;;  %v2195_v21 = vstv %s2113_s22 }
  0x13   :  { %s2157_s9 = sld [smem:[#allocation2 + $0x84]]  ;;  %4265 = vst [vmem:[#allocation11_spill] sm:$0xff] %v2195_v21  ;;  %v2200_v22 = vstv %s2115_s23  ;;  %v106_v31 = vmul.f32 %v2188_v17, %v2195_v21 }
  0x14   :  { %s2173_s14 = sld [smem:[#allocation2 + $0x85]]  ;;  %4266 = vst [vmem:[#allocation12_spill] sm:$0xff] %v2200_v22  ;;  %v98_v27 = vadd.f32 %v97_v14, %v95_v18  ;;  %v2242_v36 = vstv %s2117_s24  ;;  %v109_v40 = vmul.f32 %v2216_v26, %v2200_v22 }
  0x15   :  { %s2181_s15 = sld [smem:[#allocation2 + $0x86]]  ;;  %v2203_v23 = vstv %s2119_s25  ;;  %4272 = vst [vmem:[#allocation18_spill] sm:$0xff] %v2242_v36  ;;  %v112_v47 = vmul.f32 %v2239_v34, %v2242_v36 }
  0x16   :  { %s2183_s16 = sld [smem:[#allocation2 + $0x87]]  ;;  %4267 = vst [vmem:[#allocation13_spill] sm:$0xff] %v2203_v23  ;;  %v2206_v24 = vstv %s2121_s1  ;;  %v128_v28 = vmul.f32 %v2203_v23, %v2128_v0  ;;  %v101_v35 = vadd.f32 %v100_v19, %v98_v27  ;;  %v294_v27 = vadd.f32 %v293_v56, %v292_v48 }
  0x17   :  { %s2197_s19 = sld [smem:[#allocation2 + $0x88]]  ;;  %4268 = vst [vmem:[#allocation14_spill] sm:$0xff] %v2206_v24  ;;  %v2209_v25 = vstv %s2123_s26  ;;  %v130_v29 = vmul.f32 %v2133_v1, %v2206_v24 }
  0x18   :  { %4269 = vst [vmem:[#allocation15_spill] sm:$0xff] %v2209_v25  ;;  %s2211_s20 = sld [smem:[#allocation2 + $0x100]]  ;;  %v133_v30 = vmul.f32 %v2144_v4, %v2209_v25  ;;  %v2229_v32 = vstv %s2139_s4  ;;  %v104_v42 = vadd.f32 %v103_v20, %v101_v35 }
  0x19   :  { %s2224_s22 = sld [smem:[#allocation2 + $0x101]]  ;;  %4270 = vst [vmem:[#allocation16_spill] sm:$0xff] %v2229_v32  ;;  %v2232_v33 = vstv %s2157_s9  ;;  %v131_v37 = vadd.f32 %v130_v29, %v128_v28  ;;  %v136_v38 = vmul.f32 %v2149_v5, %v2229_v32 }
  0x1a   :  { %4271 = vst [vmem:[#allocation17_spill] sm:$0xff] %v2232_v33  ;;  %s2234_s23 = sld [smem:[#allocation2 + $0x102]]  ;;  %v2256_v41 = vstv %s2173_s14  ;;  %v139_v44 = vmul.f32 %v2162_v9, %v2232_v33  ;;  %v107_v49 = vadd.f32 %v106_v31, %v104_v42  ;;  %v295_v31 = vmul.f32 %v2315_v7, %v2155_v8 }
  0x1b   :  { %s2251_s29 = sld [smem:[#allocation2 + $0x103]]  ;;  %4273 = vst [vmem:[#allocation19_spill] sm:$0xff] %v2256_v41  ;;  %v134_v43 = vadd.f32 %v133_v30, %v131_v37  ;;  %v2263_v45 = vstv %s2181_s15  ;;  %v142_v51 = vmul.f32 %v2167_v10, %v2256_v41 }
  0x1c   :  { %s2258_s30 = sld [smem:[#allocation2 + $0x104]]  ;;  %4274 = vst [vmem:[#allocation20_spill] sm:$0xff] %v2263_v45  ;;  %v2281_v52 = vstv %s2183_s16  ;;  %v145_v53 = vmul.f32 %v2188_v17, %v2263_v45  ;;  %v110_v57 = vadd.f32 %v109_v40, %v107_v49  ;;  %v2351_v49 = vld [vmem:[%s4123_s0 + $0x110] sm:$0xff] }
  0x1d   :  { %s2270_s5 = sld [smem:[#allocation2 + $0x105]]  ;;  %v137_v50 = vadd.f32 %v136_v38, %v134_v43  ;;  %4275 = vst [vmem:[#allocation21_spill] sm:$0xff] %v2281_v52  ;;  %v148_v61 = vmul.f32 %v2216_v26, %v2281_v52  ;;  %v2304_v62 = vstv %s2197_s19 }
  0x1e   :  { %s2276_s6 = sld [smem:[#allocation2 + $0x106]]  ;;  %v2288_v54 = vstv %s2211_s20  ;;  %4278 = vst [vmem:[#allocation24_spill] sm:$0xff] %v2304_v62  ;;  %v113_v11 = vadd.f32 %v112_v47, %v110_v57  ;;  %v151_v37 = vmul.f32 %v2239_v34, %v2304_v62 }
  0x1f   :  { %s2283_s7 = sld [smem:[#allocation2 + $0x107]]  ;;  %4276 = vst [vmem:[#allocation22_spill] sm:$0xff] %v2288_v54  ;;  %v2291_v55 = vstv %s2224_s22  ;;  %v140_v58 = vadd.f32 %v139_v44, %v137_v50  ;;  %v167_v59 = vmul.f32 %v2288_v54, %v2128_v0 }
  0x20   :  { %4277 = vst [vmem:[#allocation23_spill] sm:$0xff] %v2291_v55  ;;  %s2295_s8 = sld [smem:[#allocation2 + $0x108]]  ;;  %v169_v60 = vmul.f32 %v2133_v1, %v2291_v55  ;;  %v2307_v63 = vstv %s2234_s23  ;;  %v114_v35 = vrot.slane %v113_v11, 4  ;;  %v120_v40 = vmul.f32 %v113_v11, %v113_v11 }
  0x21   :  { %s1968_s9 = sld [smem:[#allocation2 + $0x180]]  ;;  %4279 = vst [vmem:[#allocation25_spill] sm:$0xff] %v2307_v63  ;;  %v2310_v6 = vstv %s2251_s29  ;;  %v143_v13 = vadd.f32 %v142_v51, %v140_v58  ;;  %v172_v18 = vmul.f32 %v2144_v4, %v2307_v63 }
  0x22   :  { %4280 = vst [vmem:[#allocation26_spill] sm:$0xff] %v2310_v6  ;;  %s2317_s12 = sld [smem:[#allocation2 + $0x181]]  ;;  %v170_v14 = vadd.f32 %v169_v60, %v167_v59  ;;  %v175_v19 = vmul.f32 %v2149_v5, %v2310_v6  ;;  %v2324_v20 = vstv %s2258_s30  ;;  %v115_v60 = vadd.f32 %v114_v35, %v113_v11  ;;  %v2390_v35 = vld [vmem:[%s4123_s0 + $0x168] sm:$0xff] }
  0x23   :  { %s1970_s13 = sld [smem:[#allocation2 + $0x182]]  ;;  %4281 = vst [vmem:[#allocation27_spill] sm:$0xff] %v2324_v20  ;;  %v146_v28 = vadd.f32 %v145_v53, %v143_v13  ;;  %v2329_v30 = vstv %s2270_s5  ;;  %v178_v38 = vmul.f32 %v2162_v9, %v2324_v20  ;;  %v296_v53 = vadd.f32 %v295_v31, %v294_v27 }
  0x24   :  { %s2326_s14 = sld [smem:[#allocation2 + $0x183]]  ;;  %v173_v29 = vadd.f32 %v172_v18, %v170_v14  ;;  %4282 = vst [vmem:[#allocation28_spill] sm:$0xff] %v2329_v30  ;;  %v2340_v44 = vstv %s2276_s6  ;;  %v181_v47 = vmul.f32 %v2167_v10, %v2329_v30  ;;  %v297_v14 = vmul.f32 %v2351_v49, %v2171_v12 }
  0x25   :  { %s2333_s15 = sld [smem:[#allocation2 + $0x184]]  ;;  %v149_v42 = vadd.f32 %v148_v61, %v146_v28  ;;  %4283 = vst [vmem:[#allocation29_spill] sm:$0xff] %v2340_v44  ;;  %v2354_v51 = vstv %s2283_s7  ;;  %v184_v56 = vmul.f32 %v2188_v17, %v2340_v44  ;;  %v121_v61 = vrot.slane %v120_v40, 4 }
  0x26   :  { %v176_v43 = vadd.f32 %v175_v19, %v173_v29  ;;  %s2342_s16 = sld [smem:[#allocation2 + $0x185]]  ;;  %4285 = vst [vmem:[#allocation31_spill] sm:$0xff] %v2354_v51  ;;  %v187_v29 = vmul.f32 %v2216_v26, %v2354_v51  ;;  %v2385_v31 = vstv %s2295_s8  ;;  %v298_v12 = vadd.f32 %v297_v14, %v296_v53 }
  0x27   :  { %v2346_v48 = vstv %s1968_s9  ;;  %s2356_s19 = sld [smem:[#allocation2 + $0x186]]  ;;  %v152_v13 = vadd.f32 %v151_v37, %v149_v42  ;;  %4289 = vst [vmem:[#allocation35_spill] sm:$0xff] %v2385_v31  ;;  %v190_v2 = vmul.f32 %v2239_v34, %v2385_v31 }
  0x28   :  { %4284 = vst [vmem:[#allocation30_spill] sm:$0xff] %v2346_v48  ;;  %v179_v50 = vadd.f32 %v178_v38, %v176_v43  ;;  %v206_v57 = vmul.f32 %v2346_v48, %v2128_v0  ;;  %v2363_v58 = vstv %s2317_s12  ;;  %s2367_s20 = sld [smem:[#allocation2 + $0x187]] }
  0x29   :  { %4286 = vst [vmem:[#allocation32_spill] sm:$0xff] %v2363_v58  ;;  %v2365_v59 = vstv %s1970_s13  ;;  %s2371_s21 = sld [smem:[#allocation2 + $0x188]]  ;;  %v208_v19 = vmul.f32 %v2133_v1, %v2363_v58  ;;  %v153_v11 = vrot.slane %v152_v13, 4 }
  0x2a   :  { %4287 = vst [vmem:[#allocation33_spill] sm:$0xff] %v2365_v59  ;;  %v182_v18 = vadd.f32 %v181_v47, %v179_v50  ;;  %v211_v27 = vmul.f32 %v2144_v4, %v2365_v59  ;;  %v2378_v28 = vstv %s2326_s14  ;;  %s2380_s27 = sld [smem:[#allocation2 + $0x200]]  ;;  %v116_v47 = vrot.slane %v115_v60, 2 }
  0x2b   :  { %4288 = vst [vmem:[#allocation34_spill] sm:$0xff] %v2378_v28  ;;  %s2392_s25 = sld [smem:[#allocation2 + $0x201]]  ;;  %v209_v38 = vadd.f32 %v208_v19, %v206_v57  ;;  %v214_v42 = vmul.f32 %v2149_v5, %v2378_v28  ;;  %v2397_v43 = vstv %s2333_s15  ;;  %v122_v50 = vadd.f32 %v121_v61, %v120_v40  ;;  %v2415_v40 = vld [vmem:[%s4123_s0 + $0x1c0] sm:$0xff] }
  0x2c   :  { %v185_v37 = vadd.f32 %v184_v56, %v182_v18  ;;  %4290 = vst [vmem:[#allocation36_spill] sm:$0xff] %v2397_v43  ;;  %s2399_s1 = sld [smem:[#allocation2 + $0x202]]  ;;  %v217_v3 = vmul.f32 %v2162_v9, %v2397_v43  ;;  %v2406_v56 = vstv %s2342_s16  ;;  %v299_v57 = vmul.f32 %v2390_v35, %v2177_v15 }
  0x2d   :  { %s2401_s26 = sld [smem:[#allocation2 + $0x203]]  ;;  %v212_v8 = vadd.f32 %v211_v27, %v209_v38  ;;  %4291 = vst [vmem:[#allocation37_spill] sm:$0xff] %v2406_v56  ;;  %v154_v18 = vadd.f32 %v153_v11, %v152_v13  ;;  %v159_v19 = vmul.f32 %v152_v13, %v152_v13  ;;  %v220_v14 = vmul.f32 %v2167_v10, %v2406_v56 }
  0x2e   :  { %s2417_s30 = sld [smem:[#allocation2 + $0x204]]  ;;  %v188_v53 = vadd.f32 %v187_v29, %v185_v37  ;;  %v2422_v27 = vstv %s2356_s19  ;;  %v117_v13 = vadd.f32 %v116_v47, %v115_v60  ;;  %v123_v11 = vrot.slane %v122_v50, 2 }
  0x2f   :  { %v215_v61 = vadd.f32 %v214_v42, %v212_v8  ;;  %4292 = vst [vmem:[#allocation38_spill] sm:$0xff] %v2422_v27  ;;  %s2424_s24 = sld [smem:[#allocation2 + $0x205]]  ;;  %v2427_v38 = vstv %s2367_s20  ;;  %v223_v43 = vmul.f32 %v2188_v17, %v2422_v27  ;;  %v300_v29 = vadd.f32 %v299_v57, %v298_v12 }
  0x30   :  { %4293 = vst [vmem:[#allocation39_spill] sm:$0xff] %v2427_v38  ;;  %v301_v8 = vmul.f32 %v2415_v40, %v2179_v16  ;;  %s2433_s4 = sld [smem:[#allocation2 + $0x206]]  ;;  %v155_v37 = vrot.slane %v154_v18, 2  ;;  %v160_v42 = vrot.slane %v159_v19, 4  ;;  %v2436_v56 = vstv %s2371_s21 }
  0x31   :  { %v218_v15 = vadd.f32 %v217_v3, %v215_v61  ;;  %4294 = vst [vmem:[#allocation40_spill] sm:$0xff] %v2436_v56  ;;  %v2439_v60 = vstv %s2380_s27  ;;  %v191_v47 = vadd.f32 %v190_v2, %v188_v53  ;;  %v226_v61 = vmul.f32 %v2216_v26, %v2427_v38  ;;  %s2445_s5 = sld [smem:[#allocation2 + $0x207]] }
  0x32   :  { %4295 = vst [vmem:[#allocation41_spill] sm:$0xff] %v2439_v60  ;;  %v245_v12 = vmul.f32 %v2439_v60, %v2128_v0  ;;  %v118_v57 = vrot.slane %v117_v13, 1  ;;  %v124_v16 = vadd.f32 %v123_v11, %v122_v50  ;;  %v2448_v27 = vstv %s2392_s25  ;;  %s2475_s8 = sld [smem:[#allocation2 + $0x208]] }
  0x33   :  { %v221_v3 = vadd.f32 %v220_v14, %v218_v15  ;;  %4296 = vst [vmem:[#allocation42_spill] sm:$0xff] %v2448_v27  ;;  %v2451_v28 = vstv %s2399_s1  ;;  %v229_v2 = vmul.f32 %v2239_v34, %v2436_v56  ;;  %v247_v15 = vmul.f32 %v2133_v1, %v2448_v27 }
  0x34   :  { %4297 = vst [vmem:[#allocation43_spill] sm:$0xff] %v2451_v28  ;;  %v2458_v53 = vstv %s2401_s26  ;;  %v156_v0 = vadd.f32 %v155_v37, %v154_v18  ;;  %v161_v14 = vadd.f32 %v160_v42, %v159_v19  ;;  %v192_v38 = vrot.slane %v191_v47, 4 }
  0x35   :  { %v224_v31 = vadd.f32 %v223_v43, %v221_v3  ;;  %4298 = vst [vmem:[#allocation44_spill] sm:$0xff] %v2458_v53  ;;  %v250_v50 = vmul.f32 %v2144_v4, %v2451_v28  ;;  %v198_v11 = vmul.f32 %v191_v47, %v191_v47  ;;  %v248_v59 = vadd.f32 %v247_v15, %v245_v12  ;;  %v2468_v43 = vld [vmem:[%s4123_s0 + $0x218] sm:$0xff]  ;;  %v2482_v3 = vld [vmem:[%s4123_s0 + $0x270] sm:$0xff] }
  0x36   :  { %v2463_v58 = vstv %s2417_s30  ;;  %v253_v1 = vmul.f32 %v2149_v5, %v2458_v53  ;;  %v2473_v18 = vstv %s2424_s24  ;;  %v302_v19 = vadd.f32 %v301_v8, %v300_v29  ;;  %v2492_v29 = vld [vmem:[%s4123_s0 + $0x2c8] sm:$0xff] }
  0x37   :  { %v227_v60 = vadd.f32 %v226_v61, %v224_v31  ;;  %4299 = vst [vmem:[#allocation45_spill] sm:$0xff] %v2463_v58  ;;  %v2477_v4 = vadd.f32 %v118_v57, %v117_v13  ;;  %v125_v31 = vrot.slane %v124_v16, 1  ;;  %v251_v42 = vadd.f32 %v250_v50, %v248_v59 }
  0x38   :  { %4300 = vst [vmem:[#allocation46_spill] sm:$0xff] %v2473_v18  ;;  %v162_v61 = vrot.slane %v161_v14, 2  ;;  %v256_v5 = vmul.f32 %v2162_v9, %v2463_v58  ;;  %v2487_v12 = vstv %s2433_s4  ;;  %v303_v13 = vmul.f32 %v2468_v43, %v2195_v21 }
  0x39   :  { %4301 = vst [vmem:[#allocation47_spill] sm:$0xff] %v2477_v4  ;;  %v230_v37 = vadd.f32 %v229_v2, %v227_v60  ;;  %v157_v59 = vrot.slane %v156_v0, 1  ;;  %v193_v8 = vadd.f32 %v192_v38, %v191_v47  ;;  %v199_v60 = vrot.slane %v198_v11, 4 }
  0x3a   :  { %4302 = vst [vmem:[#allocation48_spill] sm:$0xff] %v2487_v12  ;;  %v259_v57 = vmul.f32 %v2167_v10, %v2473_v18  ;;  %v254_v2 = vadd.f32 %v253_v1, %v251_v42  ;;  %v2499_v15 = vstv %s2445_s5  ;;  %v304_v9 = vadd.f32 %v303_v13, %v302_v19 }
  0x3b   :  { %4303 = vst [vmem:[#allocation49_spill] sm:$0xff] %v2499_v15  ;;  %v305_v50 = vmul.f32 %v2482_v3, %v2200_v22  ;;  %v231_v4 = vrot.slane %v230_v37, 4  ;;  %v237_v56 = vmul.f32 %v230_v37, %v230_v37  ;;  %v262_v58 = vmul.f32 %v2188_v17, %v2487_v12 }
  0x3c   :  { %v307_v38 = vmul.f32 %v2492_v29, %v2242_v36  ;;  %v257_v47 = vadd.f32 %v256_v5, %v254_v2  ;;  %v324_v10 = vmul.f32 %v2249_v39, %v2203_v23  ;;  %v325_v1 = vmul.f32 %v2268_v46, %v2206_v24 }
  0x3d   :  { %v306_v21 = vadd.f32 %v305_v50, %v304_v9  ;;  %v194_v19 = vrot.slane %v193_v8, 2  ;;  %v200_v42 = vadd.f32 %v199_v60, %v198_v11  ;;  %v265_v13 = vmul.f32 %v2216_v26, %v2499_v15 }
  0x3e   :  { %v327_v17 = vmul.f32 %v2315_v7, %v2209_v25  ;;  %v260_v22 = vadd.f32 %v259_v57, %v257_v47  ;;  %v326_v18 = vadd.f32 %v325_v1, %v324_v10  ;;  %v329_v5 = vmul.f32 %v2351_v49, %v2229_v32 }
  0x3f   :  { %v308_v12 = vadd.f32 %v307_v38, %v306_v21  ;;  %v232_v2 = vadd.f32 %v231_v4, %v230_v37  ;;  %v238_v9 = vrot.slane %v237_v56, 4  ;;  %v2518_v50 = vstv %s2475_s8 }
  0x40   :  { %4304 = vst [vmem:[#allocation50_spill] sm:$0xff] %v2518_v50  ;;  %v331_v36 = vmul.f32 %v2390_v35, %v2232_v33  ;;  %v263_v11 = vadd.f32 %v262_v58, %v260_v22  ;;  %v328_v26 = vadd.f32 %v327_v17, %v326_v18  ;;  %v2522_v23 = vadd.f32 %v125_v31, %v124_v16 }
  0x41   :  { %v309_v60 = vrot.slane %v308_v12, 4  ;;  %v315_v24 = vmul.f32 %v308_v12, %v308_v12  ;;  %v2524_v25 = vadd.f32 %v157_v59, %v156_v0  ;;  %v163_v21 = vadd.f32 %v162_v61, %v161_v14 }
  0x42   :  { %v201_v57 = vrot.slane %v200_v42, 2  ;;  %v266_v38 = vadd.f32 %v265_v13, %v263_v11  ;;  %v268_v4 = vmul.f32 %v2239_v34, %v2518_v50  ;;  %v330_v47 = vadd.f32 %v329_v5, %v328_v26 }
  0x43   :  { %4305 = vst [vmem:[#allocation51_spill] sm:$0xff] %v2524_v25  ;;  %v316_v37 = vrot.slane %v315_v24, 4  ;;  %v195_v10 = vadd.f32 %v194_v19, %v193_v8  ;;  %v333_v1 = vmul.f32 %v2415_v40, %v2256_v41  ;;  %v356_v22 = vmul.f32 %v2249_v39, %v2288_v54  ;;  %v4308_v25 = vld [vmem:[#allocation35_spill] sm:$0xff] }
  0x44   :  { %v357_v16 = vmul.f32 %v2268_v46, %v2291_v55  ;;  %v233_v58 = vrot.slane %v232_v2, 2  ;;  %v239_v0 = vadd.f32 %v238_v9, %v237_v56  ;;  %v310_v14 = vadd.f32 %v309_v60, %v308_v12 }
  0x45   :  { %v332_v18 = vadd.f32 %v331_v36, %v330_v47  ;;  %v335_v31 = vmul.f32 %v2468_v43, %v2263_v45  ;;  %v359_v61 = vmul.f32 %v2315_v7, %v2307_v63  ;;  %v361_v59 = vmul.f32 %v2351_v49, %v2310_v6 }
  0x46   :  { %v358_v34 = vadd.f32 %v357_v16, %v356_v22  ;;  %v164_v8 = vrot.slane %v163_v21, 1  ;;  %v202_v19 = vadd.f32 %v201_v57, %v200_v42  ;;  %v269_v13 = vadd.f32 %v268_v4, %v266_v38 }
  0x47   :  { %v317_v17 = vadd.f32 %v316_v37, %v315_v24  ;;  %v334_v5 = vadd.f32 %v333_v1, %v332_v18  ;;  %v337_v56 = vmul.f32 %v2482_v3, %v2281_v52  ;;  %v363_v36 = vmul.f32 %v2390_v35, %v2324_v20 }
  0x48   :  { %v360_v12 = vadd.f32 %v359_v61, %v358_v34  ;;  %v196_v9 = vrot.slane %v195_v10, 1  ;;  %v234_v11 = vadd.f32 %v233_v58, %v232_v2  ;;  %v240_v60 = vrot.slane %v239_v0, 2 }
  0x49   :  { %v311_v26 = vrot.slane %v310_v14, 2  ;;  %v336_v47 = vadd.f32 %v335_v31, %v334_v5  ;;  %v339_v22 = vmul.f32 %v2492_v29, %v2304_v62  ;;  %v365_v24 = vmul.f32 %v2415_v40, %v2329_v30 }
  0x4a   :  { %v362_v16 = vadd.f32 %v361_v59, %v360_v12  ;;  %v203_v42 = vrot.slane %v202_v19, 1  ;;  %v270_v57 = vrot.slane %v269_v13, 4  ;;  %v276_v38 = vmul.f32 %v269_v13, %v269_v13  ;;  %v4306_v12 = vld [vmem:[#allocation32_spill] sm:$0xff] }
  0x4b   :  { %v318_v4 = vrot.slane %v317_v17, 2  ;;  %v338_v37 = vadd.f32 %v337_v56, %v336_v47  ;;  %v367_v18 = vmul.f32 %v2468_v43, %v2340_v44  ;;  %v388_v2 = vmul.f32 %v2249_v39, %v2346_v48  ;;  %v4307_v56 = vld [vmem:[#allocation33_spill] sm:$0xff] }
  0x4c   :  { %v364_v1 = vadd.f32 %v363_v36, %v362_v16  ;;  %v235_v58 = vrot.slane %v234_v11, 1  ;;  %v2552_v31 = vadd.f32 %v240_v60, %v239_v0  ;;  %v312_v34 = vadd.f32 %v311_v26, %v310_v14  ;;  %v4309_v26 = vld [vmem:[#allocation34_spill] sm:$0xff] }
  0x4d   :  { %v369_v61 = vmul.f32 %v2482_v3, %v2354_v51  ;;  %v340_v59 = vadd.f32 %v339_v22, %v338_v37  ;;  %v389_v30 = vmul.f32 %v2268_v46, %v4306_v12  ;;  %v391_v36 = vmul.f32 %v2315_v7, %v4307_v56 }
  0x4e   :  { %v366_v5 = vadd.f32 %v365_v24, %v364_v1  ;;  %v271_v47 = vadd.f32 %v270_v57, %v269_v13  ;;  %v277_v16 = vrot.slane %v276_v38, 4  ;;  %v319_v44 = vadd.f32 %v318_v4, %v317_v17 }
  0x4f   :  { %v371_v48 = vmul.f32 %v2492_v29, %v4308_v25  ;;  %v347_v0 = vmul.f32 %v340_v59, %v340_v59  ;;  %v390_v14 = vadd.f32 %v389_v30, %v388_v2  ;;  %v393_v51 = vmul.f32 %v2351_v49, %v4309_v26  ;;  %v4312_v30 = vld [vmem:[#allocation36_spill] sm:$0xff] }
  0x50   :  { %v368_v60 = vadd.f32 %v367_v18, %v366_v5  ;;  %v2564_v22 = vadd.f32 %v164_v8, %v163_v21  ;;  %v2566_v24 = vadd.f32 %v196_v9, %v195_v10  ;;  %v2568_v37 = vadd.f32 %v203_v42, %v202_v19  ;;  %v4313_v9 = vld [vmem:[#allocation37_spill] sm:$0xff] }
  0x51   :  { %v313_v1 = vrot.slane %v312_v34, 1  ;;  %v341_v56 = vrot.slane %v340_v59, 4  ;;  %v348_v13 = vrot.slane %v347_v0, 4  ;;  %v392_v17 = vadd.f32 %v391_v36, %v390_v14  ;;  %v4314_v42 = vld [vmem:[#allocation41_spill] sm:$0xff] }
  0x52   :  { %4310 = vst [vmem:[#allocation52_spill] sm:$0xff] %v2568_v37  ;;  %v370_v57 = vadd.f32 %v369_v61, %v368_v60  ;;  %v2570_v4 = vadd.f32 %v235_v58, %v234_v11  ;;  %v242_v25 = vrot.slane %v2552_v31, 1  ;;  %v272_v18 = vrot.slane %v271_v47, 2 }
  0x53   :  { %v395_v2 = vmul.f32 %v2390_v35, %v4312_v30  ;;  %v278_v5 = vadd.f32 %v277_v16, %v276_v38  ;;  %v320_v21 = vrot.slane %v319_v44, 1  ;;  %v394_v10 = vadd.f32 %v393_v51, %v392_v17  ;;  %v4315_v16 = vld [vmem:[#allocation38_spill] sm:$0xff] }
  0x54   :  { %4311 = vst [vmem:[#allocation53_spill] sm:$0xff] %v2570_v4  ;;  %v372_v8 = vadd.f32 %v371_v48, %v370_v57  ;;  %v397_v19 = vmul.f32 %v2415_v40, %v4313_v9  ;;  %v420_v37 = vmul.f32 %v2249_v39, %v4314_v42  ;;  %v421_v11 = vmul.f32 %v2268_v46, %v2448_v27  ;;  %v2590_v46 = vld [vmem:[%s4123_s0 + $0x10] sm:$0xff] }
  0x55   :  { %v423_v58 = vmul.f32 %v2315_v7, %v2451_v28  ;;  %v314_v61 = vadd.f32 %v313_v1, %v312_v34  ;;  %v342_v36 = vadd.f32 %v341_v56, %v340_v59  ;;  %v349_v60 = vadd.f32 %v348_v13, %v347_v0  ;;  %v4316_v34 = vld [vmem:[#allocation39_spill] sm:$0xff]  ;;  %v4317_v0 = vld [vmem:[#allocation45_spill] sm:$0xff] }
  0x56   :  { %v373_v14 = vrot.slane %v372_v8, 4  ;;  %v396_v38 = vadd.f32 %v395_v2, %v394_v10  ;;  %v399_v48 = vmul.f32 %v2468_v43, %v4315_v16  ;;  %v422_v51 = vadd.f32 %v421_v11, %v420_v37  ;;  %v2606_v2 = vld [vmem:[%s4123_s0 + $0xc0] sm:$0xff] }
  0x57   :  { %v425_v57 = vmul.f32 %v2351_v49, %v2458_v53  ;;  %v273_v17 = vadd.f32 %v272_v18, %v271_v47  ;;  %v279_v39 = vrot.slane %v278_v5, 2  ;;  %v321_v4 = vadd.f32 %v320_v21, %v319_v44  ;;  %v4318_v47 = vld [vmem:[#allocation40_spill] sm:$0xff]  ;;  %v2601_v18 = vld [vmem:[%s4123_s0 + $0x68] sm:$0xff]  ;;  %v4320_v11 = vld [vmem:[#allocation5_spill] sm:$0xff] }
  0x58   :  { %v379_v42 = vmul.f32 %v372_v8, %v372_v8  ;;  %v398_v7 = vadd.f32 %v397_v19, %v396_v38  ;;  %v401_v59 = vmul.f32 %v2482_v3, %v4316_v34  ;;  %v424_v56 = vadd.f32 %v423_v58, %v422_v51  ;;  %v4319_v19 = vld [vmem:[#allocation46_spill] sm:$0xff]  ;;  %v4321_v51 = vld [vmem:[#allocation48_spill] sm:$0xff] }
  0x59   :  { %v427_v37 = vmul.f32 %v2390_v35, %v4317_v0  ;;  %v343_v1 = vrot.slane %v342_v36, 2  ;;  %v350_v13 = vrot.slane %v349_v60, 2  ;;  %v374_v49 = vadd.f32 %v373_v14, %v372_v8  ;;  %v2619_v53 = vld [vmem:[%s4123_s0 + $0x118] sm:$0xff] }
  0x5a   :  { %v403_v44 = vmul.f32 %v2492_v29, %v4318_v47  ;;  %v400_v21 = vadd.f32 %v399_v48, %v398_v7  ;;  %v426_v10 = vadd.f32 %v425_v57, %v424_v56  ;;  %v429_v35 = vmul.f32 %v2415_v40, %v4319_v19  ;;  %v4322_v7 = vld [vmem:[#allocation6_spill] sm:$0xff]  ;;  %v4323_v56 = vld [vmem:[#allocation7_spill] sm:$0xff] }
  0x5b   :  { %v461_v8 = vmul.f32 %v2590_v46, %v4320_v11  ;;  %v274_v58 = vrot.slane %v273_v17, 1  ;;  %v2612_v14 = vadd.f32 %v279_v39, %v278_v5  ;;  %v380_v38 = vrot.slane %v379_v42, 4 }
  0x5c   :  { %v431_v0 = vmul.f32 %v2468_v43, %v4321_v51  ;;  %v402_v48 = vadd.f32 %v401_v59, %v400_v21  ;;  %v428_v57 = vadd.f32 %v427_v37, %v426_v10  ;;  %v462_v40 = vmul.f32 %v2601_v18, %v4322_v7  ;;  %v2630_v43 = vld [vmem:[%s4123_s0 + $0x170] sm:$0xff]  ;;  %v4324_v21 = vld [vmem:[#allocation8_spill] sm:$0xff] }
  0x5d   :  { %v464_v11 = vmul.f32 %v2606_v2, %v4323_v56  ;;  %v344_v19 = vadd.f32 %v343_v1, %v342_v36  ;;  %v351_v5 = vadd.f32 %v350_v13, %v349_v60  ;;  %v375_v39 = vrot.slane %v374_v49, 2  ;;  %v4325_v36 = vld [vmem:[#allocation47_spill] sm:$0xff] }
  0x5e   :  { %v433_v47 = vmul.f32 %v2482_v3, %v2499_v15  ;;  %v404_v51 = vadd.f32 %v403_v44, %v402_v48  ;;  %v430_v59 = vadd.f32 %v429_v35, %v428_v57  ;;  %v463_v37 = vadd.f32 %v462_v40, %v461_v8  ;;  %v2648_v44 = vld [vmem:[%s4123_s0 + $0x1c8] sm:$0xff]  ;;  %v4328_v8 = vld [vmem:[#allocation9_spill] sm:$0xff] }
  0x5f   :  { %v466_v10 = vmul.f32 %v2619_v53, %v4324_v21  ;;  %v2635_v7 = vadd.f32 %v242_v25, %v2552_v31  ;;  %v2638_v60 = vadd.f32 %v314_v61, %v4325_v36  ;;  %v2641_v1 = vadd.f32 %v321_v4, %v2522_v23  ;;  %v4330_v57 = vld [vmem:[#allocation10_spill] sm:$0xff]  ;;  %v4331_v40 = vld [vmem:[#allocation13_spill] sm:$0xff]  ;;  %v4335_v21 = vld [vmem:[#allocation12_spill] sm:$0xff] }
  0x60   :  { %v381_v3 = vadd.f32 %v380_v38, %v379_v42  ;;  %v432_v13 = vadd.f32 %v431_v0, %v430_v59  ;;  %v435_v15 = vmul.f32 %v2492_v29, %v2518_v50  ;;  %v465_v35 = vadd.f32 %v464_v11, %v463_v37  ;;  %v2658_v29 = vld [vmem:[%s4123_s0 + $0x220] sm:$0xff]  ;;  %v4333_v37 = vld [vmem:[#allocation15_spill] sm:$0xff] }
  0x61   :  { %4326 = vst [vmem:[#allocation36_spill] sm:$0xff] %v2638_v60  ;;  %v468_v25 = vmul.f32 %v2630_v43, %v4328_v8  ;;  %v2652_v31 = vadd.f32 %v274_v58, %v273_v17  ;;  %v281_v61 = vrot.slane %v2612_v14, 1  ;;  %v345_v23 = vrot.slane %v344_v19, 1  ;;  %v4332_v58 = vld [vmem:[#allocation14_spill] sm:$0xff] }
  0x62   :  { %4327 = vst [vmem:[#allocation47_spill] sm:$0xff] %v2641_v1  ;;  %v352_v4 = vrot.slane %v351_v5, 1  ;;  %v376_v42 = vadd.f32 %v375_v39, %v374_v49  ;;  %v411_v0 = vmul.f32 %v404_v51, %v404_v51  ;;  %v434_v38 = vadd.f32 %v433_v47, %v432_v13  ;;  %v2671_v13 = vld [vmem:[%s4123_s0 + $0x278] sm:$0xff]  ;;  %v2676_v1 = vld [vmem:[%s4123_s0 + $0x2d0] sm:$0xff] }
  0x63   :  { %4329 = vst [vmem:[#allocation54_spill] sm:$0xff] %v2652_v31  ;;  %v467_v48 = vadd.f32 %v466_v10, %v465_v35  ;;  %v470_v11 = vmul.f32 %v2648_v44, %v4330_v57  ;;  %v493_v17 = vmul.f32 %v2590_v46, %v4331_v40  ;;  %v494_v59 = vmul.f32 %v2601_v18, %v4332_v58  ;;  %v4334_v40 = vld [vmem:[#allocation11_spill] sm:$0xff] }
  0x64   :  { %v496_v49 = vmul.f32 %v2606_v2, %v4333_v37  ;;  %v382_v39 = vrot.slane %v381_v3, 2  ;;  %v405_v47 = vrot.slane %v404_v51, 4  ;;  %v436_v36 = vadd.f32 %v435_v15, %v434_v38 }
  0x65   :  { %v469_v10 = vadd.f32 %v468_v25, %v467_v48  ;;  %v346_v35 = vadd.f32 %v345_v23, %v344_v19  ;;  %v472_v58 = vmul.f32 %v2658_v29, %v4334_v40  ;;  %v495_v57 = vadd.f32 %v494_v59, %v493_v17  ;;  %v4336_v40 = vld [vmem:[#allocation18_spill] sm:$0xff] }
  0x66   :  { %v498_v37 = vmul.f32 %v2619_v53, %v2229_v32  ;;  %v353_v15 = vadd.f32 %v352_v4, %v351_v5  ;;  %v377_v38 = vrot.slane %v376_v42, 1  ;;  %v412_v8 = vrot.slane %v411_v0, 4 }
  0x67   :  { %v437_v50 = vrot.slane %v436_v36, 4  ;;  %v471_v60 = vadd.f32 %v470_v11, %v469_v10  ;;  %v474_v19 = vmul.f32 %v2671_v13, %v4335_v21  ;;  %v497_v25 = vadd.f32 %v496_v49, %v495_v57 }
  0x68   :  { %v500_v23 = vmul.f32 %v2630_v43, %v2232_v33  ;;  %v383_v48 = vadd.f32 %v382_v39, %v381_v3  ;;  %v406_v56 = vadd.f32 %v405_v47, %v404_v51  ;;  %v443_v31 = vmul.f32 %v436_v36, %v436_v36 }
  0x69   :  { %v476_v17 = vmul.f32 %v2676_v1, %v4336_v40  ;;  %v473_v59 = vadd.f32 %v472_v58, %v471_v60  ;;  %v499_v32 = vadd.f32 %v498_v37, %v497_v25  ;;  %v502_v5 = vmul.f32 %v2648_v44, %v2256_v41 }
  0x6a   :  { %v525_v4 = vmul.f32 %v2590_v46, %v2288_v54  ;;  %v378_v11 = vadd.f32 %v377_v38, %v376_v42  ;;  %v413_v10 = vadd.f32 %v412_v8, %v411_v0  ;;  %v438_v57 = vadd.f32 %v437_v50, %v436_v36 }
  0x6b   :  { %v504_v49 = vmul.f32 %v2658_v29, %v2263_v45  ;;  %v475_v3 = vadd.f32 %v474_v19, %v473_v59  ;;  %v501_v51 = vadd.f32 %v500_v23, %v499_v32  ;;  %v526_v39 = vmul.f32 %v2601_v18, %v2291_v55 }
  0x6c   :  { %v528_v60 = vmul.f32 %v2606_v2, %v2307_v63  ;;  %v384_v58 = vrot.slane %v383_v48, 1  ;;  %v407_v37 = vrot.slane %v406_v56, 2  ;;  %v444_v47 = vrot.slane %v443_v31, 4 }
  0x6d   :  { %v506_v25 = vmul.f32 %v2671_v13, %v2281_v52  ;;  %v477_v42 = vadd.f32 %v476_v17, %v475_v3  ;;  %v503_v8 = vadd.f32 %v502_v5, %v501_v51  ;;  %v527_v50 = vadd.f32 %v526_v39, %v525_v4  ;;  %v4337_v17 = vld [vmem:[#allocation51_spill] sm:$0xff] }
  0x6e   :  { %v530_v0 = vmul.f32 %v2619_v53, %v2310_v6  ;;  %v414_v36 = vrot.slane %v413_v10, 2  ;;  %v439_v32 = vrot.slane %v438_v57, 2  ;;  %v508_v38 = vmul.f32 %v2676_v1, %v2304_v62 }
  0x6f   :  { %v532_v19 = vmul.f32 %v2630_v43, %v2324_v20  ;;  %v478_v23 = vrot.slane %v477_v42, 4  ;;  %v484_v59 = vmul.f32 %v477_v42, %v477_v42  ;;  %v505_v63 = vadd.f32 %v504_v49, %v503_v8 }
  0x70   :  { %v529_v55 = vadd.f32 %v528_v60, %v527_v50  ;;  %v2707_v52 = vadd.f32 %v281_v61, %v2612_v14  ;;  %v2710_v5 = vadd.f32 %v346_v35, %v4337_v17  ;;  %v2713_v4 = vadd.f32 %v353_v15, %v2564_v22  ;;  %v4339_v60 = vld [vmem:[#allocation28_spill] sm:$0xff]  ;;  %v4340_v17 = vld [vmem:[#allocation29_spill] sm:$0xff] }
  0x71   :  { %v408_v3 = vadd.f32 %v407_v37, %v406_v56  ;;  %v445_v51 = vadd.f32 %v444_v47, %v443_v31  ;;  %v485_v39 = vrot.slane %v484_v59, 4  ;;  %v507_v62 = vadd.f32 %v506_v25, %v505_v63  ;;  %v4341_v56 = vld [vmem:[#allocation30_spill] sm:$0xff]  ;;  %v4342_v63 = vld [vmem:[#allocation33_spill] sm:$0xff] }
  0x72   :  { %v531_v6 = vadd.f32 %v530_v0, %v529_v55  ;;  %v385_v45 = vadd.f32 %v384_v58, %v383_v48  ;;  %v2716_v20 = vadd.f32 %v378_v11, %v2566_v24  ;;  %v415_v49 = vadd.f32 %v414_v36, %v413_v10  ;;  %v4343_v58 = vld [vmem:[#allocation31_spill] sm:$0xff]  ;;  %v4344_v36 = vld [vmem:[#allocation52_spill] sm:$0xff] }
  0x73   :  { %v534_v14 = vmul.f32 %v2648_v44, %v4339_v60  ;;  %v440_v61 = vadd.f32 %v439_v32, %v438_v57  ;;  %v479_v8 = vadd.f32 %v478_v23, %v477_v42  ;;  %v509_v35 = vadd.f32 %v508_v38, %v507_v62 }
  0x74   :  { %4338 = vst [vmem:[#allocation51_spill] sm:$0xff] %v2716_v20  ;;  %v533_v50 = vadd.f32 %v532_v19, %v531_v6  ;;  %v536_v22 = vmul.f32 %v2658_v29, %v4340_v17  ;;  %v557_v31 = vmul.f32 %v2590_v46, %v4341_v56  ;;  %v558_v55 = vmul.f32 %v2601_v18, %v4306_v12 }
  0x75   :  { %v560_v24 = vmul.f32 %v2606_v2, %v4342_v63  ;;  %v409_v15 = vrot.slane %v408_v3, 1  ;;  %v446_v48 = vrot.slane %v445_v51, 2  ;;  %v486_v11 = vadd.f32 %v485_v39, %v484_v59 }
  0x76   :  { %v516_v10 = vmul.f32 %v509_v35, %v509_v35  ;;  %v535_v57 = vadd.f32 %v534_v14, %v533_v50  ;;  %v538_v62 = vmul.f32 %v2671_v13, %v4343_v58  ;;  %v559_v6 = vadd.f32 %v558_v55, %v557_v31  ;;  %v4345_v55 = vld [vmem:[#allocation35_spill] sm:$0xff] }
  0x77   :  { %v562_v37 = vmul.f32 %v2619_v53, %v4309_v26  ;;  %v416_v47 = vrot.slane %v415_v49, 1  ;;  %v441_v25 = vrot.slane %v440_v61, 1  ;;  %v480_v42 = vrot.slane %v479_v8, 2 }
  0x78   :  { %v510_v0 = vrot.slane %v509_v35, 4  ;;  %v2733_v32 = vadd.f32 %v385_v45, %v4344_v36  ;;  %v537_v38 = vadd.f32 %v536_v22, %v535_v57  ;;  %v561_v19 = vadd.f32 %v560_v24, %v559_v6 }
  0x79   :  { %v564_v23 = vmul.f32 %v2630_v43, %v4312_v30  ;;  %v410_v59 = vadd.f32 %v409_v15, %v408_v3  ;;  %v447_v39 = vadd.f32 %v446_v48, %v445_v51  ;;  %v487_v14 = vrot.slane %v486_v11, 2  ;;  %v4346_v3 = vld [vmem:[#allocation41_spill] sm:$0xff] }
  0x7a   :  { %v517_v50 = vrot.slane %v516_v10, 4  ;;  %v539_v31 = vadd.f32 %v538_v62, %v537_v38  ;;  %v540_v20 = vmul.f32 %v2676_v1, %v4345_v55  ;;  %v563_v58 = vadd.f32 %v562_v37, %v561_v19  ;;  %v4349_v38 = vld [vmem:[#allocation45_spill] sm:$0xff] }
  0x7b   :  { %v566_v26 = vmul.f32 %v2648_v44, %v4313_v9  ;;  %v417_v63 = vadd.f32 %v416_v47, %v415_v49  ;;  %v442_v45 = vadd.f32 %v441_v25, %v440_v61  ;;  %v481_v36 = vadd.f32 %v480_v42, %v479_v8  ;;  %v4347_v25 = vld [vmem:[#allocation40_spill] sm:$0xff] }
  0x7c   :  { %v511_v22 = vadd.f32 %v510_v0, %v509_v35  ;;  %v565_v24 = vadd.f32 %v564_v23, %v563_v58  ;;  %v568_v57 = vmul.f32 %v2658_v29, %v4315_v16  ;;  %v589_v51 = vmul.f32 %v2590_v46, %v4346_v3  ;;  %v4348_v42 = vld [vmem:[#allocation44_spill] sm:$0xff] }
  0x7d   :  { %v590_v15 = vmul.f32 %v2601_v18, %v2448_v27  ;;  %v448_v48 = vrot.slane %v447_v39, 1  ;;  %v488_v62 = vadd.f32 %v487_v14, %v486_v11  ;;  %v518_v6 = vadd.f32 %v517_v50, %v516_v10 }
  0x7e   :  { %v592_v37 = vmul.f32 %v2606_v2, %v2451_v28  ;;  %v541_v49 = vadd.f32 %v540_v20, %v539_v31  ;;  %v567_v61 = vadd.f32 %v566_v26, %v565_v24  ;;  %v570_v8 = vmul.f32 %v2671_v13, %v4316_v34  ;;  %v2760_v20 = vld [vmem:[%s4123_s0 + $0x18] sm:$0xff]  ;;  %v4350_v26 = vld [vmem:[#allocation53_spill] sm:$0xff] }
  0x7f   :  { %v591_v35 = vadd.f32 %v590_v15, %v589_v51  ;;  %v482_v58 = vrot.slane %v481_v36, 1  ;;  %v512_v47 = vrot.slane %v511_v22, 2  ;;  %v572_v46 = vmul.f32 %v2676_v1, %v4347_v25  ;;  %v2776_v51 = vld [vmem:[%s4123_s0 + $0xc8] sm:$0xff] }
  0x80   :  { %v594_v18 = vmul.f32 %v2619_v53, %v4348_v42  ;;  %v542_v0 = vrot.slane %v541_v49, 4  ;;  %v569_v11 = vadd.f32 %v568_v57, %v567_v61  ;;  %v596_v2 = vmul.f32 %v2630_v43, %v4349_v38  ;;  %v2771_v43 = vld [vmem:[%s4123_s0 + $0x70] sm:$0xff] }
  0x81   :  { %v593_v10 = vadd.f32 %v592_v37, %v591_v35  ;;  %v2763_v19 = vadd.f32 %v410_v59, %v4350_v26  ;;  %v2766_v23 = vadd.f32 %v417_v63, %v2635_v7  ;;  %v449_v14 = vadd.f32 %v448_v48, %v447_v39  ;;  %v4352_v59 = vld [vmem:[#allocation54_spill] sm:$0xff]  ;;  %v4355_v48 = vld [vmem:[#allocation5_spill] sm:$0xff]  ;;  %v4359_v26 = vld [vmem:[#allocation7_spill] sm:$0xff] }
  0x82   :  { %v489_v50 = vrot.slane %v488_v62, 1  ;;  %v519_v53 = vrot.slane %v518_v6, 2  ;;  %v548_v31 = vmul.f32 %v541_v49, %v541_v49  ;;  %v571_v24 = vadd.f32 %v570_v8, %v569_v11  ;;  %v4354_v63 = vld [vmem:[#allocation46_spill] sm:$0xff]  ;;  %v2788_v11 = vld [vmem:[%s4123_s0 + $0x120] sm:$0xff] }
  0x83   :  { %4351 = vst [vmem:[#allocation52_spill] sm:$0xff] %v2766_v23  ;;  %v595_v57 = vadd.f32 %v594_v18, %v593_v10  ;;  %v2779_v15 = vadd.f32 %v442_v45, %v4352_v59  ;;  %v483_v7 = vadd.f32 %v482_v58, %v481_v36  ;;  %v598_v39 = vmul.f32 %v2648_v44, %v4354_v63  ;;  %v4357_v45 = vld [vmem:[#allocation48_spill] sm:$0xff]  ;;  %v4358_v58 = vld [vmem:[#allocation6_spill] sm:$0xff] }
  0x84   :  { %v630_v37 = vmul.f32 %v2760_v20, %v4355_v48  ;;  %v513_v61 = vadd.f32 %v512_v47, %v511_v22  ;;  %v543_v8 = vadd.f32 %v542_v0, %v541_v49  ;;  %v573_v35 = vadd.f32 %v572_v46, %v571_v24  ;;  %v4361_v59 = vld [vmem:[#allocation8_spill] sm:$0xff] }
  0x85   :  { %4353 = vst [vmem:[#allocation35_spill] sm:$0xff] %v2779_v15  ;;  %v597_v18 = vadd.f32 %v596_v2, %v595_v57  ;;  %v2791_v10 = vadd.f32 %v449_v14, %v2707_v52  ;;  %v600_v36 = vmul.f32 %v2658_v29, %v4357_v45  ;;  %v631_v44 = vmul.f32 %v2771_v43, %v4358_v58  ;;  %v2802_v2 = vld [vmem:[%s4123_s0 + $0x178] sm:$0xff]  ;;  %v4360_v14 = vld [vmem:[#allocation49_spill] sm:$0xff]  ;;  %v2809_v29 = vld [vmem:[%s4123_s0 + $0x1d0] sm:$0xff] }
  0x86   :  { %v633_v22 = vmul.f32 %v2776_v51, %v4359_v26  ;;  %v490_v49 = vadd.f32 %v489_v50, %v488_v62  ;;  %v520_v47 = vadd.f32 %v519_v53, %v518_v6  ;;  %v549_v46 = vrot.slane %v548_v31, 4  ;;  %v4362_v6 = vld [vmem:[#allocation36_spill] sm:$0xff] }
  0x87   :  { %4356 = vst [vmem:[#allocation53_spill] sm:$0xff] %v2791_v10  ;;  %v574_v0 = vrot.slane %v573_v35, 4  ;;  %v599_v52 = vadd.f32 %v598_v39, %v597_v18  ;;  %v602_v24 = vmul.f32 %v2671_v13, %v4360_v14  ;;  %v632_v57 = vadd.f32 %v631_v44, %v630_v37  ;;  %v4364_v39 = vld [vmem:[#allocation50_spill] sm:$0xff]  ;;  %v4365_v37 = vld [vmem:[#allocation9_spill] sm:$0xff] }
  0x88   :  { %v635_v62 = vmul.f32 %v2788_v11, %v4361_v59  ;;  %v2814_v50 = vadd.f32 %v483_v7, %v4362_v6  ;;  %v514_v53 = vrot.slane %v513_v61, 1  ;;  %v544_v10 = vrot.slane %v543_v8, 2  ;;  %v2821_v13 = vld [vmem:[%s4123_s0 + $0x228] sm:$0xff] }
  0x89   :  { %v580_v26 = vmul.f32 %v573_v35, %v573_v35  ;;  %v601_v45 = vadd.f32 %v600_v36, %v599_v52  ;;  %v604_v18 = vmul.f32 %v2676_v1, %v4364_v39  ;;  %v634_v14 = vadd.f32 %v633_v22, %v632_v57  ;;  %v4366_v6 = vld [vmem:[#allocation10_spill] sm:$0xff]  ;;  %v2830_v1 = vld [vmem:[%s4123_s0 + $0x280] sm:$0xff] }
  0x8a   :  { %4363 = vst [vmem:[#allocation54_spill] sm:$0xff] %v2814_v50  ;;  %v637_v44 = vmul.f32 %v2802_v2, %v4365_v37  ;;  %v521_v59 = vrot.slane %v520_v47, 1  ;;  %v550_v58 = vadd.f32 %v549_v46, %v548_v31  ;;  %v575_v7 = vadd.f32 %v574_v0, %v573_v35  ;;  %v4367_v52 = vld [vmem:[#allocation13_spill] sm:$0xff]  ;;  %v4368_v22 = vld [vmem:[#allocation14_spill] sm:$0xff]  ;;  %v4369_v31 = vld [vmem:[#allocation11_spill] sm:$0xff] }
  0x8b   :  { %v639_v50 = vmul.f32 %v2809_v29, %v4366_v6  ;;  %v603_v15 = vadd.f32 %v602_v24, %v601_v45  ;;  %v636_v36 = vadd.f32 %v635_v62, %v634_v14  ;;  %v662_v39 = vmul.f32 %v2760_v20, %v4367_v52  ;;  %v4370_v46 = vld [vmem:[#allocation15_spill] sm:$0xff]  ;;  %v2843_v24 = vld [vmem:[%s4123_s0 + $0x2d8] sm:$0xff] }
  0x8c   :  { %v663_v57 = vmul.f32 %v2771_v43, %v4368_v22  ;;  %v545_v37 = vadd.f32 %v544_v10, %v543_v8  ;;  %v581_v48 = vrot.slane %v580_v26, 4  ;;  %v641_v35 = vmul.f32 %v2821_v13, %v4369_v31  ;;  %v4371_v52 = vld [vmem:[#allocation16_spill] sm:$0xff] }
  0x8d   :  { %v665_v45 = vmul.f32 %v2776_v51, %v4370_v46  ;;  %v605_v0 = vadd.f32 %v604_v18, %v603_v15  ;;  %v638_v14 = vadd.f32 %v637_v44, %v636_v36  ;;  %v667_v6 = vmul.f32 %v2788_v11, %v4371_v52  ;;  %v4372_v18 = vld [vmem:[#allocation47_spill] sm:$0xff] }
  0x8e   :  { %v664_v62 = vadd.f32 %v663_v57, %v662_v39  ;;  %v515_v22 = vadd.f32 %v514_v53, %v513_v61  ;;  %v522_v8 = vadd.f32 %v521_v59, %v520_v47  ;;  %v551_v10 = vrot.slane %v550_v58, 2 }
  0x8f   :  { %v643_v31 = vmul.f32 %v2830_v1, %v4335_v21  ;;  %v576_v63 = vrot.slane %v575_v7, 2  ;;  %v640_v38 = vadd.f32 %v639_v50, %v638_v14  ;;  %v669_v15 = vmul.f32 %v2802_v2, %v2232_v33 }
  0x90   :  { %v666_v46 = vadd.f32 %v665_v45, %v664_v62  ;;  %v2852_v23 = vadd.f32 %v490_v49, %v4372_v18  ;;  %v546_v44 = vrot.slane %v545_v37, 1  ;;  %v582_v39 = vadd.f32 %v581_v48, %v580_v26 }
  0x91   :  { %v645_v36 = vmul.f32 %v2843_v24, %v4336_v40  ;;  %v612_v61 = vmul.f32 %v605_v0, %v605_v0  ;;  %v642_v47 = vadd.f32 %v641_v35, %v640_v38  ;;  %v671_v53 = vmul.f32 %v2809_v29, %v2256_v41  ;;  %v4375_v38 = vld [vmem:[#allocation20_spill] sm:$0xff]  ;;  %v4376_v35 = vld [vmem:[#allocation23_spill] sm:$0xff] }
  0x92   :  { %v668_v59 = vadd.f32 %v667_v6, %v666_v46  ;;  %v2859_v50 = vadd.f32 %v515_v22, %v2710_v5  ;;  %v2862_v57 = vadd.f32 %v522_v8, %v2713_v4  ;;  %v552_v45 = vadd.f32 %v551_v10, %v550_v58  ;;  %v4377_v5 = vld [vmem:[#allocation25_spill] sm:$0xff]  ;;  %v4381_v41 = vld [vmem:[#allocation27_spill] sm:$0xff] }
  0x93   :  { %v694_v49 = vmul.f32 %v2760_v20, %v2288_v54  ;;  %v577_v48 = vadd.f32 %v576_v63, %v575_v7  ;;  %v606_v26 = vrot.slane %v605_v0, 4  ;;  %v644_v14 = vadd.f32 %v643_v31, %v642_v47  ;;  %v4379_v31 = vld [vmem:[#allocation26_spill] sm:$0xff]  ;;  %v4380_v54 = vld [vmem:[#allocation24_spill] sm:$0xff] }
  0x94   :  { %4373 = vst [vmem:[#allocation36_spill] sm:$0xff] %v2859_v50  ;;  %v670_v62 = vadd.f32 %v669_v15, %v668_v59  ;;  %v547_v18 = vadd.f32 %v546_v44, %v545_v37  ;;  %v673_v6 = vmul.f32 %v2821_v13, %v4375_v38  ;;  %v695_v46 = vmul.f32 %v2771_v43, %v4376_v35  ;;  %v4378_v50 = vld [vmem:[#allocation21_spill] sm:$0xff] }
  0x95   :  { %4374 = vst [vmem:[#allocation47_spill] sm:$0xff] %v2862_v57  ;;  %v697_v22 = vmul.f32 %v2776_v51, %v4377_v5  ;;  %v583_v4 = vrot.slane %v582_v39, 2  ;;  %v613_v8 = vrot.slane %v612_v61, 4  ;;  %v646_v58 = vadd.f32 %v645_v36, %v644_v14 }
  0x96   :  { %v672_v10 = vadd.f32 %v671_v53, %v670_v62  ;;  %v553_v57 = vrot.slane %v552_v45, 1  ;;  %v675_v63 = vmul.f32 %v2830_v1, %v4378_v50  ;;  %v696_v7 = vadd.f32 %v695_v46, %v694_v49 }
  0x97   :  { %v699_v37 = vmul.f32 %v2788_v11, %v4379_v31  ;;  %v578_v15 = vrot.slane %v577_v48, 1  ;;  %v607_v44 = vadd.f32 %v606_v26, %v605_v0  ;;  %v647_v47 = vrot.slane %v646_v58, 4 }
  0x98   :  { %v653_v59 = vmul.f32 %v646_v58, %v646_v58  ;;  %v674_v35 = vadd.f32 %v673_v6, %v672_v10  ;;  %v677_v5 = vmul.f32 %v2843_v24, %v4380_v54  ;;  %v698_v38 = vadd.f32 %v697_v22, %v696_v7  ;;  %v4384_v54 = vld [vmem:[#allocation31_spill] sm:$0xff] }
  0x99   :  { %v701_v36 = vmul.f32 %v2802_v2, %v4381_v41  ;;  %v584_v53 = vadd.f32 %v583_v4, %v582_v39  ;;  %v614_v14 = vadd.f32 %v613_v8, %v612_v61  ;;  %v703_v49 = vmul.f32 %v2809_v29, %v4339_v60  ;;  %v4382_v8 = vld [vmem:[#allocation33_spill] sm:$0xff] }
  0x9a   :  { %v654_v62 = vrot.slane %v653_v59, 4  ;;  %v676_v46 = vadd.f32 %v675_v63, %v674_v35  ;;  %v700_v31 = vadd.f32 %v699_v37, %v698_v38  ;;  %v726_v0 = vmul.f32 %v2760_v20, %v4341_v56  ;;  %v4383_v37 = vld [vmem:[#allocation34_spill] sm:$0xff] }
  0x9b   :  { %v727_v26 = vmul.f32 %v2771_v43, %v4306_v12  ;;  %v608_v6 = vrot.slane %v607_v44, 2  ;;  %v648_v10 = vadd.f32 %v647_v47, %v646_v58  ;;  %v705_v7 = vmul.f32 %v2821_v13, %v4340_v17 }
  0x9c   :  { %v655_v22 = vadd.f32 %v654_v62, %v653_v59  ;;  %v678_v39 = vadd.f32 %v677_v5, %v676_v46  ;;  %v702_v61 = vadd.f32 %v701_v36, %v700_v31  ;;  %v729_v60 = vmul.f32 %v2776_v51, %v4382_v8 }
  0x9d   :  { %v728_v4 = vadd.f32 %v727_v26, %v726_v0  ;;  %v554_v35 = vadd.f32 %v553_v57, %v552_v45  ;;  %v579_v38 = vadd.f32 %v578_v15, %v577_v48  ;;  %v615_v63 = vrot.slane %v614_v14, 2  ;;  %v4385_v48 = vld [vmem:[#allocation51_spill] sm:$0xff] }
  0x9e   :  { %v731_v56 = vmul.f32 %v2788_v11, %v4383_v37  ;;  %v685_v41 = vmul.f32 %v678_v39, %v678_v39  ;;  %v704_v12 = vadd.f32 %v703_v49, %v702_v61  ;;  %v707_v58 = vmul.f32 %v2830_v1, %v4384_v54 }
  0x9f   :  { %v730_v47 = vadd.f32 %v729_v60, %v728_v4  ;;  %v585_v59 = vrot.slane %v584_v53, 1  ;;  %v609_v62 = vadd.f32 %v608_v6, %v607_v44  ;;  %v649_v5 = vrot.slane %v648_v10, 2 }
  0xa0   :  { %v733_v31 = vmul.f32 %v2802_v2, %v4312_v30  ;;  %v656_v36 = vrot.slane %v655_v22, 2  ;;  %v706_v46 = vadd.f32 %v705_v7, %v704_v12  ;;  %v735_v45 = vmul.f32 %v2809_v29, %v4313_v9 }
  0xa1   :  { %v732_v57 = vadd.f32 %v731_v56, %v730_v47  ;;  %v2899_v15 = vadd.f32 %v547_v18, %v4385_v48  ;;  %v2902_v49 = vadd.f32 %v554_v35, %v2733_v32  ;;  %v616_v0 = vadd.f32 %v615_v63, %v614_v14 }
  0xa2   :  { %v709_v60 = vmul.f32 %v2843_v24, %v4345_v55  ;;  %v679_v44 = vrot.slane %v678_v39, 4  ;;  %v686_v26 = vrot.slane %v685_v41, 4  ;;  %v708_v6 = vadd.f32 %v707_v58, %v706_v46 }
  0xa3   :  { %v734_v61 = vadd.f32 %v733_v31, %v732_v57  ;;  %v586_v4 = vadd.f32 %v585_v59, %v584_v53  ;;  %v2907_v12 = vadd.f32 %v579_v38, %v2763_v19  ;;  %v737_v56 = vmul.f32 %v2821_v13, %v4315_v16 }
  0xa4   :  { %v758_v18 = vmul.f32 %v2760_v20, %v4346_v3  ;;  %v610_v32 = vrot.slane %v609_v62, 1  ;;  %v650_v7 = vadd.f32 %v649_v5, %v648_v10  ;;  %v657_v14 = vadd.f32 %v656_v36, %v655_v22  ;;  %v4386_v36 = vld [vmem:[#allocation52_spill] sm:$0xff] }
  0xa5   :  { %v736_v35 = vadd.f32 %v735_v45, %v734_v61  ;;  %v710_v63 = vadd.f32 %v709_v60, %v708_v6  ;;  %v739_v47 = vmul.f32 %v2830_v1, %v4316_v34  ;;  %v759_v53 = vmul.f32 %v2771_v43, %v2448_v27  ;;  %v4387_v60 = vld [vmem:[#allocation45_spill] sm:$0xff]  ;;  %v4388_v61 = vld [vmem:[#allocation46_spill] sm:$0xff] }
  0xa6   :  { %v761_v19 = vmul.f32 %v2776_v51, %v2451_v28  ;;  %v617_v38 = vrot.slane %v616_v0, 1  ;;  %v680_v58 = vadd.f32 %v679_v44, %v678_v39  ;;  %v687_v59 = vadd.f32 %v686_v26, %v685_v41  ;;  %v2929_v51 = vld [vmem:[%s4123_s0 + $0x20] sm:$0xff] }
  0xa7   :  { %v741_v20 = vmul.f32 %v2843_v24, %v4347_v25  ;;  %v711_v31 = vrot.slane %v710_v63, 4  ;;  %v738_v10 = vadd.f32 %v737_v56, %v736_v35  ;;  %v760_v22 = vadd.f32 %v759_v53, %v758_v18  ;;  %v2943_v56 = vld [vmem:[%s4123_s0 + $0xd0] sm:$0xff] }
  0xa8   :  { %v763_v5 = vmul.f32 %v2788_v11, %v4348_v42  ;;  %v2924_v46 = vadd.f32 %v586_v4, %v4386_v36  ;;  %v611_v57 = vadd.f32 %v610_v32, %v609_v62  ;;  %v651_v43 = vrot.slane %v650_v7, 1  ;;  %v2936_v11 = vld [vmem:[%s4123_s0 + $0x78] sm:$0xff]  ;;  %v4390_v53 = vld [vmem:[#allocation35_spill] sm:$0xff] }
  0xa9   :  { %v658_v45 = vrot.slane %v657_v14, 1  ;;  %v717_v41 = vmul.f32 %v710_v63, %v710_v63  ;;  %v740_v39 = vadd.f32 %v739_v47, %v738_v10  ;;  %v762_v48 = vadd.f32 %v761_v19, %v760_v22  ;;  %v4389_v47 = vld [vmem:[#allocation5_spill] sm:$0xff]  ;;  %v4392_v10 = vld [vmem:[#allocation6_spill] sm:$0xff] }
  0xaa   :  { %v765_v44 = vmul.f32 %v2802_v2, %v4387_v60  ;;  %v618_v26 = vadd.f32 %v617_v38, %v616_v0  ;;  %v681_v62 = vrot.slane %v680_v58, 2  ;;  %v688_v6 = vrot.slane %v687_v59, 2  ;;  %v2948_v2 = vld [vmem:[%s4123_s0 + $0x128] sm:$0xff] }
  0xab   :  { %v767_v4 = vmul.f32 %v2809_v29, %v4388_v61  ;;  %v712_v18 = vadd.f32 %v711_v31, %v710_v63  ;;  %v742_v32 = vadd.f32 %v741_v20, %v740_v39  ;;  %v764_v35 = vadd.f32 %v763_v5, %v762_v48  ;;  %v4393_v20 = vld [vmem:[#allocation48_spill] sm:$0xff]  ;;  %v2962_v5 = vld [vmem:[%s4123_s0 + $0x180] sm:$0xff]  ;;  %v4394_v39 = vld [vmem:[#allocation7_spill] sm:$0xff] }
  0xac   :  { %v799_v0 = vmul.f32 %v2929_v51, %v4389_v47  ;;  %v2953_v19 = vadd.f32 %v611_v57, %v4390_v53  ;;  %v652_v29 = vadd.f32 %v651_v43, %v650_v7  ;;  %v659_v38 = vadd.f32 %v658_v45, %v657_v14  ;;  %v4395_v14 = vld [vmem:[#allocation8_spill] sm:$0xff]  ;;  %v4397_v47 = vld [vmem:[#allocation53_spill] sm:$0xff] }
  0xad   :  { %v800_v22 = vmul.f32 %v2936_v11, %v4392_v10  ;;  %v718_v36 = vrot.slane %v717_v41, 4  ;;  %v766_v63 = vadd.f32 %v765_v44, %v764_v35  ;;  %v769_v31 = vmul.f32 %v2821_v13, %v4393_v20  ;;  %v4396_v35 = vld [vmem:[#allocation49_spill] sm:$0xff]  ;;  %v2973_v20 = vld [vmem:[%s4123_s0 + $0x1d8] sm:$0xff] }
  0xae   :  { %4391 = vst [vmem:[#allocation31_spill] sm:$0xff] %v2953_v19  ;;  %v802_v48 = vmul.f32 %v2943_v56, %v4394_v39  ;;  %v682_v57 = vadd.f32 %v681_v62, %v680_v58  ;;  %v689_v53 = vadd.f32 %v688_v6, %v687_v59  ;;  %v804_v43 = vmul.f32 %v2948_v2, %v4395_v14  ;;  %v4399_v58 = vld [vmem:[#allocation54_spill] sm:$0xff]  ;;  %v4401_v6 = vld [vmem:[#allocation9_spill] sm:$0xff] }
  0xaf   :  { %v801_v7 = vadd.f32 %v800_v22, %v799_v0  ;;  %v713_v45 = vrot.slane %v712_v18, 2  ;;  %v749_v10 = vmul.f32 %v742_v32, %v742_v32  ;;  %v768_v44 = vadd.f32 %v767_v4, %v766_v63  ;;  %v4402_v14 = vld [vmem:[#allocation50_spill] sm:$0xff] }
  0xb0   :  { %v771_v13 = vmul.f32 %v2830_v1, %v4396_v35  ;;  %v2976_v61 = vadd.f32 %v618_v26, %v4397_v47  ;;  %v2979_v59 = vadd.f32 %v652_v29, %v4399_v58  ;;  %v806_v0 = vmul.f32 %v2962_v5, %v4401_v6  ;;  %v2988_v35 = vld [vmem:[%s4123_s0 + $0x230] sm:$0xff] }
  0xb1   :  { %v803_v62 = vadd.f32 %v802_v48, %v801_v7  ;;  %v719_v22 = vadd.f32 %v718_v36, %v717_v41  ;;  %v743_v4 = vrot.slane %v742_v32, 4  ;;  %v770_v63 = vadd.f32 %v769_v31, %v768_v44  ;;  %v4404_v48 = vld [vmem:[#allocation10_spill] sm:$0xff] }
  0xb2   :  { %4398 = vst [vmem:[#allocation51_spill] sm:$0xff] %v2976_v61  ;;  %v773_v1 = vmul.f32 %v2843_v24, %v4402_v14  ;;  %v2991_v26 = vadd.f32 %v659_v38, %v2852_v23  ;;  %v683_v47 = vrot.slane %v682_v57, 1  ;;  %v808_v7 = vmul.f32 %v2973_v20, %v4404_v48  ;;  %v2998_v24 = vld [vmem:[%s4123_s0 + $0x288] sm:$0xff]  ;;  %v4406_v23 = vld [vmem:[#allocation13_spill] sm:$0xff] }
  0xb3   :  { %4400 = vst [vmem:[#allocation52_spill] sm:$0xff] %v2979_v59  ;;  %v805_v29 = vadd.f32 %v804_v43, %v803_v62  ;;  %v690_v58 = vrot.slane %v689_v53, 1  ;;  %v714_v41 = vadd.f32 %v713_v45, %v712_v18  ;;  %v750_v36 = vrot.slane %v749_v10, 4  ;;  %v4405_v59 = vld [vmem:[#allocation11_spill] sm:$0xff]  ;;  %v4407_v43 = vld [vmem:[#allocation14_spill] sm:$0xff]  ;;  %v3009_v45 = vld [vmem:[%s4123_s0 + $0x2e0] sm:$0xff] }
  0xb4   :  { %4403 = vst [vmem:[#allocation35_spill] sm:$0xff] %v2991_v26  ;;  %v772_v31 = vadd.f32 %v771_v13, %v770_v63  ;;  %v810_v6 = vmul.f32 %v2988_v35, %v4405_v59  ;;  %v831_v38 = vmul.f32 %v2929_v51, %v4406_v23  ;;  %v832_v62 = vmul.f32 %v2936_v11, %v4407_v43  ;;  %v4408_v13 = vld [vmem:[#allocation15_spill] sm:$0xff] }
  0xb5   :  { %v807_v44 = vadd.f32 %v806_v0, %v805_v29  ;;  %v720_v26 = vrot.slane %v719_v22, 2  ;;  %v744_v48 = vadd.f32 %v743_v4, %v742_v32  ;;  %v834_v0 = vmul.f32 %v2943_v56, %v4408_v13 }
  0xb6   :  { %v774_v18 = vadd.f32 %v773_v1, %v772_v31  ;;  %v812_v29 = vmul.f32 %v2998_v24, %v4335_v21  ;;  %v833_v59 = vadd.f32 %v832_v62, %v831_v38  ;;  %v836_v23 = vmul.f32 %v2948_v2, %v4371_v52  ;;  %v4409_v52 = vld [vmem:[#allocation19_spill] sm:$0xff] }
  0xb7   :  { %v809_v63 = vadd.f32 %v808_v7, %v807_v44  ;;  %v684_v43 = vadd.f32 %v683_v47, %v682_v57  ;;  %v751_v14 = vadd.f32 %v750_v36, %v749_v10  ;;  %v814_v31 = vmul.f32 %v3009_v45, %v4336_v40  ;;  %v4418_v40 = vld [vmem:[#allocation47_spill] sm:$0xff] }
  0xb8   :  { %v775_v32 = vrot.slane %v774_v18, 4  ;;  %v781_v4 = vmul.f32 %v774_v18, %v774_v18  ;;  %v835_v61 = vadd.f32 %v834_v0, %v833_v59  ;;  %v838_v13 = vmul.f32 %v2962_v5, %v2232_v33 }
  0xb9   :  { %v811_v1 = vadd.f32 %v810_v6, %v809_v63  ;;  %v691_v7 = vadd.f32 %v690_v58, %v689_v53  ;;  %v715_v44 = vrot.slane %v714_v41, 1  ;;  %v721_v39 = vadd.f32 %v720_v26, %v719_v22  ;;  %v4410_v6 = vld [vmem:[#allocation20_spill] sm:$0xff]  ;;  %v4411_v63 = vld [vmem:[#allocation22_spill] sm:$0xff]  ;;  %v4412_v53 = vld [vmem:[#allocation23_spill] sm:$0xff] }
  0xba   :  { %v745_v21 = vrot.slane %v744_v48, 2  ;;  %v776_v38 = vadd.f32 %v775_v32, %v774_v18  ;;  %v837_v19 = vadd.f32 %v836_v23, %v835_v61  ;;  %v840_v10 = vmul.f32 %v2973_v20, %v4409_v52  ;;  %v4413_v26 = vld [vmem:[#allocation25_spill] sm:$0xff]  ;;  %v4414_v52 = vld [vmem:[#allocation26_spill] sm:$0xff] }
  0xbb   :  { %v813_v62 = vadd.f32 %v812_v29, %v811_v1  ;;  %v752_v57 = vrot.slane %v751_v14, 2  ;;  %v782_v47 = vrot.slane %v781_v4, 4  ;;  %v842_v36 = vmul.f32 %v2988_v35, %v4410_v6 }
  0xbc   :  { %v863_v59 = vmul.f32 %v2929_v51, %v4411_v63  ;;  %v839_v33 = vadd.f32 %v838_v13, %v837_v19  ;;  %v864_v22 = vmul.f32 %v2936_v11, %v4412_v53  ;;  %v866_v58 = vmul.f32 %v2943_v56, %v4413_v26  ;;  %v4416_v53 = vld [vmem:[#allocation24_spill] sm:$0xff] }
  0xbd   :  { %v815_v0 = vadd.f32 %v814_v31, %v813_v62  ;;  %v716_v61 = vadd.f32 %v715_v44, %v714_v41  ;;  %v722_v23 = vrot.slane %v721_v39, 1  ;;  %v746_v18 = vadd.f32 %v745_v21, %v744_v48  ;;  %v4415_v31 = vld [vmem:[#allocation36_spill] sm:$0xff]  ;;  %v4417_v48 = vld [vmem:[#allocation27_spill] sm:$0xff] }
  0xbe   :  { %v844_v29 = vmul.f32 %v2998_v24, %v4378_v50  ;;  %v777_v32 = vrot.slane %v776_v38, 2  ;;  %v841_v1 = vadd.f32 %v840_v10, %v839_v33  ;;  %v865_v6 = vadd.f32 %v864_v22, %v863_v59 }
  0xbf   :  { %v868_v63 = vmul.f32 %v2948_v2, %v4414_v52  ;;  %v3036_v19 = vadd.f32 %v684_v43, %v4415_v31  ;;  %v753_v13 = vadd.f32 %v752_v57, %v751_v14  ;;  %v783_v62 = vadd.f32 %v782_v47, %v781_v4  ;;  %v4419_v31 = vld [vmem:[#allocation28_spill] sm:$0xff] }
  0xc0   :  { %v846_v26 = vmul.f32 %v3009_v45, %v4416_v53  ;;  %v822_v41 = vmul.f32 %v815_v0, %v815_v0  ;;  %v843_v44 = vadd.f32 %v842_v36, %v841_v1  ;;  %v867_v21 = vadd.f32 %v866_v58, %v865_v6  ;;  %v4420_v6 = vld [vmem:[#allocation30_spill] sm:$0xff]  ;;  %v4421_v1 = vld [vmem:[#allocation32_spill] sm:$0xff] }
  0xc1   :  { %v870_v50 = vmul.f32 %v2962_v5, %v4417_v48  ;;  %v3043_v33 = vadd.f32 %v691_v7, %v4418_v40  ;;  %v723_v10 = vadd.f32 %v722_v23, %v721_v39  ;;  %v3046_v59 = vadd.f32 %v716_v61, %v2899_v15 }
  0xc2   :  { %v747_v43 = vrot.slane %v746_v18, 1  ;;  %v778_v22 = vadd.f32 %v777_v32, %v776_v38  ;;  %v816_v14 = vrot.slane %v815_v0, 4  ;;  %v845_v4 = vadd.f32 %v844_v29, %v843_v44 }
  0xc3   :  { %v869_v57 = vadd.f32 %v868_v63, %v867_v21  ;;  %v754_v47 = vrot.slane %v753_v13, 1  ;;  %v872_v36 = vmul.f32 %v2973_v20, %v4419_v31  ;;  %v895_v58 = vmul.f32 %v2929_v51, %v4420_v6 }
  0xc4   :  { %v896_v40 = vmul.f32 %v2936_v11, %v4421_v1  ;;  %v784_v7 = vrot.slane %v783_v62, 2  ;;  %v823_v39 = vrot.slane %v822_v41, 4  ;;  %v847_v23 = vadd.f32 %v846_v26, %v845_v4 }
  0xc5   :  { %v871_v15 = vadd.f32 %v870_v50, %v869_v57  ;;  %v874_v38 = vmul.f32 %v2988_v35, %v4340_v17  ;;  %v898_v63 = vmul.f32 %v2943_v56, %v4382_v8  ;;  %v900_v29 = vmul.f32 %v2948_v2, %v4383_v37 }
  0xc6   :  { %v897_v61 = vadd.f32 %v896_v40, %v895_v58  ;;  %v3061_v32 = vadd.f32 %v723_v10, %v2902_v49  ;;  %v748_v44 = vadd.f32 %v747_v43, %v746_v18  ;;  %v779_v21 = vrot.slane %v778_v22, 1 }
  0xc7   :  { %v817_v1 = vadd.f32 %v816_v14, %v815_v0  ;;  %v873_v6 = vadd.f32 %v872_v36, %v871_v15  ;;  %v876_v50 = vmul.f32 %v2998_v24, %v4384_v54  ;;  %v902_v4 = vmul.f32 %v2962_v5, %v4312_v30 }
  0xc8   :  { %v899_v26 = vadd.f32 %v898_v63, %v897_v61  ;;  %v755_v57 = vadd.f32 %v754_v47, %v753_v13  ;;  %v785_v58 = vadd.f32 %v784_v7, %v783_v62  ;;  %v824_v40 = vadd.f32 %v823_v39, %v822_v41 }
  0xc9   :  { %v854_v8 = vmul.f32 %v847_v23, %v847_v23  ;;  %v875_v17 = vadd.f32 %v874_v38, %v873_v6  ;;  %v878_v49 = vmul.f32 %v3009_v45, %v4345_v55  ;;  %v904_v0 = vmul.f32 %v2973_v20, %v4313_v9 }
  0xca   :  { %v901_v10 = vadd.f32 %v900_v29, %v899_v26  ;;  %v3072_v18 = vadd.f32 %v748_v44, %v2907_v12  ;;  %v780_v43 = vadd.f32 %v779_v21, %v778_v22  ;;  %v818_v14 = vrot.slane %v817_v1, 2 }
  0xcb   :  { %v848_v36 = vrot.slane %v847_v23, 4  ;;  %v877_v15 = vadd.f32 %v876_v50, %v875_v17  ;;  %v906_v13 = vmul.f32 %v2988_v35, %v4315_v16  ;;  %v927_v62 = vmul.f32 %v2929_v51, %v4346_v3  ;;  %v4446_v16 = vld [vmem:[#allocation19_spill] sm:$0xff] }
  0xcc   :  { %v903_v61 = vadd.f32 %v902_v4, %v901_v10  ;;  %v786_v41 = vrot.slane %v785_v58, 1  ;;  %v825_v47 = vrot.slane %v824_v40, 2  ;;  %v855_v6 = vrot.slane %v854_v8, 4 }
  0xcd   :  { %v928_v7 = vmul.f32 %v2936_v11, %v2448_v27  ;;  %v879_v39 = vadd.f32 %v878_v49, %v877_v15  ;;  %v908_v22 = vmul.f32 %v2998_v24, %v4316_v34  ;;  %v930_v17 = vmul.f32 %v2943_v56, %v2451_v28  ;;  %v4424_v15 = vld [vmem:[#allocation46_spill] sm:$0xff] }
  0xce   :  { %v905_v12 = vadd.f32 %v904_v0, %v903_v61  ;;  %v819_v38 = vadd.f32 %v818_v14, %v817_v1  ;;  %v849_v63 = vadd.f32 %v848_v36, %v847_v23  ;;  %v932_v51 = vmul.f32 %v2948_v2, %v4348_v42  ;;  %v3096_v1 = vld [vmem:[%s4123_s0 + $0x28] sm:$0xff]  ;;  %v3101_v14 = vld [vmem:[%s4123_s0 + $0x80] sm:$0xff] }
  0xcf   :  { %v929_v29 = vadd.f32 %v928_v7, %v927_v62  ;;  %v880_v44 = vrot.slane %v879_v39, 4  ;;  %v886_v21 = vmul.f32 %v879_v39, %v879_v39  ;;  %v910_v11 = vmul.f32 %v3009_v45, %v4347_v25  ;;  %v3116_v62 = vld [vmem:[%s4123_s0 + $0x130] sm:$0xff]  ;;  %v4426_v7 = vld [vmem:[#allocation48_spill] sm:$0xff] }
  0xd0   :  { %v907_v50 = vadd.f32 %v906_v13, %v905_v12  ;;  %v3089_v26 = vadd.f32 %v755_v57, %v2924_v46  ;;  %v787_v4 = vadd.f32 %v786_v41, %v785_v58  ;;  %v934_v56 = vmul.f32 %v2962_v5, %v4387_v60  ;;  %v3106_v46 = vld [vmem:[%s4123_s0 + $0xd8] sm:$0xff]  ;;  %v4422_v5 = vld [vmem:[#allocation31_spill] sm:$0xff]  ;;  %v4425_v41 = vld [vmem:[#allocation5_spill] sm:$0xff] }
  0xd1   :  { %v931_v49 = vadd.f32 %v930_v17, %v929_v29  ;;  %v826_v2 = vadd.f32 %v825_v47, %v824_v40  ;;  %v856_v23 = vadd.f32 %v855_v6, %v854_v8  ;;  %v887_v10 = vrot.slane %v886_v21, 4  ;;  %v4427_v12 = vld [vmem:[#allocation6_spill] sm:$0xff]  ;;  %v4428_v17 = vld [vmem:[#allocation7_spill] sm:$0xff]  ;;  %v4442_v60 = vld [vmem:[#allocation16_spill] sm:$0xff] }
  0xd2   :  { %v909_v0 = vadd.f32 %v908_v22, %v907_v50  ;;  %v3109_v57 = vadd.f32 %v780_v43, %v4422_v5  ;;  %v820_v58 = vrot.slane %v819_v38, 1  ;;  %v936_v8 = vmul.f32 %v2973_v20, %v4424_v15  ;;  %v3129_v50 = vld [vmem:[%s4123_s0 + $0x188] sm:$0xff] }
  0xd3   :  { %v933_v36 = vadd.f32 %v932_v51, %v931_v49  ;;  %v850_v40 = vrot.slane %v849_v63, 2  ;;  %v881_v61 = vadd.f32 %v880_v44, %v879_v39  ;;  %v968_v47 = vmul.f32 %v3096_v1, %v4425_v41  ;;  %v4429_v49 = vld [vmem:[#allocation49_spill] sm:$0xff] }
  0xd4   :  { %4423 = vst [vmem:[#allocation53_spill] sm:$0xff] %v3109_v57  ;;  %v911_v13 = vadd.f32 %v910_v11, %v909_v0  ;;  %v938_v43 = vmul.f32 %v2988_v35, %v4426_v7  ;;  %v969_v22 = vmul.f32 %v3101_v14, %v4427_v12  ;;  %v971_v20 = vmul.f32 %v3106_v46, %v4428_v17  ;;  %v4430_v0 = vld [vmem:[#allocation8_spill] sm:$0xff] }
  0xd5   :  { %v935_v6 = vadd.f32 %v934_v56, %v933_v36  ;;  %v827_v39 = vrot.slane %v826_v2, 1  ;;  %v857_v29 = vrot.slane %v856_v23, 2  ;;  %v888_v51 = vadd.f32 %v887_v10, %v886_v21  ;;  %v4431_v36 = vld [vmem:[#allocation51_spill] sm:$0xff]  ;;  %v3141_v10 = vld [vmem:[%s4123_s0 + $0x1e0] sm:$0xff] }
  0xd6   :  { %v918_v44 = vmul.f32 %v911_v13, %v911_v13  ;;  %v940_v56 = vmul.f32 %v2998_v24, %v4429_v49  ;;  %v970_v35 = vadd.f32 %v969_v22, %v968_v47  ;;  %v973_v5 = vmul.f32 %v3116_v62, %v4430_v0  ;;  %v3148_v24 = vld [vmem:[%s4123_s0 + $0x238] sm:$0xff] }
  0xd7   :  { %v937_v11 = vadd.f32 %v936_v8, %v935_v6  ;;  %v3136_v57 = vadd.f32 %v787_v4, %v4431_v36  ;;  %v851_v17 = vadd.f32 %v850_v40, %v849_v63  ;;  %v882_v7 = vrot.slane %v881_v61, 2  ;;  %v4433_v8 = vld [vmem:[#allocation50_spill] sm:$0xff]  ;;  %v4434_v4 = vld [vmem:[#allocation9_spill] sm:$0xff] }
  0xd8   :  { %v912_v21 = vrot.slane %v911_v13, 4  ;;  %v942_v6 = vmul.f32 %v3009_v45, %v4433_v8  ;;  %v972_v47 = vadd.f32 %v971_v20, %v970_v35  ;;  %v975_v63 = vmul.f32 %v3129_v50, %v4434_v4  ;;  %v3157_v20 = vld [vmem:[%s4123_s0 + $0x290] sm:$0xff] }
  0xd9   :  { %4432 = vst [vmem:[#allocation54_spill] sm:$0xff] %v3136_v57  ;;  %v939_v12 = vadd.f32 %v938_v43, %v937_v11  ;;  %v821_v40 = vadd.f32 %v820_v58, %v819_v38  ;;  %v858_v22 = vadd.f32 %v857_v29, %v856_v23  ;;  %v889_v36 = vrot.slane %v888_v51, 2  ;;  %v4435_v43 = vld [vmem:[#allocation10_spill] sm:$0xff]  ;;  %v4436_v35 = vld [vmem:[#allocation11_spill] sm:$0xff] }
  0xda   :  { %v919_v57 = vrot.slane %v918_v44, 4  ;;  %v828_v49 = vadd.f32 %v827_v39, %v826_v2  ;;  %v974_v41 = vadd.f32 %v973_v5, %v972_v47  ;;  %v977_v11 = vmul.f32 %v3141_v10, %v4435_v43  ;;  %v3164_v2 = vld [vmem:[%s4123_s0 + $0x2e8] sm:$0xff]  ;;  %v4439_v5 = vld [vmem:[#allocation15_spill] sm:$0xff] }
  0xdb   :  { %v941_v0 = vadd.f32 %v940_v56, %v939_v12  ;;  %v852_v45 = vrot.slane %v851_v17, 1  ;;  %v883_v8 = vadd.f32 %v882_v7, %v881_v61  ;;  %v913_v15 = vadd.f32 %v912_v21, %v911_v13  ;;  %v4437_v12 = vld [vmem:[#allocation13_spill] sm:$0xff]  ;;  %v4438_v61 = vld [vmem:[#allocation14_spill] sm:$0xff] }
  0xdc   :  { %v979_v38 = vmul.f32 %v3148_v24, %v4436_v35  ;;  %v976_v58 = vadd.f32 %v975_v63, %v974_v41  ;;  %v1000_v39 = vmul.f32 %v3096_v1, %v4437_v12  ;;  %v1001_v13 = vmul.f32 %v3101_v14, %v4438_v61  ;;  %v4441_v63 = vld [vmem:[#allocation18_spill] sm:$0xff] }
  0xdd   :  { %v943_v23 = vadd.f32 %v942_v6, %v941_v0  ;;  %v859_v7 = vrot.slane %v858_v22, 1  ;;  %v890_v29 = vadd.f32 %v889_v36, %v888_v51  ;;  %v920_v56 = vadd.f32 %v919_v57, %v918_v44  ;;  %v4440_v6 = vld [vmem:[#allocation12_spill] sm:$0xff]  ;;  %v4443_v44 = vld [vmem:[#allocation17_spill] sm:$0xff] }
  0xde   :  { %v1003_v21 = vmul.f32 %v3106_v46, %v4439_v5  ;;  %v978_v0 = vadd.f32 %v977_v11, %v976_v58  ;;  %v981_v35 = vmul.f32 %v3157_v20, %v4440_v6  ;;  %v1002_v43 = vadd.f32 %v1001_v13, %v1000_v39  ;;  %v4444_v5 = vld [vmem:[#allocation52_spill] sm:$0xff] }
  0xdf   :  { %v950_v47 = vmul.f32 %v943_v23, %v943_v23  ;;  %v884_v4 = vrot.slane %v883_v8, 1  ;;  %v914_v41 = vrot.slane %v913_v15, 2  ;;  %v983_v12 = vmul.f32 %v3164_v2, %v4441_v63  ;;  %v4445_v63 = vld [vmem:[#allocation35_spill] sm:$0xff] }
  0xe0   :  { %v1005_v61 = vmul.f32 %v3116_v62, %v4442_v60  ;;  %v944_v25 = vrot.slane %v943_v23, 4  ;;  %v980_v51 = vadd.f32 %v979_v38, %v978_v0  ;;  %v1004_v57 = vadd.f32 %v1003_v21, %v1002_v43  ;;  %v4447_v38 = vld [vmem:[#allocation22_spill] sm:$0xff] }
  0xe1   :  { %v1007_v36 = vmul.f32 %v3129_v50, %v4443_v44  ;;  %v3181_v11 = vadd.f32 %v821_v40, %v4444_v5  ;;  %v853_v58 = vadd.f32 %v852_v45, %v851_v17  ;;  %v860_v6 = vadd.f32 %v859_v7, %v858_v22  ;;  %v4448_v45 = vld [vmem:[#allocation20_spill] sm:$0xff] }
  0xe2   :  { %v891_v39 = vrot.slane %v890_v29, 1  ;;  %v921_v13 = vrot.slane %v920_v56, 2  ;;  %v951_v42 = vrot.slane %v950_v47, 4  ;;  %v982_v34 = vadd.f32 %v981_v35, %v980_v51 }
  0xe3   :  { %v1006_v28 = vadd.f32 %v1005_v61, %v1004_v57  ;;  %v3184_v27 = vadd.f32 %v828_v49, %v4445_v63  ;;  %v885_v60 = vadd.f32 %v884_v4, %v883_v8  ;;  %v1009_v43 = vmul.f32 %v3141_v10, %v4446_v16  ;;  %v4449_v61 = vld [vmem:[#allocation23_spill] sm:$0xff]  ;;  %v4450_v8 = vld [vmem:[#allocation25_spill] sm:$0xff] }
  0xe4   :  { %v1032_v21 = vmul.f32 %v3096_v1, %v4447_v38  ;;  %v915_v0 = vadd.f32 %v914_v41, %v913_v15  ;;  %v945_v40 = vadd.f32 %v944_v25, %v943_v23  ;;  %v984_v5 = vadd.f32 %v983_v12, %v982_v34 }
  0xe5   :  { %v1008_v17 = vadd.f32 %v1007_v36, %v1006_v28  ;;  %v3191_v22 = vadd.f32 %v853_v58, %v3036_v19  ;;  %v1011_v35 = vmul.f32 %v3148_v24, %v4448_v45  ;;  %v1033_v49 = vmul.f32 %v3101_v14, %v4449_v61  ;;  %v4452_v28 = vld [vmem:[#allocation21_spill] sm:$0xff] }
  0xe6   :  { %v1035_v4 = vmul.f32 %v3106_v46, %v4450_v8  ;;  %v3200_v7 = vadd.f32 %v860_v6, %v3043_v33  ;;  %v892_v63 = vadd.f32 %v891_v39, %v890_v29  ;;  %v922_v15 = vadd.f32 %v921_v13, %v920_v56 }
  0xe7   :  { %v952_v25 = vadd.f32 %v951_v42, %v950_v47  ;;  %v1010_v34 = vadd.f32 %v1009_v43, %v1008_v17  ;;  %v1013_v19 = vmul.f32 %v3157_v20, %v4452_v28  ;;  %v1034_v23 = vadd.f32 %v1033_v49, %v1032_v21  ;;  %v4455_v21 = vld [vmem:[#allocation32_spill] sm:$0xff] }
  0xe8   :  { %4451 = vst [vmem:[#allocation36_spill] sm:$0xff] %v3200_v7  ;;  %v1037_v12 = vmul.f32 %v3116_v62, %v4414_v52  ;;  %v3207_v41 = vadd.f32 %v885_v60, %v3046_v59  ;;  %v916_v51 = vrot.slane %v915_v0, 1  ;;  %v946_v57 = vrot.slane %v945_v40, 2  ;;  %v4454_v59 = vld [vmem:[#allocation30_spill] sm:$0xff] }
  0xe9   :  { %v991_v36 = vmul.f32 %v984_v5, %v984_v5  ;;  %v1012_v58 = vadd.f32 %v1011_v35, %v1010_v34  ;;  %v1015_v33 = vmul.f32 %v3164_v2, %v4416_v53  ;;  %v1036_v29 = vadd.f32 %v1035_v4, %v1034_v23  ;;  %v4456_v4 = vld [vmem:[#allocation29_spill] sm:$0xff] }
  0xea   :  { %4453 = vst [vmem:[#allocation47_spill] sm:$0xff] %v3207_v41  ;;  %v1039_v42 = vmul.f32 %v3129_v50, %v4417_v48  ;;  %v923_v56 = vrot.slane %v922_v15, 1  ;;  %v953_v47 = vrot.slane %v952_v25, 2  ;;  %v985_v6 = vrot.slane %v984_v5, 4  ;;  %v4457_v23 = vld [vmem:[#allocation33_spill] sm:$0xff] }
  0xeb   :  { %v1041_v39 = vmul.f32 %v3141_v10, %v4419_v31  ;;  %v1014_v13 = vadd.f32 %v1013_v19, %v1012_v58  ;;  %v1038_v60 = vadd.f32 %v1037_v12, %v1036_v29  ;;  %v1064_v43 = vmul.f32 %v3096_v1, %v4454_v59 }
  0xec   :  { %v1065_v17 = vmul.f32 %v3101_v14, %v4455_v21  ;;  %v947_v35 = vadd.f32 %v946_v57, %v945_v40  ;;  %v992_v49 = vrot.slane %v991_v36, 4  ;;  %v1043_v34 = vmul.f32 %v3148_v24, %v4456_v4 }
  0xed   :  { %v1067_v53 = vmul.f32 %v3106_v46, %v4457_v23  ;;  %v1016_v48 = vadd.f32 %v1015_v33, %v1014_v13  ;;  %v1040_v41 = vadd.f32 %v1039_v42, %v1038_v60  ;;  %v1069_v19 = vmul.f32 %v3116_v62, %v4383_v37 }
  0xee   :  { %v1066_v7 = vadd.f32 %v1065_v17, %v1064_v43  ;;  %v917_v12 = vadd.f32 %v916_v51, %v915_v0  ;;  %v924_v58 = vadd.f32 %v923_v56, %v922_v15  ;;  %v954_v29 = vadd.f32 %v953_v47, %v952_v25 }
  0xef   :  { %v986_v59 = vadd.f32 %v985_v6, %v984_v5  ;;  %v1042_v31 = vadd.f32 %v1041_v39, %v1040_v41  ;;  %v1045_v40 = vmul.f32 %v3157_v20, %v4384_v54  ;;  %v1071_v21 = vmul.f32 %v3129_v50, %v4312_v30  ;;  %v4461_v39 = vld [vmem:[#allocation42_spill] sm:$0xff] }
  0xf0   :  { %v1068_v57 = vadd.f32 %v1067_v53, %v1066_v7  ;;  %v3230_v23 = vadd.f32 %v892_v63, %v3061_v32  ;;  %v948_v33 = vrot.slane %v947_v35, 1  ;;  %v993_v42 = vadd.f32 %v992_v49, %v991_v36 }
  0xf1   :  { %v1047_v13 = vmul.f32 %v3164_v2, %v4345_v55  ;;  %v1023_v0 = vmul.f32 %v1016_v48, %v1016_v48  ;;  %v1044_v15 = vadd.f32 %v1043_v34, %v1042_v31  ;;  %v1073_v5 = vmul.f32 %v3141_v10, %v4313_v9  ;;  %v4460_v31 = vld [vmem:[#allocation38_spill] sm:$0xff] }
  0xf2   :  { %v1070_v25 = vadd.f32 %v1069_v19, %v1068_v57  ;;  %v3237_v41 = vadd.f32 %v917_v12, %v3072_v18  ;;  %v3240_v53 = vadd.f32 %v924_v58, %v3089_v26  ;;  %v955_v7 = vrot.slane %v954_v29, 1  ;;  %v4462_v18 = vld [vmem:[#allocation43_spill] sm:$0xff] }
  0xf3   :  { %v1096_v32 = vmul.f32 %v3096_v1, %v4346_v3  ;;  %v987_v63 = vrot.slane %v986_v59, 2  ;;  %v1017_v51 = vrot.slane %v1016_v48, 4  ;;  %v1046_v36 = vadd.f32 %v1045_v40, %v1044_v15  ;;  %v4463_v1 = vld [vmem:[#allocation39_spill] sm:$0xff] }
  0xf4   :  { %4458 = vst [vmem:[#allocation31_spill] sm:$0xff] %v3237_v41  ;;  %v1072_v56 = vadd.f32 %v1071_v21, %v1070_v25  ;;  %v949_v47 = vadd.f32 %v948_v33, %v947_v35  ;;  %v1075_v6 = vmul.f32 %v3148_v24, %v4460_v31  ;;  %v1097_v60 = vmul.f32 %v3101_v14, %v4461_v39  ;;  %v4464_v21 = vld [vmem:[#allocation44_spill] sm:$0xff]  ;;  %v3257_v14 = vld [vmem:[%s4123_s0 + $0x30] sm:$0xff] }
  0xf5   :  { %4459 = vst [vmem:[#allocation51_spill] sm:$0xff] %v3240_v53  ;;  %v1099_v43 = vmul.f32 %v3106_v46, %v4462_v18  ;;  %v994_v26 = vrot.slane %v993_v42, 2  ;;  %v1024_v17 = vrot.slane %v1023_v0, 4  ;;  %v1048_v49 = vadd.f32 %v1047_v13, %v1046_v36  ;;  %v3262_v46 = vld [vmem:[%s4123_s0 + $0x88] sm:$0xff]  ;;  %v4465_v13 = vld [vmem:[#allocation40_spill] sm:$0xff]  ;;  %v3273_v36 = vld [vmem:[%s4123_s0 + $0xe0] sm:$0xff] }
  0xf6   :  { %v1074_v34 = vadd.f32 %v1073_v5, %v1072_v56  ;;  %v956_v19 = vadd.f32 %v955_v7, %v954_v29  ;;  %v1077_v12 = vmul.f32 %v3157_v20, %v4463_v1  ;;  %v1098_v58 = vadd.f32 %v1097_v60, %v1096_v32  ;;  %v3278_v60 = vld [vmem:[%s4123_s0 + $0x138] sm:$0xff] }
  0xf7   :  { %v1101_v35 = vmul.f32 %v3116_v62, %v4464_v21  ;;  %v988_v40 = vadd.f32 %v987_v63, %v986_v59  ;;  %v1018_v57 = vadd.f32 %v1017_v51, %v1016_v48  ;;  %v1049_v33 = vrot.slane %v1048_v49, 4  ;;  %v4466_v62 = vld [vmem:[#allocation45_spill] sm:$0xff]  ;;  %v4467_v63 = vld [vmem:[#allocation46_spill] sm:$0xff] }
  0xf8   :  { %v1055_v15 = vmul.f32 %v1048_v49, %v1048_v49  ;;  %v1076_v29 = vadd.f32 %v1075_v6, %v1074_v34  ;;  %v1079_v25 = vmul.f32 %v3164_v2, %v4465_v13  ;;  %v1100_v5 = vadd.f32 %v1099_v43, %v1098_v58  ;;  %v4468_v43 = vld [vmem:[#allocation5_spill] sm:$0xff]  ;;  %v4470_v34 = vld [vmem:[#allocation48_spill] sm:$0xff] }
  0xf9   :  { %v1103_v48 = vmul.f32 %v3129_v50, %v4466_v62  ;;  %v995_v59 = vadd.f32 %v994_v26, %v993_v42  ;;  %v1025_v7 = vadd.f32 %v1024_v17, %v1023_v0  ;;  %v1105_v51 = vmul.f32 %v3141_v10, %v4467_v63  ;;  %v4469_v42 = vld [vmem:[#allocation6_spill] sm:$0xff] }
  0xfa   :  { %v1056_v32 = vrot.slane %v1055_v15, 4  ;;  %v1078_v56 = vadd.f32 %v1077_v12, %v1076_v29  ;;  %v1102_v6 = vadd.f32 %v1101_v35, %v1100_v5  ;;  %v1137_v50 = vmul.f32 %v3257_v14, %v4468_v43  ;;  %v3289_v35 = vld [vmem:[%s4123_s0 + $0x190] sm:$0xff] }
  0xfb   :  { %v1138_v0 = vmul.f32 %v3262_v46, %v4469_v42  ;;  %v1019_v26 = vrot.slane %v1018_v57, 2  ;;  %v1050_v10 = vadd.f32 %v1049_v33, %v1048_v49  ;;  %v1107_v58 = vmul.f32 %v3148_v24, %v4470_v34  ;;  %v4471_v5 = vld [vmem:[#allocation7_spill] sm:$0xff]  ;;  %v3296_v49 = vld [vmem:[%s4123_s0 + $0x1e8] sm:$0xff]  ;;  %v4472_v24 = vld [vmem:[#allocation8_spill] sm:$0xff] }
  0xfc   :  { %v1057_v17 = vadd.f32 %v1056_v32, %v1055_v15  ;;  %v1080_v63 = vadd.f32 %v1079_v25, %v1078_v56  ;;  %v1104_v12 = vadd.f32 %v1103_v48, %v1102_v6  ;;  %v1140_v43 = vmul.f32 %v3273_v36, %v4471_v5  ;;  %v4473_v48 = vld [vmem:[#allocation49_spill] sm:$0xff] }
  0xfd   :  { %v1139_v29 = vadd.f32 %v1138_v0, %v1137_v50  ;;  %v989_v53 = vrot.slane %v988_v40, 1  ;;  %v996_v62 = vrot.slane %v995_v59, 1  ;;  %v1026_v42 = vrot.slane %v1025_v7, 2  ;;  %v4474_v0 = vld [vmem:[#allocation50_spill] sm:$0xff]  ;;  %v4475_v34 = vld [vmem:[#allocation9_spill] sm:$0xff] }
  0xfe   :  { %v1142_v33 = vmul.f32 %v3278_v60, %v4472_v24  ;;  %v1087_v15 = vmul.f32 %v1080_v63, %v1080_v63  ;;  %v1106_v25 = vadd.f32 %v1105_v51, %v1104_v12  ;;  %v1109_v32 = vmul.f32 %v3157_v20, %v4473_v48  ;;  %v3309_v24 = vld [vmem:[%s4123_s0 + $0x240] sm:$0xff]  ;;  %v4476_v12 = vld [vmem:[#allocation10_spill] sm:$0xff] }
  0xff   :  { %v1141_v56 = vadd.f32 %v1140_v43, %v1139_v29  ;;  %v1020_v6 = vadd.f32 %v1019_v26, %v1018_v57  ;;  %v1051_v50 = vrot.slane %v1050_v10, 2  ;;  %v1111_v5 = vmul.f32 %v3164_v2, %v4474_v0  ;;  %v4477_v43 = vld [vmem:[#allocation53_spill] sm:$0xff]  ;;  %v4479_v26 = vld [vmem:[#allocation54_spill] sm:$0xff] }
 0x100   :  { %v1144_v13 = vmul.f32 %v3289_v35, %v4475_v34  ;;  %v1058_v41 = vrot.slane %v1057_v17, 2  ;;  %v1108_v21 = vadd.f32 %v1107_v58, %v1106_v25  ;;  %v1146_v20 = vmul.f32 %v3296_v49, %v4476_v12  ;;  %v3322_v25 = vld [vmem:[%s4123_s0 + $0x298] sm:$0xff]  ;;  %v4485_v12 = vld [vmem:[#allocation15_spill] sm:$0xff] }
 0x101   :  { %v1143_v51 = vadd.f32 %v1142_v33, %v1141_v56  ;;  %v3314_v57 = vadd.f32 %v949_v47, %v4477_v43  ;;  %v3317_v29 = vadd.f32 %v956_v19, %v4479_v26  ;;  %v990_v2 = vadd.f32 %v989_v53, %v988_v40  ;;  %v3327_v47 = vld [vmem:[%s4123_s0 + $0x2f0] sm:$0xff]  ;;  %v4482_v40 = vld [vmem:[#allocation13_spill] sm:$0xff] }
 0x102   :  { %v1027_v0 = vadd.f32 %v1026_v42, %v1025_v7  ;;  %v1081_v34 = vrot.slane %v1080_v63, 4  ;;  %v1088_v48 = vrot.slane %v1087_v15, 4  ;;  %v1110_v58 = vadd.f32 %v1109_v32, %v1108_v21  ;;  %v4481_v19 = vld [vmem:[#allocation11_spill] sm:$0xff] }
 0x103   :  { %4478 = vst [vmem:[#allocation52_spill] sm:$0xff] %v3314_v57  ;;  %v1145_v33 = vadd.f32 %v1144_v13, %v1143_v51  ;;  %v997_v56 = vadd.f32 %v996_v62, %v995_v59  ;;  %v1021_v1 = vrot.slane %v1020_v6, 1  ;;  %v1148_v53 = vmul.f32 %v3309_v24, %v4481_v19  ;;  %v4483_v13 = vld [vmem:[#allocation12_spill] sm:$0xff]  ;;  %v4484_v59 = vld [vmem:[#allocation14_spill] sm:$0xff] }
 0x104   :  { %4480 = vst [vmem:[#allocation35_spill] sm:$0xff] %v3317_v29  ;;  %v1169_v7 = vmul.f32 %v3257_v14, %v4482_v40  ;;  %v1052_v21 = vadd.f32 %v1051_v50, %v1050_v10  ;;  %v1059_v42 = vadd.f32 %v1058_v41, %v1057_v17  ;;  %v1112_v32 = vadd.f32 %v1111_v5, %v1110_v58  ;;  %v4486_v40 = vld [vmem:[#allocation18_spill] sm:$0xff] }
 0x105   :  { %v1147_v43 = vadd.f32 %v1146_v20, %v1145_v33  ;;  %v3334_v26 = vadd.f32 %v990_v2, %v3181_v11  ;;  %v1150_v62 = vmul.f32 %v3322_v25, %v4483_v13  ;;  %v1170_v51 = vmul.f32 %v3262_v46, %v4484_v59  ;;  %v4487_v11 = vld [vmem:[#allocation16_spill] sm:$0xff] }
 0x106   :  { %v1172_v29 = vmul.f32 %v3273_v36, %v4485_v12  ;;  %v1028_v19 = vrot.slane %v1027_v0, 1  ;;  %v1082_v57 = vadd.f32 %v1081_v34, %v1080_v63  ;;  %v1089_v18 = vadd.f32 %v1088_v48, %v1087_v15 }
 0x107   :  { %v1152_v41 = vmul.f32 %v3327_v47, %v4486_v40  ;;  %v1119_v10 = vmul.f32 %v1112_v32, %v1112_v32  ;;  %v1149_v17 = vadd.f32 %v1148_v53, %v1147_v43  ;;  %v1171_v5 = vadd.f32 %v1170_v51, %v1169_v7 }
 0x108   :  { %v1174_v50 = vmul.f32 %v3278_v60, %v4487_v11  ;;  %v3347_v20 = vadd.f32 %v997_v56, %v3184_v27  ;;  %v1022_v2 = vadd.f32 %v1021_v1, %v1020_v6  ;;  %v1053_v58 = vrot.slane %v1052_v21, 1 }
 0x109   :  { %v1060_v33 = vrot.slane %v1059_v42, 1  ;;  %v1113_v13 = vrot.slane %v1112_v32, 4  ;;  %v1151_v12 = vadd.f32 %v1150_v62, %v1149_v17  ;;  %v1173_v59 = vadd.f32 %v1172_v29, %v1171_v5 }
 0x10a   :  { %v1176_v63 = vmul.f32 %v3289_v35, %v4443_v44  ;;  %v1029_v34 = vadd.f32 %v1028_v19, %v1027_v0  ;;  %v1083_v15 = vrot.slane %v1082_v57, 2  ;;  %v1090_v48 = vrot.slane %v1089_v18, 2 }
 0x10b   :  { %v1178_v53 = vmul.f32 %v3296_v49, %v4446_v16  ;;  %v1120_v7 = vrot.slane %v1119_v10, 4  ;;  %v1153_v43 = vadd.f32 %v1152_v41, %v1151_v12  ;;  %v1175_v51 = vadd.f32 %v1174_v50, %v1173_v59 }
 0x10c   :  { %v1201_v27 = vmul.f32 %v3257_v14, %v4447_v38  ;;  %v3356_v1 = vadd.f32 %v1022_v2, %v3191_v22  ;;  %v1054_v6 = vadd.f32 %v1053_v58, %v1052_v21  ;;  %v1061_v29 = vadd.f32 %v1060_v33, %v1059_v42  ;;  %v4490_v2 = vld [vmem:[#allocation47_spill] sm:$0xff] }
 0x10d   :  { %v1202_v56 = vmul.f32 %v3262_v46, %v4449_v61  ;;  %v1114_v0 = vadd.f32 %v1113_v13, %v1112_v32  ;;  %v1177_v19 = vadd.f32 %v1176_v63, %v1175_v51  ;;  %v1180_v62 = vmul.f32 %v3309_v24, %v4448_v45  ;;  %v4488_v32 = vld [vmem:[#allocation36_spill] sm:$0xff]  ;;  %v4492_v63 = vld [vmem:[#allocation27_spill] sm:$0xff] }
 0x10e   :  { %v1204_v12 = vmul.f32 %v3273_v36, %v4450_v8  ;;  %v1084_v59 = vadd.f32 %v1083_v15, %v1082_v57  ;;  %v1091_v41 = vadd.f32 %v1090_v48, %v1089_v18  ;;  %v1206_v22 = vmul.f32 %v3278_v60, %v4414_v52  ;;  %v4493_v51 = vld [vmem:[#allocation24_spill] sm:$0xff] }
 0x10f   :  { %v1203_v17 = vadd.f32 %v1202_v56, %v1201_v27  ;;  %v1121_v5 = vadd.f32 %v1120_v7, %v1119_v10  ;;  %v1160_v21 = vmul.f32 %v1153_v43, %v1153_v43  ;;  %v1179_v42 = vadd.f32 %v1178_v53, %v1177_v19 }
 0x110   :  { %v1182_v50 = vmul.f32 %v3322_v25, %v4452_v28  ;;  %v3369_v13 = vadd.f32 %v1029_v34, %v4488_v32  ;;  %v3372_v58 = vadd.f32 %v1054_v6, %v4490_v2  ;;  %v1208_v18 = vmul.f32 %v3289_v35, %v4492_v63  ;;  %v4495_v34 = vld [vmem:[#allocation28_spill] sm:$0xff] }
 0x111   :  { %v1205_v33 = vadd.f32 %v1204_v12, %v1203_v17  ;;  %v1115_v57 = vrot.slane %v1114_v0, 2  ;;  %v1154_v15 = vrot.slane %v1153_v43, 4  ;;  %v1181_v48 = vadd.f32 %v1180_v62, %v1179_v42  ;;  %v4496_v62 = vld [vmem:[#allocation30_spill] sm:$0xff] }
 0x112   :  { %4489 = vst [vmem:[#allocation53_spill] sm:$0xff] %v3369_v13  ;;  %v1184_v10 = vmul.f32 %v3327_v47, %v4493_v51  ;;  %v3379_v53 = vadd.f32 %v1061_v29, %v3230_v23  ;;  %v1085_v7 = vrot.slane %v1084_v59, 1  ;;  %v1210_v56 = vmul.f32 %v3296_v49, %v4495_v34 }
 0x113   :  { %4491 = vst [vmem:[#allocation54_spill] sm:$0xff] %v3372_v58  ;;  %v1207_v27 = vadd.f32 %v1206_v22, %v1205_v33  ;;  %v1092_v6 = vrot.slane %v1091_v41, 1  ;;  %v1122_v19 = vrot.slane %v1121_v5, 2  ;;  %v1161_v12 = vrot.slane %v1160_v21, 4  ;;  %v4497_v58 = vld [vmem:[#allocation32_spill] sm:$0xff]  ;;  %v4498_v33 = vld [vmem:[#allocation33_spill] sm:$0xff] }
 0x114   :  { %4494 = vst [vmem:[#allocation36_spill] sm:$0xff] %v3379_v53  ;;  %v1183_v17 = vadd.f32 %v1182_v50, %v1181_v48  ;;  %v1212_v2 = vmul.f32 %v3309_v24, %v4456_v4  ;;  %v1233_v42 = vmul.f32 %v3257_v14, %v4496_v62  ;;  %v1234_v23 = vmul.f32 %v3262_v46, %v4497_v58 }
 0x115   :  { %v1209_v32 = vadd.f32 %v1208_v18, %v1207_v27  ;;  %v1116_v29 = vadd.f32 %v1115_v57, %v1114_v0  ;;  %v1155_v53 = vadd.f32 %v1154_v15, %v1153_v43  ;;  %v1236_v34 = vmul.f32 %v3273_v36, %v4498_v33 }
 0x116   :  { %v1185_v22 = vadd.f32 %v1184_v10, %v1183_v17  ;;  %v1214_v50 = vmul.f32 %v3322_v25, %v4384_v54  ;;  %v1235_v18 = vadd.f32 %v1234_v23, %v1233_v42  ;;  %v1238_v48 = vmul.f32 %v3278_v60, %v4383_v37  ;;  %v4500_v23 = vld [vmem:[#allocation39_spill] sm:$0xff] }
 0x117   :  { %v1211_v63 = vadd.f32 %v1210_v56, %v1209_v32  ;;  %v1086_v27 = vadd.f32 %v1085_v7, %v1084_v59  ;;  %v1123_v4 = vadd.f32 %v1122_v19, %v1121_v5  ;;  %v1162_v62 = vadd.f32 %v1161_v12, %v1160_v21 }
 0x118   :  { %v1186_v51 = vrot.slane %v1185_v22, 4  ;;  %v1192_v13 = vmul.f32 %v1185_v22, %v1185_v22  ;;  %v1237_v0 = vadd.f32 %v1236_v34, %v1235_v18  ;;  %v1240_v43 = vmul.f32 %v3289_v35, %v4312_v30 }
 0x119   :  { %v1213_v58 = vadd.f32 %v1212_v2, %v1211_v63  ;;  %v1093_v57 = vadd.f32 %v1092_v6, %v1091_v41  ;;  %v1117_v15 = vrot.slane %v1116_v29, 1  ;;  %v1156_v10 = vrot.slane %v1155_v53, 2 }
 0x11a   :  { %v1187_v56 = vadd.f32 %v1186_v51, %v1185_v22  ;;  %v1216_v32 = vmul.f32 %v3327_v47, %v4345_v55  ;;  %v1239_v42 = vadd.f32 %v1238_v48, %v1237_v0  ;;  %v1242_v59 = vmul.f32 %v3296_v49, %v4313_v9  ;;  %v4499_v51 = vld [vmem:[#allocation43_spill] sm:$0xff]  ;;  %v4501_v0 = vld [vmem:[#allocation44_spill] sm:$0xff] }
 0x11b   :  { %v1215_v17 = vadd.f32 %v1214_v50, %v1213_v58  ;;  %v1124_v5 = vrot.slane %v1123_v4, 1  ;;  %v1163_v21 = vrot.slane %v1162_v62, 2  ;;  %v1244_v63 = vmul.f32 %v3309_v24, %v4460_v31  ;;  %v4502_v31 = vld [vmem:[#allocation31_spill] sm:$0xff] }
 0x11c   :  { %v1265_v7 = vmul.f32 %v3257_v14, %v4346_v3  ;;  %v1193_v41 = vrot.slane %v1192_v13, 4  ;;  %v1241_v34 = vadd.f32 %v1240_v43, %v1239_v42  ;;  %v1266_v58 = vmul.f32 %v3262_v46, %v4461_v39  ;;  %v4503_v39 = vld [vmem:[#allocation40_spill] sm:$0xff] }
 0x11d   :  { %v1268_v6 = vmul.f32 %v3273_v36, %v4499_v51  ;;  %v1118_v19 = vadd.f32 %v1117_v15, %v1116_v29  ;;  %v1157_v12 = vadd.f32 %v1156_v10, %v1155_v53  ;;  %v1188_v2 = vrot.slane %v1187_v56, 2  ;;  %v4504_v10 = vld [vmem:[#allocation45_spill] sm:$0xff] }
 0x11e   :  { %v1246_v22 = vmul.f32 %v3322_v25, %v4500_v23  ;;  %v1217_v50 = vadd.f32 %v1216_v32, %v1215_v17  ;;  %v1243_v18 = vadd.f32 %v1242_v59, %v1241_v34  ;;  %v1267_v48 = vadd.f32 %v1266_v58, %v1265_v7  ;;  %v3423_v17 = vld [vmem:[%s4123_s0 + $0x38] sm:$0xff]  ;;  %v3444_v7 = vld [vmem:[%s4123_s0 + $0x140] sm:$0xff]  ;;  %v4509_v34 = vld [vmem:[#allocation46_spill] sm:$0xff] }
 0x11f   :  { %v1270_v14 = vmul.f32 %v3278_v60, %v4501_v0  ;;  %v3414_v43 = vadd.f32 %v1086_v27, %v4502_v31  ;;  %v1125_v42 = vadd.f32 %v1124_v5, %v1123_v4  ;;  %v1164_v46 = vadd.f32 %v1163_v21, %v1162_v62  ;;  %v3428_v31 = vld [vmem:[%s4123_s0 + $0x90] sm:$0xff]  ;;  %v4506_v62 = vld [vmem:[#allocation52_spill] sm:$0xff]  ;;  %v4510_v58 = vld [vmem:[#allocation5_spill] sm:$0xff] }
 0x120   :  { %v1248_v36 = vmul.f32 %v3327_v47, %v4503_v39  ;;  %v1194_v29 = vadd.f32 %v1193_v41, %v1192_v13  ;;  %v1245_v53 = vadd.f32 %v1244_v63, %v1243_v18  ;;  %v1269_v15 = vadd.f32 %v1268_v6, %v1267_v48  ;;  %v4505_v4 = vld [vmem:[#allocation51_spill] sm:$0xff]  ;;  %v3439_v63 = vld [vmem:[%s4123_s0 + $0xe8] sm:$0xff] }
 0x121   :  { %v1272_v23 = vmul.f32 %v3289_v35, %v4504_v10  ;;  %v3431_v60 = vadd.f32 %v1093_v57, %v4505_v4  ;;  %v3434_v13 = vadd.f32 %v1118_v19, %v4506_v62  ;;  %v1158_v27 = vrot.slane %v1157_v12, 1  ;;  %v4507_v57 = vld [vmem:[#allocation35_spill] sm:$0xff]  ;;  %v4511_v19 = vld [vmem:[#allocation6_spill] sm:$0xff] }
 0x122   :  { %v1189_v32 = vadd.f32 %v1188_v2, %v1187_v56  ;;  %v1218_v59 = vrot.slane %v1217_v50, 4  ;;  %v1224_v35 = vmul.f32 %v1217_v50, %v1217_v50  ;;  %v1247_v5 = vadd.f32 %v1246_v22, %v1245_v53  ;;  %v3458_v53 = vld [vmem:[%s4123_s0 + $0x198] sm:$0xff]  ;;  %v4518_v39 = vld [vmem:[#allocation10_spill] sm:$0xff] }
 0x123   :  { %v1271_v21 = vadd.f32 %v1270_v14, %v1269_v15  ;;  %v3447_v41 = vadd.f32 %v1125_v42, %v4507_v57  ;;  %v1274_v56 = vmul.f32 %v3296_v49, %v4509_v34  ;;  %v1306_v6 = vmul.f32 %v3423_v17, %v4510_v58  ;;  %v4512_v42 = vld [vmem:[#allocation48_spill] sm:$0xff]  ;;  %v4513_v49 = vld [vmem:[#allocation7_spill] sm:$0xff] }
 0x124   :  { %v1307_v2 = vmul.f32 %v3428_v31, %v4511_v19  ;;  %v1165_v22 = vrot.slane %v1164_v46, 1  ;;  %v1195_v18 = vrot.slane %v1194_v29, 2  ;;  %v1249_v48 = vadd.f32 %v1248_v36, %v1247_v5  ;;  %v4514_v57 = vld [vmem:[#allocation8_spill] sm:$0xff] }
 0x125   :  { %4508 = vst [vmem:[#allocation47_spill] sm:$0xff] %v3447_v41  ;;  %v1273_v14 = vadd.f32 %v1272_v23, %v1271_v21  ;;  %v1276_v15 = vmul.f32 %v3309_v24, %v4512_v42  ;;  %v1309_v62 = vmul.f32 %v3439_v63, %v4513_v49  ;;  %v1311_v41 = vmul.f32 %v3444_v7, %v4514_v57  ;;  %v3469_v23 = vld [vmem:[%s4123_s0 + $0x1f0] sm:$0xff]  ;;  %v4515_v21 = vld [vmem:[#allocation49_spill] sm:$0xff] }
 0x126   :  { %v1308_v4 = vadd.f32 %v1307_v2, %v1306_v6  ;;  %v1159_v19 = vadd.f32 %v1158_v27, %v1157_v12  ;;  %v1190_v58 = vrot.slane %v1189_v32, 1  ;;  %v1219_v34 = vadd.f32 %v1218_v59, %v1217_v50  ;;  %v4516_v2 = vld [vmem:[#allocation9_spill] sm:$0xff]  ;;  %v3478_v50 = vld [vmem:[%s4123_s0 + $0x248] sm:$0xff] }
 0x127   :  { %v1225_v36 = vrot.slane %v1224_v35, 4  ;;  %v1275_v5 = vadd.f32 %v1274_v56, %v1273_v14  ;;  %v1278_v24 = vmul.f32 %v3322_v25, %v4515_v21  ;;  %v1313_v49 = vmul.f32 %v3458_v53, %v4516_v2  ;;  %v4517_v59 = vld [vmem:[#allocation50_spill] sm:$0xff] }
 0x128   :  { %v1310_v6 = vadd.f32 %v1309_v62, %v1308_v4  ;;  %v1166_v42 = vadd.f32 %v1165_v22, %v1164_v46  ;;  %v1196_v10 = vadd.f32 %v1195_v18, %v1194_v29  ;;  %v1250_v57 = vrot.slane %v1249_v48, 4  ;;  %v3490_v18 = vld [vmem:[%s4123_s0 + $0x2a0] sm:$0xff] }
 0x129   :  { %v1256_v12 = vmul.f32 %v1249_v48, %v1249_v48  ;;  %v1277_v27 = vadd.f32 %v1276_v15, %v1275_v5  ;;  %v1280_v56 = vmul.f32 %v3327_v47, %v4517_v59  ;;  %v1315_v25 = vmul.f32 %v3469_v23, %v4518_v39  ;;  %v4520_v5 = vld [vmem:[#allocation11_spill] sm:$0xff] }
 0x12a   :  { %v1312_v14 = vadd.f32 %v1311_v41, %v1310_v6  ;;  %v3485_v4 = vadd.f32 %v1159_v19, %v3334_v26  ;;  %v1191_v46 = vadd.f32 %v1190_v58, %v1189_v32  ;;  %v1220_v29 = vrot.slane %v1219_v34, 2  ;;  %v4521_v41 = vld [vmem:[#allocation13_spill] sm:$0xff]  ;;  %v3499_v32 = vld [vmem:[%s4123_s0 + $0x2f8] sm:$0xff] }
 0x12b   :  { %v1226_v22 = vadd.f32 %v1225_v36, %v1224_v35  ;;  %v1279_v62 = vadd.f32 %v1278_v24, %v1277_v27  ;;  %v1317_v47 = vmul.f32 %v3478_v50, %v4520_v5  ;;  %v1338_v6 = vmul.f32 %v3423_v17, %v4521_v41  ;;  %v4522_v35 = vld [vmem:[#allocation14_spill] sm:$0xff]  ;;  %v4524_v27 = vld [vmem:[#allocation15_spill] sm:$0xff] }
 0x12c   :  { %4519 = vst [vmem:[#allocation31_spill] sm:$0xff] %v3485_v4  ;;  %v1314_v15 = vadd.f32 %v1313_v49, %v1312_v14  ;;  %v1197_v39 = vrot.slane %v1196_v10, 1  ;;  %v1251_v59 = vadd.f32 %v1250_v57, %v1249_v48  ;;  %v1257_v26 = vrot.slane %v1256_v12, 4  ;;  %v4523_v49 = vld [vmem:[#allocation12_spill] sm:$0xff] }
 0x12d   :  { %v1339_v58 = vmul.f32 %v3428_v31, %v4522_v35  ;;  %v1281_v19 = vadd.f32 %v1280_v56, %v1279_v62  ;;  %v1319_v24 = vmul.f32 %v3490_v18, %v4523_v49  ;;  %v1341_v14 = vmul.f32 %v3439_v63, %v4524_v27 }
 0x12e   :  { %v1316_v36 = vadd.f32 %v1315_v25, %v1314_v15  ;;  %v1221_v5 = vadd.f32 %v1220_v29, %v1219_v34  ;;  %v1227_v41 = vrot.slane %v1226_v22, 2  ;;  %v1343_v57 = vmul.f32 %v3444_v7, %v4487_v11 }
 0x12f   :  { %v1340_v48 = vadd.f32 %v1339_v58, %v1338_v6  ;;  %v1282_v4 = vrot.slane %v1281_v19, 4  ;;  %v1288_v2 = vmul.f32 %v1281_v19, %v1281_v19  ;;  %v1321_v35 = vmul.f32 %v3499_v32, %v4486_v40 }
 0x130   :  { %v1318_v21 = vadd.f32 %v1317_v47, %v1316_v36  ;;  %v3512_v56 = vadd.f32 %v1166_v42, %v3347_v20  ;;  %v1198_v25 = vadd.f32 %v1197_v39, %v1196_v10  ;;  %v1345_v15 = vmul.f32 %v3458_v53, %v4443_v44 }
 0x131   :  { %v1342_v62 = vadd.f32 %v1341_v14, %v1340_v48  ;;  %v1252_v34 = vrot.slane %v1251_v59, 2  ;;  %v1258_v29 = vadd.f32 %v1257_v26, %v1256_v12  ;;  %v1289_v6 = vrot.slane %v1288_v2, 4 }
 0x132   :  { %v1320_v58 = vadd.f32 %v1319_v24, %v1318_v21  ;;  %v3517_v11 = vadd.f32 %v1191_v46, %v3356_v1  ;;  %v1222_v49 = vrot.slane %v1221_v5, 1  ;;  %v1347_v36 = vmul.f32 %v3469_v23, %v4446_v16 }
 0x133   :  { %v1344_v47 = vadd.f32 %v1343_v57, %v1342_v62  ;;  %v1228_v40 = vadd.f32 %v1227_v41, %v1226_v22  ;;  %v1283_v20 = vadd.f32 %v1282_v4, %v1281_v19  ;;  %v1370_v39 = vmul.f32 %v3423_v17, %v4447_v38  ;;  %v4526_v19 = vld [vmem:[#allocation53_spill] sm:$0xff] }
 0x134   :  { %4525 = vst [vmem:[#allocation51_spill] sm:$0xff] %v3517_v11  ;;  %v1322_v42 = vadd.f32 %v1321_v35, %v1320_v58  ;;  %v1349_v12 = vmul.f32 %v3478_v50, %v4448_v45  ;;  %v1371_v21 = vmul.f32 %v3428_v31, %v4449_v61  ;;  %v1373_v1 = vmul.f32 %v3439_v63, %v4450_v8  ;;  %v4532_v45 = vld [vmem:[#allocation30_spill] sm:$0xff] }
 0x135   :  { %v1346_v10 = vadd.f32 %v1345_v15, %v1344_v47  ;;  %v1253_v46 = vadd.f32 %v1252_v34, %v1251_v59  ;;  %v1259_v26 = vrot.slane %v1258_v29, 2  ;;  %v1290_v24 = vadd.f32 %v1289_v6, %v1288_v2  ;;  %v4528_v47 = vld [vmem:[#allocation24_spill] sm:$0xff]  ;;  %v4529_v34 = vld [vmem:[#allocation27_spill] sm:$0xff] }
 0x136   :  { %v1329_v14 = vmul.f32 %v1322_v42, %v1322_v42  ;;  %v1351_v4 = vmul.f32 %v3490_v18, %v4452_v28  ;;  %v1372_v41 = vadd.f32 %v1371_v21, %v1370_v39  ;;  %v1375_v35 = vmul.f32 %v3444_v7, %v4414_v52 }
 0x137   :  { %v1348_v22 = vadd.f32 %v1347_v36, %v1346_v10  ;;  %v3534_v48 = vadd.f32 %v1198_v25, %v4526_v19  ;;  %v1284_v57 = vrot.slane %v1283_v20, 2  ;;  %v1323_v62 = vrot.slane %v1322_v42, 4  ;;  %v4530_v25 = vld [vmem:[#allocation28_spill] sm:$0xff] }
 0x138   :  { %v1330_v15 = vrot.slane %v1329_v14, 4  ;;  %v1353_v59 = vmul.f32 %v3499_v32, %v4528_v47  ;;  %v1374_v2 = vadd.f32 %v1373_v1, %v1372_v41  ;;  %v1377_v6 = vmul.f32 %v3458_v53, %v4529_v34 }
 0x139   :  { %4527 = vst [vmem:[#allocation52_spill] sm:$0xff] %v3534_v48  ;;  %v1350_v58 = vadd.f32 %v1349_v12, %v1348_v22  ;;  %v1223_v36 = vadd.f32 %v1222_v49, %v1221_v5  ;;  %v1229_v10 = vrot.slane %v1228_v40, 1  ;;  %v1260_v39 = vadd.f32 %v1259_v26, %v1258_v29  ;;  %v4531_v22 = vld [vmem:[#allocation29_spill] sm:$0xff]  ;;  %v4533_v49 = vld [vmem:[#allocation32_spill] sm:$0xff] }
 0x13a   :  { %v1291_v21 = vrot.slane %v1290_v24, 2  ;;  %v1254_v11 = vrot.slane %v1253_v46, 1  ;;  %v1376_v52 = vadd.f32 %v1375_v35, %v1374_v2  ;;  %v1379_v19 = vmul.f32 %v3469_v23, %v4530_v25 }
 0x13b   :  { %v1352_v28 = vadd.f32 %v1351_v4, %v1350_v58  ;;  %v1285_v48 = vadd.f32 %v1284_v57, %v1283_v20  ;;  %v1324_v8 = vadd.f32 %v1323_v62, %v1322_v42  ;;  %v1331_v12 = vadd.f32 %v1330_v15, %v1329_v14 }
 0x13c   :  { %v1381_v47 = vmul.f32 %v3478_v50, %v4531_v22  ;;  %v1378_v41 = vadd.f32 %v1377_v6, %v1376_v52  ;;  %v1402_v5 = vmul.f32 %v3423_v17, %v4532_v45  ;;  %v1403_v29 = vmul.f32 %v3428_v31, %v4533_v49  ;;  %v4534_v6 = vld [vmem:[#allocation54_spill] sm:$0xff] }
 0x13d   :  { %v1354_v1 = vadd.f32 %v1353_v59, %v1352_v28  ;;  %v1230_v26 = vadd.f32 %v1229_v10, %v1228_v40  ;;  %v1261_v4 = vrot.slane %v1260_v39, 1  ;;  %v1292_v35 = vadd.f32 %v1291_v21, %v1290_v24 }
 0x13e   :  { %v1405_v58 = vmul.f32 %v3439_v63, %v4498_v33  ;;  %v1380_v42 = vadd.f32 %v1379_v19, %v1378_v41  ;;  %v1383_v14 = vmul.f32 %v3490_v18, %v4384_v54  ;;  %v1404_v57 = vadd.f32 %v1403_v29, %v1402_v5  ;;  %v4535_v33 = vld [vmem:[#allocation36_spill] sm:$0xff] }
 0x13f   :  { %v1361_v20 = vmul.f32 %v1354_v1, %v1354_v1  ;;  %v1255_v28 = vadd.f32 %v1254_v11, %v1253_v46  ;;  %v1286_v52 = vrot.slane %v1285_v48, 1  ;;  %v1325_v62 = vrot.slane %v1324_v8, 2 }
 0x140   :  { %v1407_v15 = vmul.f32 %v3444_v7, %v4383_v37  ;;  %v1332_v59 = vrot.slane %v1331_v12, 2  ;;  %v1382_v2 = vadd.f32 %v1381_v47, %v1380_v42  ;;  %v1406_v40 = vadd.f32 %v1405_v58, %v1404_v57 }
 0x141   :  { %v1409_v24 = vmul.f32 %v3458_v53, %v4312_v30  ;;  %v3557_v10 = vadd.f32 %v1223_v36, %v4534_v6  ;;  %v1262_v21 = vadd.f32 %v1261_v4, %v1260_v39  ;;  %v1293_v19 = vrot.slane %v1292_v35, 1 }
 0x142   :  { %v1385_v41 = vmul.f32 %v3499_v32, %v4345_v55  ;;  %v1355_v11 = vrot.slane %v1354_v1, 4  ;;  %v1362_v46 = vrot.slane %v1361_v20, 4  ;;  %v1384_v5 = vadd.f32 %v1383_v14, %v1382_v2  ;;  %v4537_v14 = vld [vmem:[#allocation38_spill] sm:$0xff] }
 0x143   :  { %v1408_v29 = vadd.f32 %v1407_v15, %v1406_v40  ;;  %v3562_v37 = vadd.f32 %v1230_v26, %v4535_v33  ;;  %v3565_v47 = vadd.f32 %v1255_v28, %v3414_v43  ;;  %v1411_v58 = vmul.f32 %v3469_v23, %v4313_v9  ;;  %v4538_v26 = vld [vmem:[#allocation42_spill] sm:$0xff] }
 0x144   :  { %v1434_v36 = vmul.f32 %v3423_v17, %v4346_v3  ;;  %v1287_v39 = vadd.f32 %v1286_v52, %v1285_v48  ;;  %v1326_v4 = vadd.f32 %v1325_v62, %v1324_v8  ;;  %v1333_v42 = vadd.f32 %v1332_v59, %v1331_v12  ;;  %v4539_v8 = vld [vmem:[#allocation39_spill] sm:$0xff] }
 0x145   :  { %v1410_v57 = vadd.f32 %v1409_v24, %v1408_v29  ;;  %v3572_v6 = vadd.f32 %v1262_v21, %v3431_v60  ;;  %v1413_v33 = vmul.f32 %v3478_v50, %v4537_v14  ;;  %v1435_v43 = vmul.f32 %v3428_v31, %v4538_v26  ;;  %v4543_v29 = vld [vmem:[#allocation46_spill] sm:$0xff] }
 0x146   :  { %v1437_v28 = vmul.f32 %v3439_v63, %v4499_v51  ;;  %v1294_v15 = vadd.f32 %v1293_v19, %v1292_v35  ;;  %v1356_v2 = vadd.f32 %v1355_v11, %v1354_v1  ;;  %v1363_v40 = vadd.f32 %v1362_v46, %v1361_v20  ;;  %v3590_v63 = vld [vmem:[%s4123_s0 + $0x40] sm:$0xff]  ;;  %v3595_v1 = vld [vmem:[%s4123_s0 + $0x98] sm:$0xff] }
 0x147   :  { %4536 = vst [vmem:[#allocation35_spill] sm:$0xff] %v3572_v6  ;;  %v1386_v17 = vadd.f32 %v1385_v41, %v1384_v5  ;;  %v1412_v48 = vadd.f32 %v1411_v58, %v1410_v57  ;;  %v1415_v12 = vmul.f32 %v3490_v18, %v4539_v8  ;;  %v1436_v52 = vadd.f32 %v1435_v43, %v1434_v36  ;;  %v4541_v20 = vld [vmem:[#allocation40_spill] sm:$0xff]  ;;  %v3604_v41 = vld [vmem:[%s4123_s0 + $0xf0] sm:$0xff]  ;;  %v3611_v36 = vld [vmem:[%s4123_s0 + $0x148] sm:$0xff] }
 0x148   :  { %v1439_v60 = vmul.f32 %v3444_v7, %v4501_v0  ;;  %v3585_v62 = vadd.f32 %v1287_v39, %v3434_v13  ;;  %v1327_v59 = vrot.slane %v1326_v4, 1  ;;  %v1334_v31 = vrot.slane %v1333_v42, 1  ;;  %v4542_v13 = vld [vmem:[#allocation45_spill] sm:$0xff]  ;;  %v4545_v43 = vld [vmem:[#allocation6_spill] sm:$0xff] }
 0x149   :  { %v1387_v24 = vrot.slane %v1386_v17, 4  ;;  %v1414_v35 = vadd.f32 %v1413_v33, %v1412_v48  ;;  %v1417_v7 = vmul.f32 %v3499_v32, %v4541_v20  ;;  %v1438_v21 = vadd.f32 %v1437_v28, %v1436_v52  ;;  %v4544_v33 = vld [vmem:[#allocation5_spill] sm:$0xff] }
 0x14a   :  { %4540 = vst [vmem:[#allocation53_spill] sm:$0xff] %v3585_v62  ;;  %v1441_v19 = vmul.f32 %v3458_v53, %v4542_v13  ;;  %v1357_v11 = vrot.slane %v1356_v2, 2  ;;  %v1364_v46 = vrot.slane %v1363_v40, 2  ;;  %v1393_v5 = vmul.f32 %v1386_v17, %v1386_v17  ;;  %v4546_v62 = vld [vmem:[#allocation48_spill] sm:$0xff]  ;;  %v4549_v13 = vld [vmem:[#allocation49_spill] sm:$0xff] }
 0x14b   :  { %v1443_v58 = vmul.f32 %v3469_v23, %v4543_v29  ;;  %v1416_v39 = vadd.f32 %v1415_v12, %v1414_v35  ;;  %v1440_v57 = vadd.f32 %v1439_v60, %v1438_v21  ;;  %v1475_v53 = vmul.f32 %v3590_v63, %v4544_v33  ;;  %v3622_v23 = vld [vmem:[%s4123_s0 + $0x1a0] sm:$0xff]  ;;  %v4547_v29 = vld [vmem:[#allocation7_spill] sm:$0xff]  ;;  %v3629_v21 = vld [vmem:[%s4123_s0 + $0x1f8] sm:$0xff] }
 0x14c   :  { %v1476_v28 = vmul.f32 %v3595_v1, %v4545_v43  ;;  %v1328_v48 = vadd.f32 %v1327_v59, %v1326_v4  ;;  %v1388_v52 = vadd.f32 %v1387_v24, %v1386_v17  ;;  %v1445_v20 = vmul.f32 %v3478_v50, %v4546_v62  ;;  %v4548_v17 = vld [vmem:[#allocation8_spill] sm:$0xff] }
 0x14d   :  { %v1478_v12 = vmul.f32 %v3604_v41, %v4547_v29  ;;  %v1418_v60 = vadd.f32 %v1417_v7, %v1416_v39  ;;  %v1442_v35 = vadd.f32 %v1441_v19, %v1440_v57  ;;  %v1480_v59 = vmul.f32 %v3611_v36, %v4548_v17  ;;  %v4550_v7 = vld [vmem:[#allocation9_spill] sm:$0xff]  ;;  %v4551_v39 = vld [vmem:[#allocation47_spill] sm:$0xff]  ;;  %v4554_v17 = vld [vmem:[#allocation10_spill] sm:$0xff] }
 0x14e   :  { %v1477_v4 = vadd.f32 %v1476_v28, %v1475_v53  ;;  %v1335_v50 = vadd.f32 %v1334_v31, %v1333_v42  ;;  %v1358_v24 = vadd.f32 %v1357_v11, %v1356_v2  ;;  %v1365_v43 = vadd.f32 %v1364_v46, %v1363_v40  ;;  %v4553_v53 = vld [vmem:[#allocation50_spill] sm:$0xff]  ;;  %v4555_v46 = vld [vmem:[#allocation31_spill] sm:$0xff] }
 0x14f   :  { %v1394_v33 = vrot.slane %v1393_v5, 4  ;;  %v1444_v62 = vadd.f32 %v1443_v58, %v1442_v35  ;;  %v1447_v6 = vmul.f32 %v3490_v18, %v4549_v13  ;;  %v1482_v19 = vmul.f32 %v3622_v23, %v4550_v7  ;;  %v3647_v18 = vld [vmem:[%s4123_s0 + $0x250] sm:$0xff] }
 0x150   :  { %v1479_v29 = vadd.f32 %v1478_v12, %v1477_v4  ;;  %v3638_v57 = vadd.f32 %v1294_v15, %v4551_v39  ;;  %v1389_v8 = vrot.slane %v1388_v52, 2  ;;  %v1449_v28 = vmul.f32 %v3499_v32, %v4553_v53  ;;  %v4558_v32 = vld [vmem:[#allocation13_spill] sm:$0xff] }
 0x151   :  { %v1484_v42 = vmul.f32 %v3629_v21, %v4554_v17  ;;  %v1419_v2 = vrot.slane %v1418_v60, 4  ;;  %v1425_v40 = vmul.f32 %v1418_v60, %v1418_v60  ;;  %v1446_v31 = vadd.f32 %v1445_v20, %v1444_v62  ;;  %v3660_v62 = vld [vmem:[%s4123_s0 + $0x2a8] sm:$0xff] }
 0x152   :  { %4552 = vst [vmem:[#allocation27_spill] sm:$0xff] %v3638_v57  ;;  %v1481_v11 = vadd.f32 %v1480_v59, %v1479_v29  ;;  %v3650_v58 = vadd.f32 %v1328_v48, %v4555_v46  ;;  %v3653_v15 = vadd.f32 %v1335_v50, %v3512_v56  ;;  %v1359_v12 = vrot.slane %v1358_v24, 1  ;;  %v4559_v59 = vld [vmem:[#allocation11_spill] sm:$0xff]  ;;  %v4560_v46 = vld [vmem:[#allocation14_spill] sm:$0xff] }
 0x153   :  { %v1507_v35 = vmul.f32 %v3590_v63, %v4558_v32  ;;  %v1366_v4 = vrot.slane %v1365_v43, 1  ;;  %v1395_v39 = vadd.f32 %v1394_v33, %v1393_v5  ;;  %v1448_v57 = vadd.f32 %v1447_v6, %v1446_v31  ;;  %v3671_v6 = vld [vmem:[%s4123_s0 + $0x300] sm:$0xff] }
 0x154   :  { %4556 = vst [vmem:[#allocation28_spill] sm:$0xff] %v3650_v58  ;;  %v1483_v20 = vadd.f32 %v1482_v19, %v1481_v11  ;;  %v1390_v29 = vadd.f32 %v1389_v8, %v1388_v52  ;;  %v1486_v48 = vmul.f32 %v3647_v18, %v4559_v59  ;;  %v1508_v56 = vmul.f32 %v3595_v1, %v4560_v46  ;;  %v4561_v8 = vld [vmem:[#allocation12_spill] sm:$0xff] }
 0x155   :  { %4557 = vst [vmem:[#allocation29_spill] sm:$0xff] %v3653_v15  ;;  %v1510_v50 = vmul.f32 %v3604_v41, %v4524_v27  ;;  %v1420_v15 = vadd.f32 %v1419_v2, %v1418_v60  ;;  %v1426_v58 = vrot.slane %v1425_v40, 4  ;;  %v1450_v5 = vadd.f32 %v1449_v28, %v1448_v57  ;;  %v4562_v11 = vld [vmem:[#allocation16_spill] sm:$0xff]  ;;  %v4563_v57 = vld [vmem:[#allocation18_spill] sm:$0xff] }
 0x156   :  { %v1485_v33 = vadd.f32 %v1484_v42, %v1483_v20  ;;  %v1360_v19 = vadd.f32 %v1359_v12, %v1358_v24  ;;  %v1488_v52 = vmul.f32 %v3660_v62, %v4561_v8  ;;  %v1509_v31 = vadd.f32 %v1508_v56, %v1507_v35 }
 0x157   :  { %v1512_v46 = vmul.f32 %v3611_v36, %v4562_v11  ;;  %v1367_v32 = vadd.f32 %v1366_v4, %v1365_v43  ;;  %v1396_v59 = vrot.slane %v1395_v39, 2  ;;  %v1451_v27 = vrot.slane %v1450_v5, 4 }
 0x158   :  { %v1457_v60 = vmul.f32 %v1450_v5, %v1450_v5  ;;  %v1487_v2 = vadd.f32 %v1486_v48, %v1485_v33  ;;  %v1490_v28 = vmul.f32 %v3671_v6, %v4563_v57  ;;  %v1511_v53 = vadd.f32 %v1510_v50, %v1509_v31  ;;  %v4564_v31 = vld [vmem:[#allocation20_spill] sm:$0xff] }
 0x159   :  { %v1514_v42 = vmul.f32 %v3622_v23, %v4443_v44  ;;  %v1391_v24 = vrot.slane %v1390_v29, 1  ;;  %v1421_v12 = vrot.slane %v1420_v15, 2  ;;  %v1427_v20 = vadd.f32 %v1426_v58, %v1425_v40  ;;  %v4565_v58 = vld [vmem:[#allocation25_spill] sm:$0xff] }
 0x15a   :  { %v1516_v35 = vmul.f32 %v3629_v21, %v4446_v16  ;;  %v1489_v56 = vadd.f32 %v1488_v52, %v1487_v2  ;;  %v1513_v11 = vadd.f32 %v1512_v46, %v1511_v53  ;;  %v1539_v43 = vmul.f32 %v3590_v63, %v4447_v38  ;;  %v4566_v2 = vld [vmem:[#allocation26_spill] sm:$0xff] }
 0x15b   :  { %v1540_v4 = vmul.f32 %v3595_v1, %v4449_v61  ;;  %v1397_v48 = vadd.f32 %v1396_v59, %v1395_v39  ;;  %v1452_v33 = vadd.f32 %v1451_v27, %v1450_v5  ;;  %v1458_v50 = vrot.slane %v1457_v60, 4  ;;  %v4567_v39 = vld [vmem:[#allocation21_spill] sm:$0xff] }
 0x15c   :  { %v1518_v44 = vmul.f32 %v3647_v18, %v4564_v31  ;;  %v1491_v57 = vadd.f32 %v1490_v28, %v1489_v56  ;;  %v1515_v8 = vadd.f32 %v1514_v42, %v1513_v11  ;;  %v1542_v16 = vmul.f32 %v3604_v41, %v4565_v58  ;;  %v4568_v28 = vld [vmem:[#allocation24_spill] sm:$0xff]  ;;  %v4569_v56 = vld [vmem:[#allocation51_spill] sm:$0xff] }
 0x15d   :  { %v1541_v40 = vadd.f32 %v1540_v4, %v1539_v43  ;;  %v1392_v52 = vadd.f32 %v1391_v24, %v1390_v29  ;;  %v1422_v53 = vadd.f32 %v1421_v12, %v1420_v15  ;;  %v1428_v46 = vrot.slane %v1427_v20, 2 }
 0x15e   :  { %v1544_v38 = vmul.f32 %v3611_v36, %v4566_v2  ;;  %v1498_v17 = vmul.f32 %v1491_v57, %v1491_v57  ;;  %v1517_v61 = vadd.f32 %v1516_v35, %v1515_v8  ;;  %v1520_v27 = vmul.f32 %v3660_v62, %v4567_v39  ;;  %v4570_v35 = vld [vmem:[#allocation52_spill] sm:$0xff] }
 0x15f   :  { %v1543_v59 = vadd.f32 %v1542_v16, %v1541_v40  ;;  %v1398_v5 = vrot.slane %v1397_v48, 1  ;;  %v1453_v31 = vrot.slane %v1452_v33, 2  ;;  %v1522_v11 = vmul.f32 %v3671_v6, %v4568_v28 }
 0x160   :  { %v1546_v42 = vmul.f32 %v3622_v23, %v4529_v34  ;;  %v1459_v29 = vadd.f32 %v1458_v50, %v1457_v60  ;;  %v1519_v15 = vadd.f32 %v1518_v44, %v1517_v61  ;;  %v1548_v12 = vmul.f32 %v3629_v21, %v4530_v25 }
 0x161   :  { %v1545_v24 = vadd.f32 %v1544_v38, %v1543_v59  ;;  %v3702_v8 = vadd.f32 %v1360_v19, %v4569_v56  ;;  %v3705_v43 = vadd.f32 %v1367_v32, %v4570_v35  ;;  %v1423_v16 = vrot.slane %v1422_v53, 1 }
 0x162   :  { %v1429_v4 = vadd.f32 %v1428_v46, %v1427_v20  ;;  %v1492_v40 = vrot.slane %v1491_v57, 4  ;;  %v1499_v39 = vrot.slane %v1498_v17, 4  ;;  %v1521_v28 = vadd.f32 %v1520_v27, %v1519_v15  ;;  %v4571_v46 = vld [vmem:[#allocation33_spill] sm:$0xff] }
 0x163   :  { %v1547_v2 = vadd.f32 %v1546_v42, %v1545_v24  ;;  %v1399_v58 = vadd.f32 %v1398_v5, %v1397_v48  ;;  %v3708_v60 = vadd.f32 %v1392_v52, %v3557_v10  ;;  %v1550_v44 = vmul.f32 %v3647_v18, %v4531_v22 }
 0x164   :  { %v1571_v38 = vmul.f32 %v3590_v63, %v4532_v45  ;;  %v1454_v61 = vadd.f32 %v1453_v31, %v1452_v33  ;;  %v1460_v19 = vrot.slane %v1459_v29, 2  ;;  %v1523_v32 = vadd.f32 %v1522_v11, %v1521_v28 }
 0x165   :  { %v1549_v50 = vadd.f32 %v1548_v12, %v1547_v2  ;;  %v1430_v59 = vrot.slane %v1429_v4, 1  ;;  %v1552_v20 = vmul.f32 %v3660_v62, %v4384_v54  ;;  %v1572_v48 = vmul.f32 %v3595_v1, %v4533_v49  ;;  %v4572_v2 = vld [vmem:[#allocation34_spill] sm:$0xff] }
 0x166   :  { %v1574_v10 = vmul.f32 %v3604_v41, %v4571_v46  ;;  %v1424_v52 = vadd.f32 %v1423_v16, %v1422_v53  ;;  %v1493_v27 = vadd.f32 %v1492_v40, %v1491_v57  ;;  %v1500_v5 = vadd.f32 %v1499_v39, %v1498_v17 }
 0x167   :  { %v1524_v42 = vrot.slane %v1523_v32, 4  ;;  %v1551_v15 = vadd.f32 %v1550_v44, %v1549_v50  ;;  %v1554_v33 = vmul.f32 %v3671_v6, %v4345_v55  ;;  %v1573_v31 = vadd.f32 %v1572_v48, %v1571_v38 }
 0x168   :  { %v1576_v28 = vmul.f32 %v3611_v36, %v4572_v2  ;;  %v3725_v11 = vadd.f32 %v1399_v58, %v3562_v37  ;;  %v1455_v24 = vrot.slane %v1454_v61, 1  ;;  %v1461_v12 = vadd.f32 %v1460_v19, %v1459_v29 }
 0x169   :  { %v1530_v56 = vmul.f32 %v1523_v32, %v1523_v32  ;;  %v1431_v35 = vadd.f32 %v1430_v59, %v1429_v4  ;;  %v1553_v46 = vadd.f32 %v1552_v20, %v1551_v15  ;;  %v1575_v53 = vadd.f32 %v1574_v10, %v1573_v31  ;;  %v4573_v15 = vld [vmem:[#allocation39_spill] sm:$0xff] }
 0x16a   :  { %v1578_v17 = vmul.f32 %v3622_v23, %v4312_v30  ;;  %v3730_v57 = vadd.f32 %v1424_v52, %v3565_v47  ;;  %v1494_v39 = vrot.slane %v1493_v27, 2  ;;  %v1501_v16 = vrot.slane %v1500_v5, 2 }
 0x16b   :  { %v1525_v40 = vadd.f32 %v1524_v42, %v1523_v32  ;;  %v1555_v44 = vadd.f32 %v1554_v33, %v1553_v46  ;;  %v1577_v38 = vadd.f32 %v1576_v28, %v1575_v53  ;;  %v1580_v37 = vmul.f32 %v3629_v21, %v4313_v9  ;;  %v4574_v33 = vld [vmem:[#allocation35_spill] sm:$0xff]  ;;  %v4575_v53 = vld [vmem:[#allocation45_spill] sm:$0xff] }
 0x16c   :  { %v1603_v58 = vmul.f32 %v3590_v63, %v4346_v3  ;;  %v1456_v29 = vadd.f32 %v1455_v24, %v1454_v61  ;;  %v1462_v4 = vrot.slane %v1461_v12, 1  ;;  %v1531_v19 = vrot.slane %v1530_v56, 4 }
 0x16d   :  { %v1604_v50 = vmul.f32 %v3595_v1, %v4538_v26  ;;  %v1562_v59 = vmul.f32 %v1555_v44, %v1555_v44  ;;  %v1579_v47 = vadd.f32 %v1578_v17, %v1577_v38  ;;  %v1582_v20 = vmul.f32 %v3647_v18, %v4537_v14  ;;  %v4576_v38 = vld [vmem:[#allocation40_spill] sm:$0xff] }
 0x16e   :  { %v1606_v32 = vmul.f32 %v3604_v41, %v4499_v51  ;;  %v1495_v48 = vadd.f32 %v1494_v39, %v1493_v27  ;;  %v1526_v46 = vrot.slane %v1525_v40, 2  ;;  %v1608_v63 = vmul.f32 %v3611_v36, %v4501_v0  ;;  %v4593_v0 = vld [vmem:[#allocation27_spill] sm:$0xff] }
 0x16f   :  { %v1605_v10 = vadd.f32 %v1604_v50, %v1603_v58  ;;  %v1502_v61 = vadd.f32 %v1501_v16, %v1500_v5  ;;  %v1556_v52 = vrot.slane %v1555_v44, 4  ;;  %v1581_v42 = vadd.f32 %v1580_v37, %v1579_v47  ;;  %v3758_v5 = vld [vmem:[%s4123_s0 + $0x48] sm:$0xff] }
 0x170   :  { %v1584_v1 = vmul.f32 %v3660_v62, %v4573_v15  ;;  %v3747_v31 = vadd.f32 %v1431_v35, %v4574_v33  ;;  %v3749_v28 = vadd.f32 %v1462_v4, %v1461_v12  ;;  %v1610_v41 = vmul.f32 %v3622_v23, %v4575_v53  ;;  %v3763_v12 = vld [vmem:[%s4123_s0 + $0xa0] sm:$0xff]  ;;  %v4579_v37 = vld [vmem:[#allocation46_spill] sm:$0xff]  ;;  %v3773_v4 = vld [vmem:[%s4123_s0 + $0xf8] sm:$0xff] }
 0x171   :  { %v1607_v24 = vadd.f32 %v1606_v32, %v1605_v10  ;;  %v1532_v27 = vadd.f32 %v1531_v19, %v1530_v56  ;;  %v1563_v17 = vrot.slane %v1562_v59, 4  ;;  %v1583_v39 = vadd.f32 %v1582_v20, %v1581_v42  ;;  %v4577_v35 = vld [vmem:[#allocation53_spill] sm:$0xff]  ;;  %v3778_v32 = vld [vmem:[%s4123_s0 + $0x150] sm:$0xff]  ;;  %v4596_v15 = vld [vmem:[#allocation18_spill] sm:$0xff] }
 0x172   :  { %v1586_v36 = vmul.f32 %v3671_v6, %v4576_v38  ;;  %v3766_v16 = vadd.f32 %v1456_v29, %v4577_v35  ;;  %v1527_v23 = vadd.f32 %v1526_v46, %v1525_v40  ;;  %v1612_v58 = vmul.f32 %v3629_v21, %v4579_v37  ;;  %v4580_v40 = vld [vmem:[#allocation48_spill] sm:$0xff]  ;;  %v4581_v10 = vld [vmem:[#allocation5_spill] sm:$0xff] }
 0x173   :  { %v1609_v56 = vadd.f32 %v1608_v63, %v1607_v24  ;;  %v1496_v19 = vrot.slane %v1495_v48, 1  ;;  %v1503_v50 = vrot.slane %v1502_v61, 1  ;;  %v1557_v47 = vadd.f32 %v1556_v52, %v1555_v44  ;;  %v4582_v63 = vld [vmem:[#allocation6_spill] sm:$0xff]  ;;  %v4583_v52 = vld [vmem:[#allocation7_spill] sm:$0xff] }
 0x174   :  { %4578 = vst [vmem:[#allocation30_spill] sm:$0xff] %v3766_v16  ;;  %v1585_v20 = vadd.f32 %v1584_v1, %v1583_v39  ;;  %v1614_v46 = vmul.f32 %v3647_v18, %v4580_v40  ;;  %v1644_v21 = vmul.f32 %v3758_v5, %v4581_v10  ;;  %v1645_v42 = vmul.f32 %v3763_v12, %v4582_v63  ;;  %v3789_v44 = vld [vmem:[%s4123_s0 + $0x1a8] sm:$0xff] }
 0x175   :  { %v1611_v29 = vadd.f32 %v1610_v41, %v1609_v56  ;;  %v1533_v33 = vrot.slane %v1532_v27, 2  ;;  %v1564_v24 = vadd.f32 %v1563_v17, %v1562_v59  ;;  %v1647_v1 = vmul.f32 %v3773_v4, %v4583_v52  ;;  %v4584_v56 = vld [vmem:[#allocation8_spill] sm:$0xff]  ;;  %v3798_v59 = vld [vmem:[%s4123_s0 + $0x200] sm:$0xff] }
 0x176   :  { %v1587_v35 = vadd.f32 %v1586_v36, %v1585_v20  ;;  %v1528_v41 = vrot.slane %v1527_v23, 1  ;;  %v1646_v18 = vadd.f32 %v1645_v42, %v1644_v21  ;;  %v1649_v16 = vmul.f32 %v3778_v32, %v4584_v56 }
 0x177   :  { %v1613_v39 = vadd.f32 %v1612_v58, %v1611_v29  ;;  %v1497_v10 = vadd.f32 %v1496_v19, %v1495_v48  ;;  %v1558_v40 = vrot.slane %v1557_v47, 2  ;;  %v1616_v36 = vmul.f32 %v3660_v62, %v4549_v13  ;;  %v3805_v58 = vld [vmem:[%s4123_s0 + $0x258] sm:$0xff] }
 0x178   :  { %v1588_v63 = vrot.slane %v1587_v35, 4  ;;  %v1594_v37 = vmul.f32 %v1587_v35, %v1587_v35  ;;  %v1648_v20 = vadd.f32 %v1647_v1, %v1646_v18  ;;  %v1651_v48 = vmul.f32 %v3789_v44, %v4550_v7  ;;  %v4586_v1 = vld [vmem:[#allocation50_spill] sm:$0xff]  ;;  %v4587_v7 = vld [vmem:[#allocation11_spill] sm:$0xff] }
 0x179   :  { %v1615_v17 = vadd.f32 %v1614_v46, %v1613_v39  ;;  %v1504_v19 = vadd.f32 %v1503_v50, %v1502_v61  ;;  %v1534_v29 = vadd.f32 %v1533_v33, %v1532_v27  ;;  %v1565_v21 = vrot.slane %v1564_v24, 2  ;;  %v3812_v46 = vld [vmem:[%s4123_s0 + $0x2b0] sm:$0xff]  ;;  %v4585_v39 = vld [vmem:[#allocation10_spill] sm:$0xff]  ;;  %v4588_v27 = vld [vmem:[#allocation13_spill] sm:$0xff] }
 0x17a   :  { %v1589_v42 = vadd.f32 %v1588_v63, %v1587_v35  ;;  %v1529_v56 = vadd.f32 %v1528_v41, %v1527_v23  ;;  %v1595_v52 = vrot.slane %v1594_v37, 4  ;;  %v1650_v62 = vadd.f32 %v1649_v16, %v1648_v20  ;;  %v3825_v63 = vld [vmem:[%s4123_s0 + $0x308] sm:$0xff] }
 0x17b   :  { %v1653_v13 = vmul.f32 %v3798_v59, %v4585_v39  ;;  %v1559_v38 = vadd.f32 %v1558_v40, %v1557_v47  ;;  %v1618_v18 = vmul.f32 %v3671_v6, %v4586_v1  ;;  %v1655_v61 = vmul.f32 %v3805_v58, %v4587_v7  ;;  %v4589_v33 = vld [vmem:[#allocation14_spill] sm:$0xff]  ;;  %v4590_v47 = vld [vmem:[#allocation15_spill] sm:$0xff]  ;;  %v4591_v7 = vld [vmem:[#allocation12_spill] sm:$0xff] }
 0x17c   :  { %v1676_v23 = vmul.f32 %v3758_v5, %v4588_v27  ;;  %v1617_v50 = vadd.f32 %v1616_v36, %v1615_v17  ;;  %v1652_v16 = vadd.f32 %v1651_v48, %v1650_v62  ;;  %v1677_v35 = vmul.f32 %v3763_v12, %v4589_v33  ;;  %v4592_v1 = vld [vmem:[#allocation16_spill] sm:$0xff] }
 0x17d   :  { %v1679_v40 = vmul.f32 %v3773_v4, %v4590_v47  ;;  %v1535_v6 = vrot.slane %v1534_v29, 1  ;;  %v1566_v41 = vadd.f32 %v1565_v21, %v1564_v24  ;;  %v1590_v20 = vrot.slane %v1589_v42, 2  ;;  %v4595_v62 = vld [vmem:[#allocation28_spill] sm:$0xff] }
 0x17e   :  { %v1657_v39 = vmul.f32 %v3812_v46, %v4591_v7  ;;  %v1596_v27 = vadd.f32 %v1595_v52, %v1594_v37  ;;  %v1654_v17 = vadd.f32 %v1653_v13, %v1652_v16  ;;  %v1678_v36 = vadd.f32 %v1677_v35, %v1676_v23  ;;  %v4597_v37 = vld [vmem:[#allocation17_spill] sm:$0xff] }
 0x17f   :  { %v1681_v53 = vmul.f32 %v3778_v32, %v4592_v1  ;;  %v3837_v48 = vadd.f32 %v3749_v28, %v4593_v0  ;;  %v3840_v33 = vadd.f32 %v1497_v10, %v4595_v62  ;;  %v1560_v47 = vrot.slane %v1559_v38, 1  ;;  %v4598_v52 = vld [vmem:[#allocation29_spill] sm:$0xff] }
 0x180   :  { %v1659_v24 = vmul.f32 %v3825_v63, %v4596_v15  ;;  %v1619_v21 = vadd.f32 %v1618_v18, %v1617_v50  ;;  %v1656_v51 = vadd.f32 %v1655_v61, %v1654_v17  ;;  %v1680_v7 = vadd.f32 %v1679_v40, %v1678_v36  ;;  %v4599_v15 = vld [vmem:[#allocation19_spill] sm:$0xff]  ;;  %v4600_v61 = vld [vmem:[#allocation22_spill] sm:$0xff] }
 0x181   :  { %4594 = vst [vmem:[#allocation32_spill] sm:$0xff] %v3837_v48  ;;  %v1683_v13 = vmul.f32 %v3789_v44, %v4597_v37  ;;  %v3847_v23 = vadd.f32 %v1504_v19, %v4598_v52  ;;  %v1536_v16 = vadd.f32 %v1535_v6, %v1534_v29  ;;  %v3850_v0 = vadd.f32 %v1529_v56, %v3702_v8  ;;  %v4601_v40 = vld [vmem:[#allocation23_spill] sm:$0xff]  ;;  %v4602_v56 = vld [vmem:[#allocation20_spill] sm:$0xff] }
 0x182   :  { %v1567_v28 = vrot.slane %v1566_v41, 1  ;;  %v1591_v10 = vadd.f32 %v1590_v20, %v1589_v42  ;;  %v1597_v35 = vrot.slane %v1596_v27, 2  ;;  %v1658_v62 = vadd.f32 %v1657_v39, %v1656_v51  ;;  %v4603_v51 = vld [vmem:[#allocation25_spill] sm:$0xff] }
 0x183   :  { %v1682_v48 = vadd.f32 %v1681_v53, %v1680_v7  ;;  %v1561_v1 = vadd.f32 %v1560_v47, %v1559_v38  ;;  %v1685_v18 = vmul.f32 %v3798_v59, %v4599_v15  ;;  %v1708_v50 = vmul.f32 %v3758_v5, %v4600_v61  ;;  %v4604_v53 = vld [vmem:[#allocation26_spill] sm:$0xff]  ;;  %v4605_v61 = vld [vmem:[#allocation21_spill] sm:$0xff] }
 0x184   :  { %v1709_v19 = vmul.f32 %v3763_v12, %v4601_v40  ;;  %v1620_v17 = vrot.slane %v1619_v21, 4  ;;  %v1626_v29 = vmul.f32 %v1619_v21, %v1619_v21  ;;  %v1660_v6 = vadd.f32 %v1659_v24, %v1658_v62 }
 0x185   :  { %v1684_v8 = vadd.f32 %v1683_v13, %v1682_v48  ;;  %v1687_v42 = vmul.f32 %v3805_v58, %v4602_v56  ;;  %v1711_v7 = vmul.f32 %v3773_v4, %v4603_v51  ;;  %v1713_v38 = vmul.f32 %v3778_v32, %v4604_v53 }
 0x186   :  { %v1710_v20 = vadd.f32 %v1709_v19, %v1708_v50  ;;  %v3865_v39 = vadd.f32 %v1536_v16, %v3705_v43  ;;  %v1568_v47 = vadd.f32 %v1567_v28, %v1566_v41  ;;  %v1592_v36 = vrot.slane %v1591_v10, 1  ;;  %v4606_v43 = vld [vmem:[#allocation24_spill] sm:$0xff] }
 0x187   :  { %v1598_v52 = vadd.f32 %v1597_v35, %v1596_v27  ;;  %v1686_v40 = vadd.f32 %v1685_v18, %v1684_v8  ;;  %v1689_v48 = vmul.f32 %v3812_v46, %v4605_v61  ;;  %v1715_v13 = vmul.f32 %v3789_v44, %v4529_v34 }
 0x188   :  { %v1712_v24 = vadd.f32 %v1711_v7, %v1710_v20  ;;  %v3872_v62 = vadd.f32 %v1561_v1, %v3708_v60  ;;  %v1621_v50 = vadd.f32 %v1620_v17, %v1619_v21  ;;  %v1627_v19 = vrot.slane %v1626_v29, 4 }
 0x189   :  { %v1667_v53 = vmul.f32 %v1660_v6, %v1660_v6  ;;  %v1688_v51 = vadd.f32 %v1687_v42, %v1686_v40  ;;  %v1691_v41 = vmul.f32 %v3825_v63, %v4606_v43  ;;  %v1717_v27 = vmul.f32 %v3798_v59, %v4530_v25 }
 0x18a   :  { %v1714_v16 = vadd.f32 %v1713_v38, %v1712_v24  ;;  %v3879_v28 = vadd.f32 %v1568_v47, %v3725_v11  ;;  %v1593_v35 = vadd.f32 %v1592_v36, %v1591_v10  ;;  %v1599_v18 = vrot.slane %v1598_v52, 1  ;;  %v4608_v47 = vld [vmem:[#allocation33_spill] sm:$0xff] }
 0x18b   :  { %v1661_v8 = vrot.slane %v1660_v6, 4  ;;  %v1690_v20 = vadd.f32 %v1689_v48, %v1688_v51  ;;  %v1719_v1 = vmul.f32 %v3805_v58, %v4531_v22  ;;  %v1740_v21 = vmul.f32 %v3758_v5, %v4532_v45 }
 0x18c   :  { %4607 = vst [vmem:[#allocation54_spill] sm:$0xff] %v3879_v28  ;;  %v1716_v60 = vadd.f32 %v1715_v13, %v1714_v16  ;;  %v1622_v40 = vrot.slane %v1621_v50, 2  ;;  %v1628_v17 = vadd.f32 %v1627_v19, %v1626_v29  ;;  %v1668_v42 = vrot.slane %v1667_v53, 4 }
 0x18d   :  { %v1741_v7 = vmul.f32 %v3763_v12, %v4533_v49  ;;  %v1692_v38 = vadd.f32 %v1691_v41, %v1690_v20  ;;  %v1721_v10 = vmul.f32 %v3812_v46, %v4384_v54  ;;  %v1743_v51 = vmul.f32 %v3773_v4, %v4608_v47 }
 0x18e   :  { %v1718_v11 = vadd.f32 %v1717_v27, %v1716_v60  ;;  %v1600_v36 = vadd.f32 %v1599_v18, %v1598_v52  ;;  %v1662_v48 = vadd.f32 %v1661_v8, %v1660_v6  ;;  %v1745_v13 = vmul.f32 %v3778_v32, %v4572_v2 }
 0x18f   :  { %v1742_v24 = vadd.f32 %v1741_v7, %v1740_v21  ;;  %v1693_v16 = vrot.slane %v1692_v38, 4  ;;  %v1699_v29 = vmul.f32 %v1692_v38, %v1692_v38  ;;  %v1723_v28 = vmul.f32 %v3825_v63, %v4345_v55 }
 0x190   :  { %v1720_v19 = vadd.f32 %v1719_v1, %v1718_v11  ;;  %v3896_v41 = vadd.f32 %v1593_v35, %v3730_v57  ;;  %v3898_v27 = vadd.f32 %v1622_v40, %v1621_v50  ;;  %v1747_v52 = vmul.f32 %v3789_v44, %v4312_v30 }
 0x191   :  { %v1744_v20 = vadd.f32 %v1743_v51, %v1742_v24  ;;  %v1669_v6 = vadd.f32 %v1668_v42, %v1667_v53  ;;  %v1694_v18 = vadd.f32 %v1693_v16, %v1692_v38  ;;  %v1700_v8 = vrot.slane %v1699_v29, 4 }
 0x192   :  { %4609 = vst [vmem:[#allocation36_spill] sm:$0xff] %v3896_v41  ;;  %v1722_v60 = vadd.f32 %v1721_v10, %v1720_v19  ;;  %v3903_v21 = vadd.f32 %v1600_v36, %v3747_v31  ;;  %v1629_v1 = vrot.slane %v1628_v17, 2  ;;  %v1749_v11 = vmul.f32 %v3798_v59, %v4313_v9  ;;  %v4611_v31 = vld [vmem:[#allocation43_spill] sm:$0xff] }
 0x193   :  { %v1746_v7 = vadd.f32 %v1745_v13, %v1744_v20  ;;  %v1663_v57 = vrot.slane %v1662_v48, 2  ;;  %v1701_v35 = vadd.f32 %v1700_v8, %v1699_v29  ;;  %v1772_v40 = vmul.f32 %v3758_v5, %v4346_v3  ;;  %v4612_v29 = vld [vmem:[#allocation39_spill] sm:$0xff]  ;;  %v4613_v5 = vld [vmem:[#allocation44_spill] sm:$0xff] }
 0x194   :  { %4610 = vst [vmem:[#allocation47_spill] sm:$0xff] %v3903_v21  ;;  %v1724_v50 = vadd.f32 %v1723_v28, %v1722_v60  ;;  %v1751_v53 = vmul.f32 %v3805_v58, %v4537_v14  ;;  %v1773_v42 = vmul.f32 %v3763_v12, %v4538_v26  ;;  %v1775_v38 = vmul.f32 %v3773_v4, %v4611_v31  ;;  %v4614_v4 = vld [vmem:[#allocation45_spill] sm:$0xff] }
 0x195   :  { %v1748_v51 = vadd.f32 %v1747_v52, %v1746_v7  ;;  %v1670_v10 = vrot.slane %v1669_v6, 2  ;;  %v1695_v36 = vrot.slane %v1694_v18, 2  ;;  %v1753_v28 = vmul.f32 %v3812_v46, %v4612_v29 }
 0x196   :  { %v1725_v24 = vrot.slane %v1724_v50, 4  ;;  %v1731_v13 = vmul.f32 %v1724_v50, %v1724_v50  ;;  %v1774_v19 = vadd.f32 %v1773_v42, %v1772_v40  ;;  %v1777_v20 = vmul.f32 %v3778_v32, %v4613_v5  ;;  %v3925_v40 = vld [vmem:[%s4123_s0 + $0x50] sm:$0x1]  ;;  %v3930_v32 = vld [vmem:[%s4123_s0 + $0xa8] sm:$0x1] }
 0x197   :  { %v1750_v16 = vadd.f32 %v1749_v11, %v1748_v51  ;;  %v1630_v52 = vadd.f32 %v1629_v1, %v1628_v17  ;;  %v1664_v8 = vadd.f32 %v1663_v57, %v1662_v48  ;;  %v1702_v60 = vrot.slane %v1701_v35, 2  ;;  %v4615_v48 = vld [vmem:[#allocation40_spill] sm:$0xff]  ;;  %v4616_v57 = vld [vmem:[#allocation46_spill] sm:$0xff] }
 0x198   :  { %v1732_v7 = vrot.slane %v1731_v13, 4  ;;  %v1726_v12 = vadd.f32 %v1725_v24, %v1724_v50  ;;  %v1776_v41 = vadd.f32 %v1775_v38, %v1774_v19  ;;  %v1779_v14 = vmul.f32 %v3789_v44, %v4614_v4  ;;  %v4617_v38 = vld [vmem:[#allocation48_spill] sm:$0xff]  ;;  %v4618_v24 = vld [vmem:[#allocation5_spill] sm:$0xff] }
 0x199   :  { %v1752_v21 = vadd.f32 %v1751_v53, %v1750_v16  ;;  %v1624_v9 = vrot.slane %v3898_v27, 1  ;;  %v1671_v11 = vadd.f32 %v1670_v10, %v1669_v6  ;;  %v1696_v51 = vadd.f32 %v1695_v36, %v1694_v18  ;;  %v3939_v18 = vld [vmem:[%s4123_s0 + $0x100] sm:$0x1]  ;;  %v4623_v4 = vld [vmem:[#allocation8_spill] sm:$0xff] }
 0x19a   :  { %v1733_v31 = vadd.f32 %v1732_v7, %v1731_v13  ;;  %v1755_v1 = vmul.f32 %v3825_v63, %v4615_v48  ;;  %v1778_v44 = vadd.f32 %v1777_v20, %v1776_v41  ;;  %v1781_v6 = vmul.f32 %v3798_v59, %v4616_v57  ;;  %v3946_v41 = vld [vmem:[%s4123_s0 + $0x158] sm:$0x1]  ;;  %v4619_v13 = vld [vmem:[#allocation6_spill] sm:$0xff] }
 0x19b   :  { %v1754_v17 = vadd.f32 %v1753_v28, %v1752_v21  ;;  %v1631_v50 = vrot.slane %v1630_v52, 1  ;;  %v1665_v53 = vrot.slane %v1664_v8, 1  ;;  %v1703_v42 = vadd.f32 %v1702_v60, %v1701_v35 }
 0x19c   :  { %v1783_v10 = vmul.f32 %v3805_v58, %v4617_v38  ;;  %v1727_v36 = vrot.slane %v1726_v12, 2  ;;  %v1780_v21 = vadd.f32 %v1779_v14, %v1778_v44  ;;  %v1813_v59 = vmul.f32 %v3925_v40, %v4618_v24  ;;  %v3955_v58 = vld [vmem:[%s4123_s0 + $0x1b0] sm:$0x1]  ;;  %v4621_v44 = vld [vmem:[#allocation49_spill] sm:$0xff] }
 0x19d   :  { %v1814_v16 = vmul.f32 %v3930_v32, %v4619_v13  ;;  %v1672_v28 = vrot.slane %v1671_v11, 1  ;;  %v1697_v19 = vrot.slane %v1696_v51, 1  ;;  %v1734_v20 = vrot.slane %v1733_v31, 2  ;;  %v4620_v14 = vld [vmem:[#allocation7_spill] sm:$0xff]  ;;  %v4622_v13 = vld [vmem:[#allocation50_spill] sm:$0xff] }
 0x19e   :  { %v1816_v35 = vmul.f32 %v3939_v18, %v4620_v14  ;;  %v1756_v60 = vadd.f32 %v1755_v1, %v1754_v17  ;;  %v1782_v7 = vadd.f32 %v1781_v6, %v1780_v21  ;;  %v1785_v38 = vmul.f32 %v3812_v46, %v4621_v44  ;;  %v3968_v14 = vld [vmem:[%s4123_s0 + $0x208] sm:$0x1]  ;;  %v4624_v1 = vld [vmem:[#allocation9_spill] sm:$0xff] }
 0x19f   :  { %v1815_v24 = vadd.f32 %v1814_v16, %v1813_v59  ;;  %v1666_v48 = vadd.f32 %v1665_v53, %v1664_v8  ;;  %v1704_v57 = vrot.slane %v1703_v42, 1  ;;  %v1787_v29 = vmul.f32 %v3825_v63, %v4622_v13 }
 0x1a0   :  { %v1818_v5 = vmul.f32 %v3946_v41, %v4623_v4  ;;  %v1728_v26 = vadd.f32 %v1727_v36, %v1726_v12  ;;  %v1784_v3 = vadd.f32 %v1783_v10, %v1782_v7  ;;  %v1820_v46 = vmul.f32 %v3955_v58, %v4624_v1  ;;  %v3978_v12 = vld [vmem:[%s4123_s0 + $0x260] sm:$0x1] }
 0x1a1   :  { %v1817_v17 = vadd.f32 %v1816_v35, %v1815_v24  ;;  %v3973_v8 = vadd.f32 %v1624_v9, %v3898_v27  ;;  %v1673_v6 = vadd.f32 %v1672_v28, %v1671_v11  ;;  %v1698_v53 = vadd.f32 %v1697_v19, %v1696_v51  ;;  %v4625_v35 = vld [vmem:[#allocation10_spill] sm:$0xff]  ;;  %v4626_v27 = vld [vmem:[#allocation13_spill] sm:$0xff]  ;;  %v4629_v19 = vld [vmem:[#allocation15_spill] sm:$0xff] }
 0x1a2   :  { %v1735_v63 = vadd.f32 %v1734_v20, %v1733_v31  ;;  %v1757_v21 = vrot.slane %v1756_v60, 4  ;;  %v1763_v59 = vmul.f32 %v1756_v60, %v1756_v60  ;;  %v1786_v4 = vadd.f32 %v1785_v38, %v1784_v3  ;;  %v3990_v3 = vld [vmem:[%s4123_s0 + $0x2b8] sm:$0x1]  ;;  %v4005_v24 = vld [vmem:[%s4123_s0 + $0x310] sm:$0x1] }
 0x1a3   :  { %v1819_v10 = vadd.f32 %v1818_v5, %v1817_v17  ;;  %v3980_v36 = vadd.f32 %v1631_v50, %v1630_v52  ;;  %v1674_v16 = vadd.f32 %v1666_v48, %v3840_v33  ;;  %v1822_v9 = vmul.f32 %v3968_v14, %v4625_v35  ;;  %v4627_v52 = vld [vmem:[#allocation11_spill] sm:$0xff]  ;;  %v4628_v48 = vld [vmem:[#allocation14_spill] sm:$0xff]  ;;  %v4630_v17 = vld [vmem:[#allocation12_spill] sm:$0xff] }
 0x1a4   :  { %v1835_v11 = vmul.f32 %v3925_v40, %v4626_v27  ;;  %v1705_v31 = vadd.f32 %v1704_v57, %v1703_v42  ;;  %v1729_v51 = vrot.slane %v1728_v26, 1  ;;  %v1788_v28 = vadd.f32 %v1787_v29, %v1786_v4  ;;  %v4632_v35 = vld [vmem:[#allocation18_spill] sm:$0xff] }
 0x1a5   :  { %v1821_v38 = vadd.f32 %v1820_v46, %v1819_v10  ;;  %v1675_v5 = vadd.f32 %v1673_v6, %v3847_v23  ;;  %v1824_v33 = vmul.f32 %v3978_v12, %v4627_v52  ;;  %v1836_v50 = vmul.f32 %v3930_v32, %v4628_v48  ;;  %v4631_v6 = vld [vmem:[#allocation16_spill] sm:$0xff] }
 0x1a6   :  { %v1838_v20 = vmul.f32 %v3939_v18, %v4629_v19  ;;  %v4000_v57 = vadd.f32 %v1698_v53, %v3850_v0  ;;  %v1736_v29 = vrot.slane %v1735_v63, 1  ;;  %v1758_v42 = vadd.f32 %v1757_v21, %v1756_v60 }
 0x1a7   :  { %v1764_v7 = vrot.slane %v1763_v59, 4  ;;  %v1823_v23 = vadd.f32 %v1822_v9, %v1821_v38  ;;  %v1826_v1 = vmul.f32 %v3990_v3, %v4630_v17  ;;  %v1837_v46 = vadd.f32 %v1836_v50, %v1835_v11 }
 0x1a8   :  { %v1840_v4 = vmul.f32 %v3946_v41, %v4631_v6  ;;  %v4012_v10 = vadd.f32 %v1705_v31, %v3865_v39  ;;  %v1730_v0 = vadd.f32 %v1729_v51, %v1728_v26  ;;  %v1789_v53 = vrot.slane %v1788_v28, 4  ;;  %v4633_v26 = vld [vmem:[#allocation22_spill] sm:$0xff] }
 0x1a9   :  { %v1795_v60 = vmul.f32 %v1788_v28, %v1788_v28  ;;  %v1825_v21 = vadd.f32 %v1824_v33, %v1823_v23  ;;  %v1828_v27 = vmul.f32 %v4005_v24, %v4632_v35  ;;  %v1839_v52 = vadd.f32 %v1838_v20, %v1837_v46  ;;  %v4634_v33 = vld [vmem:[#allocation23_spill] sm:$0xff] }
 0x1aa   :  { %v1842_v9 = vmul.f32 %v3955_v58, %v4597_v37  ;;  %v4018_v38 = vadd.f32 %v1736_v29, %v1735_v63  ;;  %v1759_v11 = vrot.slane %v1758_v42, 2  ;;  %v1765_v48 = vadd.f32 %v1764_v7, %v1763_v59  ;;  %v4635_v63 = vld [vmem:[#allocation25_spill] sm:$0xff] }
 0x1ab   :  { %v1844_v50 = vmul.f32 %v3968_v14, %v4599_v15  ;;  %v1827_v39 = vadd.f32 %v1826_v1, %v1825_v21  ;;  %v1841_v31 = vadd.f32 %v1840_v4, %v1839_v52  ;;  %v1857_v51 = vmul.f32 %v3925_v40, %v4633_v26  ;;  %v4636_v15 = vld [vmem:[#allocation26_spill] sm:$0xff] }
 0x1ac   :  { %v1858_v19 = vmul.f32 %v3930_v32, %v4634_v33  ;;  %v1790_v23 = vadd.f32 %v1789_v53, %v1788_v28  ;;  %v1796_v20 = vrot.slane %v1795_v60, 4  ;;  %v1846_v37 = vmul.f32 %v3978_v12, %v4602_v56 }
 0x1ad   :  { %v1860_v29 = vmul.f32 %v3939_v18, %v4635_v63  ;;  %v1829_v59 = vadd.f32 %v1828_v27, %v1827_v39  ;;  %v1843_v7 = vadd.f32 %v1842_v9, %v1841_v31  ;;  %v1862_v1 = vmul.f32 %v3946_v41, %v4636_v15  ;;  %v4640_v15 = vld [vmem:[#allocation37_spill] sm:$0xff] }
 0x1ae   :  { %v1859_v17 = vadd.f32 %v1858_v19, %v1857_v51  ;;  %v1760_v46 = vadd.f32 %v1759_v11, %v1758_v42  ;;  %v1766_v6 = vrot.slane %v1765_v48, 2  ;;  %v1848_v4 = vmul.f32 %v3990_v3, %v4605_v61 }
 0x1af   :  { %v1864_v28 = vmul.f32 %v3955_v58, %v4529_v34  ;;  %v1831_v53 = vmul.f32 %v1829_v59, %v1829_v59  ;;  %v1833_v21 = vadd.f32 %v1829_v59, %v1674_v16  ;;  %v1845_v56 = vadd.f32 %v1844_v50, %v1843_v7  ;;  %v4639_v7 = vld [vmem:[#allocation43_spill] sm:$0xff] }
 0x1b0   :  { %v1861_v35 = vadd.f32 %v1860_v29, %v1859_v17  ;;  %v1738_v52 = vadd.f32 %v1730_v0, %v3872_v62  ;;  %v1791_v27 = vrot.slane %v1790_v23, 2  ;;  %v1797_v9 = vadd.f32 %v1796_v20, %v1795_v60  ;;  %v4637_v20 = vld [vmem:[#allocation41_spill] sm:$0xff] }
 0x1b1   :  { %v1850_v39 = vmul.f32 %v4005_v24, %v4606_v43  ;;  %v1834_v31 = vadd.f32 %v1831_v53, %v1675_v5  ;;  %v1847_v42 = vadd.f32 %v1846_v37, %v1845_v56  ;;  %v1866_v61 = vmul.f32 %v3968_v14, %v4530_v25  ;;  %1923 = vst [vmem:[%s4125_s2] sm:$0x1] %v1833_v21  ;;  %v4638_v37 = vld [vmem:[#allocation42_spill] sm:$0xff]  ;;  %v4643_v56 = vld [vmem:[#allocation45_spill] sm:$0xff] }
 0x1b2   :  { %v1863_v11 = vadd.f32 %v1862_v1, %v1861_v35  ;;  %v1761_v34 = vrot.slane %v1760_v46, 1  ;;  %v1767_v16 = vadd.f32 %v1766_v6, %v1765_v48  ;;  %v1879_v62 = vmul.f32 %v3925_v40, %v4532_v45  ;;  %v4641_v6 = vld [vmem:[#allocation44_spill] sm:$0xff]  ;;  %v4642_v53 = vld [vmem:[#allocation38_spill] sm:$0xff] }
 0x1b3   :  { %v1880_v0 = vmul.f32 %v3930_v32, %v4533_v49  ;;  %v1849_v60 = vadd.f32 %v1848_v4, %v1847_v42  ;;  %v1868_v5 = vmul.f32 %v3978_v12, %v4531_v22  ;;  %v1882_v25 = vmul.f32 %v3939_v18, %v4608_v47  ;;  %1924 = vst [vmem:[%s4126_s3] sm:$0x1] %v1834_v31  ;;  %v4645_v42 = vld [vmem:[#allocation39_spill] sm:$0xff] }
 0x1b4   :  { %v1865_v43 = vadd.f32 %v1864_v28, %v1863_v11  ;;  %v1792_v50 = vadd.f32 %v1791_v27, %v1790_v23  ;;  %v1798_v48 = vrot.slane %v1797_v9, 2  ;;  %v1884_v45 = vmul.f32 %v3946_v41, %v4572_v2  ;;  %v4644_v27 = vld [vmem:[#allocation54_spill] sm:$0xff] }
 0x1b5   :  { %v1881_v26 = vadd.f32 %v1880_v0, %v1879_v62  ;;  %v1851_v51 = vadd.f32 %v1850_v39, %v1849_v60  ;;  %v1870_v33 = vmul.f32 %v3990_v3, %v4384_v54  ;;  %v1872_v22 = vmul.f32 %v4005_v24, %v4345_v55  ;;  %v4646_v62 = vld [vmem:[#allocation46_spill] sm:$0xff] }
 0x1b6   :  { %v1867_v49 = vadd.f32 %v1866_v61, %v1865_v43  ;;  %v1886_v47 = vmul.f32 %v3955_v58, %v4312_v30  ;;  %v1901_v23 = vmul.f32 %v3925_v40, %v4637_v20  ;;  %v1902_v63 = vmul.f32 %v3930_v32, %v4638_v37 }
 0x1b7   :  { %v1883_v19 = vadd.f32 %v1882_v25, %v1881_v26  ;;  %v1853_v29 = vmul.f32 %v1851_v51, %v1851_v51  ;;  %v1855_v2 = vadd.f32 %v1851_v51, %v4000_v57  ;;  %v1904_v54 = vmul.f32 %v3939_v18, %v4639_v7 }
 0x1b8   :  { %v1869_v59 = vadd.f32 %v1868_v5, %v1867_v49  ;;  %v1888_v55 = vmul.f32 %v3968_v14, %v4640_v15  ;;  %v1903_v1 = vadd.f32 %v1902_v63, %v1901_v23  ;;  %v1906_v30 = vmul.f32 %v3946_v41, %v4641_v6  ;;  %v4650_v49 = vld [vmem:[#allocation36_spill] sm:$0xff] }
 0x1b9   :  { %v1885_v17 = vadd.f32 %v1884_v45, %v1883_v19  ;;  %v1768_v4 = vrot.slane %v1767_v16, 1  ;;  %v1799_v40 = vadd.f32 %v1798_v48, %v1797_v9  ;;  %v1856_v28 = vadd.f32 %v1853_v29, %v4012_v10  ;;  %1925 = vst [vmem:[%s4125_s2 + $0x1] sm:$0x1] %v1855_v2  ;;  %v4648_v48 = vld [vmem:[#allocation48_spill] sm:$0xff]  ;;  %v4649_v45 = vld [vmem:[#allocation30_spill] sm:$0xff] }
 0x1ba   :  { %v1871_v32 = vadd.f32 %v1870_v33, %v1869_v59  ;;  %v1890_v18 = vmul.f32 %v3978_v12, %v4642_v53  ;;  %v1905_v21 = vadd.f32 %v1904_v54, %v1903_v1  ;;  %v1908_v35 = vmul.f32 %v3955_v58, %v4643_v56 }
 0x1bb   :  { %v1887_v57 = vadd.f32 %v1886_v47, %v1885_v17  ;;  %v1739_v41 = vadd.f32 %v4018_v38, %v4644_v27  ;;  %v1762_v39 = vadd.f32 %v1761_v34, %v1760_v46  ;;  %v1793_v9 = vrot.slane %v1792_v50, 1  ;;  %1926 = vst [vmem:[%s4126_s3 + $0x1] sm:$0x1] %v1856_v28  ;;  %v4647_v46 = vld [vmem:[#allocation40_spill] sm:$0xff] }
 0x1bc   :  { %v1873_v31 = vadd.f32 %v1872_v22, %v1871_v32  ;;  %v1892_v11 = vmul.f32 %v3990_v3, %v4645_v42  ;;  %v1907_v61 = vadd.f32 %v1906_v30, %v1905_v21  ;;  %v1910_v0 = vmul.f32 %v3968_v14, %v4646_v62  ;;  %v4651_v47 = vld [vmem:[#allocation32_spill] sm:$0xff] }
 0x1bd   :  { %v1889_v10 = vadd.f32 %v1888_v55, %v1887_v57  ;;  %v1769_v60 = vadd.f32 %v1768_v4, %v1767_v16  ;;  %v1800_v58 = vrot.slane %v1799_v40, 1  ;;  %v1894_v34 = vmul.f32 %v4005_v24, %v4647_v46 }
 0x1be   :  { %v1875_v43 = vmul.f32 %v1873_v31, %v1873_v31  ;;  %v1877_v5 = vadd.f32 %v1873_v31, %v1738_v52  ;;  %v1909_v25 = vadd.f32 %v1908_v35, %v1907_v61  ;;  %v1912_v26 = vmul.f32 %v3978_v12, %v4648_v48  ;;  %v4652_v12 = vld [vmem:[#allocation47_spill] sm:$0xff] }
 0x1bf   :  { %v1891_v38 = vadd.f32 %v1890_v18, %v1889_v10  ;;  %v1633_v51 = vadd.f32 %v3973_v8, %v4649_v45  ;;  %v1770_v33 = vadd.f32 %v1762_v39, %v4650_v49  ;;  %v1794_v14 = vadd.f32 %v1793_v9, %v1792_v50 }
 0x1c0   :  { %v1878_v22 = vadd.f32 %v1875_v43, %v1739_v41  ;;  %1927 = vst [vmem:[%s4125_s2 + $0x2] sm:$0x1] %v1877_v5  ;;  %v1911_v16 = vadd.f32 %v1910_v0, %v1909_v25  ;;  %v1914_v19 = vmul.f32 %v3990_v3, %v4621_v44  ;;  %v1634_v20 = vadd.f32 %v3980_v36, %v4651_v47 }
 0x1c1   :  { %v1893_v52 = vadd.f32 %v1892_v11, %v1891_v38  ;;  %v1771_v23 = vadd.f32 %v1769_v60, %v4652_v12  ;;  %v1801_v8 = vadd.f32 %v1800_v58, %v1799_v40  ;;  %v1916_v50 = vmul.f32 %v4005_v24, %v4622_v13 }
 0x1c2   :  { %1928 = vst [vmem:[%s4126_s3 + $0x2] sm:$0x1] %v1878_v22  ;;  %v1913_v63 = vadd.f32 %v1912_v26, %v1911_v16  ;;  %v1802_v29 = vadd.f32 %v1794_v14, %v1633_v51 }
 0x1c3   :  { %v1895_v37 = vadd.f32 %v1894_v34, %v1893_v52  ;;  %v1803_v44 = vadd.f32 %v1801_v8, %v1634_v20 }
 0x1c4   :  { %v1915_v7 = vadd.f32 %v1914_v19, %v1913_v63 }
 0x1c5   :  { %v1897_v2 = vmul.f32 %v1895_v37, %v1895_v37  ;;  %v1899_v59 = vadd.f32 %v1895_v37, %v1770_v33 }
 0x1c6   :  { %v1917_v54 = vadd.f32 %v1916_v50, %v1915_v7 }
 0x1c7   :  { %v1900_v3 = vadd.f32 %v1897_v2, %v1771_v23  ;;  %1929 = vst [vmem:[%s4125_s2 + $0x3] sm:$0x1] %v1899_v59 }
 0x1c8   :  { %v1919_v36 = vmul.f32 %v1917_v54, %v1917_v54  ;;  %v1921_v17 = vadd.f32 %v1917_v54, %v1802_v29 }
 0x1c9   :  { %1930 = vst [vmem:[%s4126_s3 + $0x3] sm:$0x1] %v1900_v3 }
 0x1ca   :  { %v1922_v15 = vadd.f32 %v1919_v36, %v1803_v44  ;;  %1931 = vst [vmem:[%s4125_s2 + $0x4] sm:$0x1] %v1921_v17 }
 0x1cc   :  { %1932 = vst [vmem:[%s4126_s3 + $0x4] sm:$0x1] %v1922_v15 }
 0x1cd   :  { %1941 = vsyncpa [#allocation3], 1 }

</bundles_post_ra>
